<compile_context>
chip_gen: v6e
topology: v6e:2x2x1
jax: 0.10.0
libtpu: 0.0.40
codegen_flags: <defaults>
</compile_context>

<pallas_src>
import functools

import jax
import jax.numpy as jnp
from jax.experimental import pallas as pl
from jax.experimental.pallas import tpu as pltpu

IMG_SIZE = 28
IN_DIM = IMG_SIZE * IMG_SIZE          # 784
DIMS = (IN_DIM, 1024, 512, 256, 1)    # layer sizes


def _leaky_relu(x, slope=0.2):
    return jnp.where(x > 0, x, slope * x)


def _round_up(x, m):
    return (x + m - 1) // m * m


def critic_kernel(x_ref,
                  w1_ref, b1_ref,
                  w2_ref, b2_ref,
                  w3_ref, b3_ref,
                  w4_ref, b4_ref,
                  o_ref):
    """Fused 4-layer MLP for one batch tile; weights stay resident in VMEM.

    Layers 1-3 run on the MXU in the weights' dtype (bf16 or f32) with f32
    accumulation; bias adds and LeakyReLU stay in f32 on the VPU.  The final
    256->1 layer is a per-row dot product done as a VPU multiply + cross-lane
    reduce (XLU), so only a thin (tile_b, 1) f32 column is written back.
    """
    cdt = w1_ref.dtype

    h = jnp.dot(x_ref[...], w1_ref[...], preferred_element_type=jnp.float32)
    h = _leaky_relu(h + b1_ref[...])                                  # (TB, 1024)

    h = jnp.dot(h.astype(cdt), w2_ref[...], preferred_element_type=jnp.float32)
    h = _leaky_relu(h + b2_ref[...])                                  # (TB, 512)

    h = jnp.dot(h.astype(cdt), w3_ref[...], preferred_element_type=jnp.float32)
    h = _leaky_relu(h + b3_ref[...])                                  # (TB, 256)

    # Final 256 -> 1 layer: row-wise dot product on VPU + lane reduce.
    score = jnp.sum(h * w4_ref[...], axis=-1, keepdims=True) + b4_ref[...]
    o_ref[...] = score.astype(o_ref.dtype)                            # (TB, 1)


@functools.partial(
    jax.jit,
    static_argnames=("tile_b", "compute_dtype", "single_buffer_weights"))
def _critic_forward_impl(img, params, *, tile_b, compute_dtype,
                         single_buffer_weights):
    x = img.reshape(-1, IN_DIM)                       # same as img.view(-1, 784)
    B = x.shape[0]
    (w1, b1), (w2, b2), (w3, b3), (w4, b4) = params
    cdt = jnp.dtype(compute_dtype)

    # ---- batch tiling (balanced across v7x's 2 TensorCores for small B) ----
    if tile_b is None:
        tile_b = 512 if B >= 1024 else 256
    tile_b = max(16, _round_up(int(tile_b), 16))      # sublane / bf16-pack safe
    if B < 2 * tile_b:
        tb = max(16, _round_up(pl.cdiv(B, 2), 16))    # two balanced tiles
    else:
        tb = tile_b
    Bp = _round_up(B, tb)
    grid = (Bp // tb,)

    # ---- operand prep: one fused cast (+ zero batch pad); no K padding ------
    xq = x.astype(cdt)
    if Bp != B:
        xq = jnp.pad(xq, ((0, Bp - B), (0, 0)))
    w1q, w2q, w3q = (w.astype(cdt) for w in (w1, w2, w3))
    b1r, b2r, b3r = (b.reshape(1, -1).astype(jnp.float32) for b in (b1, b2, b3))
    w4r = w4.reshape(1, -1).astype(jnp.float32)       # (1, 256) row, stays f32
    b4r = b4.reshape(1, 1).astype(jnp.float32)

    def const_spec(arr):
        # Whole-array block, identical for every batch tile (weights / biases).
        if single_buffer_weights:
            return pl.BlockSpec(arr.shape, lambda i: (0, 0),
                                pipeline_mode=pl.Buffered(1))
        return pl.BlockSpec(arr.shape, lambda i: (0, 0))

    # ---- VMEM budget / cost hints ------------------------------------------
    weight_bytes = sum(int(a.size) * a.dtype.itemsize
                       for a in (w1q, w2q, w3q, w4r, b1r, b2r, b3r, b4r))
    act_bytes = (2 * tb * IN_DIM * cdt.itemsize           # double-buffered x tile
                 + 2 * tb * 4                             # double-buffered out tile
                 + tb * (1024 + 512 + 256) * (4 + cdt.itemsize))  # intermediates
    # Budget weights at 2 buffers regardless (harmless headroom if they end up
    # single-buffered); stays well under v7x's 64 MiB-per-TC VMEM.
    vmem_limit = int(1.5 * (2 * weight_bytes + act_bytes)) + 6 * 1024 * 1024

    flops = 2 * Bp * (IN_DIM * 1024 + 1024 * 512 + 512 * 256 + 256)
    bytes_accessed = int(xq.size) * cdt.itemsize + weight_bytes + Bp * 4

    out = pl.pallas_call(
        critic_kernel,
        out_shape=jax.ShapeDtypeStruct((Bp, 1), jnp.float32),
        grid_spec=pltpu.PrefetchScalarGridSpec(
            num_scalar_prefetch=0,
            grid=grid,
            in_specs=[
                pl.BlockSpec((tb, IN_DIM), lambda i: (i, 0)),   # x batch tile
                const_spec(w1q), const_spec(b1r),
                const_spec(w2q), const_spec(b2r),
                const_spec(w3q), const_spec(b3r),
                const_spec(w4r), const_spec(b4r),
            ],
            out_specs=pl.BlockSpec((tb, 1), lambda i: (i, 0)),
        ),
        compiler_params=pltpu.CompilerParams(
            dimension_semantics=("parallel",),
            vmem_limit_bytes=vmem_limit,
        ),
        cost_estimate=pl.CostEstimate(
            flops=flops, transcendentals=0, bytes_accessed=bytes_accessed),
    )(xq, w1q, b1r, w2q, b2r, w3q, b3r, w4r, b4r)

    return out[:B]                    # drop padded batch rows; already (B, 1)


_SINGLE_BUFFER_WEIGHTS = None         # feature-detected on the first call


def critic_forward(img, params, tile_b=None, compute_dtype=jnp.bfloat16):
    """img: anything flattening to (B, 784) (e.g. (B, 1, 28, 28) NCHW).

    Returns (B, 1) critic scores.

    tile_b: batch tile; None => auto (512 for B >= 1024, else 256 — fine on
      v5e/v6e/v7x; for B < 2*tile_b the batch is split into two balanced tiles
      so both v7x TensorCores get work).
    compute_dtype: MXU input dtype.  bf16 (default) is the fast path on all
      generations; pass jnp.float32 for near-exact numerics.
    """
    global _SINGLE_BUFFER_WEIGHTS
    cdt = jnp.dtype(compute_dtype)
    if _SINGLE_BUFFER_WEIGHTS is None:
        # Feature-detect pipeline_mode=pl.Buffered(1): single-buffers the
        # grid-invariant weights (halves resident weight VMEM at zero
        # throughput cost).  jax versions that reject it fall back to the
        # default double-buffered constant BlockSpecs.
        try:
            out = _critic_forward_impl(img, params, tile_b=tile_b,
                                       compute_dtype=cdt,
                                       single_buffer_weights=True)
            _SINGLE_BUFFER_WEIGHTS = True
            return out
        except Exception:
            _SINGLE_BUFFER_WEIGHTS = False
    return _critic_forward_impl(img, params, tile_b=tile_b, compute_dtype=cdt,
                                single_buffer_weights=_SINGLE_BUFFER_WEIGHTS)


def init_params(key):
    """Deterministic init mimicking nn.Linear default: U(-1/sqrt(in), 1/sqrt(in))."""
    params = []
    for i in range(len(DIMS) - 1):
        fan_in, fan_out = DIMS[i], DIMS[i + 1]
        key, kw, kb = jax.random.split(key, 3)
        bound = 1.0 / jnp.sqrt(jnp.float32(fan_in))
        w = jax.random.uniform(kw, (fan_in, fan_out), jnp.float32, -bound, bound)
        b = jax.random.uniform(kb, (fan_out,), jnp.float32, -bound, bound)
        params.append((w, b))
    return params


def critic_forward_ref(img, params):
    """Plain-JAX reference for correctness checking."""
    x = img.reshape(-1, IN_DIM).astype(jnp.float32)
    (w1, b1), (w2, b2), (w3, b3), (w4, b4) = params
    h = _leaky_relu(x @ w1 + b1)
    h = _leaky_relu(h @ w2 + b2)
    h = _leaky_relu(h @ w3 + b3)
    return h @ w4 + b4


if __name__ == "__main__":
    key = jax.random.PRNGKey(0)
    k_img, k_par, k_big = jax.random.split(key, 3)
    params = init_params(k_par)

    # Small smoke test: B=4, single 16-row tile.
    img = jax.random.normal(k_img, (4, 1, IMG_SIZE, IMG_SIZE), jnp.float32)
    ref = critic_forward_ref(img, params)

    out = jax.block_until_ready(critic_forward(img, params))          # bf16 MXU
    assert out.shape == (4, 1), out.shape
    assert jnp.allclose(out, ref, atol=1e-1, rtol=1e-1), (
        float(jnp.max(jnp.abs(out - ref))))

    out_f32 = jax.block_until_ready(
        critic_forward(img, params, compute_dtype=jnp.float32))       # f32 MXU
    assert jnp.allclose(out_f32, ref, atol=5e-4, rtol=5e-4), (
        float(jnp.max(jnp.abs(out_f32 - ref))))

    # Larger, non-multiple batch: exercises the balanced two-tile grid (both
    # TensorCores on v7x), batch zero-padding and the multi-tile pipeline.
    img_big = jax.random.normal(k_big, (300, 1, IMG_SIZE, IMG_SIZE), jnp.float32)
    ref_big = critic_forward_ref(img_big, params)

    out_big = jax.block_until_ready(critic_forward(img_big, params))  # bf16 MXU
    assert out_big.shape == (300, 1), out_big.shape
    assert jnp.allclose(out_big, ref_big, atol=1e-1, rtol=1e-1), (
        float(jnp.max(jnp.abs(out_big - ref_big))))

    out_big_f32 = jax.block_until_ready(
        critic_forward(img_big, params, compute_dtype=jnp.float32))
    assert jnp.allclose(out_big_f32, ref_big, atol=5e-4, rtol=5e-4), (
        float(jnp.max(jnp.abs(out_big_f32 - ref_big))))

    print("KERNEL_OK")
</pallas_src>

<mosaic_0001>
module attributes {stable_mosaic.version = 11 : i64} {
  func.func @critic_kernel(%arg0: i32, %arg1: memref<16x784xbf16, #tpu.memory_space<vmem>>, %arg2: memref<784x1024xbf16, #tpu.memory_space<vmem>>, %arg3: memref<1x1024xf32, #tpu.memory_space<vmem>>, %arg4: memref<1024x512xbf16, #tpu.memory_space<vmem>>, %arg5: memref<1x512xf32, #tpu.memory_space<vmem>>, %arg6: memref<512x256xbf16, #tpu.memory_space<vmem>>, %arg7: memref<1x256xf32, #tpu.memory_space<vmem>>, %arg8: memref<1x256xf32, #tpu.memory_space<vmem>>, %arg9: memref<1x1xf32, #tpu.memory_space<vmem>>, %arg10: memref<16x1xf32, #tpu.memory_space<vmem>>) attributes {dimension_semantics = [#tpu.dimension_semantics<parallel>], iteration_bounds = array<i64: 1>, scalar_prefetch = 0 : i64, scratch_operands = 0 : i64, tpu.core_type = #tpu.core_type<tc>, window_params = [{transform_indices = @transform_0, window_bounds = array<i64: 16, 784>}, {pipeline_mode = #tpu.pipeline_mode<synchronous>, transform_indices = @transform_1, window_bounds = array<i64: 784, 1024>}, {pipeline_mode = #tpu.pipeline_mode<synchronous>, transform_indices = @transform_2, window_bounds = array<i64: 1, 1024>}, {pipeline_mode = #tpu.pipeline_mode<synchronous>, transform_indices = @transform_3, window_bounds = array<i64: 1024, 512>}, {pipeline_mode = #tpu.pipeline_mode<synchronous>, transform_indices = @transform_4, window_bounds = array<i64: 1, 512>}, {pipeline_mode = #tpu.pipeline_mode<synchronous>, transform_indices = @transform_5, window_bounds = array<i64: 512, 256>}, {pipeline_mode = #tpu.pipeline_mode<synchronous>, transform_indices = @transform_6, window_bounds = array<i64: 1, 256>}, {pipeline_mode = #tpu.pipeline_mode<synchronous>, transform_indices = @transform_7, window_bounds = array<i64: 1, 256>}, {pipeline_mode = #tpu.pipeline_mode<synchronous>, transform_indices = @transform_8, window_bounds = array<i64: 1, 1>}, {transform_indices = @transform_9, window_bounds = array<i64: 16, 1>}]} {
    %c0 = arith.constant 0 : index
    %c0_0 = arith.constant 0 : index
    %0 = vector.load %arg1[%c0, %c0_0] : memref<16x784xbf16, #tpu.memory_space<vmem>>, vector<16x784xbf16>
    %c0_1 = arith.constant 0 : index
    %c0_2 = arith.constant 0 : index
    %1 = vector.load %arg2[%c0_1, %c0_2] : memref<784x1024xbf16, #tpu.memory_space<vmem>>, vector<784x1024xbf16>
    %cst = arith.constant dense<0.000000e+00> : vector<16x1024xf32>
    %2 = tpu.matmul %0, %1, %cst {dimension_numbers = #tpu.dot_dimension_numbers<[1], [0], [0], [1], [0, 0, 1, 1], [], []>} : vector<16x784xbf16>, vector<784x1024xbf16>, vector<16x1024xf32> -> vector<16x1024xf32>
    %c0_3 = arith.constant 0 : index
    %c0_4 = arith.constant 0 : index
    %3 = vector.load %arg3[%c0_3, %c0_4] : memref<1x1024xf32, #tpu.memory_space<vmem>>, vector<1x1024xf32>
    %4 = vector.broadcast %3 : vector<1x1024xf32> to vector<16x1024xf32>
    %5 = arith.addf %2, %4 : vector<16x1024xf32>
    %cst_5 = arith.constant 0.000000e+00 : f32
    %6 = vector.broadcast %cst_5 : f32 to vector<16x1024xf32>
    %7 = arith.cmpf ogt, %5, %6 : vector<16x1024xf32>
    %cst_6 = arith.constant 2.000000e-01 : f32
    %8 = vector.broadcast %cst_6 : f32 to vector<16x1024xf32>
    %9 = arith.mulf %8, %5 : vector<16x1024xf32>
    %10 = arith.select %7, %5, %9 : vector<16x1024xi1>, vector<16x1024xf32>
    %11 = arith.truncf %10 : vector<16x1024xf32> to vector<16x1024xbf16>
    %c0_7 = arith.constant 0 : index
    %c0_8 = arith.constant 0 : index
    %12 = vector.load %arg4[%c0_7, %c0_8] : memref<1024x512xbf16, #tpu.memory_space<vmem>>, vector<1024x512xbf16>
    %cst_9 = arith.constant dense<0.000000e+00> : vector<16x512xf32>
    %13 = tpu.matmul %11, %12, %cst_9 {dimension_numbers = #tpu.dot_dimension_numbers<[1], [0], [0], [1], [0, 0, 1, 1], [], []>} : vector<16x1024xbf16>, vector<1024x512xbf16>, vector<16x512xf32> -> vector<16x512xf32>
    %c0_10 = arith.constant 0 : index
    %c0_11 = arith.constant 0 : index
    %14 = vector.load %arg5[%c0_10, %c0_11] : memref<1x512xf32, #tpu.memory_space<vmem>>, vector<1x512xf32>
    %15 = vector.broadcast %14 : vector<1x512xf32> to vector<16x512xf32>
    %16 = arith.addf %13, %15 : vector<16x512xf32>
    %cst_12 = arith.constant 0.000000e+00 : f32
    %17 = vector.broadcast %cst_12 : f32 to vector<16x512xf32>
    %18 = arith.cmpf ogt, %16, %17 : vector<16x512xf32>
    %cst_13 = arith.constant 2.000000e-01 : f32
    %19 = vector.broadcast %cst_13 : f32 to vector<16x512xf32>
    %20 = arith.mulf %19, %16 : vector<16x512xf32>
    %21 = arith.select %18, %16, %20 : vector<16x512xi1>, vector<16x512xf32>
    %22 = arith.truncf %21 : vector<16x512xf32> to vector<16x512xbf16>
    %c0_14 = arith.constant 0 : index
    %c0_15 = arith.constant 0 : index
    %23 = vector.load %arg6[%c0_14, %c0_15] : memref<512x256xbf16, #tpu.memory_space<vmem>>, vector<512x256xbf16>
    %cst_16 = arith.constant dense<0.000000e+00> : vector<16x256xf32>
    %24 = tpu.matmul %22, %23, %cst_16 {dimension_numbers = #tpu.dot_dimension_numbers<[1], [0], [0], [1], [0, 0, 1, 1], [], []>} : vector<16x512xbf16>, vector<512x256xbf16>, vector<16x256xf32> -> vector<16x256xf32>
    %c0_17 = arith.constant 0 : index
    %c0_18 = arith.constant 0 : index
    %25 = vector.load %arg7[%c0_17, %c0_18] : memref<1x256xf32, #tpu.memory_space<vmem>>, vector<1x256xf32>
    %26 = vector.broadcast %25 : vector<1x256xf32> to vector<16x256xf32>
    %27 = arith.addf %24, %26 : vector<16x256xf32>
    %cst_19 = arith.constant 0.000000e+00 : f32
    %28 = vector.broadcast %cst_19 : f32 to vector<16x256xf32>
    %29 = arith.cmpf ogt, %27, %28 : vector<16x256xf32>
    %cst_20 = arith.constant 2.000000e-01 : f32
    %30 = vector.broadcast %cst_20 : f32 to vector<16x256xf32>
    %31 = arith.mulf %30, %27 : vector<16x256xf32>
    %32 = arith.select %29, %27, %31 : vector<16x256xi1>, vector<16x256xf32>
    %c0_21 = arith.constant 0 : index
    %c0_22 = arith.constant 0 : index
    %33 = vector.load %arg8[%c0_21, %c0_22] : memref<1x256xf32, #tpu.memory_space<vmem>>, vector<1x256xf32>
    %34 = vector.broadcast %33 : vector<1x256xf32> to vector<16x256xf32>
    %35 = arith.mulf %32, %34 : vector<16x256xf32>
    %cst_23 = arith.constant dense<0.000000e+00> : vector<16xf32>
    %36 = vector.multi_reduction <add>, %35, %cst_23 [1] : vector<16x256xf32> to vector<16xf32>
    %37 = vector.shape_cast %36 : vector<16xf32> to vector<16x1xf32>
    %c0_24 = arith.constant 0 : index
    %c0_25 = arith.constant 0 : index
    %38 = vector.load %arg9[%c0_24, %c0_25] : memref<1x1xf32, #tpu.memory_space<vmem>>, vector<1x1xf32>
    %39 = vector.broadcast %38 : vector<1x1xf32> to vector<16x1xf32>
    %40 = arith.addf %37, %39 : vector<16x1xf32>
    %c0_26 = arith.constant 0 : index
    %c0_27 = arith.constant 0 : index
    %41 = vector.load %arg10[%c0_26, %c0_27] : memref<16x1xf32, #tpu.memory_space<vmem>>, vector<16x1xf32>
    tpu.vector_store %arg10[%c0_26, %c0_27], %40 {strides = array<i32>} : memref<16x1xf32, #tpu.memory_space<vmem>>, vector<16x1xf32>,
    return
  }
  func.func @transform_0(%arg0: i32) -> (i32, i32) {
    %c0_i32 = arith.constant 0 : i32
    %c0_i32_0 = arith.constant 0 : i32
    return %arg0, %c0_i32 : i32, i32
  }
  func.func @transform_1(%arg0: i32) -> (i32, i32) {
    %c0_i32 = arith.constant 0 : i32
    %c0_i32_0 = arith.constant 0 : i32
    %c0_i32_1 = arith.constant 0 : i32
    return %c0_i32, %c0_i32_0 : i32, i32
  }
  func.func @transform_2(%arg0: i32) -> (i32, i32) {
    %c0_i32 = arith.constant 0 : i32
    %c0_i32_0 = arith.constant 0 : i32
    %c0_i32_1 = arith.constant 0 : i32
    return %c0_i32, %c0_i32_0 : i32, i32
  }
  func.func @transform_3(%arg0: i32) -> (i32, i32) {
    %c0_i32 = arith.constant 0 : i32
    %c0_i32_0 = arith.constant 0 : i32
    %c0_i32_1 = arith.constant 0 : i32
    return %c0_i32, %c0_i32_0 : i32, i32
  }
  func.func @transform_4(%arg0: i32) -> (i32, i32) {
    %c0_i32 = arith.constant 0 : i32
    %c0_i32_0 = arith.constant 0 : i32
    %c0_i32_1 = arith.constant 0 : i32
    return %c0_i32, %c0_i32_0 : i32, i32
  }
  func.func @transform_5(%arg0: i32) -> (i32, i32) {
    %c0_i32 = arith.constant 0 : i32
    %c0_i32_0 = arith.constant 0 : i32
    %c0_i32_1 = arith.constant 0 : i32
    return %c0_i32, %c0_i32_0 : i32, i32
  }
  func.func @transform_6(%arg0: i32) -> (i32, i32) {
    %c0_i32 = arith.constant 0 : i32
    %c0_i32_0 = arith.constant 0 : i32
    %c0_i32_1 = arith.constant 0 : i32
    return %c0_i32, %c0_i32_0 : i32, i32
  }
  func.func @transform_7(%arg0: i32) -> (i32, i32) {
    %c0_i32 = arith.constant 0 : i32
    %c0_i32_0 = arith.constant 0 : i32
    %c0_i32_1 = arith.constant 0 : i32
    return %c0_i32, %c0_i32_0 : i32, i32
  }
  func.func @transform_8(%arg0: i32) -> (i32, i32) {
    %c0_i32 = arith.constant 0 : i32
    %c0_i32_0 = arith.constant 0 : i32
    %c0_i32_1 = arith.constant 0 : i32
    return %c0_i32, %c0_i32_0 : i32, i32
  }
  func.func @transform_9(%arg0: i32) -> (i32, i32) {
    %c0_i32 = arith.constant 0 : i32
    %c0_i32_0 = arith.constant 0 : i32
    return %arg0, %c0_i32 : i32, i32
  }
}

module attributes {stable_mosaic.version = 11 : i64} {
  func.func @critic_kernel(%arg0: i32, %arg1: memref<16x784xbf16, #tpu.memory_space<vmem>>, %arg2: memref<784x1024xbf16, #tpu.memory_space<vmem>>, %arg3: memref<1x1024xf32, #tpu.memory_space<vmem>>, %arg4: memref<1024x512xbf16, #tpu.memory_space<vmem>>, %arg5: memref<1x512xf32, #tpu.memory_space<vmem>>, %arg6: memref<512x256xbf16, #tpu.memory_space<vmem>>, %arg7: memref<1x256xf32, #tpu.memory_space<vmem>>, %arg8: memref<1x256xf32, #tpu.memory_space<vmem>>, %arg9: memref<1x1xf32, #tpu.memory_space<vmem>>, %arg10: memref<16x1xf32, #tpu.memory_space<vmem>>) attributes {dimension_semantics = [#tpu.dimension_semantics<parallel>], iteration_bounds = array<i64: 1>, scalar_prefetch = 0 : i64, scratch_operands = 0 : i64, tpu.core_type = #tpu.core_type<tc>, window_params = [{transform_indices = @transform_0, window_bounds = array<i64: 16, 784>}, {pipeline_mode = #tpu.pipeline_mode<synchronous>, transform_indices = @transform_1, window_bounds = array<i64: 784, 1024>}, {pipeline_mode = #tpu.pipeline_mode<synchronous>, transform_indices = @transform_2, window_bounds = array<i64: 1, 1024>}, {pipeline_mode = #tpu.pipeline_mode<synchronous>, transform_indices = @transform_3, window_bounds = array<i64: 1024, 512>}, {pipeline_mode = #tpu.pipeline_mode<synchronous>, transform_indices = @transform_4, window_bounds = array<i64: 1, 512>}, {pipeline_mode = #tpu.pipeline_mode<synchronous>, transform_indices = @transform_5, window_bounds = array<i64: 512, 256>}, {pipeline_mode = #tpu.pipeline_mode<synchronous>, transform_indices = @transform_6, window_bounds = array<i64: 1, 256>}, {pipeline_mode = #tpu.pipeline_mode<synchronous>, transform_indices = @transform_7, window_bounds = array<i64: 1, 256>}, {pipeline_mode = #tpu.pipeline_mode<synchronous>, transform_indices = @transform_8, window_bounds = array<i64: 1, 1>}, {transform_indices = @transform_9, window_bounds = array<i64: 16, 1>}]} {
    %c0 = arith.constant 0 : index
    %c0_0 = arith.constant 0 : index
    %0 = vector.load %arg1[%c0, %c0_0] : memref<16x784xbf16, #tpu.memory_space<vmem>>, vector<16x784xbf16>
    %c0_1 = arith.constant 0 : index
    %c0_2 = arith.constant 0 : index
    %1 = vector.load %arg2[%c0_1, %c0_2] : memref<784x1024xbf16, #tpu.memory_space<vmem>>, vector<784x1024xbf16>
    %cst = arith.constant dense<0.000000e+00> : vector<16x1024xf32>
    %2 = tpu.matmul %0, %1, %cst {dimension_numbers = #tpu.dot_dimension_numbers<[1], [0], [0], [1], [0, 0, 1, 1], [], []>} : vector<16x784xbf16>, vector<784x1024xbf16>, vector<16x1024xf32> -> vector<16x1024xf32>
    %c0_3 = arith.constant 0 : index
    %c0_4 = arith.constant 0 : index
    %3 = vector.load %arg3[%c0_3, %c0_4] : memref<1x1024xf32, #tpu.memory_space<vmem>>, vector<1x1024xf32>
    %4 = vector.broadcast %3 : vector<1x1024xf32> to vector<16x1024xf32>
    %5 = arith.addf %2, %4 : vector<16x1024xf32>
    %cst_5 = arith.constant 0.000000e+00 : f32
    %6 = vector.broadcast %cst_5 : f32 to vector<16x1024xf32>
    %7 = arith.cmpf ogt, %5, %6 : vector<16x1024xf32>
    %cst_6 = arith.constant 2.000000e-01 : f32
    %8 = vector.broadcast %cst_6 : f32 to vector<16x1024xf32>
    %9 = arith.mulf %8, %5 : vector<16x1024xf32>
    %10 = arith.select %7, %5, %9 : vector<16x1024xi1>, vector<16x1024xf32>
    %11 = arith.truncf %10 : vector<16x1024xf32> to vector<16x1024xbf16>
    %c0_7 = arith.constant 0 : index
    %c0_8 = arith.constant 0 : index
    %12 = vector.load %arg4[%c0_7, %c0_8] : memref<1024x512xbf16, #tpu.memory_space<vmem>>, vector<1024x512xbf16>
    %cst_9 = arith.constant dense<0.000000e+00> : vector<16x512xf32>
    %13 = tpu.matmul %11, %12, %cst_9 {dimension_numbers = #tpu.dot_dimension_numbers<[1], [0], [0], [1], [0, 0, 1, 1], [], []>} : vector<16x1024xbf16>, vector<1024x512xbf16>, vector<16x512xf32> -> vector<16x512xf32>
    %c0_10 = arith.constant 0 : index
    %c0_11 = arith.constant 0 : index
    %14 = vector.load %arg5[%c0_10, %c0_11] : memref<1x512xf32, #tpu.memory_space<vmem>>, vector<1x512xf32>
    %15 = vector.broadcast %14 : vector<1x512xf32> to vector<16x512xf32>
    %16 = arith.addf %13, %15 : vector<16x512xf32>
    %cst_12 = arith.constant 0.000000e+00 : f32
    %17 = vector.broadcast %cst_12 : f32 to vector<16x512xf32>
    %18 = arith.cmpf ogt, %16, %17 : vector<16x512xf32>
    %cst_13 = arith.constant 2.000000e-01 : f32
    %19 = vector.broadcast %cst_13 : f32 to vector<16x512xf32>
    %20 = arith.mulf %19, %16 : vector<16x512xf32>
    %21 = arith.select %18, %16, %20 : vector<16x512xi1>, vector<16x512xf32>
    %22 = arith.truncf %21 : vector<16x512xf32> to vector<16x512xbf16>
    %c0_14 = arith.constant 0 : index
    %c0_15 = arith.constant 0 : index
    %23 = vector.load %arg6[%c0_14, %c0_15] : memref<512x256xbf16, #tpu.memory_space<vmem>>, vector<512x256xbf16>
    %cst_16 = arith.constant dense<0.000000e+00> : vector<16x256xf32>
    %24 = tpu.matmul %22, %23, %cst_16 {dimension_numbers = #tpu.dot_dimension_numbers<[1], [0], [0], [1], [0, 0, 1, 1], [], []>} : vector<16x512xbf16>, vector<512x256xbf16>, vector<16x256xf32> -> vector<16x256xf32>
    %c0_17 = arith.constant 0 : index
    %c0_18 = arith.constant 0 : index
    %25 = vector.load %arg7[%c0_17, %c0_18] : memref<1x256xf32, #tpu.memory_space<vmem>>, vector<1x256xf32>
    %26 = vector.broadcast %25 : vector<1x256xf32> to vector<16x256xf32>
    %27 = arith.addf %24, %26 : vector<16x256xf32>
    %cst_19 = arith.constant 0.000000e+00 : f32
    %28 = vector.broadcast %cst_19 : f32 to vector<16x256xf32>
    %29 = arith.cmpf ogt, %27, %28 : vector<16x256xf32>
    %cst_20 = arith.constant 2.000000e-01 : f32
    %30 = vector.broadcast %cst_20 : f32 to vector<16x256xf32>
    %31 = arith.mulf %30, %27 : vector<16x256xf32>
    %32 = arith.select %29, %27, %31 : vector<16x256xi1>, vector<16x256xf32>
    %c0_21 = arith.constant 0 : index
    %c0_22 = arith.constant 0 : index
    %33 = vector.load %arg8[%c0_21, %c0_22] : memref<1x256xf32, #tpu.memory_space<vmem>>, vector<1x256xf32>
    %34 = vector.broadcast %33 : vector<1x256xf32> to vector<16x256xf32>
    %35 = arith.mulf %32, %34 : vector<16x256xf32>
    %cst_23 = arith.constant dense<0.000000e+00> : vector<16xf32>
    %36 = vector.multi_reduction <add>, %35, %cst_23 [1] : vector<16x256xf32> to vector<16xf32>
    %37 = vector.shape_cast %36 : vector<16xf32> to vector<16x1xf32>
    %c0_24 = arith.constant 0 : index
    %c0_25 = arith.constant 0 : index
    %38 = vector.load %arg9[%c0_24, %c0_25] : memref<1x1xf32, #tpu.memory_space<vmem>>, vector<1x1xf32>
    %39 = vector.broadcast %38 : vector<1x1xf32> to vector<16x1xf32>
    %40 = arith.addf %37, %39 : vector<16x1xf32>
    %c0_26 = arith.constant 0 : index
    %c0_27 = arith.constant 0 : index
    %41 = vector.load %arg10[%c0_26, %c0_27] : memref<16x1xf32, #tpu.memory_space<vmem>>, vector<16x1xf32>
    tpu.vector_store %arg10[%c0_26, %c0_27], %40 {strides = array<i32>} : memref<16x1xf32, #tpu.memory_space<vmem>>, vector<16x1xf32>,
    return
  }
  func.func @transform_0(%arg0: i32) -> (i32, i32) {
    %c0_i32 = arith.constant 0 : i32
    %c0_i32_0 = arith.constant 0 : i32
    return %arg0, %c0_i32 : i32, i32
  }
  func.func @transform_1(%arg0: i32) -> (i32, i32) {
    %c0_i32 = arith.constant 0 : i32
    %c0_i32_0 = arith.constant 0 : i32
    %c0_i32_1 = arith.constant 0 : i32
    return %c0_i32, %c0_i32_0 : i32, i32
  }
  func.func @transform_2(%arg0: i32) -> (i32, i32) {
    %c0_i32 = arith.constant 0 : i32
    %c0_i32_0 = arith.constant 0 : i32
    %c0_i32_1 = arith.constant 0 : i32
    return %c0_i32, %c0_i32_0 : i32, i32
  }
  func.func @transform_3(%arg0: i32) -> (i32, i32) {
    %c0_i32 = arith.constant 0 : i32
    %c0_i32_0 = arith.constant 0 : i32
    %c0_i32_1 = arith.constant 0 : i32
    return %c0_i32, %c0_i32_0 : i32, i32
  }
  func.func @transform_4(%arg0: i32) -> (i32, i32) {
    %c0_i32 = arith.constant 0 : i32
    %c0_i32_0 = arith.constant 0 : i32
    %c0_i32_1 = arith.constant 0 : i32
    return %c0_i32, %c0_i32_0 : i32, i32
  }
  func.func @transform_5(%arg0: i32) -> (i32, i32) {
    %c0_i32 = arith.constant 0 : i32
    %c0_i32_0 = arith.constant 0 : i32
    %c0_i32_1 = arith.constant 0 : i32
    return %c0_i32, %c0_i32_0 : i32, i32
  }
  func.func @transform_6(%arg0: i32) -> (i32, i32) {
    %c0_i32 = arith.constant 0 : i32
    %c0_i32_0 = arith.constant 0 : i32
    %c0_i32_1 = arith.constant 0 : i32
    return %c0_i32, %c0_i32_0 : i32, i32
  }
  func.func @transform_7(%arg0: i32) -> (i32, i32) {
    %c0_i32 = arith.constant 0 : i32
    %c0_i32_0 = arith.constant 0 : i32
    %c0_i32_1 = arith.constant 0 : i32
    return %c0_i32, %c0_i32_0 : i32, i32
  }
  func.func @transform_8(%arg0: i32) -> (i32, i32) {
    %c0_i32 = arith.constant 0 : i32
    %c0_i32_0 = arith.constant 0 : i32
    %c0_i32_1 = arith.constant 0 : i32
    return %c0_i32, %c0_i32_0 : i32, i32
  }
  func.func @transform_9(%arg0: i32) -> (i32, i32) {
    %c0_i32 = arith.constant 0 : i32
    %c0_i32_0 = arith.constant 0 : i32
    return %arg0, %c0_i32 : i32, i32
  }
}

</mosaic_0001>

<bundles_post_ra>
// kernel: _critic_forward_impl.1
= control target key start
LH: loop header
LB: loop body
LE: loop exit
PB: predicated region body
PF: predicated region fallthrough
CT: control target
= control target key end

     0   :  { %vm2472_vm0 = vcmask 130048   ;;  %s9351_s1 = inlined_call_operand.vmem [shape: bf16[784,1024], index: 1, kind: input, shape index: {}]   ;;  %s9352_s0 = inlined_call_operand.vmem [shape: bf16[16,784], index: 0, kind: input, shape index: {}]   ;;  %s9353_s2 = inlined_call_operand.vmem [shape: f32[1,1024], index: 2, kind: input, shape index: {}]   ;;  %s9354_s3 = inlined_call_operand.vmem [shape: bf16[1024,512], index: 3, kind: input, shape index: {}]   ;;  %s9355_s5 = inlined_call_operand.vmem [shape: bf16[512,256], index: 5, kind: input, shape index: {}]   ;;  %s9356_s4 = inlined_call_operand.vmem [shape: f32[1,512], index: 4, kind: input, shape index: {}]   ;;  %s9357_s8 = inlined_call_operand.<no memory space> [shape: f32[1,1], index: 8, kind: input, shape index: {}]   ;;  %s9358_s6 = inlined_call_operand.vmem [shape: f32[1,256], index: 6, kind: input, shape index: {}]   ;;  %s9359_s7 = inlined_call_operand.vmem [shape: f32[1,256], index: 7, kind: input, shape index: {}]   ;;  %s9360_s9 = inlined_call_operand.vmem [shape: f32[16,1], index: 9, kind: output, shape index: {}]  }
   0x1   :  { %v99_v0 = vld [vmem:[%s9351_s1 + $0x1c0] sm:$0xff]  ;;  %v7064_v59 = vld [vmem:[%s9352_s0 + $0xc] ss:$28 sps:$4 sm:$0xff]  }
   0x2   :  { %v103_v1 = vld [vmem:[%s9351_s1 + $0x1e0] sm:$0xff]  ;;  %2551 = vmatprep.mubr.bf16.mxu1 %v7064_v59 }
   0x3   :  { %v227_v2 = vld [vmem:[%s9351_s1 + $0x5c0] sm:$0xff]  ;;  %v5746_v3 = vcombine.high %v99_v0, %v103_v1  ;;  %v5745_v5 = vcombine.low %v99_v0, %v103_v1 }
   0x4   :  { %v231_v4 = vld [vmem:[%s9351_s1 + $0x5e0] sm:$0xff] }
   0x5   :  { %v91_v6 = vld [vmem:[%s9351_s1 + $0x180] sm:$0xff]  ;;  %v5874_v8 = vcombine.high %v227_v2, %v231_v4  ;;  %v5873_v9 = vcombine.low %v227_v2, %v231_v4  ;;  %2476 = vmatprep.subr.bf16.mxu0 %v5746_v3 }
   0x6   :  { %v95_v7 = vld [vmem:[%s9351_s1 + $0x1a0] sm:$0xff]  ;;  %2477 = vmatpush1.bf16.msra.mxu0 %v5745_v5 }
   0x7   :  { %v5738_v10 = vcombine.high %v91_v6, %v95_v7  ;;  %v219_v11 = vld [vmem:[%s9351_s1 + $0x580] sm:$0xff]  ;;  %2519 = vmatprep.subr.bf16.mxu1 %v5874_v8  ;;  %v5737_v18 = vcombine.low %v91_v6, %v95_v7 }
   0x8   :  { %v223_v12 = vld [vmem:[%s9351_s1 + $0x5a0] sm:$0xff]  ;;  %2520 = vmatpush1.bf16.msra.mxu1 %v5873_v9 }
   0x9   :  { %v83_v13 = vld [vmem:[%s9351_s1 + $0x140] sm:$0xff]  ;;  %v5866_v14 = vcombine.high %v219_v11, %v223_v12  ;;  %2478 = vmatprep.subr.bf16.mxu0 %v5738_v10  ;;  %v5865_v19 = vcombine.low %v219_v11, %v223_v12 }
   0xa   :  { %v87_v15 = vld [vmem:[%s9351_s1 + $0x160] sm:$0xff]  ;;  %2479 = vmatpush1.bf16.msra.mxu0 %v5737_v18 }
   0xb   :  { %v211_v16 = vld [vmem:[%s9351_s1 + $0x540] sm:$0xff]  ;;  %v5730_v20 = vcombine.high %v83_v13, %v87_v15  ;;  %2521 = vmatprep.subr.bf16.mxu1 %v5866_v14  ;;  %v5729_v26 = vcombine.low %v83_v13, %v87_v15 }
   0xc   :  { %v215_v17 = vld [vmem:[%s9351_s1 + $0x560] sm:$0xff]  ;;  %2522 = vmatpush1.bf16.msra.mxu1 %v5865_v19 }
   0xd   :  { %v5858_v21 = vcombine.high %v211_v16, %v215_v17  ;;  %v75_v22 = vld [vmem:[%s9351_s1 + $0x100] sm:$0xff]  ;;  %2480 = vmatprep.subr.bf16.mxu0 %v5730_v20  ;;  %v5857_v27 = vcombine.low %v211_v16, %v215_v17 }
   0xe   :  { %v79_v23 = vld [vmem:[%s9351_s1 + $0x120] sm:$0xff]  ;;  %2481 = vmatpush1.bf16.msra.mxu0 %v5729_v26 }
   0xf   :  { %v203_v24 = vld [vmem:[%s9351_s1 + $0x500] sm:$0xff]  ;;  %v5722_v28 = vcombine.high %v75_v22, %v79_v23  ;;  %2523 = vmatprep.subr.bf16.mxu1 %v5858_v21  ;;  %v5721_v34 = vcombine.low %v75_v22, %v79_v23 }
  0x10   :  { %v207_v25 = vld [vmem:[%s9351_s1 + $0x520] sm:$0xff]  ;;  %2524 = vmatpush1.bf16.msra.mxu1 %v5857_v27 }
  0x11   :  { %v5850_v29 = vcombine.high %v203_v24, %v207_v25  ;;  %v67_v30 = vld [vmem:[%s9351_s1 + $0xc0] sm:$0xff]  ;;  %2482 = vmatprep.subr.bf16.mxu0 %v5722_v28  ;;  %v5849_v35 = vcombine.low %v203_v24, %v207_v25 }
  0x12   :  { %v71_v31 = vld [vmem:[%s9351_s1 + $0xe0] sm:$0xff]  ;;  %2483 = vmatpush1.bf16.msra.mxu0 %v5721_v34 }
  0x13   :  { %v195_v32 = vld [vmem:[%s9351_s1 + $0x4c0] sm:$0xff]  ;;  %v5714_v36 = vcombine.high %v67_v30, %v71_v31  ;;  %2525 = vmatprep.subr.bf16.mxu1 %v5850_v29  ;;  %v5713_v42 = vcombine.low %v67_v30, %v71_v31 }
  0x14   :  { %v199_v33 = vld [vmem:[%s9351_s1 + $0x4e0] sm:$0xff]  ;;  %2526 = vmatpush1.bf16.msra.mxu1 %v5849_v35 }
  0x15   :  { %v5842_v37 = vcombine.high %v195_v32, %v199_v33  ;;  %v59_v38 = vld [vmem:[%s9351_s1 + $0x80] sm:$0xff]  ;;  %2484 = vmatprep.subr.bf16.mxu0 %v5714_v36  ;;  %v5841_v43 = vcombine.low %v195_v32, %v199_v33 }
  0x16   :  { %v63_v39 = vld [vmem:[%s9351_s1 + $0xa0] sm:$0xff]  ;;  %2485 = vmatpush1.bf16.msra.mxu0 %v5713_v42 }
  0x17   :  { %v187_v40 = vld [vmem:[%s9351_s1 + $0x480] sm:$0xff]  ;;  %v5706_v44 = vcombine.high %v59_v38, %v63_v39  ;;  %2527 = vmatprep.subr.bf16.mxu1 %v5842_v37  ;;  %v5705_v50 = vcombine.low %v59_v38, %v63_v39 }
  0x18   :  { %v191_v41 = vld [vmem:[%s9351_s1 + $0x4a0] sm:$0xff]  ;;  %2528 = vmatpush1.bf16.msra.mxu1 %v5841_v43 }
  0x19   :  { %v5834_v45 = vcombine.high %v187_v40, %v191_v41  ;;  %v51_v46 = vld [vmem:[%s9351_s1 + $0x40] sm:$0xff]  ;;  %2486 = vmatprep.subr.bf16.mxu0 %v5706_v44  ;;  %v5833_v52 = vcombine.low %v187_v40, %v191_v41 }
  0x1a   :  { %v55_v47 = vld [vmem:[%s9351_s1 + $0x60] sm:$0xff]  ;;  %2487 = vmatpush1.bf16.msra.mxu0 %v5705_v50 }
  0x1b   :  { %v179_v48 = vld [vmem:[%s9351_s1 + $0x440] sm:$0xff]  ;;  %v5698_v53 = vcombine.high %v51_v46, %v55_v47  ;;  %2529 = vmatprep.subr.bf16.mxu1 %v5834_v45  ;;  %v5697_v60 = vcombine.low %v51_v46, %v55_v47 }
  0x1c   :  { %v183_v49 = vld [vmem:[%s9351_s1 + $0x460] sm:$0xff]  ;;  %2530 = vmatpush1.bf16.msra.mxu1 %v5833_v52 }
  0x1d   :  { %v43_v51 = vld [vmem:[%s9351_s1] sm:$0xff]  ;;  %v5826_v55 = vcombine.high %v179_v48, %v183_v49  ;;  %2488 = vmatprep.subr.bf16.mxu0 %v5698_v53  ;;  %v5825_v61 = vcombine.low %v179_v48, %v183_v49 }
  0x1e   :  { %v47_v54 = vld [vmem:[%s9351_s1 + $0x20] sm:$0xff]  ;;  %2489 = vmatpush1.bf16.msra.mxu0 %v5697_v60 }
  0x1f   :  { %v7053_v56 = vld [vmem:[%s9352_s0 + $0x4] ss:$28 sps:$4 sm:$0xff]   ;;  %v5690_v62 = vcombine.high %v43_v51, %v47_v54  ;;  %2531 = vmatprep.subr.bf16.mxu1 %v5826_v55  ;;  %v5689_v4 = vcombine.low %v43_v51, %v47_v54 }
  0x20   :  { %v171_v57 = vld [vmem:[%s9351_s1 + $0x400] sm:$0xff]  ;;  %2508 = vmatprep.mubr.bf16.mxu0 %v7053_v56  ;;  %2532 = vmatpush1.bf16.msra.mxu1 %v5825_v61 }
  0x21   :  { %v175_v58 = vld [vmem:[%s9351_s1 + $0x420] sm:$0xff]  ;;  %2490 = vmatprep.subr.bf16.mxu0 %v5690_v62 }
  0x22   :  { %v5818_v63 = vcombine.high %v171_v57, %v175_v58  ;;  %v163_v0 = vld [vmem:[%s9351_s1 + $0x3c0] sm:$0xff]  ;;  %v5817_v5 = vcombine.low %v171_v57, %v175_v58  ;;  %2491 = vmatpush1.bf16.msra.mxu0 %v5689_v4 }
  0x23   :  { %v167_v1 = vld [vmem:[%s9351_s1 + $0x3e0] sm:$0xff] }
  0x24   :  { %v291_v2 = vld [vmem:[%s9351_s1 + $0x7c0] sm:$0xff]  ;;  %v5810_v6 = vcombine.high %v163_v0, %v167_v1  ;;  %2533 = vmatprep.subr.bf16.mxu1 %v5818_v63  ;;  %v5809_v12 = vcombine.low %v163_v0, %v167_v1 }
  0x25   :  { %v295_v3 = vld [vmem:[%s9351_s1 + $0x7e0] sm:$0xff]  ;;  %2534 = vmatpush1.bf16.msra.mxu1 %v5817_v5 }
  0x26   :  { %v5938_v7 = vcombine.high %v291_v2, %v295_v3  ;;  %v155_v8 = vld [vmem:[%s9351_s1 + $0x380] sm:$0xff]  ;;  %2492 = vmatprep.subr.bf16.mxu0 %v5810_v6  ;;  %v5937_v13 = vcombine.low %v291_v2, %v295_v3 }
  0x27   :  { %v159_v9 = vld [vmem:[%s9351_s1 + $0x3a0] sm:$0xff]  ;;  %2493 = vmatpush2.bf16.msra.mxu0 %v5809_v12 }
  0x28   :  { %v283_v10 = vld [vmem:[%s9351_s1 + $0x780] sm:$0xff]  ;;  %v5802_v14 = vcombine.high %v155_v8, %v159_v9  ;;  %2535 = vmatprep.subr.bf16.mxu1 %v5938_v7  ;;  %v5801_v20 = vcombine.low %v155_v8, %v159_v9 }
  0x29   :  { %v287_v11 = vld [vmem:[%s9351_s1 + $0x7a0] sm:$0xff]  ;;  %2536 = vmatpush2.bf16.msra.mxu1 %v5937_v13  ;;  %v100_v13 = vld [vmem:[%s9351_s1 + $0x1c8] sm:$0xff] }
  0x2a   :  { %v5930_v15 = vcombine.high %v283_v10, %v287_v11  ;;  %v147_v16 = vld [vmem:[%s9351_s1 + $0x340] sm:$0xff]  ;;  %2494 = vmatprep.subr.bf16.mxu0 %v5802_v14  ;;  %v5929_v21 = vcombine.low %v283_v10, %v287_v11  ;;  %v104_v14 = vld [vmem:[%s9351_s1 + $0x1e8] sm:$0xff] }
  0x2b   :  { %v151_v17 = vld [vmem:[%s9351_s1 + $0x360] sm:$0xff]  ;;  %2495 = vmatpush2.bf16.msra.mxu0 %v5801_v20 }
  0x2c   :  { %v275_v18 = vld [vmem:[%s9351_s1 + $0x740] sm:$0xff]  ;;  %v5794_v22 = vcombine.high %v147_v16, %v151_v17  ;;  %2537 = vmatprep.subr.bf16.mxu1 %v5930_v15  ;;  %v5793_v28 = vcombine.low %v147_v16, %v151_v17 }
  0x2d   :  { %v279_v19 = vld [vmem:[%s9351_s1 + $0x760] sm:$0xff]  ;;  %2538 = vmatpush2.bf16.msra.mxu1 %v5929_v21 }
  0x2e   :  { %v5922_v23 = vcombine.high %v275_v18, %v279_v19  ;;  %v139_v24 = vld [vmem:[%s9351_s1 + $0x300] sm:$0xff]  ;;  %2496 = vmatprep.subr.bf16.mxu0 %v5794_v22  ;;  %v5921_v29 = vcombine.low %v275_v18, %v279_v19  ;;  %v5748_v19 = vcombine.high %v100_v13, %v104_v14  ;;  %v7208_v22 = vld [vmem:[%s9352_s0 + $0x14] ss:$28 sps:$4 sm:$0xff]  }
  0x2f   :  { %v143_v25 = vld [vmem:[%s9351_s1 + $0x320] sm:$0xff]  ;;  %2497 = vmatpush2.bf16.msra.mxu0 %v5793_v28  ;;  %v92_v28 = vld [vmem:[%s9351_s1 + $0x188] sm:$0xff] }
  0x30   :  { %v267_v26 = vld [vmem:[%s9351_s1 + $0x700] sm:$0xff]  ;;  %v5786_v30 = vcombine.high %v139_v24, %v143_v25  ;;  %2539 = vmatprep.subr.bf16.mxu1 %v5922_v23  ;;  %v5785_v36 = vcombine.low %v139_v24, %v143_v25  ;;  %v6909_v25 = vmov 0  }
  0x31   :  { %v271_v27 = vld [vmem:[%s9351_s1 + $0x720] sm:$0xff]  ;;  %2540 = vmatpush2.bf16.msra.mxu1 %v5921_v29  ;;  %v96_v29 = vld [vmem:[%s9351_s1 + $0x1a8] sm:$0xff] }
  0x32   :  { %v5914_v31 = vcombine.high %v267_v26, %v271_v27  ;;  %v131_v32 = vld [vmem:[%s9351_s1 + $0x2c0] sm:$0xff]  ;;  %2498 = vmatprep.subr.bf16.mxu0 %v5786_v30  ;;  %v5913_v37 = vcombine.low %v267_v26, %v271_v27 }
  0x33   :  { %v135_v33 = vld [vmem:[%s9351_s1 + $0x2e0] sm:$0xff]  ;;  %2499 = vmatpush2.bf16.msra.mxu0 %v5785_v36 }
  0x34   :  { %v259_v34 = vld [vmem:[%s9351_s1 + $0x6c0] sm:$0xff]  ;;  %v5778_v38 = vcombine.high %v131_v32, %v135_v33  ;;  %2541 = vmatprep.subr.bf16.mxu1 %v5914_v31  ;;  %v5777_v44 = vcombine.low %v131_v32, %v135_v33  ;;  %v7228_v31 = vld [vmem:[%s9352_s0 + $0x18] ss:$28 sps:$4 sm:$0xff]   ;;  %v5747_v32 = vcombine.low %v100_v13, %v104_v14 }
  0x35   :  { %v263_v35 = vld [vmem:[%s9351_s1 + $0x6e0] sm:$0xff]  ;;  %2542 = vmatpush2.bf16.msra.mxu1 %v5913_v37  ;;  %v84_v37 = vld [vmem:[%s9351_s1 + $0x148] sm:$0xff] }
  0x36   :  { %v5906_v39 = vcombine.high %v259_v34, %v263_v35  ;;  %v123_v40 = vld [vmem:[%s9351_s1 + $0x280] sm:$0xff]  ;;  %2500 = vmatprep.subr.bf16.mxu0 %v5778_v38  ;;  %v5905_v45 = vcombine.low %v259_v34, %v263_v35  ;;  %v5740_v34 = vcombine.high %v92_v28, %v96_v29  ;;  %v88_v38 = vld [vmem:[%s9351_s1 + $0x168] sm:$0xff] }
  0x37   :  { %v127_v41 = vld [vmem:[%s9351_s1 + $0x2a0] sm:$0xff]  ;;  %2501 = vmatpush2.bf16.msra.mxu0 %v5777_v44 }
  0x38   :  { %v251_v42 = vld [vmem:[%s9351_s1 + $0x680] sm:$0xff]  ;;  %v5770_v46 = vcombine.high %v123_v40, %v127_v41  ;;  %2543 = vmatprep.subr.bf16.mxu1 %v5906_v39  ;;  %v5769_v52 = vcombine.low %v123_v40, %v127_v41  ;;  %v5739_v40 = vcombine.low %v92_v28, %v96_v29 }
  0x39   :  { %v255_v43 = vld [vmem:[%s9351_s1 + $0x6a0] sm:$0xff]  ;;  %2544 = vmatpush2.bf16.msra.mxu1 %v5905_v45  ;;  %v76_v45 = vld [vmem:[%s9351_s1 + $0x108] sm:$0xff] }
  0x3a   :  { %v5898_v47 = vcombine.high %v251_v42, %v255_v43  ;;  %v115_v48 = vld [vmem:[%s9351_s1 + $0x240] sm:$0xff]  ;;  %2502 = vmatprep.subr.bf16.mxu0 %v5770_v46  ;;  %v5897_v53 = vcombine.low %v251_v42, %v255_v43  ;;  %v5732_v42 = vcombine.high %v84_v37, %v88_v38  ;;  %v80_v46 = vld [vmem:[%s9351_s1 + $0x128] sm:$0xff] }
  0x3b   :  { %v119_v49 = vld [vmem:[%s9351_s1 + $0x260] sm:$0xff]  ;;  %2503 = vmatpush2.bf16.msra.mxu0 %v5769_v52  ;;  %v68_v52 = vld [vmem:[%s9351_s1 + $0xc8] sm:$0xff] }
  0x3c   :  { %v243_v50 = vld [vmem:[%s9351_s1 + $0x640] sm:$0xff]  ;;  %v5762_v54 = vcombine.high %v115_v48, %v119_v49  ;;  %2545 = vmatprep.subr.bf16.mxu1 %v5898_v47  ;;  %v5761_v62 = vcombine.low %v115_v48, %v119_v49  ;;  %v5731_v48 = vcombine.low %v84_v37, %v88_v38 }
  0x3d   :  { %v247_v51 = vld [vmem:[%s9351_s1 + $0x660] sm:$0xff]  ;;  %2546 = vmatpush2.bf16.msra.mxu1 %v5897_v53  ;;  %v72_v53 = vld [vmem:[%s9351_s1 + $0xe8] sm:$0xff] }
  0x3e   :  { %v5890_v55 = vcombine.high %v243_v50, %v247_v51  ;;  %v107_v57 = vld [vmem:[%s9351_s1 + $0x200] sm:$0xff]  ;;  %2504 = vmatprep.subr.bf16.mxu0 %v5762_v54  ;;  %v5889_v63 = vcombine.low %v243_v50, %v247_v51  ;;  %v5724_v50 = vcombine.high %v76_v45, %v80_v46 }
  0x3f   :  { %v111_v58 = vld [vmem:[%s9351_s1 + $0x220] sm:$0xff]  ;;  %2505 = vmatpush2.bf16.msra.mxu0 %v5761_v62  ;;  %v60_v62 = vld [vmem:[%s9351_s1 + $0x88] sm:$0xff] }
  0x40   :  { %v235_v60 = vld [vmem:[%s9351_s1 + $0x600] sm:$0xff]  ;;  %v5754_v0 = vcombine.high %v107_v57, %v111_v58  ;;  %2547 = vmatprep.subr.bf16.mxu1 %v5890_v55  ;;  %v5753_v6 = vcombine.low %v107_v57, %v111_v58  ;;  %v5723_v55 = vcombine.low %v76_v45, %v80_v46  ;;  %v5716_v58 = vcombine.high %v68_v52, %v72_v53 }
  0x41   :  { %v239_v61 = vld [vmem:[%s9351_s1 + $0x620] sm:$0xff]  ;;  %2548 = vmatpush2.bf16.msra.mxu1 %v5889_v63  ;;  %v64_v63 = vld [vmem:[%s9351_s1 + $0xa8] sm:$0xff] }
  0x42   :  { %v5882_v1 = vcombine.high %v235_v60, %v239_v61  ;;  %v355_v2 = vld [vmem:[%s9351_s1 + $0x9c0] sm:$0xff]  ;;  %2506 = vmatprep.subr.bf16.mxu0 %v5754_v0  ;;  %v5881_v7 = vcombine.low %v235_v60, %v239_v61 }
  0x43   :  { %v359_v3 = vld [vmem:[%s9351_s1 + $0x9e0] sm:$0xff]  ;;  %2507 = vmatpush2.bf16.msra.mxu0 %v5753_v6  ;;  %v52_v6 = vld [vmem:[%s9351_s1 + $0x48] sm:$0xff] }
  0x44   :  { %v427_v4 = vld [vmem:[%s9351_s1 + $0xc00] sm:$0xff]  ;;  %v6002_v8 = vcombine.high %v355_v2, %v359_v3  ;;  %2549 = vmatprep.subr.bf16.mxu1 %v5882_v1  ;;  %v6001_v16 = vcombine.low %v355_v2, %v359_v3  ;;  %v5715_v1 = vcombine.low %v68_v52, %v72_v53  ;;  %v5708_v3 = vcombine.high %v60_v62, %v64_v63 }
  0x45   :  { %v431_v5 = vld [vmem:[%s9351_s1 + $0xc20] sm:$0xff]  ;;  %2550 = vmatpush2.bf16.msra.mxu1 %v5881_v7  ;;  %v56_v7 = vld [vmem:[%s9351_s1 + $0x68] sm:$0xff] }
  0x46   :  { %v6074_v9 = vcombine.high %v427_v4, %v431_v5  ;;  %v347_v10 = vld [vmem:[%s9351_s1 + $0x980] sm:$0xff]  ;;  %2562 = vmatprep.subr.bf16.mxu0 %v6002_v8  ;;  %v6073_v17 = vcombine.low %v427_v4, %v431_v5 }
  0x47   :  { %v351_v11 = vld [vmem:[%s9351_s1 + $0x9a0] sm:$0xff] }
  0x48   :  { %v7185_v12 = vld [vmem:[%s9352_s0] ss:$28 sps:$4 sm:$0xff]   ;;  %v7196_v15 = vld [vmem:[%s9352_s0 + $0x8] ss:$28 sps:$4 sm:$0xff]   ;;  %v5994_v18 = vcombine.high %v347_v10, %v351_v11  ;;  %2619 = vmatprep.subr.bf16.mxu1 %v6074_v9  ;;  %v5993_v23 = vcombine.low %v347_v10, %v351_v11  ;;  %v5707_v9 = vcombine.low %v60_v62, %v64_v63  ;;  %v5700_v11 = vcombine.high %v52_v6, %v56_v7 }
  0x49   :  { %v339_v20 = vld [vmem:[%s9351_s1 + $0x940] sm:$0xff]  ;;  %2509 = vmatmul.mubr.bf16.vlgmr.msra.gmra.mxu0 %v7185_v12  ;;  %2552 = vmatmul.mubr.bf16.vlgmr.msra.gmra.mxu1 %v7196_v15 }
  0x4a   :  { %v343_v21 = vld [vmem:[%s9351_s1 + $0x960] sm:$0xff]  ;;  %2563 = vmatpush1.bf16.msra.mxu0 %v6001_v16  ;;  %2620 = vmatpush1.bf16.msra.mxu1 %v6073_v17  ;;  %v44_v16 = vld [vmem:[%s9351_s1 + $0x8] sm:$0xff] }
  0x4b   :  { %2564 = vmatprep.subr.bf16.mxu0 %v5994_v18  ;;  %v5986_v24 = vcombine.high %v339_v20, %v343_v21  ;;  %2637 = vmatprep.mubr.bf16.mxu1 %v6909_v25  ;;  %v331_v26 = vld [vmem:[%s9351_s1 + $0x900] sm:$0xff]  ;;  %v5985_v30 = vcombine.low %v339_v20, %v343_v21  ;;  %v48_v17 = vld [vmem:[%s9351_s1 + $0x28] sm:$0xff] }
  0x4c   :  { %2648 = vmatprep.subr.bf16.mxu1 %v5748_v19  ;;  %v335_v27 = vld [vmem:[%s9351_s1 + $0x920] sm:$0xff]  ;;  %2594 = vmatprep.mubr.bf16.mxu0 %v7208_v22  ;;  %v5699_v19 = vcombine.low %v52_v6, %v56_v7  ;;  %v5692_v21 = vcombine.high %v44_v16, %v48_v17  ;;  %v5691_v29 = vcombine.low %v44_v16, %v48_v17 }
  0x4d   :  { %v5978_v33 = vcombine.high %v331_v26, %v335_v27  ;;  %v323_v35 = vld [vmem:[%s9351_s1 + $0x8c0] sm:$0xff]  ;;  %v5977_v39 = vcombine.low %v331_v26, %v335_v27  ;;  %v164_v26 = vld [vmem:[%s9351_s1 + $0x3c8] sm:$0xff] }
  0x4e   :  { %2565 = vmatpush1.bf16.msra.mxu0 %v5993_v23  ;;  %v327_v36 = vld [vmem:[%s9351_s1 + $0x8e0] sm:$0xff]  ;;  %v168_v27 = vld [vmem:[%s9351_s1 + $0x3e8] sm:$0xff] }
  0x4f   :  { %2566 = vmatprep.subr.bf16.mxu0 %v5986_v24  ;;  %v5970_v41 = vcombine.high %v323_v35, %v327_v36  ;;  %v315_v43 = vld [vmem:[%s9351_s1 + $0x880] sm:$0xff]  ;;  %v5969_v47 = vcombine.low %v323_v35, %v327_v36  ;;  %v156_v35 = vld [vmem:[%s9351_s1 + $0x388] sm:$0xff]  ;;  %v5811_v38 = vcombine.low %v164_v26, %v168_v27 }
  0x50   :  { %v319_v44 = vld [vmem:[%s9351_s1 + $0x8a0] sm:$0xff]  ;;  %v160_v36 = vld [vmem:[%s9351_s1 + $0x3a8] sm:$0xff] }
  0x51   :  { %6081 = vmatmul.mubr.msk.bf16.vlgmr.msra.gmra.mxu1 %vm2472_vm0, %v7228_v31  ;;  %v5962_v49 = vcombine.high %v315_v43, %v319_v44  ;;  %v311_v51 = vld [vmem:[%s9351_s1 + $0x860] sm:$0xff]  ;;  %v5961_v54 = vcombine.low %v315_v43, %v319_v44  ;;  %v148_v43 = vld [vmem:[%s9351_s1 + $0x348] sm:$0xff]  ;;  %v5803_v46 = vcombine.low %v156_v35, %v160_v36 }
  0x52   :  { %2567 = vmatpush1.bf16.msra.mxu0 %v5985_v30  ;;  %2649 = vmatpush1.bf16.msra.mxu1 %v5747_v32  ;;  %v299_v60 = vld [vmem:[%s9351_s1 + $0x800] sm:$0xff]  ;;  %v5812_v32 = vcombine.high %v164_v26, %v168_v27  ;;  %v152_v44 = vld [vmem:[%s9351_s1 + $0x368] sm:$0xff] }
  0x53   :  { %2568 = vmatprep.subr.bf16.mxu0 %v5978_v33  ;;  %2650 = vmatprep.subr.bf16.mxu1 %v5740_v34  ;;  %v303_v61 = vld [vmem:[%s9351_s1 + $0x820] sm:$0xff]  ;;  %v5795_v53 = vcombine.low %v148_v43, %v152_v44  ;;  %v112_v26 = vld [vmem:[%s9351_s1 + $0x228] sm:$0xff] }
  0x54   :  { %2680 = vmatprep.mubr.bf16.mxu1 %v7053_v56  ;;  %v307_v56 = vld [vmem:[%s9351_s1 + $0x840] sm:$0xff]  ;;  %v5946_v2 = vcombine.high %v299_v60, %v303_v61  ;;  %v5945_v8 = vcombine.low %v299_v60, %v303_v61  ;;  %v132_v60 = vld [vmem:[%s9351_s1 + $0x2c8] sm:$0xff] }
  0x55   :  { %v5954_v57 = vcombine.high %v307_v56, %v311_v51  ;;  %v5953_v0 = vcombine.low %v307_v56, %v311_v51  ;;  %v419_v4 = vld [vmem:[%s9351_s1 + $0xbc0] sm:$0xff]  ;;  %v140_v56 = vld [vmem:[%s9351_s1 + $0x308] sm:$0xff] }
  0x56   :  { %2569 = vmatpush1.bf16.msra.mxu0 %v5977_v39  ;;  %2651 = vmatpush1.bf16.msra.mxu1 %v5739_v40  ;;  %v423_v5 = vld [vmem:[%s9351_s1 + $0xbe0] sm:$0xff]  ;;  %v5804_v40 = vcombine.high %v156_v35, %v160_v36  ;;  %v144_v51 = vld [vmem:[%s9351_s1 + $0x328] sm:$0xff] }
  0x57   :  { %2570 = vmatprep.subr.bf16.mxu0 %v5970_v41  ;;  %2652 = vmatprep.subr.bf16.mxu1 %v5732_v42  ;;  %v6066_v10 = vcombine.high %v419_v4, %v423_v5  ;;  %v411_v13 = vld [vmem:[%s9351_s1 + $0xb80] sm:$0xff]  ;;  %v6065_v18 = vcombine.low %v419_v4, %v423_v5  ;;  %v136_v61 = vld [vmem:[%s9351_s1 + $0x2e8] sm:$0xff]  ;;  %v5787_v63 = vcombine.low %v140_v56, %v144_v51 }
  0x58   :  { %v415_v14 = vld [vmem:[%s9351_s1 + $0xba0] sm:$0xff]  ;;  %v124_v4 = vld [vmem:[%s9351_s1 + $0x288] sm:$0xff]  ;;  %v5779_v7 = vcombine.low %v132_v60, %v136_v61 }
  0x59   :  { %v6058_v20 = vcombine.high %v411_v13, %v415_v14  ;;  %v403_v23 = vld [vmem:[%s9351_s1 + $0xb40] sm:$0xff]  ;;  %v6057_v28 = vcombine.low %v411_v13, %v415_v14  ;;  %v128_v5 = vld [vmem:[%s9351_s1 + $0x2a8] sm:$0xff] }
  0x5a   :  { %2571 = vmatpush1.bf16.msra.mxu0 %v5969_v47  ;;  %2653 = vmatpush1.bf16.msra.mxu1 %v5731_v48  ;;  %v407_v24 = vld [vmem:[%s9351_s1 + $0xb60] sm:$0xff]  ;;  %v5796_v48 = vcombine.high %v148_v43, %v152_v44  ;;  %v116_v13 = vld [vmem:[%s9351_s1 + $0x248] sm:$0xff]  ;;  %v5771_v17 = vcombine.low %v124_v4, %v128_v5 }
  0x5b   :  { %2572 = vmatprep.subr.bf16.mxu0 %v5962_v49  ;;  %2654 = vmatprep.subr.bf16.mxu1 %v5724_v50  ;;  %v6050_v30 = vcombine.high %v403_v23, %v407_v24  ;;  %v395_v33 = vld [vmem:[%s9351_s1 + $0xb00] sm:$0xff]  ;;  %v6049_v37 = vcombine.low %v403_v23, %v407_v24  ;;  %v120_v14 = vld [vmem:[%s9351_s1 + $0x268] sm:$0xff] }
  0x5c   :  { %v399_v34 = vld [vmem:[%s9351_s1 + $0xb20] sm:$0xff]  ;;  %v7398_v23 = vld [vmem:[%s9352_s0 + $0x10] ss:$28 sps:$4 sm:$0xff]  }
  0x5d   :  { %v6042_v39 = vcombine.high %v395_v33, %v399_v34  ;;  %v387_v41 = vld [vmem:[%s9351_s1 + $0xac0] sm:$0xff]  ;;  %v6041_v45 = vcombine.low %v395_v33, %v399_v34  ;;  %v108_v24 = vld [vmem:[%s9351_s1 + $0x208] sm:$0xff] }
  0x5e   :  { %2573 = vmatpush1.bf16.msra.mxu0 %v5961_v54  ;;  %2655 = vmatpush1.bf16.msra.mxu1 %v5723_v55  ;;  %v391_v42 = vld [vmem:[%s9351_s1 + $0xae0] sm:$0xff]  ;;  %v5788_v55 = vcombine.high %v140_v56, %v144_v51  ;;  %v216_v33 = vld [vmem:[%s9351_s1 + $0x568] sm:$0xff] }
  0x5f   :  { %2574 = vmatprep.subr.bf16.mxu0 %v5954_v57  ;;  %2656 = vmatprep.subr.bf16.mxu1 %v5716_v58  ;;  %v6034_v47 = vcombine.high %v387_v41, %v391_v42  ;;  %v379_v49 = vld [vmem:[%s9351_s1 + $0xa80] sm:$0xff]  ;;  %v6033_v52 = vcombine.low %v387_v41, %v391_v42  ;;  %v356_v34 = vld [vmem:[%s9351_s1 + $0x9c8] sm:$0xff] }
  0x60   :  { %v383_v50 = vld [vmem:[%s9351_s1 + $0xaa0] sm:$0xff]  ;;  %v360_v35 = vld [vmem:[%s9351_s1 + $0x9e8] sm:$0xff] }
  0x61   :  { %v6026_v54 = vcombine.high %v379_v49, %v383_v50  ;;  %v371_v57 = vld [vmem:[%s9351_s1 + $0xa40] sm:$0xff]  ;;  %v6025_v62 = vcombine.low %v379_v49, %v383_v50  ;;  %v208_v41 = vld [vmem:[%s9351_s1 + $0x528] sm:$0xff]  ;;  %v6003_v44 = vcombine.low %v356_v34, %v360_v35 }
  0x62   :  { %2575 = vmatpush1.bf16.msra.mxu0 %v5953_v0  ;;  %2657 = vmatpush1.bf16.msra.mxu1 %v5715_v1  ;;  %v375_v58 = vld [vmem:[%s9351_s1 + $0xa60] sm:$0xff]  ;;  %v5780_v1 = vcombine.high %v132_v60, %v136_v61  ;;  %v348_v42 = vld [vmem:[%s9351_s1 + $0x988] sm:$0xff] }
  0x63   :  { %2576 = vmatprep.subr.bf16.mxu0 %v5946_v2  ;;  %2658 = vmatprep.subr.bf16.mxu1 %v5708_v3  ;;  %v6018_v0 = vcombine.high %v371_v57, %v375_v58  ;;  %v363_v2 = vld [vmem:[%s9351_s1 + $0xa00] sm:$0xff]  ;;  %v6017_v6 = vcombine.low %v371_v57, %v375_v58  ;;  %v340_v49 = vld [vmem:[%s9351_s1 + $0x948] sm:$0xff] }
  0x64   :  { %v367_v3 = vld [vmem:[%s9351_s1 + $0xa20] sm:$0xff]  ;;  %v344_v50 = vld [vmem:[%s9351_s1 + $0x968] sm:$0xff] }
  0x65   :  { %v6009_v16 = vcombine.low %v363_v2, %v367_v3  ;;  %v336_v57 = vld [vmem:[%s9351_s1 + $0x928] sm:$0xff]  ;;  %v5987_v60 = vcombine.low %v340_v49, %v344_v50 }
  0x66   :  { %2577 = vmatpush1.bf16.msra.mxu0 %v5945_v8  ;;  %2659 = vmatpush1.bf16.msra.mxu1 %v5707_v9  ;;  %v6010_v8 = vcombine.high %v363_v2, %v367_v3  ;;  %v5772_v9 = vcombine.high %v124_v4, %v128_v5 }
  0x67   :  { %2578 = vmatprep.subr.bf16.mxu0 %v6066_v10  ;;  %2660 = vmatprep.subr.bf16.mxu1 %v5700_v11  ;;  %v228_v10 = vld [vmem:[%s9351_s1 + $0x5c8] sm:$0xff] }
  0x68   :  { %v232_v11 = vld [vmem:[%s9351_s1 + $0x5e8] sm:$0xff] }
  0x69   :  { %v5875_v27 = vcombine.low %v228_v10, %v232_v11 }
  0x6a   :  { %2579 = vmatpush2.bf16.msra.mxu0 %v6065_v18  ;;  %2661 = vmatpush1.bf16.msra.mxu1 %v5699_v19  ;;  %v5876_v18 = vcombine.high %v228_v10, %v232_v11  ;;  %v5764_v19 = vcombine.high %v116_v13, %v120_v14 }
  0x6b   :  { %2580 = vmatprep.subr.bf16.mxu0 %v6058_v20  ;;  %2662 = vmatprep.subr.bf16.mxu1 %v5692_v21  ;;  %v220_v20 = vld [vmem:[%s9351_s1 + $0x588] sm:$0xff] }
  0x6c   :  { %v224_v21 = vld [vmem:[%s9351_s1 + $0x5a8] sm:$0xff] }
  0x6d   :  { %v5867_v36 = vcombine.low %v220_v20, %v224_v21 }
  0x6e   :  { %2581 = vmatpush2.bf16.msra.mxu0 %v6057_v28  ;;  %2663 = vmatpush1.bf16.msra.mxu1 %v5691_v29  ;;  %v5763_v28 = vcombine.low %v116_v13, %v120_v14  ;;  %v5868_v29 = vcombine.high %v220_v20, %v224_v21 }
  0x6f   :  { %2582 = vmatprep.subr.bf16.mxu0 %v6050_v30  ;;  %2664 = vmatprep.subr.bf16.mxu1 %v5812_v32  ;;  %v5756_v30 = vcombine.high %v108_v24, %v112_v26  ;;  %v212_v32 = vld [vmem:[%s9351_s1 + $0x548] sm:$0xff] }
  0x70   :  { %v5859_v43 = vcombine.low %v212_v32, %v216_v33 }
  0x72   :  { %2583 = vmatpush2.bf16.msra.mxu0 %v6049_v37  ;;  %2665 = vmatpush2.bf16.msra.mxu1 %v5811_v38  ;;  %v5755_v37 = vcombine.low %v108_v24, %v112_v26  ;;  %v5860_v38 = vcombine.high %v212_v32, %v216_v33 }
  0x73   :  { %2584 = vmatprep.subr.bf16.mxu0 %v6042_v39  ;;  %2666 = vmatprep.subr.bf16.mxu1 %v5804_v40  ;;  %v6004_v39 = vcombine.high %v356_v34, %v360_v35  ;;  %v204_v40 = vld [vmem:[%s9351_s1 + $0x508] sm:$0xff] }
  0x74   :  { %v5851_v56 = vcombine.low %v204_v40, %v208_v41 }
  0x76   :  { %2585 = vmatpush2.bf16.msra.mxu0 %v6041_v45  ;;  %2667 = vmatpush2.bf16.msra.mxu1 %v5803_v46  ;;  %v5852_v45 = vcombine.high %v204_v40, %v208_v41 }
  0x77   :  { %2586 = vmatprep.subr.bf16.mxu0 %v6034_v47  ;;  %2668 = vmatprep.subr.bf16.mxu1 %v5796_v48  ;;  %v196_v47 = vld [vmem:[%s9351_s1 + $0x4c8] sm:$0xff] }
  0x78   :  { %v200_v48 = vld [vmem:[%s9351_s1 + $0x4e8] sm:$0xff] }
  0x79   :  { %v5843_v58 = vcombine.low %v196_v47, %v200_v48 }
  0x7a   :  { %2587 = vmatpush2.bf16.msra.mxu0 %v6033_v52  ;;  %2669 = vmatpush2.bf16.msra.mxu1 %v5795_v53  ;;  %v5844_v52 = vcombine.high %v196_v47, %v200_v48  ;;  %v5988_v53 = vcombine.high %v340_v49, %v344_v50 }
  0x7b   :  { %2588 = vmatprep.subr.bf16.mxu0 %v6026_v54  ;;  %2670 = vmatprep.subr.bf16.mxu1 %v5788_v55  ;;  %v188_v54 = vld [vmem:[%s9351_s1 + $0x488] sm:$0xff] }
  0x7c   :  { %v192_v55 = vld [vmem:[%s9351_s1 + $0x4a8] sm:$0xff] }
  0x7d   :  { %v5836_v61 = vcombine.high %v188_v54, %v192_v55  ;;  %v5835_v2 = vcombine.low %v188_v54, %v192_v55 }
  0x7e   :  { %2589 = vmatpush2.bf16.msra.mxu0 %v6025_v62  ;;  %2671 = vmatpush2.bf16.msra.mxu1 %v5787_v63  ;;  %v184_v63 = vld [vmem:[%s9351_s1 + $0x468] sm:$0xff] }
  0x7f   :  { %2590 = vmatprep.subr.bf16.mxu0 %v6018_v0  ;;  %2672 = vmatprep.subr.bf16.mxu1 %v5780_v1  ;;  %v324_v0 = vld [vmem:[%s9351_s1 + $0x8c8] sm:$0xff] }
  0x80   :  { %v328_v1 = vld [vmem:[%s9351_s1 + $0x8e8] sm:$0xff] }
  0x81   :  { %v5972_v5 = vcombine.high %v324_v0, %v328_v1  ;;  %v5971_v11 = vcombine.low %v324_v0, %v328_v1 }
  0x82   :  { %2591 = vmatpush2.bf16.msra.mxu0 %v6017_v6  ;;  %2673 = vmatpush2.bf16.msra.mxu1 %v5779_v7  ;;  %v172_v6 = vld [vmem:[%s9351_s1 + $0x408] sm:$0xff] }
  0x83   :  { %2592 = vmatprep.subr.bf16.mxu0 %v6010_v8  ;;  %2674 = vmatprep.subr.bf16.mxu1 %v5772_v9  ;;  %v176_v7 = vld [vmem:[%s9351_s1 + $0x428] sm:$0xff] }
  0x84   :  { %v316_v8 = vld [vmem:[%s9351_s1 + $0x888] sm:$0xff]  ;;  %v5820_v13 = vcombine.high %v172_v6, %v176_v7  ;;  %v5819_v20 = vcombine.low %v172_v6, %v176_v7 }
  0x85   :  { %v320_v9 = vld [vmem:[%s9351_s1 + $0x8a8] sm:$0xff] }
  0x86   :  { %2593 = vmatpush2.bf16.msra.mxu0 %v6009_v16  ;;  %2675 = vmatpush2.bf16.msra.mxu1 %v5771_v17  ;;  %v5964_v14 = vcombine.high %v316_v8, %v320_v9  ;;  %v292_v16 = vld [vmem:[%s9351_s1 + $0x7c8] sm:$0xff]  ;;  %v5963_v21 = vcombine.low %v316_v8, %v320_v9 }
  0x87   :  { %2691 = vmatprep.subr.bf16.mxu0 %v5876_v18  ;;  %2676 = vmatprep.subr.bf16.mxu1 %v5764_v19  ;;  %v296_v17 = vld [vmem:[%s9351_s1 + $0x7e8] sm:$0xff] }
  0x88   :  { %v308_v18 = vld [vmem:[%s9351_s1 + $0x848] sm:$0xff]  ;;  %v5940_v24 = vcombine.high %v292_v16, %v296_v17  ;;  %v5939_v32 = vcombine.low %v292_v16, %v296_v17 }
  0x89   :  { %2595 = vmatmul.mubr.bf16.vlgmr.msra.gmra.mxu0 %v7398_v23  ;;  %v312_v19 = vld [vmem:[%s9351_s1 + $0x868] sm:$0xff] }
  0x8a   :  { %2692 = vmatpush1.bf16.msra.mxu0 %v5875_v27  ;;  %2723 = vmatprep.mubr.bf16.mxu0 %v7064_v59  ;;  %v352_v59 = vld [vmem:[%s9351_s1 + $0x9a8] sm:$0xff]  ;;  %v5956_v26 = vcombine.high %v308_v18, %v312_v19  ;;  %v5955_v33 = vcombine.low %v308_v18, %v312_v19 }
  0x8b   :  { %2677 = vmatpush2.bf16.msra.mxu1 %v5763_v28  ;;  %2693 = vmatprep.subr.bf16.mxu0 %v5868_v29  ;;  %v5996_v46 = vcombine.high %v348_v42, %v352_v59  ;;  %v5995_v51 = vcombine.low %v348_v42, %v352_v59  ;;  %v284_v27 = vld [vmem:[%s9351_s1 + $0x788] sm:$0xff] }
  0x8c   :  { %2678 = vmatprep.subr.bf16.mxu1 %v5756_v30  ;;  %v288_v28 = vld [vmem:[%s9351_s1 + $0x7a8] sm:$0xff] }
  0x8d   :  { %v300_v29 = vld [vmem:[%s9351_s1 + $0x808] sm:$0xff]  ;;  %v5932_v34 = vcombine.high %v284_v27, %v288_v28  ;;  %v5931_v40 = vcombine.low %v284_v27, %v288_v28 }
  0x8e   :  { %2694 = vmatpush1.bf16.msra.mxu0 %v5867_v36  ;;  %v304_v30 = vld [vmem:[%s9351_s1 + $0x828] sm:$0xff] }
  0x8f   :  { %2679 = vmatpush2.bf16.msra.mxu1 %v5755_v37  ;;  %2695 = vmatprep.subr.bf16.mxu0 %v5860_v38  ;;  %v5948_v35 = vcombine.high %v300_v29, %v304_v30  ;;  %v276_v36 = vld [vmem:[%s9351_s1 + $0x748] sm:$0xff]  ;;  %v5947_v41 = vcombine.low %v300_v29, %v304_v30 }
  0x90   :  { %2734 = vmatprep.subr.bf16.mxu1 %v6004_v39  ;;  %v280_v37 = vld [vmem:[%s9351_s1 + $0x768] sm:$0xff] }
  0x91   :  { %v420_v38 = vld [vmem:[%s9351_s1 + $0xbc8] sm:$0xff]  ;;  %v5924_v42 = vcombine.high %v276_v36, %v280_v37  ;;  %v5923_v47 = vcombine.low %v276_v36, %v280_v37 }
  0x92   :  { %2681 = vmatmul.mubr.bf16.vlgmr.msra.gmra.mxu1 %v7185_v12  ;;  %2696 = vmatpush1.bf16.msra.mxu0 %v5859_v43  ;;  %v332_v12 = vld [vmem:[%s9351_s1 + $0x908] sm:$0xff] }
  0x93   :  { %2735 = vmatpush1.bf16.msra.mxu1 %v6003_v44  ;;  %2697 = vmatprep.subr.bf16.mxu0 %v5852_v45  ;;  %v5980_v62 = vcombine.high %v332_v12, %v336_v57  ;;  %v5979_v3 = vcombine.low %v332_v12, %v336_v57  ;;  %v424_v39 = vld [vmem:[%s9351_s1 + $0xbe8] sm:$0xff] }
  0x94   :  { %2736 = vmatprep.subr.bf16.mxu1 %v5996_v46  ;;  %2766 = vmatprep.mubr.bf16.mxu1 %v7208_v22  ;;  %v180_v22 = vld [vmem:[%s9351_s1 + $0x448] sm:$0xff]  ;;  %v6068_v59 = vcombine.high %v420_v38, %v424_v39  ;;  %v6067_v48 = vcombine.low %v420_v38, %v424_v39 }
  0x95   :  { %v5828_v4 = vcombine.high %v180_v22, %v184_v63  ;;  %v5827_v10 = vcombine.low %v180_v22, %v184_v63  ;;  %v268_v43 = vld [vmem:[%s9351_s1 + $0x708] sm:$0xff] }
  0x96   :  { %2698 = vmatpush1.bf16.msra.mxu0 %v5851_v56  ;;  %v272_v44 = vld [vmem:[%s9351_s1 + $0x728] sm:$0xff] }
  0x97   :  { %2737 = vmatpush1.bf16.msra.mxu1 %v5995_v51  ;;  %2699 = vmatprep.subr.bf16.mxu0 %v5844_v52  ;;  %v412_v45 = vld [vmem:[%s9351_s1 + $0xb88] sm:$0xff]  ;;  %v5916_v49 = vcombine.high %v268_v43, %v272_v44  ;;  %v5915_v54 = vcombine.low %v268_v43, %v272_v44  ;;  %v97_v43 = vld [vmem:[%s9351_s1 + $0x1b0] sm:$0xff] }
  0x98   :  { %2738 = vmatprep.subr.bf16.mxu1 %v5988_v53  ;;  %v416_v46 = vld [vmem:[%s9351_s1 + $0xba8] sm:$0xff]  ;;  %v221_v44 = vld [vmem:[%s9351_s1 + $0x590] sm:$0xff] }
  0x99   :  { %v6060_v50 = vcombine.high %v412_v45, %v416_v46  ;;  %v260_v56 = vld [vmem:[%s9351_s1 + $0x6c8] sm:$0xff]  ;;  %v6059_v55 = vcombine.low %v412_v45, %v416_v46  ;;  %v225_v45 = vld [vmem:[%s9351_s1 + $0x5b0] sm:$0xff] }
  0x9a   :  { %2700 = vmatpush1.bf16.msra.mxu0 %v5843_v58  ;;  %v264_v51 = vld [vmem:[%s9351_s1 + $0x6e8] sm:$0xff] }
  0x9b   :  { %2739 = vmatpush1.bf16.msra.mxu1 %v5987_v60  ;;  %2701 = vmatprep.subr.bf16.mxu0 %v5836_v61  ;;  %v404_v52 = vld [vmem:[%s9351_s1 + $0xb48] sm:$0xff]  ;;  %v5908_v12 = vcombine.high %v260_v56, %v264_v51  ;;  %v5907_v22 = vcombine.low %v260_v56, %v264_v51  ;;  %v89_v56 = vld [vmem:[%s9351_s1 + $0x170] sm:$0xff] }
  0x9c   :  { %2740 = vmatprep.subr.bf16.mxu1 %v5980_v62  ;;  %v408_v53 = vld [vmem:[%s9351_s1 + $0xb68] sm:$0xff]  ;;  %v213_v51 = vld [vmem:[%s9351_s1 + $0x550] sm:$0xff] }
  0x9d   :  { %v6052_v57 = vcombine.high %v404_v52, %v408_v53  ;;  %v252_v58 = vld [vmem:[%s9351_s1 + $0x688] sm:$0xff]  ;;  %v6051_v63 = vcombine.low %v404_v52, %v408_v53  ;;  %v217_v52 = vld [vmem:[%s9351_s1 + $0x570] sm:$0xff] }
  0x9e   :  { %2702 = vmatpush1.bf16.msra.mxu0 %v5835_v2  ;;  %v256_v60 = vld [vmem:[%s9351_s1 + $0x6a8] sm:$0xff] }
  0x9f   :  { %2741 = vmatpush1.bf16.msra.mxu1 %v5979_v3  ;;  %2703 = vmatprep.subr.bf16.mxu0 %v5828_v4  ;;  %v396_v61 = vld [vmem:[%s9351_s1 + $0xb08] sm:$0xff]  ;;  %v5900_v0 = vcombine.high %v252_v58, %v256_v60  ;;  %v5899_v6 = vcombine.low %v252_v58, %v256_v60  ;;  %v205_v58 = vld [vmem:[%s9351_s1 + $0x510] sm:$0xff] }
  0xa0   :  { %2742 = vmatprep.subr.bf16.mxu1 %v5972_v5  ;;  %v400_v62 = vld [vmem:[%s9351_s1 + $0xb28] sm:$0xff]  ;;  %v209_v60 = vld [vmem:[%s9351_s1 + $0x530] sm:$0xff] }
  0xa1   :  { %v6044_v1 = vcombine.high %v396_v61, %v400_v62  ;;  %v244_v2 = vld [vmem:[%s9351_s1 + $0x648] sm:$0xff]  ;;  %v6043_v7 = vcombine.low %v396_v61, %v400_v62 }
  0xa2   :  { %2704 = vmatpush1.bf16.msra.mxu0 %v5827_v10  ;;  %v248_v3 = vld [vmem:[%s9351_s1 + $0x668] sm:$0xff] }
  0xa3   :  { %2743 = vmatpush1.bf16.msra.mxu1 %v5971_v11  ;;  %2705 = vmatprep.subr.bf16.mxu0 %v5820_v13  ;;  %v388_v4 = vld [vmem:[%s9351_s1 + $0xac8] sm:$0xff]  ;;  %v5892_v8 = vcombine.high %v244_v2, %v248_v3  ;;  %v5891_v16 = vcombine.low %v244_v2, %v248_v3  ;;  %v73_v2 = vld [vmem:[%s9351_s1 + $0xf0] sm:$0xff] }
  0xa4   :  { %2744 = vmatprep.subr.bf16.mxu1 %v5964_v14  ;;  %v392_v5 = vld [vmem:[%s9351_s1 + $0xae8] sm:$0xff]  ;;  %v197_v3 = vld [vmem:[%s9351_s1 + $0x4d0] sm:$0xff] }
  0xa5   :  { %v6036_v9 = vcombine.high %v388_v4, %v392_v5  ;;  %v236_v10 = vld [vmem:[%s9351_s1 + $0x608] sm:$0xff]  ;;  %v6035_v17 = vcombine.low %v388_v4, %v392_v5  ;;  %v201_v4 = vld [vmem:[%s9351_s1 + $0x4f0] sm:$0xff] }
  0xa6   :  { %2706 = vmatpush1.bf16.msra.mxu0 %v5819_v20  ;;  %v240_v11 = vld [vmem:[%s9351_s1 + $0x628] sm:$0xff] }
  0xa7   :  { %2745 = vmatpush1.bf16.msra.mxu1 %v5963_v21  ;;  %2707 = vmatprep.subr.bf16.mxu0 %v5940_v24  ;;  %v380_v13 = vld [vmem:[%s9351_s1 + $0xa88] sm:$0xff]  ;;  %v5884_v18 = vcombine.high %v236_v10, %v240_v11  ;;  %v5883_v27 = vcombine.low %v236_v10, %v240_v11  ;;  %v65_v10 = vld [vmem:[%s9351_s1 + $0xb0] sm:$0xff] }
  0xa8   :  { %2746 = vmatprep.subr.bf16.mxu1 %v5956_v26  ;;  %v384_v14 = vld [vmem:[%s9351_s1 + $0xaa8] sm:$0xff]  ;;  %v189_v11 = vld [vmem:[%s9351_s1 + $0x490] sm:$0xff] }
  0xa9   :  { %v6028_v19 = vcombine.high %v380_v13, %v384_v14  ;;  %v428_v20 = vld [vmem:[%s9351_s1 + $0xc08] sm:$0xff]  ;;  %v6027_v28 = vcombine.low %v380_v13, %v384_v14  ;;  %v193_v13 = vld [vmem:[%s9351_s1 + $0x4b0] sm:$0xff] }
  0xaa   :  { %2708 = vmatpush2.bf16.msra.mxu0 %v5939_v32  ;;  %v432_v21 = vld [vmem:[%s9351_s1 + $0xc28] sm:$0xff]  ;;  %v101_v32 = vld [vmem:[%s9351_s1 + $0x1d0] sm:$0xff] }
  0xab   :  { %2747 = vmatpush1.bf16.msra.mxu1 %v5955_v33  ;;  %2709 = vmatprep.subr.bf16.mxu0 %v5932_v34  ;;  %v372_v24 = vld [vmem:[%s9351_s1 + $0xa48] sm:$0xff]  ;;  %v6076_v29 = vcombine.high %v428_v20, %v432_v21  ;;  %v105_v33 = vld [vmem:[%s9351_s1 + $0x1f0] sm:$0xff]  ;;  %v6075_v36 = vcombine.low %v428_v20, %v432_v21 }
  0xac   :  { %2748 = vmatprep.subr.bf16.mxu1 %v5948_v35  ;;  %v376_v26 = vld [vmem:[%s9351_s1 + $0xa68] sm:$0xff]  ;;  %v5750_v38 = vcombine.high %v101_v32, %v105_v33  ;;  %v5749_v46 = vcombine.low %v101_v32, %v105_v33  ;;  %v57_v20 = vld [vmem:[%s9351_s1 + $0x70] sm:$0xff] }
  0xad   :  { %v6020_v30 = vcombine.high %v372_v24, %v376_v26  ;;  %v364_v34 = vld [vmem:[%s9351_s1 + $0xa08] sm:$0xff]  ;;  %v6019_v37 = vcombine.low %v372_v24, %v376_v26  ;;  %v181_v21 = vld [vmem:[%s9351_s1 + $0x450] sm:$0xff] }
  0xae   :  { %2710 = vmatpush2.bf16.msra.mxu0 %v5931_v40  ;;  %v368_v35 = vld [vmem:[%s9351_s1 + $0xa28] sm:$0xff]  ;;  %v229_v40 = vld [vmem:[%s9351_s1 + $0x5d0] sm:$0xff] }
  0xaf   :  { %2749 = vmatpush1.bf16.msra.mxu1 %v5947_v41  ;;  %2711 = vmatprep.subr.bf16.mxu0 %v5924_v42  ;;  %v6012_v39 = vcombine.high %v364_v34, %v368_v35  ;;  %v233_v41 = vld [vmem:[%s9351_s1 + $0x5f0] sm:$0xff]  ;;  %v6011_v42 = vcombine.low %v364_v34, %v368_v35  ;;  %v6898_v61 = vld [vmem:[%s9352_s0 + $0xc] ss:$28 sps:$4 sm:$0xff]  }
  0xb0   :  { %2750 = vmatprep.subr.bf16.mxu1 %v6068_v59  ;;  %v5878_v59 = vcombine.high %v229_v40, %v233_v41  ;;  %v185_v24 = vld [vmem:[%s9351_s1 + $0x470] sm:$0xff] }
  0xb1   :  { %v49_v32 = vld [vmem:[%s9351_s1 + $0x30] sm:$0xff] }
  0xb2   :  { %2712 = vmatpush2.bf16.msra.mxu0 %v5923_v47  ;;  %v5877_v47 = vcombine.low %v229_v40, %v233_v41  ;;  %v173_v33 = vld [vmem:[%s9351_s1 + $0x410] sm:$0xff] }
  0xb3   :  { %2751 = vmatpush2.bf16.msra.mxu1 %v6067_v48  ;;  %2713 = vmatprep.subr.bf16.mxu0 %v5916_v49  ;;  %v5870_v49 = vcombine.high %v221_v44, %v225_v45  ;;  %v177_v34 = vld [vmem:[%s9351_s1 + $0x430] sm:$0xff] }
  0xb4   :  { %2752 = vmatprep.subr.bf16.mxu1 %v6060_v50  ;;  %v85_v50 = vld [vmem:[%s9351_s1 + $0x150] sm:$0xff] }
  0xb5   :  { %v5733_v62 = vcombine.low %v85_v50, %v89_v56  ;;  %v169_v40 = vld [vmem:[%s9351_s1 + $0x3f0] sm:$0xff] }
  0xb6   :  { %2714 = vmatpush2.bf16.msra.mxu0 %v5915_v54  ;;  %v5869_v54 = vcombine.low %v221_v44, %v225_v45  ;;  %v293_v41 = vld [vmem:[%s9351_s1 + $0x7d0] sm:$0xff] }
  0xb7   :  { %2753 = vmatpush2.bf16.msra.mxu1 %v6059_v55  ;;  %2715 = vmatprep.subr.bf16.mxu0 %v5908_v12  ;;  %v5734_v55 = vcombine.high %v85_v50, %v89_v56  ;;  %v5862_v12 = vcombine.high %v213_v51, %v217_v52  ;;  %v157_v45 = vld [vmem:[%s9351_s1 + $0x390] sm:$0xff] }
  0xb8   :  { %2754 = vmatprep.subr.bf16.mxu1 %v6052_v57  ;;  %v81_v57 = vld [vmem:[%s9351_s1 + $0x130] sm:$0xff] }
  0xba   :  { %2716 = vmatpush2.bf16.msra.mxu0 %v5907_v22  ;;  %v5861_v22 = vcombine.low %v213_v51, %v217_v52  ;;  %v149_v52 = vld [vmem:[%s9351_s1 + $0x350] sm:$0xff] }
  0xbb   :  { %2755 = vmatpush2.bf16.msra.mxu1 %v6051_v63  ;;  %2717 = vmatprep.subr.bf16.mxu0 %v5900_v0  ;;  %v5854_v0 = vcombine.high %v205_v58, %v209_v60 }
  0xbc   :  { %2756 = vmatprep.subr.bf16.mxu1 %v6044_v1  ;;  %v69_v1 = vld [vmem:[%s9351_s1 + $0xd0] sm:$0xff] }
  0xbd   :  { %v5717_v14 = vcombine.low %v69_v1, %v73_v2 }
  0xbe   :  { %2718 = vmatpush2.bf16.msra.mxu0 %v5899_v6  ;;  %v5853_v6 = vcombine.low %v205_v58, %v209_v60  ;;  %v141_v60 = vld [vmem:[%s9351_s1 + $0x310] sm:$0xff] }
  0xbf   :  { %2757 = vmatpush2.bf16.msra.mxu1 %v6043_v7  ;;  %2719 = vmatprep.subr.bf16.mxu0 %v5892_v8  ;;  %v5718_v7 = vcombine.high %v69_v1, %v73_v2  ;;  %v5846_v8 = vcombine.high %v197_v3, %v201_v4 }
  0xc0   :  { %2758 = vmatprep.subr.bf16.mxu1 %v6036_v9  ;;  %v61_v9 = vld [vmem:[%s9351_s1 + $0x90] sm:$0xff] }
  0xc1   :  { %v5709_v26 = vcombine.low %v61_v9, %v65_v10 }
  0xc2   :  { %2720 = vmatpush2.bf16.msra.mxu0 %v5891_v16  ;;  %v5845_v16 = vcombine.low %v197_v3, %v201_v4  ;;  %v133_v3 = vld [vmem:[%s9351_s1 + $0x2d0] sm:$0xff] }
  0xc3   :  { %2759 = vmatpush2.bf16.msra.mxu1 %v6035_v17  ;;  %2721 = vmatprep.subr.bf16.mxu0 %v5884_v18  ;;  %v5710_v17 = vcombine.high %v61_v9, %v65_v10  ;;  %v5838_v18 = vcombine.high %v189_v11, %v193_v13  ;;  %v137_v4 = vld [vmem:[%s9351_s1 + $0x2f0] sm:$0xff] }
  0xc4   :  { %2760 = vmatprep.subr.bf16.mxu1 %v6028_v19  ;;  %v53_v19 = vld [vmem:[%s9351_s1 + $0x50] sm:$0xff]  ;;  %v5782_v10 = vcombine.high %v133_v3, %v137_v4 }
  0xc5   :  { %v5701_v35 = vcombine.low %v53_v19, %v57_v20 }
  0xc6   :  { %2722 = vmatpush2.bf16.msra.mxu0 %v5883_v27  ;;  %v5837_v27 = vcombine.low %v189_v11, %v193_v13  ;;  %v125_v13 = vld [vmem:[%s9351_s1 + $0x290] sm:$0xff] }
  0xc7   :  { %2761 = vmatpush2.bf16.msra.mxu1 %v6027_v28  ;;  %2791 = vmatprep.subr.bf16.mxu0 %v6076_v29  ;;  %v5702_v28 = vcombine.high %v53_v19, %v57_v20  ;;  %v5830_v29 = vcombine.high %v181_v21, %v185_v24 }
  0xc8   :  { %2762 = vmatprep.subr.bf16.mxu1 %v6020_v30  ;;  %v45_v30 = vld [vmem:[%s9351_s1 + $0x10] sm:$0xff] }
  0xc9   :  { %2724 = vmatmul.mubr.bf16.vlgmr.msra.gmra.mxu0 %v7196_v15  ;;  %v93_v15 = vld [vmem:[%s9351_s1 + $0x190] sm:$0xff] }
  0xca   :  { %2792 = vmatpush1.bf16.msra.mxu0 %v6075_v36  ;;  %2809 = vmatprep.mubr.bf16.mxu0 %v6909_v25  ;;  %v5742_v48 = vcombine.high %v93_v15, %v97_v43  ;;  %v5741_v53 = vcombine.low %v93_v15, %v97_v43  ;;  %v5829_v36 = vcombine.low %v181_v21, %v185_v24 }
  0xcb   :  { %2763 = vmatpush2.bf16.msra.mxu1 %v6019_v37  ;;  %2820 = vmatprep.subr.bf16.mxu0 %v5750_v38  ;;  %v5694_v37 = vcombine.high %v45_v30, %v49_v32  ;;  %v5822_v38 = vcombine.high %v173_v33, %v177_v34  ;;  %v5821_v15 = vcombine.low %v173_v33, %v177_v34 }
  0xcc   :  { %2764 = vmatprep.subr.bf16.mxu1 %v6012_v39  ;;  %v165_v39 = vld [vmem:[%s9351_s1 + $0x3d0] sm:$0xff] }
  0xcd   :  { %v5814_v43 = vcombine.high %v165_v39, %v169_v40 }
  0xcf   :  { %2765 = vmatpush2.bf16.msra.mxu1 %v6011_v42  ;;  %v297_v42 = vld [vmem:[%s9351_s1 + $0x7f0] sm:$0xff] }
  0xd0   :  { %2863 = vmatprep.subr.bf16.mxu1 %v5878_v59  ;;  %v5693_v59 = vcombine.low %v45_v30, %v49_v32  ;;  %v5942_v44 = vcombine.high %v293_v41, %v297_v42  ;;  %v5941_v50 = vcombine.low %v293_v41, %v297_v42 }
  0xd1   :  { %6082 = vmatmul.mubr.msk.bf16.vlgmr.msra.gmra.mxu0 %vm2472_vm0, %v7228_v31  ;;  %v77_v31 = vld [vmem:[%s9351_s1 + $0x110] sm:$0xff] }
  0xd2   :  { %2767 = vmatmul.mubr.bf16.vlgmr.msra.gmra.mxu1 %v7398_v23  ;;  %2821 = vmatpush1.bf16.msra.mxu0 %v5749_v46  ;;  %v7646_v23 = vld [vmem:[%s9352_s0 + $0x4] ss:$28 sps:$4 sm:$0xff]   ;;  %v5726_v63 = vcombine.high %v77_v31, %v81_v57  ;;  %v5725_v5 = vcombine.low %v77_v31, %v81_v57  ;;  %v161_v46 = vld [vmem:[%s9351_s1 + $0x3b0] sm:$0xff] }
  0xd3   :  { %2864 = vmatpush1.bf16.msra.mxu1 %v5877_v47  ;;  %2822 = vmatprep.subr.bf16.mxu0 %v5742_v48  ;;  %v285_v47 = vld [vmem:[%s9351_s1 + $0x790] sm:$0xff]  ;;  %v5806_v56 = vcombine.high %v157_v45, %v161_v46 }
  0xd4   :  { %2865 = vmatprep.subr.bf16.mxu1 %v5870_v49  ;;  %2852 = vmatprep.mubr.bf16.mxu0 %v7646_v23  ;;  %v289_v48 = vld [vmem:[%s9351_s1 + $0x7b0] sm:$0xff]  ;;  %v5813_v49 = vcombine.low %v165_v39, %v169_v40 }
  0xd5   :  { %2895 = vmatprep.mubr.bf16.mxu1 %v6898_v61  ;;  %v5934_v51 = vcombine.high %v285_v47, %v289_v48  ;;  %v5933_v31 = vcombine.low %v285_v47, %v289_v48  ;;  %v145_v61 = vld [vmem:[%s9351_s1 + $0x330] sm:$0xff] }
  0xd6   :  { %2823 = vmatpush1.bf16.msra.mxu0 %v5741_v53  ;;  %v153_v53 = vld [vmem:[%s9351_s1 + $0x370] sm:$0xff]  ;;  %v5790_v1 = vcombine.high %v141_v60, %v145_v61 }
  0xd7   :  { %2866 = vmatpush1.bf16.msra.mxu1 %v5869_v54  ;;  %2824 = vmatprep.subr.bf16.mxu0 %v5734_v55  ;;  %v277_v54 = vld [vmem:[%s9351_s1 + $0x750] sm:$0xff]  ;;  %v5798_v57 = vcombine.high %v149_v52, %v153_v53 }
  0xd8   :  { %2867 = vmatprep.subr.bf16.mxu1 %v5862_v12  ;;  %v281_v55 = vld [vmem:[%s9351_s1 + $0x770] sm:$0xff]  ;;  %v5805_v12 = vcombine.low %v157_v45, %v161_v46 }
  0xd9   :  { %v5926_v58 = vcombine.high %v277_v54, %v281_v55  ;;  %v237_v39 = vld [vmem:[%s9351_s1 + $0x610] sm:$0xff] }
  0xda   :  { %2825 = vmatpush1.bf16.msra.mxu0 %v5733_v62  ;;  %v269_v62 = vld [vmem:[%s9351_s1 + $0x710] sm:$0xff] }
  0xdb   :  { %2868 = vmatpush1.bf16.msra.mxu1 %v5861_v22  ;;  %2826 = vmatprep.subr.bf16.mxu0 %v5726_v63  ;;  %v273_v22 = vld [vmem:[%s9351_s1 + $0x730] sm:$0xff]  ;;  %v5797_v63 = vcombine.low %v149_v52, %v153_v53 }
  0xdc   :  { %2869 = vmatprep.subr.bf16.mxu1 %v5854_v0  ;;  %v5925_v0 = vcombine.low %v277_v54, %v281_v55  ;;  %v5918_v2 = vcombine.high %v269_v62, %v273_v22  ;;  %v5917_v9 = vcombine.low %v269_v62, %v273_v22  ;;  %v241_v40 = vld [vmem:[%s9351_s1 + $0x630] sm:$0xff] }
  0xdd   :  { %v361_v45 = vld [vmem:[%s9351_s1 + $0x9f0] sm:$0xff]  ;;  %v5885_v52 = vcombine.low %v237_v39, %v241_v40 }
  0xde   :  { %2827 = vmatpush1.bf16.msra.mxu0 %v5725_v5  ;;  %v261_v5 = vld [vmem:[%s9351_s1 + $0x6d0] sm:$0xff] }
  0xdf   :  { %2870 = vmatpush1.bf16.msra.mxu1 %v5853_v6  ;;  %2828 = vmatprep.subr.bf16.mxu0 %v5718_v7  ;;  %v265_v6 = vld [vmem:[%s9351_s1 + $0x6f0] sm:$0xff]  ;;  %v5789_v7 = vcombine.low %v141_v60, %v145_v61  ;;  %v102_v60 = vld [vmem:[%s9351_s1 + $0x1d8] sm:$0xff] }
  0xe0   :  { %2871 = vmatprep.subr.bf16.mxu1 %v5846_v8  ;;  %v437_v8 = vlaneseq  ;;  %v5910_v11 = vcombine.high %v261_v5, %v265_v6  ;;  %v5909_v20 = vcombine.low %v261_v5, %v265_v6  ;;  %v429_v47 = vld [vmem:[%s9351_s1 + $0xc10] sm:$0xff]  ;;  %v106_v61 = vld [vmem:[%s9351_s1 + $0x1f8] sm:$0xff] }
  0xe1   :  { %v433_v48 = vld [vmem:[%s9351_s1 + $0xc30] sm:$0xff]  ;;  %v7852_v6 = vld [vmem:[%s9352_s0] ss:$28 sps:$4 sm:$0xff]  }
  0xe2   :  { %2829 = vmatpush1.bf16.msra.mxu0 %v5717_v14  ;;  %v129_v14 = vld [vmem:[%s9351_s1 + $0x2b0] sm:$0xff]  ;;  %v7778_v19 = vshrl.u32 %v437_v8, 7 }
  0xe3   :  { %2872 = vmatpush1.bf16.msra.mxu1 %v5845_v16  ;;  %2830 = vmatprep.subr.bf16.mxu0 %v5710_v17  ;;  %v253_v16 = vld [vmem:[%s9351_s1 + $0x690] sm:$0xff]  ;;  %v5774_v21 = vcombine.high %v125_v13, %v129_v14  ;;  %v5773_v30 = vcombine.low %v125_v13, %v129_v14  ;;  %v94_v13 = vld [vmem:[%s9351_s1 + $0x198] sm:$0xff] }
  0xe4   :  { %2873 = vmatprep.subr.bf16.mxu1 %v5838_v18  ;;  %v257_v17 = vld [vmem:[%s9351_s1 + $0x6b0] sm:$0xff]  ;;  %v5781_v18 = vcombine.low %v133_v3, %v137_v4  ;;  %v7793_v32 = vsub.s32 0, %v7778_v19  ;;  %v5752_v3 = vcombine.high %v102_v60, %v106_v61  ;;  %v98_v14 = vld [vmem:[%s9351_s1 + $0x1b8] sm:$0xff] }
  0xe5   :  { %v5902_v24 = vcombine.high %v253_v16, %v257_v17  ;;  %v5901_v33 = vcombine.low %v253_v16, %v257_v17  ;;  %v341_v4 = vld [vmem:[%s9351_s1 + $0x950] sm:$0xff] }
  0xe6   :  { %2831 = vmatpush1.bf16.msra.mxu0 %v5709_v26  ;;  %v117_v26 = vld [vmem:[%s9351_s1 + $0x250] sm:$0xff] }
  0xe7   :  { %2874 = vmatpush1.bf16.msra.mxu1 %v5837_v27  ;;  %2832 = vmatprep.subr.bf16.mxu0 %v5702_v28  ;;  %v121_v27 = vld [vmem:[%s9351_s1 + $0x270] sm:$0xff] }
  0xe8   :  { %2875 = vmatprep.subr.bf16.mxu1 %v5830_v29  ;;  %v245_v28 = vld [vmem:[%s9351_s1 + $0x650] sm:$0xff]  ;;  %v5766_v34 = vcombine.high %v117_v26, %v121_v27  ;;  %v5765_v41 = vcombine.low %v117_v26, %v121_v27  ;;  %v5744_v26 = vcombine.high %v94_v13, %v98_v14 }
  0xe9   :  { %v249_v29 = vld [vmem:[%s9351_s1 + $0x670] sm:$0xff] }
  0xea   :  { %2833 = vmatpush1.bf16.msra.mxu0 %v5701_v35  ;;  %v435_v35 = vld [vmem:[%s9353_s2] sm:$0xff]  ;;  %v345_v5 = vld [vmem:[%s9351_s1 + $0x970] sm:$0xff] }
  0xeb   :  { %2876 = vmatpush1.bf16.msra.mxu1 %v5829_v36  ;;  %2834 = vmatprep.subr.bf16.mxu0 %v5694_v37  ;;  %v5894_v36 = vcombine.high %v245_v28, %v249_v29  ;;  %v109_v37 = vld [vmem:[%s9351_s1 + $0x210] sm:$0xff]  ;;  %v440_v42 = vrot.slane %v435_v35, %v7793_v32  ;;  %v5989_v17 = vcombine.low %v341_v4, %v345_v5 }
  0xec   :  { %2877 = vmatprep.subr.bf16.mxu1 %v5822_v38  ;;  %v113_v38 = vld [vmem:[%s9351_s1 + $0x230] sm:$0xff] }
  0xed   :  { %v7874_v16 = vld [vmem:[%s9352_s0 + $0x14] ss:$28 sps:$4 sm:$0xff]  }
  0xee   :  { %2835 = vmatpush1.bf16.msra.mxu0 %v5693_v59  ;;  %v5893_v59 = vcombine.low %v245_v28, %v249_v29  ;;  %v329_v27 = vld [vmem:[%s9351_s1 + $0x8f0] sm:$0xff]  ;;  %v90_v28 = vld [vmem:[%s9351_s1 + $0x178] sm:$0xff] }
  0xef   :  { %2878 = vmatpush1.bf16.msra.mxu1 %v5821_v15  ;;  %2836 = vmatprep.subr.bf16.mxu0 %v5814_v43  ;;  %v5758_v15 = vcombine.high %v109_v37, %v113_v38  ;;  %v5886_v43 = vcombine.high %v237_v39, %v241_v40  ;;  %v6902_v29 = vld [vmem:[%s9352_s0 + $0x18] ss:$28 sps:$4 sm:$0xff]  }
  0xf0   :  { %2879 = vmatprep.subr.bf16.mxu1 %v5942_v44  ;;  %v357_v44 = vld [vmem:[%s9351_s1 + $0x9d0] sm:$0xff]  ;;  %v82_v39 = vld [vmem:[%s9351_s1 + $0x138] sm:$0xff] }
  0xf1   :  { %v6006_v53 = vcombine.high %v357_v44, %v361_v45  ;;  %v6005_v22 = vcombine.low %v357_v44, %v361_v45  ;;  %v313_v44 = vld [vmem:[%s9351_s1 + $0x870] sm:$0xff] }
  0xf2   :  { %2837 = vmatpush2.bf16.msra.mxu0 %v5813_v49 }
  0xf3   :  { %2880 = vmatpush2.bf16.msra.mxu1 %v5941_v50  ;;  %2838 = vmatprep.subr.bf16.mxu0 %v5806_v56  ;;  %v5757_v56 = vcombine.low %v109_v37, %v113_v38  ;;  %v321_v37 = vld [vmem:[%s9351_s1 + $0x8b0] sm:$0xff]  ;;  %v78_v38 = vld [vmem:[%s9351_s1 + $0x118] sm:$0xff] }
  0xf4   :  { %2881 = vmatprep.subr.bf16.mxu1 %v5934_v51 }
  0xf6   :  { %2839 = vmatpush2.bf16.msra.mxu0 %v5805_v12  ;;  %v6078_v12 = vcombine.high %v429_v47, %v433_v48 }
  0xf7   :  { %2882 = vmatpush2.bf16.msra.mxu1 %v5933_v31  ;;  %2840 = vmatprep.subr.bf16.mxu0 %v5798_v57  ;;  %v349_v31 = vld [vmem:[%s9351_s1 + $0x990] sm:$0xff] }
  0xf8   :  { %2883 = vmatprep.subr.bf16.mxu1 %v5926_v58  ;;  %v353_v57 = vld [vmem:[%s9351_s1 + $0x9b0] sm:$0xff] }
  0xf9   :  { %v5997_v8 = vcombine.low %v349_v31, %v353_v57 }
  0xfa   :  { %2841 = vmatpush2.bf16.msra.mxu0 %v5797_v63 }
  0xfb   :  { %2884 = vmatpush2.bf16.msra.mxu1 %v5925_v0  ;;  %2842 = vmatprep.subr.bf16.mxu0 %v5790_v1  ;;  %v6077_v0 = vcombine.low %v429_v47, %v433_v48  ;;  %v5998_v1 = vcombine.high %v349_v31, %v353_v57  ;;  %v62_v48 = vld [vmem:[%s9351_s1 + $0x98] sm:$0xff] }
  0xfc   :  { %2885 = vmatprep.subr.bf16.mxu1 %v5918_v2  ;;  %v54_v57 = vld [vmem:[%s9351_s1 + $0x58] sm:$0xff] }
  0xfe   :  { %2843 = vmatpush2.bf16.msra.mxu0 %v5789_v7  ;;  %v6900_v7 = vld [vmem:[%s9352_s0 + $0x8] ss:$28 sps:$4 sm:$0xff]  }
  0xff   :  { %2886 = vmatpush2.bf16.msra.mxu1 %v5917_v9  ;;  %2844 = vmatprep.subr.bf16.mxu0 %v5782_v10  ;;  %v5990_v9 = vcombine.high %v341_v4, %v345_v5  ;;  %v333_v10 = vld [vmem:[%s9351_s1 + $0x910] sm:$0xff] }
 0x100   :  { %2887 = vmatprep.subr.bf16.mxu1 %v5910_v11  ;;  %v337_v11 = vld [vmem:[%s9351_s1 + $0x930] sm:$0xff] }
 0x101   :  { %v413_v4 = vld [vmem:[%s9351_s1 + $0xb90] sm:$0xff] }
 0x102   :  { %2845 = vmatpush2.bf16.msra.mxu0 %v5781_v18  ;;  %v5751_v18 = vcombine.low %v102_v60, %v106_v61  ;;  %v421_v60 = vld [vmem:[%s9351_s1 + $0xbd0] sm:$0xff] }
 0x103   :  { %2888 = vmatpush2.bf16.msra.mxu1 %v5909_v20  ;;  %2846 = vmatprep.subr.bf16.mxu0 %v5774_v21  ;;  %v5982_v20 = vcombine.high %v333_v10, %v337_v11  ;;  %v86_v21 = vld [vmem:[%s9351_s1 + $0x158] sm:$0xff] }
 0x104   :  { %2889 = vmatprep.subr.bf16.mxu1 %v5902_v24  ;;  %v325_v24 = vld [vmem:[%s9351_s1 + $0x8d0] sm:$0xff]  ;;  %v5736_v35 = vcombine.high %v86_v21, %v90_v28 }
 0x105   :  { %v5973_v40 = vcombine.low %v325_v24, %v329_v27 }
 0x106   :  { %2847 = vmatpush2.bf16.msra.mxu0 %v5773_v30  ;;  %v5981_v30 = vcombine.low %v333_v10, %v337_v11  ;;  %v166_v11 = vld [vmem:[%s9351_s1 + $0x3d8] sm:$0xff] }
 0x107   :  { %2890 = vmatpush2.bf16.msra.mxu1 %v5901_v33  ;;  %2848 = vmatprep.subr.bf16.mxu0 %v5766_v34  ;;  %v5743_v33 = vcombine.low %v94_v13, %v98_v14  ;;  %v5974_v34 = vcombine.high %v325_v24, %v329_v27  ;;  %v170_v13 = vld [vmem:[%s9351_s1 + $0x3f8] sm:$0xff]  ;;  %v405_v14 = vld [vmem:[%s9351_s1 + $0xb50] sm:$0xff] }
 0x108   :  { %2891 = vmatprep.subr.bf16.mxu1 %v5894_v36  ;;  %v317_v36 = vld [vmem:[%s9351_s1 + $0x890] sm:$0xff]  ;;  %v162_v27 = vld [vmem:[%s9351_s1 + $0x3b8] sm:$0xff] }
 0x109   :  { %v2510_v46 = vpop.f32.mrf.mxu0  ;;  %v2553_v50 = vpop.f32.mrf.mxu1  ;;  %v5965_v45 = vcombine.low %v317_v36, %v321_v37 }
 0x10a   :  { %v2511_v49 = vadd.f32 %v2510_v46, %v440_v42  ;;  %2849 = vmatpush2.bf16.msra.mxu0 %v5765_v41  ;;  %v5735_v41 = vcombine.low %v86_v21, %v90_v28  ;;  %v5727_v46 = vcombine.low %v78_v38, %v82_v39  ;;  %v397_v28 = vld [vmem:[%s9351_s1 + $0xb10] sm:$0xff] }
 0x10b   :  { %2892 = vmatpush2.bf16.msra.mxu1 %v5893_v59  ;;  %v7823_v51 = vpop.f32.mrf.mxu0  ;;  %2850 = vmatprep.subr.bf16.mxu0 %v5758_v15  ;;  %v7827_v55 = vpop.f32.mrf.mxu1  ;;  %v70_v59 = vld [vmem:[%s9351_s1 + $0xd8] sm:$0xff]  ;;  %v309_v15 = vld [vmem:[%s9351_s1 + $0x850] sm:$0xff] }
 0x10c   :  { %v7825_v54 = vadd.f32 %v2553_v50, %v2511_v49  ;;  %2893 = vmatprep.subr.bf16.mxu1 %v5886_v43  ;;  %v5728_v43 = vcombine.high %v78_v38, %v82_v39  ;;  %v5958_v47 = vcombine.high %v309_v15, %v313_v44  ;;  %v66_v49 = vld [vmem:[%s9351_s1 + $0xb8] sm:$0xff]  ;;  %v389_v38 = vld [vmem:[%s9351_s1 + $0xad0] sm:$0xff] }
 0x10d   :  { %v2514_v58 = vpop.f32.mrf.mxu0  ;;  %v2557_v63 = vpop.f32.mrf.mxu1  ;;  %v5712_v61 = vcombine.high %v62_v48, %v66_v49 }
 0x10e   :  { %v2515_v62 = vadd.f32 %v2514_v58, %v440_v42  ;;  %2851 = vmatpush2.bf16.msra.mxu0 %v5757_v56  ;;  %v5966_v42 = vcombine.high %v317_v36, %v321_v37  ;;  %v301_v56 = vld [vmem:[%s9351_s1 + $0x810] sm:$0xff]  ;;  %v58_v58 = vld [vmem:[%s9351_s1 + $0x78] sm:$0xff] }
 0x10f   :  { %2894 = vmatpush2.bf16.msra.mxu1 %v5885_v52  ;;  %2906 = vmatprep.subr.bf16.mxu0 %v6006_v53  ;;  %v305_v52 = vld [vmem:[%s9351_s1 + $0x830] sm:$0xff]  ;;  %v5957_v53 = vcombine.low %v309_v15, %v313_v44  ;;  %v5704_v5 = vcombine.high %v54_v57, %v58_v58  ;;  %v150_v36 = vld [vmem:[%s9351_s1 + $0x358] sm:$0xff] }
 0x110   :  { %v7841_v2 = vadd.f32 %v2557_v63, %v2515_v62  ;;  %2963 = vmatprep.subr.bf16.mxu1 %v6078_v12  ;;  %v5950_v31 = vcombine.high %v301_v56, %v305_v52  ;;  %v425_v62 = vld [vmem:[%s9351_s1 + $0xbf0] sm:$0xff]  ;;  %v5711_v63 = vcombine.low %v62_v48, %v66_v49  ;;  %v154_v37 = vld [vmem:[%s9351_s1 + $0x378] sm:$0xff] }
 0x111   :  { %2853 = vmatmul.mubr.bf16.vlgmr.msra.gmra.mxu0 %v7852_v6  ;;  %v146_v15 = vld [vmem:[%s9351_s1 + $0x338] sm:$0xff]  ;;  %v5800_v44 = vcombine.high %v150_v36, %v154_v37 }
 0x112   :  { %2896 = vmatmul.mubr.bf16.vlgmr.msra.gmra.mxu1 %v6900_v7  ;;  %2907 = vmatpush1.bf16.msra.mxu0 %v6005_v22  ;;  %v5949_v22 = vcombine.low %v301_v56, %v305_v52  ;;  %v417_v7 = vld [vmem:[%s9351_s1 + $0xbb0] sm:$0xff]  ;;  %v134_v49 = vld [vmem:[%s9351_s1 + $0x2d8] sm:$0xff] }
 0x113   :  { %2964 = vmatpush1.bf16.msra.mxu1 %v6077_v0  ;;  %2908 = vmatprep.subr.bf16.mxu0 %v5998_v1  ;;  %v6070_v0 = vcombine.high %v421_v60, %v425_v62  ;;  %v46_v1 = vld [vmem:[%s9351_s1 + $0x18] sm:$0xff]  ;;  %v6062_v10 = vcombine.high %v413_v4, %v417_v7  ;;  %v373_v56 = vld [vmem:[%s9351_s1 + $0xa50] sm:$0xff] }
 0x114   :  { %2981 = vmatprep.mubr.bf16.mxu1 %v6909_v25  ;;  %2992 = vmatprep.subr.bf16.mxu1 %v5752_v3  ;;  %v50_v3 = vld [vmem:[%s9351_s1 + $0x38] sm:$0xff] }
 0x115   :  { %2938 = vmatprep.mubr.bf16.mxu0 %v7874_v16  ;;  %v5695_v21 = vcombine.low %v46_v1, %v50_v3 }
 0x116   :  { %2909 = vmatpush1.bf16.msra.mxu0 %v5997_v8  ;;  %v6069_v8 = vcombine.low %v421_v60, %v425_v62  ;;  %v126_v60 = vld [vmem:[%s9351_s1 + $0x298] sm:$0xff]  ;;  %v365_v62 = vld [vmem:[%s9351_s1 + $0xa10] sm:$0xff] }
 0x117   :  { %2910 = vmatprep.subr.bf16.mxu0 %v5990_v9  ;;  %v5703_v9 = vcombine.low %v54_v57, %v58_v58 }
 0x11a   :  { %6083 = vmatmul.mubr.msk.bf16.vlgmr.msra.gmra.mxu1 %vm2472_vm0, %v6902_v29  ;;  %2911 = vmatpush1.bf16.msra.mxu0 %v5989_v17  ;;  %v5696_v17 = vcombine.high %v46_v1, %v50_v3  ;;  %v5816_v29 = vcombine.high %v166_v11, %v170_v13  ;;  %v8028_v1 = vpop.f32.mrf.mxu0 }
 0x11b   :  { %2993 = vmatpush1.bf16.msra.mxu1 %v5751_v18  ;;  %2912 = vmatprep.subr.bf16.mxu0 %v5982_v20  ;;  %v409_v18 = vld [vmem:[%s9351_s1 + $0xb70] sm:$0xff]  ;;  %v6061_v20 = vcombine.low %v413_v4, %v417_v7  ;;  %v118_v7 = vld [vmem:[%s9351_s1 + $0x258] sm:$0xff] }
 0x11c   :  { %2994 = vmatprep.subr.bf16.mxu1 %v5744_v26  ;;  %3024 = vmatprep.mubr.bf16.mxu1 %v7646_v23  ;;  %v74_v23 = vld [vmem:[%s9351_s1 + $0xf8] sm:$0xff]  ;;  %v6054_v24 = vcombine.high %v405_v14, %v409_v18 }
 0x11d   :  { %v5720_v50 = vcombine.high %v70_v59, %v74_v23  ;;  %v5719_v12 = vcombine.low %v70_v59, %v74_v23  ;;  %v158_v26 = vld [vmem:[%s9351_s1 + $0x398] sm:$0xff] }
 0x11e   :  { %2913 = vmatpush1.bf16.msra.mxu0 %v5981_v30  ;;  %v401_v30 = vld [vmem:[%s9351_s1 + $0xb30] sm:$0xff]  ;;  %v5808_v39 = vcombine.high %v158_v26, %v162_v27  ;;  %v142_v23 = vld [vmem:[%s9351_s1 + $0x318] sm:$0xff] }
 0x11f   :  { %2995 = vmatpush1.bf16.msra.mxu1 %v5743_v33  ;;  %2914 = vmatprep.subr.bf16.mxu0 %v5974_v34  ;;  %v6053_v33 = vcombine.low %v405_v14, %v409_v18  ;;  %v5815_v34 = vcombine.low %v166_v11, %v170_v13  ;;  %v5792_v52 = vcombine.high %v142_v23, %v146_v15  ;;  %v234_v11 = vld [vmem:[%s9351_s1 + $0x5f8] sm:$0xff] }
 0x120   :  { %2996 = vmatprep.subr.bf16.mxu1 %v5736_v35  ;;  %v6046_v35 = vcombine.high %v397_v28, %v401_v30  ;;  %v5791_v57 = vcombine.low %v142_v23, %v146_v15  ;;  %v218_v23 = vld [vmem:[%s9351_s1 + $0x578] sm:$0xff]  ;;  %v8075_v15 = vld [vmem:[%s9352_s0 + $0x10] ss:$28 sps:$4 sm:$0xff]  }
 0x122   :  { %2915 = vmatpush1.bf16.msra.mxu0 %v5973_v40  ;;  %v393_v40 = vld [vmem:[%s9351_s1 + $0xaf0] sm:$0xff] }
 0x123   :  { %2997 = vmatpush1.bf16.msra.mxu1 %v5735_v41  ;;  %2916 = vmatprep.subr.bf16.mxu0 %v5966_v42  ;;  %v6045_v41 = vcombine.low %v397_v28, %v401_v30  ;;  %v5807_v42 = vcombine.low %v158_v26, %v162_v27  ;;  %v6038_v59 = vcombine.high %v389_v38, %v393_v40  ;;  %v110_v26 = vld [vmem:[%s9351_s1 + $0x218] sm:$0xff] }
 0x124   :  { %2998 = vmatprep.subr.bf16.mxu1 %v5728_v43  ;;  %v381_v43 = vld [vmem:[%s9351_s1 + $0xa90] sm:$0xff]  ;;  %v114_v27 = vld [vmem:[%s9351_s1 + $0x238] sm:$0xff] }
 0x125   :  { %v226_v30 = vld [vmem:[%s9351_s1 + $0x5b8] sm:$0xff] }
 0x126   :  { %2917 = vmatpush1.bf16.msra.mxu0 %v5965_v45  ;;  %v385_v45 = vld [vmem:[%s9351_s1 + $0xab0] sm:$0xff] }
 0x127   :  { %2999 = vmatpush1.bf16.msra.mxu1 %v5727_v46  ;;  %2918 = vmatprep.subr.bf16.mxu0 %v5958_v47  ;;  %v6037_v46 = vcombine.low %v389_v38, %v393_v40  ;;  %v5799_v47 = vcombine.low %v150_v36, %v154_v37  ;;  %v6030_v48 = vcombine.high %v381_v43, %v385_v45  ;;  %v362_v40 = vld [vmem:[%s9351_s1 + $0x9f8] sm:$0xff] }
 0x128   :  { %3000 = vmatprep.subr.bf16.mxu1 %v5720_v50  ;;  %v138_v50 = vld [vmem:[%s9351_s1 + $0x2f8] sm:$0xff] }
 0x129   :  { %v5783_v4 = vcombine.low %v134_v49, %v138_v50 }
 0x12a   :  { %2919 = vmatpush1.bf16.msra.mxu0 %v5957_v53  ;;  %v377_v53 = vld [vmem:[%s9351_s1 + $0xa70] sm:$0xff] }
 0x12b   :  { %3001 = vmatpush1.bf16.msra.mxu1 %v5719_v12  ;;  %2920 = vmatprep.subr.bf16.mxu0 %v5950_v31  ;;  %v6029_v12 = vcombine.low %v381_v43, %v385_v45  ;;  %v8014_v31 = vpop.f32.mrf.mxu1  ;;  %v6022_v58 = vcombine.high %v373_v56, %v377_v53  ;;  %v6904_v45 = vld [vmem:[%s9352_s0 + $0xc] ss:$28 sps:$4 sm:$0xff]  }
 0x12c   :  { %3002 = vmatprep.subr.bf16.mxu1 %v5712_v61  ;;  %v130_v61 = vld [vmem:[%s9351_s1 + $0x2b8] sm:$0xff] }
 0x12d   :  { %v2639_v3 = vpop.f32.mrf.mxu1 }
 0x12e   :  { %2921 = vmatpush1.bf16.msra.mxu0 %v5949_v22  ;;  %v5784_v22 = vcombine.high %v134_v49, %v138_v50 }
 0x12f   :  { %3003 = vmatpush1.bf16.msra.mxu1 %v5711_v63  ;;  %2922 = vmatprep.subr.bf16.mxu0 %v6070_v0  ;;  %v369_v63 = vld [vmem:[%s9351_s1 + $0xa30] sm:$0xff]  ;;  %v6021_v0 = vcombine.low %v373_v56, %v377_v53  ;;  %v8043_v18 = vpop.f32.mrf.mxu1  ;;  %v206_v56 = vld [vmem:[%s9351_s1 + $0x518] sm:$0xff] }
 0x130   :  { %3004 = vmatprep.subr.bf16.mxu1 %v5704_v5  ;;  %v6014_v5 = vcombine.high %v365_v62, %v369_v63  ;;  %v350_v53 = vld [vmem:[%s9351_s1 + $0x998] sm:$0xff] }
 0x131   :  { %v2643_v36 = vpop.f32.mrf.mxu1 }
 0x132   :  { %2923 = vmatpush2.bf16.msra.mxu0 %v6069_v8  ;;  %v122_v8 = vld [vmem:[%s9351_s1 + $0x278] sm:$0xff] }
 0x133   :  { %3005 = vmatpush1.bf16.msra.mxu1 %v5703_v9  ;;  %2924 = vmatprep.subr.bf16.mxu0 %v6062_v10  ;;  %v230_v9 = vld [vmem:[%s9351_s1 + $0x5d8] sm:$0xff]  ;;  %v5776_v10 = vcombine.high %v126_v60, %v130_v61  ;;  %v5767_v37 = vcombine.low %v118_v7, %v122_v8 }
 0x134   :  { %3006 = vmatprep.subr.bf16.mxu1 %v5696_v17  ;;  %v6013_v17 = vcombine.low %v365_v62, %v369_v63  ;;  %v342_v63 = vld [vmem:[%s9351_s1 + $0x958] sm:$0xff] }
 0x136   :  { %2925 = vmatpush2.bf16.msra.mxu0 %v6061_v20 }
 0x137   :  { %3007 = vmatpush1.bf16.msra.mxu1 %v5695_v21  ;;  %2926 = vmatprep.subr.bf16.mxu0 %v6054_v24  ;;  %v5775_v21 = vcombine.low %v126_v60, %v130_v61  ;;  %v5880_v24 = vcombine.high %v230_v9, %v234_v11  ;;  %v198_v60 = vld [vmem:[%s9351_s1 + $0x4d8] sm:$0xff] }
 0x138   :  { %3008 = vmatprep.subr.bf16.mxu1 %v5816_v29  ;;  %v5768_v29 = vcombine.high %v118_v7, %v122_v8  ;;  %v202_v61 = vld [vmem:[%s9351_s1 + $0x4f8] sm:$0xff] }
 0x139   :  { %v194_v7 = vld [vmem:[%s9351_s1 + $0x4b8] sm:$0xff] }
 0x13a   :  { %2927 = vmatpush2.bf16.msra.mxu0 %v6053_v33 }
 0x13b   :  { %3009 = vmatpush2.bf16.msra.mxu1 %v5815_v34  ;;  %2928 = vmatprep.subr.bf16.mxu0 %v6046_v35  ;;  %v5879_v35 = vcombine.low %v230_v9, %v234_v11  ;;  %v5848_v9 = vcombine.high %v198_v60, %v202_v61 }
 0x13c   :  { %3010 = vmatprep.subr.bf16.mxu1 %v5808_v39  ;;  %v358_v39 = vld [vmem:[%s9351_s1 + $0x9d8] sm:$0xff] }
 0x13d   :  { %v6008_v50 = vcombine.high %v358_v39, %v362_v40  ;;  %v6007_v62 = vcombine.low %v358_v39, %v362_v40  ;;  %v298_v39 = vld [vmem:[%s9351_s1 + $0x7f8] sm:$0xff] }
 0x13e   :  { %2929 = vmatpush2.bf16.msra.mxu0 %v6045_v41 }
 0x13f   :  { %3011 = vmatpush2.bf16.msra.mxu1 %v5807_v42  ;;  %2930 = vmatprep.subr.bf16.mxu0 %v6038_v59  ;;  %v5760_v59 = vcombine.high %v110_v26, %v114_v27 }
 0x140   :  { %3012 = vmatprep.subr.bf16.mxu1 %v5800_v44 }
 0x142   :  { %2931 = vmatpush2.bf16.msra.mxu0 %v6037_v46  ;;  %v5759_v46 = vcombine.low %v110_v26, %v114_v27  ;;  %v186_v26 = vld [vmem:[%s9351_s1 + $0x478] sm:$0xff] }
 0x143   :  { %3013 = vmatpush2.bf16.msra.mxu1 %v5799_v47  ;;  %2932 = vmatprep.subr.bf16.mxu0 %v6030_v48  ;;  %v330_v27 = vld [vmem:[%s9351_s1 + $0x8f8] sm:$0xff] }
 0x144   :  { %3014 = vmatprep.subr.bf16.mxu1 %v5792_v52  ;;  %v210_v52 = vld [vmem:[%s9351_s1 + $0x538] sm:$0xff] }
 0x146   :  { %2933 = vmatpush2.bf16.msra.mxu0 %v6029_v12  ;;  %v354_v12 = vld [vmem:[%s9351_s1 + $0x9b8] sm:$0xff] }
 0x147   :  { %3015 = vmatpush2.bf16.msra.mxu1 %v5791_v57  ;;  %2934 = vmatprep.subr.bf16.mxu0 %v6022_v58  ;;  %v5999_v8 = vcombine.low %v350_v53, %v354_v12 }
 0x148   :  { %3016 = vmatprep.subr.bf16.mxu1 %v5784_v22  ;;  %v5856_v22 = vcombine.high %v206_v56, %v210_v52 }
 0x149   :  { %v2596_v13 = vpop.f32.mrf.mxu0 }
 0x14a   :  { %v2597_v14 = vadd.f32 %v2596_v13, %v7825_v54  ;;  %2935 = vmatpush2.bf16.msra.mxu0 %v6021_v0  ;;  %v222_v54 = vld [vmem:[%s9351_s1 + $0x598] sm:$0xff]  ;;  %v5847_v13 = vcombine.low %v198_v60, %v202_v61 }
 0x14b   :  { %3017 = vmatpush2.bf16.msra.mxu1 %v5783_v4  ;;  %v8045_v20 = vpop.f32.mrf.mxu0  ;;  %2936 = vmatprep.subr.bf16.mxu0 %v6014_v5  ;;  %v5872_v38 = vcombine.high %v222_v54, %v226_v30  ;;  %v5871_v44 = vcombine.low %v222_v54, %v226_v30  ;;  %v346_v0 = vld [vmem:[%s9351_s1 + $0x978] sm:$0xff]  ;;  %v5855_v4 = vcombine.low %v206_v56, %v210_v52 }
 0x14c   :  { %v2640_v28 = vadd.f32 %v2639_v3, %v2597_v14  ;;  %3018 = vmatprep.subr.bf16.mxu1 %v5776_v10  ;;  %v6000_v3 = vcombine.high %v350_v53, %v354_v12  ;;  %v190_v5 = vld [vmem:[%s9351_s1 + $0x498] sm:$0xff]  ;;  %v5992_v11 = vcombine.high %v342_v63, %v346_v0  ;;  %v5991_v14 = vcombine.low %v342_v63, %v346_v0 }
 0x14d   :  { %v2600_v33 = vpop.f32.mrf.mxu0  ;;  %v334_v10 = vld [vmem:[%s9351_s1 + $0x918] sm:$0xff]  ;;  %v5839_v54 = vcombine.low %v190_v5, %v194_v7 }
 0x14e   :  { %v2601_v34 = vadd.f32 %v2600_v33, %v7841_v2  ;;  %2937 = vmatpush2.bf16.msra.mxu0 %v6013_v17  ;;  %v3180_v41 = vmul.f32 0.2, %v2640_v28  ;;  %v214_v2 = vld [vmem:[%s9351_s1 + $0x558] sm:$0xff]  ;;  %vm3164_vm1 = vcmp.gt.f32.partialorder %v2640_v28, 0.0  ;;  %v5840_v17 = vcombine.high %v190_v5, %v194_v7 }
 0x14f   :  { %3019 = vmatpush2.bf16.msra.mxu1 %v5775_v21  ;;  %3035 = vmatprep.subr.bf16.mxu0 %v5880_v24  ;;  %v5864_v47 = vcombine.high %v214_v2, %v218_v23  ;;  %v5863_v58 = vcombine.low %v214_v2, %v218_v23  ;;  %v182_v24 = vld [vmem:[%s9351_s1 + $0x458] sm:$0xff] }
 0x150   :  { %v2644_v42 = vadd.f32 %v2643_v36, %v2601_v34  ;;  %3020 = vmatprep.subr.bf16.mxu1 %v5768_v29  ;;  %v3196_v48 = vsel %vm3164_vm1, %v2640_v28, %v3180_v41  ;;  %v174_v28 = vld [vmem:[%s9351_s1 + $0x418] sm:$0xff]  ;;  %v5832_v33 = vcombine.high %v182_v24, %v186_v26 }
 0x151   :  { %2939 = vmatmul.mubr.bf16.vlgmr.msra.gmra.mxu0 %v8075_v15  ;;  %v178_v29 = vld [vmem:[%s9351_s1 + $0x438] sm:$0xff] }
 0x152   :  { %vm3172_vm2 = vcmp.gt.f32.partialorder %v2644_v42, 0.0  ;;  %v3188_v43 = vmul.f32 0.2, %v2644_v42  ;;  %3036 = vmatpush1.bf16.msra.mxu0 %v5879_v35  ;;  %3067 = vmatprep.mubr.bf16.mxu0 %v6904_v45  ;;  %v318_v34 = vld [vmem:[%s9351_s1 + $0x898] sm:$0xff]  ;;  %v5824_v41 = vcombine.high %v174_v28, %v178_v29  ;;  %v5823_v23 = vcombine.low %v174_v28, %v178_v29 }
 0x153   :  { %3021 = vmatpush2.bf16.msra.mxu1 %v5767_v37  ;;  %3037 = vmatprep.subr.bf16.mxu0 %v5872_v38  ;;  %v322_v35 = vld [vmem:[%s9351_s1 + $0x8b8] sm:$0xff]  ;;  %v5831_v37 = vcombine.low %v182_v24, %v186_v26 }
 0x154   :  { %v3204_v49 = vsel %vm3172_vm2, %v2644_v42, %v3188_v43  ;;  %3022 = vmatprep.subr.bf16.mxu1 %v5760_v59  ;;  %v294_v38 = vld [vmem:[%s9351_s1 + $0x7d8] sm:$0xff]  ;;  %v5968_v2 = vcombine.high %v318_v34, %v322_v35  ;;  %v5967_v45 = vcombine.low %v318_v34, %v322_v35 }
 0x155   :  { %v8093_v57 = vpack.c.bf16 %v3204_v49, %v3196_v48  ;;  %v310_v42 = vld [vmem:[%s9351_s1 + $0x858] sm:$0xff] }
 0x156   :  { %3038 = vmatpush1.bf16.msra.mxu0 %v5871_v44  ;;  %v314_v59 = vld [vmem:[%s9351_s1 + $0x878] sm:$0xff] }
 0x157   :  { %3023 = vmatpush2.bf16.msra.mxu1 %v5759_v46  ;;  %3039 = vmatprep.subr.bf16.mxu0 %v5864_v47  ;;  %v286_v43 = vld [vmem:[%s9351_s1 + $0x798] sm:$0xff]  ;;  %v5944_v46 = vcombine.high %v294_v38, %v298_v39  ;;  %v5960_v49 = vcombine.high %v310_v42, %v314_v59  ;;  %v5959_v53 = vcombine.low %v310_v42, %v314_v59  ;;  %v8236_v42 = vld [vmem:[%s9353_s2] sm:$0xff] }
 0x158   :  { %3078 = vmatprep.subr.bf16.mxu1 %v6008_v50  ;;  %v290_v44 = vld [vmem:[%s9351_s1 + $0x7b8] sm:$0xff]  ;;  %v5943_v50 = vcombine.low %v294_v38, %v298_v39 }
 0x159   :  { %v302_v47 = vld [vmem:[%s9351_s1 + $0x818] sm:$0xff]  ;;  %v5936_v12 = vcombine.high %v286_v43, %v290_v44 }
 0x15a   :  { %3025 = vmatmul.mubr.bf16.vlgmr.msra.gmra.mxu1 %v7852_v6  ;;  %3040 = vmatpush1.bf16.msra.mxu0 %v5863_v58  ;;  %v338_v6 = vld [vmem:[%s9351_s1 + $0x938] sm:$0xff] }
 0x15b   :  { %3079 = vmatpush1.bf16.msra.mxu1 %v6007_v62  ;;  %3041 = vmatprep.subr.bf16.mxu0 %v5856_v22  ;;  %v5984_v21 = vcombine.high %v334_v10, %v338_v6  ;;  %v5983_v30 = vcombine.low %v334_v10, %v338_v6  ;;  %v306_v48 = vld [vmem:[%s9351_s1 + $0x838] sm:$0xff]  ;;  %v5935_v62 = vcombine.low %v286_v43, %v290_v44 }
 0x15c   :  { %3080 = vmatprep.subr.bf16.mxu1 %v6000_v3  ;;  %3110 = vmatprep.mubr.bf16.mxu1 %v7874_v16  ;;  %v326_v16 = vld [vmem:[%s9351_s1 + $0x8d8] sm:$0xff]  ;;  %v5952_v61 = vcombine.high %v302_v47, %v306_v48  ;;  %v5951_v0 = vcombine.low %v302_v47, %v306_v48 }
 0x15d   :  { %v5976_v36 = vcombine.high %v326_v16, %v330_v27  ;;  %v5975_v40 = vcombine.low %v326_v16, %v330_v27  ;;  %v278_v56 = vld [vmem:[%s9351_s1 + $0x758] sm:$0xff] }
 0x15e   :  { %3042 = vmatpush1.bf16.msra.mxu0 %v5855_v4  ;;  %v282_v52 = vld [vmem:[%s9351_s1 + $0x778] sm:$0xff] }
 0x15f   :  { %3081 = vmatpush1.bf16.msra.mxu1 %v5999_v8  ;;  %3043 = vmatprep.subr.bf16.mxu0 %v5848_v9  ;;  %v422_v58 = vld [vmem:[%s9351_s1 + $0xbd8] sm:$0xff]  ;;  %v5928_v3 = vcombine.high %v278_v56, %v282_v52  ;;  %v5927_v8 = vcombine.low %v278_v56, %v282_v52 }
 0x160   :  { %3082 = vmatprep.subr.bf16.mxu1 %v5992_v11  ;;  %v426_v60 = vld [vmem:[%s9351_s1 + $0xbf8] sm:$0xff] }
 0x161   :  { %v270_v22 = vld [vmem:[%s9351_s1 + $0x718] sm:$0xff]  ;;  %v6072_v7 = vcombine.high %v422_v58, %v426_v60  ;;  %v6071_v6 = vcombine.low %v422_v58, %v426_v60  ;;  %v2602_v60 = vpop.f32.mrf.mxu0 }
 0x162   :  { %3044 = vmatpush1.bf16.msra.mxu0 %v5847_v13  ;;  %v274_v63 = vld [vmem:[%s9351_s1 + $0x738] sm:$0xff] }
 0x163   :  { %3083 = vmatpush1.bf16.msra.mxu1 %v5991_v14  ;;  %3045 = vmatprep.subr.bf16.mxu0 %v5840_v17  ;;  %v414_v4 = vld [vmem:[%s9351_s1 + $0xb98] sm:$0xff]  ;;  %v5920_v11 = vcombine.high %v270_v22, %v274_v63 }
 0x164   :  { %3084 = vmatprep.subr.bf16.mxu1 %v5984_v21  ;;  %v418_v5 = vld [vmem:[%s9351_s1 + $0xbb8] sm:$0xff]  ;;  %v5919_v21 = vcombine.low %v270_v22, %v274_v63 }
 0x165   :  { %v262_v9 = vld [vmem:[%s9351_s1 + $0x6d8] sm:$0xff]  ;;  %v6064_v17 = vcombine.high %v414_v4, %v418_v5  ;;  %v6063_v16 = vcombine.low %v414_v4, %v418_v5  ;;  %v451_v5 = vsub.s32 3, %v7778_v19 }
 0x166   :  { %3046 = vmatpush1.bf16.msra.mxu0 %v5839_v54  ;;  %v266_v10 = vld [vmem:[%s9351_s1 + $0x6f8] sm:$0xff] }
 0x167   :  { %3085 = vmatpush1.bf16.msra.mxu1 %v5983_v30  ;;  %3047 = vmatprep.subr.bf16.mxu0 %v5832_v33  ;;  %v406_v13 = vld [vmem:[%s9351_s1 + $0xb58] sm:$0xff]  ;;  %v5912_v27 = vcombine.high %v262_v9, %v266_v10  ;;  %v8218_v30 = vsub.s32 1, %v7778_v19  ;;  %v5911_v33 = vcombine.low %v262_v9, %v266_v10 }
 0x168   :  { %3086 = vmatprep.subr.bf16.mxu1 %v5976_v36  ;;  %v410_v14 = vld [vmem:[%s9351_s1 + $0xb78] sm:$0xff] }
 0x169   :  { %v254_v24 = vld [vmem:[%s9351_s1 + $0x698] sm:$0xff]  ;;  %v6056_v29 = vcombine.high %v406_v13, %v410_v14  ;;  %v6055_v36 = vcombine.low %v406_v13, %v410_v14  ;;  %v444_v59 = vrot.slane %v8236_v42, %v8218_v30 }
 0x16a   :  { %3048 = vmatpush1.bf16.msra.mxu0 %v5831_v37  ;;  %v258_v26 = vld [vmem:[%s9351_s1 + $0x6b8] sm:$0xff] }
 0x16b   :  { %3087 = vmatpush1.bf16.msra.mxu1 %v5975_v40  ;;  %3049 = vmatprep.subr.bf16.mxu0 %v5824_v41  ;;  %v398_v54 = vld [vmem:[%s9351_s1 + $0xb18] sm:$0xff]  ;;  %v5904_v37 = vcombine.high %v254_v24, %v258_v26  ;;  %v447_v40 = vsub.s32 2, %v7778_v19 }
 0x16c   :  { %3088 = vmatprep.subr.bf16.mxu1 %v5968_v2  ;;  %v402_v28 = vld [vmem:[%s9351_s1 + $0xb38] sm:$0xff]  ;;  %v2645_v2 = vpop.f32.mrf.mxu1 }
 0x16d   :  { %v246_v34 = vld [vmem:[%s9351_s1 + $0x658] sm:$0xff]  ;;  %v6048_v41 = vcombine.high %v398_v54, %v402_v28 }
 0x16e   :  { %3050 = vmatpush1.bf16.msra.mxu0 %v5823_v23  ;;  %v250_v35 = vld [vmem:[%s9351_s1 + $0x678] sm:$0xff]  ;;  %v5903_v23 = vcombine.low %v254_v24, %v258_v26  ;;  %v2682_v56 = vpop.f32.mrf.mxu1 }
 0x16f   :  { %3089 = vmatpush1.bf16.msra.mxu1 %v5967_v45  ;;  %3051 = vmatprep.subr.bf16.mxu0 %v5944_v46  ;;  %v390_v38 = vld [vmem:[%s9351_s1 + $0xad8] sm:$0xff]  ;;  %v6047_v45 = vcombine.low %v398_v54, %v402_v28  ;;  %v5896_v46 = vcombine.high %v246_v34, %v250_v35 }
 0x170   :  { %3090 = vmatprep.subr.bf16.mxu1 %v5960_v49  ;;  %v394_v39 = vld [vmem:[%s9351_s1 + $0xaf8] sm:$0xff]  ;;  %v2517_v49 = vadd.f32 %v8028_v1, %v444_v59 }
 0x171   :  { %v238_v43 = vld [vmem:[%s9351_s1 + $0x618] sm:$0xff]  ;;  %v6040_v52 = vcombine.high %v390_v38, %v394_v39 }
 0x172   :  { %3052 = vmatpush2.bf16.msra.mxu0 %v5943_v50  ;;  %v242_v44 = vld [vmem:[%s9351_s1 + $0x638] sm:$0xff]  ;;  %v8256_v50 = vrot.slane %v8236_v42, %v447_v40  ;;  %v2560_v63 = vadd.f32 %v8014_v31, %v2517_v49 }
 0x173   :  { %3091 = vmatpush1.bf16.msra.mxu1 %v5959_v53  ;;  %3053 = vmatprep.subr.bf16.mxu0 %v5936_v12  ;;  %v382_v47 = vld [vmem:[%s9351_s1 + $0xa98] sm:$0xff]  ;;  %v2513_v53 = vadd.f32 %v7823_v51, %v444_v59  ;;  %v5895_v12 = vcombine.low %v246_v34, %v250_v35 }
 0x174   :  { %3092 = vmatprep.subr.bf16.mxu1 %v5952_v61  ;;  %v386_v48 = vld [vmem:[%s9351_s1 + $0xab8] sm:$0xff]  ;;  %v6039_v61 = vcombine.low %v390_v38, %v394_v39  ;;  %v2603_v9 = vadd.f32 %v2602_v60, %v2560_v63  ;;  %v6428_v60 = vld [vmem:[%s9354_s3 + $0x2c4] ss:$16 sps:$4 sm:$0xff]   ;;  %v6423_v63 = vld [vmem:[%s9354_s3 + $0xc0] ss:$16 sps:$4 sm:$0xff]  }
 0x175   :  { %v430_v58 = vld [vmem:[%s9351_s1 + $0xc18] sm:$0xff]  ;;  %v6032_v4 = vcombine.high %v382_v47, %v386_v48  ;;  %v6031_v13 = vcombine.low %v382_v47, %v386_v48 }
 0x176   :  { %3054 = vmatpush2.bf16.msra.mxu0 %v5935_v62  ;;  %v434_v1 = vld [vmem:[%s9351_s1 + $0xc38] sm:$0xff]  ;;  %v5888_v62 = vcombine.high %v238_v43, %v242_v44 }
 0x177   :  { %3093 = vmatpush1.bf16.msra.mxu1 %v5951_v0  ;;  %3055 = vmatprep.subr.bf16.mxu0 %v5928_v3  ;;  %v374_v22 = vld [vmem:[%s9351_s1 + $0xa58] sm:$0xff]  ;;  %v2683_v0 = vadd.f32 %v2682_v56, %v8256_v50  ;;  %v2684_v3 = vpop.f32.mrf.mxu1  ;;  %v6080_v31 = vcombine.high %v430_v58, %v434_v1  ;;  %v6420_v56 = vld [vmem:[%s9354_s3 + $0x2e0] ss:$16 sps:$4 sm:$0xff]  }
 0x178   :  { %3094 = vmatprep.subr.bf16.mxu1 %v6072_v7  ;;  %v378_v51 = vld [vmem:[%s9351_s1 + $0xa78] sm:$0xff] }
 0x179   :  { %v366_v26 = vld [vmem:[%s9351_s1 + $0xa18] sm:$0xff]  ;;  %v6023_v28 = vcombine.low %v374_v22, %v378_v51 }
 0x17a   :  { %3056 = vmatpush2.bf16.msra.mxu0 %v5927_v8  ;;  %v2556_v8 = vadd.f32 %v7827_v55, %v2513_v53  ;;  %v452_v55 = vrot.slane %v8236_v42, %v451_v5 }
 0x17b   :  { %3095 = vmatpush2.bf16.msra.mxu1 %v6071_v6  ;;  %3057 = vmatprep.subr.bf16.mxu0 %v5920_v11  ;;  %v5887_v6 = vcombine.low %v238_v43, %v242_v44  ;;  %v6422_v44 = vld [vmem:[%s9354_s3 + $0x2e4] ss:$16 sps:$4 sm:$0xff]  }
 0x17c   :  { %3096 = vmatprep.subr.bf16.mxu1 %v6064_v17  ;;  %v2599_v14 = vadd.f32 %v8045_v20, %v2556_v8  ;;  %v8278_v17 = vpop.f32.mrf.mxu1  ;;  %v6079_v20 = vcombine.low %v430_v58, %v434_v1  ;;  %v6425_v1 = vld [vmem:[%s9354_s3 + $0xc4] ss:$16 sps:$4 sm:$0xff]  }
 0x17e   :  { %3058 = vmatpush2.bf16.msra.mxu0 %v5919_v21  ;;  %v6024_v21 = vcombine.high %v374_v22, %v378_v51  ;;  %v2688_v34 = vpop.f32.mrf.mxu1 }
 0x17f   :  { %3097 = vmatpush2.bf16.msra.mxu1 %v6063_v16  ;;  %3059 = vmatprep.subr.bf16.mxu0 %v5912_v27  ;;  %v370_v16 = vld [vmem:[%s9351_s1 + $0xa38] sm:$0xff]  ;;  %v2646_v27 = vadd.f32 %v2645_v2, %v2603_v9  ;;  %v2689_v47 = vadd.f32 %v2688_v34, %v452_v55  ;;  %v6429_v9 = vld [vmem:[%s9354_s3 + $0xa0] ss:$16 sps:$4 sm:$0xff]  }
 0x180   :  { %3098 = vmatprep.subr.bf16.mxu1 %v6056_v29  ;;  %v6419_v29 = vld [vmem:[%s9354_s3 + $0xe4] ss:$16 sps:$4 sm:$0xff]   ;;  %v6016_v35 = vcombine.high %v366_v26, %v370_v16  ;;  %v6015_v2 = vcombine.low %v366_v26, %v370_v16  ;;  %v6438_v26 = vld [vmem:[%s9354_s3 + $0x280] ss:$16 sps:$4 sm:$0xff]  }
 0x181   :  { %v3189_v39 = vmul.f32 0.2, %v2646_v27  ;;  %vm3173_vm3 = vcmp.gt.f32.partialorder %v2646_v27, 0.0  ;;  %v6443_v16 = vld [vmem:[%s9354_s3 + $0x64] ss:$16 sps:$4 sm:$0xff]  }
 0x182   :  { %3060 = vmatpush2.bf16.msra.mxu0 %v5911_v33  ;;  %v2642_v33 = vadd.f32 %v8043_v18, %v2599_v14  ;;  %v6440_v14 = vld [vmem:[%s9354_s3 + $0x284] ss:$16 sps:$4 sm:$0xff]   ;;  %v6450_v34 = vld [vmem:[%s9354_s3 + $0x240] ss:$16 sps:$4 sm:$0xff]  }
 0x183   :  { %3099 = vmatpush2.bf16.msra.mxu1 %v6055_v36  ;;  %3061 = vmatprep.subr.bf16.mxu0 %v5904_v37  ;;  %v2685_v36 = vadd.f32 %v2684_v3, %v452_v55  ;;  %v6906_v37 = vld [vmem:[%s9352_s0 + $0x8] ss:$28 sps:$4 sm:$0xff]   ;;  %v3205_v49 = vsel %vm3173_vm3, %v2646_v27, %v3189_v39  ;;  %v6435_v55 = vld [vmem:[%s9354_s3 + $0x80] ss:$16 sps:$4 sm:$0xff]  }
 0x184   :  { %3100 = vmatprep.subr.bf16.mxu1 %v6048_v41  ;;  %vm3165_vm4 = vcmp.gt.f32.partialorder %v2642_v33, 0.0  ;;  %v6431_v3 = vld [vmem:[%s9354_s3 + $0xa4] ss:$16 sps:$4 sm:$0xff]   ;;  %v6456_v39 = vld [vmem:[%s9354_s3 + $0x220] ss:$16 sps:$4 sm:$0xff]  }
 0x185   :  { %v6446_v27 = vld [vmem:[%s9354_s3 + $0x264] ss:$16 sps:$4 sm:$0xff]  }
 0x186   :  { %3062 = vmatpush2.bf16.msra.mxu0 %v5903_v23  ;;  %v3181_v23 = vmul.f32 0.2, %v2642_v33 }
 0x187   :  { %3101 = vmatpush2.bf16.msra.mxu1 %v6047_v45  ;;  %3063 = vmatprep.subr.bf16.mxu0 %v5896_v46 }
 0x188   :  { %3102 = vmatprep.subr.bf16.mxu1 %v6040_v52  ;;  %v3197_v58 = vsel %vm3165_vm4, %v2642_v33, %v3181_v23  ;;  %v6447_v33 = vld [vmem:[%s9354_s3 + $0x40] ss:$16 sps:$4 sm:$0xff]  }
 0x189   :  { %v2725_v7 = vpop.f32.mrf.mxu0  ;;  %v8327_v22 = vpack.c.bf16 %v3205_v49, %v3197_v58  ;;  %v6462_v23 = vld [vmem:[%s9354_s3 + $0x200] ss:$16 sps:$4 sm:$0xff]   ;;  %v6476_v49 = vld [vmem:[%s9354_s3 + $0x3c4] ss:$16 sps:$4 sm:$0xff]  }
 0x18a   :  { %v8275_v10 = vadd.f32 %v2725_v7, %v2683_v0  ;;  %3064 = vmatpush2.bf16.msra.mxu0 %v5895_v12  ;;  %v6426_v0 = vld [vmem:[%s9354_s3 + $0x2c0] ss:$16 sps:$4 sm:$0xff]  }
 0x18b   :  { %3103 = vmatpush2.bf16.msra.mxu1 %v6039_v61  ;;  %v2727_v11 = vpop.f32.mrf.mxu0  ;;  %3065 = vmatprep.subr.bf16.mxu0 %v5888_v62  ;;  %v6907_v62 = vld [vmem:[%s9352_s0 + $0x18] ss:$28 sps:$4 sm:$0xff]   ;;  %v6477_v58 = vld [vmem:[%s9354_s3 + $0x1a0] ss:$16 sps:$4 sm:$0xff]  }
 0x18c   :  { %3104 = vmatprep.subr.bf16.mxu1 %v6032_v4  ;;  %v2728_v59 = vadd.f32 %v2727_v11, %v2685_v36  ;;  %v6458_v36 = vld [vmem:[%s9354_s3 + $0x224] ss:$16 sps:$4 sm:$0xff]  }
 0x18d   :  { %v8283_v24 = vpop.f32.mrf.mxu0 }
 0x18e   :  { %3066 = vmatpush2.bf16.msra.mxu0 %v5887_v6  ;;  %v6432_v6 = vld [vmem:[%s9354_s3 + $0x2a0] ss:$16 sps:$4 sm:$0xff]  }
 0x18f   :  { %3105 = vmatpush2.bf16.msra.mxu1 %v6031_v13  ;;  %v2731_v54 = vpop.f32.mrf.mxu0  ;;  %3135 = vmatprep.subr.bf16.mxu0 %v6080_v31  ;;  %v6437_v31 = vld [vmem:[%s9354_s3 + $0x84] ss:$16 sps:$4 sm:$0xff]  }
 0x190   :  { %3106 = vmatprep.subr.bf16.mxu1 %v6024_v21  ;;  %v2732_v52 = vadd.f32 %v2731_v54, %v2689_v47  ;;  %v6444_v54 = vld [vmem:[%s9354_s3 + $0x260] ss:$16 sps:$4 sm:$0xff]  }
 0x191   :  { %3068 = vmatmul.mubr.bf16.vlgmr.msra.gmra.mxu0 %v6906_v37  ;;  %v8298_v38 = vpop.f32.mrf.mxu0  ;;  %v6453_v37 = vld [vmem:[%s9354_s3 + $0x20] ss:$16 sps:$4 sm:$0xff]  }
 0x192   :  { %v8300_v41 = vpop.f32.mrf.mxu1  ;;  %3136 = vmatpush1.bf16.msra.mxu0 %v6079_v20  ;;  %3153 = vmatprep.mubr.bf16.mxu0 %v6909_v25  ;;  %v6417_v25 = vld [vmem:[%s9354_s3 + $0xe0] ss:$16 sps:$4 sm:$0xff]  }
 0x193   :  { %3107 = vmatpush2.bf16.msra.mxu1 %v6023_v28  ;;  %v2813_v18 = vpop.f32.mrf.mxu0  ;;  %4778 = vmatprep.subr.bf16.mxu0 %v6419_v29  ;;  %v6441_v20 = vld [vmem:[%s9354_s3 + $0x60] ss:$16 sps:$4 sm:$0xff]   ;;  %v6449_v28 = vld [vmem:[%s9354_s3 + $0x44] ss:$16 sps:$4 sm:$0xff]  }
 0x194   :  { %v2770_v43 = vpop.f32.mrf.mxu1  ;;  %3108 = vmatprep.subr.bf16.mxu1 %v6016_v35  ;;  %v6452_v29 = vld [vmem:[%s9354_s3 + $0x244] ss:$16 sps:$4 sm:$0xff]   ;;  %v6468_v47 = vld [vmem:[%s9354_s3 + $0x3e0] ss:$16 sps:$4 sm:$0xff]  }
 0x195   :  { %v2771_v45 = vadd.f32 %v2770_v43, %v2728_v59  ;;  %v8306_v46 = vpop.f32.mrf.mxu0  ;;  %v6455_v35 = vld [vmem:[%s9354_s3 + $0x24] ss:$16 sps:$4 sm:$0xff]  }
 0x196   :  { %v8308_v48 = vpop.f32.mrf.mxu1  ;;  %v6461_v59 = vld [vmem:[%s9354_s3 + $0x4] ss:$16 sps:$4 sm:$0xff]  }
 0x197   :  { %3109 = vmatpush2.bf16.msra.mxu1 %v6015_v2  ;;  %v2814_v53 = vadd.f32 %v2813_v18, %v2771_v45  ;;  %v2817_v61 = vpop.f32.mrf.mxu0  ;;  %v6464_v18 = vld [vmem:[%s9354_s3 + $0x204] ss:$16 sps:$4 sm:$0xff]   ;;  %v6459_v2 = vld [vmem:[%s9354_s3] ss:$16 sps:$4 sm:$0xff]  }
 0x198   :  { %v2774_v12 = vpop.f32.mrf.mxu1  ;;  %4821 = vmatprep.subr.bf16.mxu1 %v6422_v44  ;;  %v6467_v43 = vld [vmem:[%s9354_s3 + $0x1e4] ss:$16 sps:$4 sm:$0xff]   ;;  %v6465_v45 = vld [vmem:[%s9354_s3 + $0x1e0] ss:$16 sps:$4 sm:$0xff]  }
 0x199   :  { %6084 = vmatmul.mubr.msk.bf16.vlgmr.msra.gmra.mxu0 %vm2472_vm0, %v6907_v62  ;;  %v2775_v51 = vadd.f32 %v2774_v12, %v2732_v52  ;;  %v3183_v4 = vmul.f32 0.2, %v2814_v53  ;;  %vm3167_vm5 = vcmp.gt.f32.partialorder %v2814_v53, 0.0  ;;  %v6470_v44 = vld [vmem:[%s9354_s3 + $0x3e4] ss:$16 sps:$4 sm:$0xff]  }
 0x19a   :  { %3111 = vmatmul.mubr.bf16.vlgmr.msra.gmra.mxu1 %v8075_v15  ;;  %4779 = vmatpush1.bf16.msra.mxu0 %v6417_v25  ;;  %v6434_v15 = vld [vmem:[%s9354_s3 + $0x2a4] ss:$16 sps:$4 sm:$0xff]   ;;  %v6474_v52 = vld [vmem:[%s9354_s3 + $0x3c0] ss:$16 sps:$4 sm:$0xff]  }
 0x19b   :  { %4822 = vmatpush1.bf16.msra.mxu1 %v6420_v56  ;;  %4810 = vmatprep.mubr.bf16.mxu0 %v8327_v22  ;;  %v2818_v7 = vadd.f32 %v2817_v61, %v2775_v51  ;;  %v3199_v11 = vsel %vm3167_vm5, %v2814_v53, %v3183_v4  ;;  %v6473_v25 = vld [vmem:[%s9354_s3 + $0x1c4] ss:$16 sps:$4 sm:$0xff]   ;;  %v6471_v56 = vld [vmem:[%s9354_s3 + $0x1c0] ss:$16 sps:$4 sm:$0xff]  }
 0x19c   :  { %4780 = vmatprep.subr.bf16.mxu0 %v6425_v1  ;;  %4823 = vmatprep.subr.bf16.mxu1 %v6428_v60  ;;  %v6479_v53 = vld [vmem:[%s9354_s3 + $0x1a4] ss:$16 sps:$4 sm:$0xff]   ;;  %v6480_v1 = vld [vmem:[%s9354_s3 + $0x3a0] ss:$16 sps:$4 sm:$0xff]  }
 0x19d   :  { %vm3175_vm6 = vcmp.gt.f32.partialorder %v2818_v7, 0.0  ;;  %v3191_v8 = vmul.f32 0.2, %v2818_v7  ;;  %v6482_v12 = vld [vmem:[%s9354_s3 + $0x3a4] ss:$16 sps:$4 sm:$0xff]  }
 0x19e   :  { %4781 = vmatpush1.bf16.msra.mxu0 %v6423_v63  ;;  %v6485_v60 = vld [vmem:[%s9354_s3 + $0x184] ss:$16 sps:$4 sm:$0xff]   ;;  %v6483_v62 = vld [vmem:[%s9354_s3 + $0x180] ss:$16 sps:$4 sm:$0xff]  }
 0x19f   :  { %4824 = vmatpush1.bf16.msra.mxu1 %v6426_v0  ;;  %4782 = vmatprep.subr.bf16.mxu0 %v6431_v3  ;;  %v3207_v13 = vsel %vm3175_vm6, %v2818_v7, %v3191_v8  ;;  %v6488_v61 = vld [vmem:[%s9354_s3 + $0x384] ss:$16 sps:$4 sm:$0xff]   ;;  %v6486_v51 = vld [vmem:[%s9354_s3 + $0x380] ss:$16 sps:$4 sm:$0xff]   ;;  %v2687_v3 = vadd.f32 %v8278_v17, %v8256_v50 }
 0x1a0   :  { %4825 = vmatprep.subr.bf16.mxu1 %v6434_v15  ;;  %v8355_v21 = vpack.c.bf16 %v3207_v13, %v3199_v11  ;;  %v6491_v63 = vld [vmem:[%s9354_s3 + $0x164] ss:$16 sps:$4 sm:$0xff]   ;;  %v6489_v4 = vld [vmem:[%s9354_s3 + $0x160] ss:$16 sps:$4 sm:$0xff]  }
 0x1a1   :  { %v6494_v0 = vld [vmem:[%s9354_s3 + $0x364] ss:$16 sps:$4 sm:$0xff]   ;;  %v2730_v7 = vadd.f32 %v8283_v24, %v2687_v3  ;;  %v6492_v15 = vld [vmem:[%s9354_s3 + $0x360] ss:$16 sps:$4 sm:$0xff]  }
 0x1a2   :  { %4783 = vmatpush1.bf16.msra.mxu0 %v6429_v9  ;;  %4853 = vmatprep.mubr.bf16.mxu1 %v8355_v21  ;;  %v6497_v8 = vld [vmem:[%s9354_s3 + $0x144] ss:$16 sps:$4 sm:$0xff]   ;;  %v6495_v24 = vld [vmem:[%s9354_s3 + $0x140] ss:$16 sps:$4 sm:$0xff]   ;;  %v2769_v9 = vadd.f32 %v8300_v41, %v8275_v10 }
 0x1a3   :  { %4826 = vmatpush1.bf16.msra.mxu1 %v6432_v6  ;;  %4784 = vmatprep.subr.bf16.mxu0 %v6437_v31  ;;  %v6500_v50 = vld [vmem:[%s9354_s3 + $0x344] ss:$16 sps:$4 sm:$0xff]   ;;  %v2773_v17 = vadd.f32 %v8308_v48, %v2730_v7  ;;  %v6498_v6 = vld [vmem:[%s9354_s3 + $0x340] ss:$16 sps:$4 sm:$0xff]  }
 0x1a4   :  { %4827 = vmatprep.subr.bf16.mxu1 %v6440_v14  ;;  %v6503_v11 = vld [vmem:[%s9354_s3 + $0x124] ss:$16 sps:$4 sm:$0xff]   ;;  %v6501_v10 = vld [vmem:[%s9354_s3 + $0x120] ss:$16 sps:$4 sm:$0xff]   ;;  %v2812_v41 = vadd.f32 %v8298_v38, %v2769_v9 }
 0x1a5   :  { %v6506_v48 = vld [vmem:[%s9354_s3 + $0x324] ss:$16 sps:$4 sm:$0xff]   ;;  %v2816_v13 = vadd.f32 %v8306_v46, %v2773_v17  ;;  %v6504_v31 = vld [vmem:[%s9354_s3 + $0x320] ss:$16 sps:$4 sm:$0xff]  }
 0x1a6   :  { %4785 = vmatpush1.bf16.msra.mxu0 %v6435_v55  ;;  %v6509_v14 = vld [vmem:[%s9354_s3 + $0x104] ss:$16 sps:$4 sm:$0xff]   ;;  %v6507_v38 = vld [vmem:[%s9354_s3 + $0x100] ss:$16 sps:$4 sm:$0xff]   ;;  %vm3166_vm8 = vcmp.gt.f32.partialorder %v2812_v41, 0.0 }
 0x1a7   :  { %4828 = vmatpush1.bf16.msra.mxu1 %v6438_v26  ;;  %4786 = vmatprep.subr.bf16.mxu0 %v6443_v16  ;;  %v6512_v46 = vld [vmem:[%s9354_s3 + $0x304] ss:$16 sps:$4 sm:$0xff]   ;;  %v3190_v55 = vmul.f32 0.2, %v2816_v13  ;;  %vm3174_vm7 = vcmp.gt.f32.partialorder %v2816_v13, 0.0 }
 0x1a8   :  { %4829 = vmatprep.subr.bf16.mxu1 %v6446_v27  ;;  %v3182_v26 = vmul.f32 0.2, %v2812_v41  ;;  %v6510_v16 = vld [vmem:[%s9354_s3 + $0x300] ss:$16 sps:$4 sm:$0xff]   ;;  %v6515_v27 = vld [vmem:[%s9354_s3 + $0x4e4] ss:$16 sps:$4 sm:$0xff]  }
 0x1a9   :  { %v6534_v3 = vld [vmem:[%s9354_s3 + $0x400] ss:$16 sps:$4 sm:$0xff]  }
 0x1aa   :  { %4787 = vmatpush1.bf16.msra.mxu0 %v6441_v20  ;;  %v6569_v20 = vld [vmem:[%s9354_s3 + $0x6e4] ss:$16 sps:$4 sm:$0xff]   ;;  %v6609_v7 = vld [vmem:[%s9354_s3 + $0x600] ss:$16 sps:$4 sm:$0xff]  }
 0x1ab   :  { %4830 = vmatpush1.bf16.msra.mxu1 %v6444_v54  ;;  %4788 = vmatprep.subr.bf16.mxu0 %v6449_v28  ;;  %v3206_v54 = vsel %vm3174_vm7, %v2816_v13, %v3190_v55  ;;  %v6513_v28 = vld [vmem:[%s9354_s3 + $0x4e0] ss:$16 sps:$4 sm:$0xff]  }
 0x1ac   :  { %4831 = vmatprep.subr.bf16.mxu1 %v6452_v29  ;;  %v3198_v29 = vsel %vm3166_vm8, %v2812_v41, %v3182_v26  ;;  %v6615_v17 = vld [vmem:[%s9354_s3 + $0x7e0] ss:$16 sps:$4 sm:$0xff]   ;;  %v6548_v41 = vld [vmem:[%s9354_s3 + $0x584] ss:$16 sps:$4 sm:$0xff]  }
 0x1ad   :  { %v6540_v9 = vld [vmem:[%s9354_s3 + $0x5c0] ss:$16 sps:$4 sm:$0xff]   ;;  %v6551_v26 = vld [vmem:[%s9354_s3 + $0x564] ss:$16 sps:$4 sm:$0xff]  }
 0x1ae   :  { %4789 = vmatpush1.bf16.msra.mxu0 %v6447_v33  ;;  %v6518_v33 = vld [vmem:[%s9354_s3 + $0x4c4] ss:$16 sps:$4 sm:$0xff]   ;;  %v6546_v55 = vld [vmem:[%s9354_s3 + $0x580] ss:$16 sps:$4 sm:$0xff]  }
 0x1af   :  { %4832 = vmatpush1.bf16.msra.mxu1 %v6450_v34  ;;  %4790 = vmatprep.subr.bf16.mxu0 %v6455_v35  ;;  %v6567_v34 = vld [vmem:[%s9354_s3 + $0x6e0] ss:$16 sps:$4 sm:$0xff]   ;;  %v8531_v35 = vpack.c.bf16 %v3206_v54, %v3198_v29  ;;  %v459_v54 = vsub.s32 5, %v7778_v19 }
 0x1b0   :  { %4833 = vmatprep.subr.bf16.mxu1 %v6458_v36  ;;  %v6575_v36 = vld [vmem:[%s9354_s3 + $0x6c4] ss:$16 sps:$4 sm:$0xff]   ;;  %v6549_v29 = vld [vmem:[%s9354_s3 + $0x560] ss:$16 sps:$4 sm:$0xff]  }
 0x1b2   :  { %4791 = vmatpush1.bf16.msra.mxu0 %v6453_v37  ;;  %v6516_v37 = vld [vmem:[%s9354_s3 + $0x4c0] ss:$16 sps:$4 sm:$0xff]  }
 0x1b3   :  { %4834 = vmatpush1.bf16.msra.mxu1 %v6456_v39  ;;  %4792 = vmatprep.subr.bf16.mxu0 %v6461_v59  ;;  %v6521_v39 = vld [vmem:[%s9354_s3 + $0x4a4] ss:$16 sps:$4 sm:$0xff]   ;;  %v6573_v59 = vld [vmem:[%s9354_s3 + $0x6c0] ss:$16 sps:$4 sm:$0xff]  }
 0x1b4   :  { %4835 = vmatprep.subr.bf16.mxu1 %v6464_v18  ;;  %v6581_v18 = vld [vmem:[%s9354_s3 + $0x6a4] ss:$16 sps:$4 sm:$0xff]  }
 0x1b6   :  { %4793 = vmatpush1.bf16.msra.mxu0 %v6459_v2  ;;  %v6519_v2 = vld [vmem:[%s9354_s3 + $0x4a0] ss:$16 sps:$4 sm:$0xff]  }
 0x1b7   :  { %4836 = vmatpush1.bf16.msra.mxu1 %v6462_v23  ;;  %4794 = vmatprep.subr.bf16.mxu0 %v6467_v43  ;;  %v6524_v23 = vld [vmem:[%s9354_s3 + $0x484] ss:$16 sps:$4 sm:$0xff]   ;;  %v6579_v43 = vld [vmem:[%s9354_s3 + $0x6a0] ss:$16 sps:$4 sm:$0xff]  }
 0x1b8   :  { %4837 = vmatprep.subr.bf16.mxu1 %v6470_v44  ;;  %v6587_v44 = vld [vmem:[%s9354_s3 + $0x684] ss:$16 sps:$4 sm:$0xff]  }
 0x1ba   :  { %4795 = vmatpush2.bf16.msra.mxu0 %v6465_v45  ;;  %v6522_v45 = vld [vmem:[%s9354_s3 + $0x480] ss:$16 sps:$4 sm:$0xff]  }
 0x1bb   :  { %4838 = vmatpush2.bf16.msra.mxu1 %v6468_v47  ;;  %4796 = vmatprep.subr.bf16.mxu0 %v6473_v25  ;;  %v6527_v47 = vld [vmem:[%s9354_s3 + $0x464] ss:$16 sps:$4 sm:$0xff]   ;;  %v6585_v25 = vld [vmem:[%s9354_s3 + $0x680] ss:$16 sps:$4 sm:$0xff]  }
 0x1bc   :  { %4839 = vmatprep.subr.bf16.mxu1 %v6476_v49  ;;  %v6593_v49 = vld [vmem:[%s9354_s3 + $0x664] ss:$16 sps:$4 sm:$0xff]  }
 0x1be   :  { %4797 = vmatpush2.bf16.msra.mxu0 %v6471_v56  ;;  %v6525_v56 = vld [vmem:[%s9354_s3 + $0x460] ss:$16 sps:$4 sm:$0xff]  }
 0x1bf   :  { %4840 = vmatpush2.bf16.msra.mxu1 %v6474_v52  ;;  %4798 = vmatprep.subr.bf16.mxu0 %v6479_v53  ;;  %v6530_v52 = vld [vmem:[%s9354_s3 + $0x444] ss:$16 sps:$4 sm:$0xff]   ;;  %v6591_v53 = vld [vmem:[%s9354_s3 + $0x660] ss:$16 sps:$4 sm:$0xff]  }
 0x1c0   :  { %4841 = vmatprep.subr.bf16.mxu1 %v6482_v12  ;;  %v6599_v12 = vld [vmem:[%s9354_s3 + $0x644] ss:$16 sps:$4 sm:$0xff]  }
 0x1c2   :  { %4799 = vmatpush2.bf16.msra.mxu0 %v6477_v58  ;;  %v6528_v58 = vld [vmem:[%s9354_s3 + $0x440] ss:$16 sps:$4 sm:$0xff]  }
 0x1c3   :  { %4842 = vmatpush2.bf16.msra.mxu1 %v6480_v1  ;;  %4800 = vmatprep.subr.bf16.mxu0 %v6485_v60  ;;  %v6533_v1 = vld [vmem:[%s9354_s3 + $0x424] ss:$16 sps:$4 sm:$0xff]   ;;  %v6597_v60 = vld [vmem:[%s9354_s3 + $0x640] ss:$16 sps:$4 sm:$0xff]  }
 0x1c4   :  { %4843 = vmatprep.subr.bf16.mxu1 %v6488_v61  ;;  %v6605_v61 = vld [vmem:[%s9354_s3 + $0x624] ss:$16 sps:$4 sm:$0xff]  }
 0x1c6   :  { %4801 = vmatpush2.bf16.msra.mxu0 %v6483_v62  ;;  %v6531_v62 = vld [vmem:[%s9354_s3 + $0x420] ss:$16 sps:$4 sm:$0xff]  }
 0x1c7   :  { %4844 = vmatpush2.bf16.msra.mxu1 %v6486_v51  ;;  %4802 = vmatprep.subr.bf16.mxu0 %v6491_v63  ;;  %v6536_v51 = vld [vmem:[%s9354_s3 + $0x404] ss:$16 sps:$4 sm:$0xff]   ;;  %v6603_v63 = vld [vmem:[%s9354_s3 + $0x620] ss:$16 sps:$4 sm:$0xff]  }
 0x1c8   :  { %4845 = vmatprep.subr.bf16.mxu1 %v6494_v0  ;;  %v6611_v0 = vld [vmem:[%s9354_s3 + $0x604] ss:$16 sps:$4 sm:$0xff]  }
 0x1ca   :  { %4803 = vmatpush2.bf16.msra.mxu0 %v6489_v4  ;;  %v6539_v4 = vld [vmem:[%s9354_s3 + $0x5e4] ss:$16 sps:$4 sm:$0xff]  }
 0x1cb   :  { %4846 = vmatpush2.bf16.msra.mxu1 %v6492_v15  ;;  %4804 = vmatprep.subr.bf16.mxu0 %v6497_v8  ;;  %v6617_v15 = vld [vmem:[%s9354_s3 + $0x7e4] ss:$16 sps:$4 sm:$0xff]   ;;  %v6537_v8 = vld [vmem:[%s9354_s3 + $0x5e0] ss:$16 sps:$4 sm:$0xff]  }
 0x1cc   :  { %4847 = vmatprep.subr.bf16.mxu1 %v6500_v50  ;;  %v6542_v50 = vld [vmem:[%s9354_s3 + $0x5c4] ss:$16 sps:$4 sm:$0xff]  }
 0x1ce   :  { %4805 = vmatpush2.bf16.msra.mxu0 %v6495_v24  ;;  %v6623_v24 = vld [vmem:[%s9354_s3 + $0x7c4] ss:$16 sps:$4 sm:$0xff]  }
 0x1cf   :  { %4848 = vmatpush2.bf16.msra.mxu1 %v6498_v6  ;;  %4806 = vmatprep.subr.bf16.mxu0 %v6503_v11  ;;  %v6545_v6 = vld [vmem:[%s9354_s3 + $0x5a4] ss:$16 sps:$4 sm:$0xff]   ;;  %v6621_v11 = vld [vmem:[%s9354_s3 + $0x7c0] ss:$16 sps:$4 sm:$0xff]  }
 0x1d0   :  { %4849 = vmatprep.subr.bf16.mxu1 %v6506_v48  ;;  %v6629_v48 = vld [vmem:[%s9354_s3 + $0x7a4] ss:$16 sps:$4 sm:$0xff]  }
 0x1d2   :  { %4807 = vmatpush2.bf16.msra.mxu0 %v6501_v10  ;;  %v2897_v13 = vpop.f32.mrf.mxu1  ;;  %v6543_v10 = vld [vmem:[%s9354_s3 + $0x5a0] ss:$16 sps:$4 sm:$0xff]  }
 0x1d3   :  { %4850 = vmatpush2.bf16.msra.mxu1 %v6504_v31  ;;  %4808 = vmatprep.subr.bf16.mxu0 %v6509_v14  ;;  %v6627_v31 = vld [vmem:[%s9354_s3 + $0x7a0] ss:$16 sps:$4 sm:$0xff]   ;;  %v6635_v14 = vld [vmem:[%s9354_s3 + $0x784] ss:$16 sps:$4 sm:$0xff]  }
 0x1d4   :  { %4851 = vmatprep.subr.bf16.mxu1 %v6512_v46  ;;  %v2899_v46 = vpop.f32.mrf.mxu1 }
 0x1d6   :  { %4809 = vmatpush2.bf16.msra.mxu0 %v6507_v38  ;;  %v2854_v38 = vpop.f32.mrf.mxu0 }
 0x1d7   :  { %4852 = vmatpush2.bf16.msra.mxu1 %v6510_v16  ;;  %4864 = vmatprep.subr.bf16.mxu0 %v6515_v27  ;;  %v6633_v16 = vld [vmem:[%s9354_s3 + $0x780] ss:$16 sps:$4 sm:$0xff]   ;;  %v6641_v27 = vld [vmem:[%s9354_s3 + $0x764] ss:$16 sps:$4 sm:$0xff]  }
 0x1d8   :  { %4907 = vmatprep.subr.bf16.mxu1 %v6569_v20  ;;  %v455_v20 = vsub.s32 4, %v7778_v19 }
 0x1d9   :  { %4811 = vmatmul.mubr.bf16.vlgmr.msra.gmra.mxu0 %v8093_v57 }
 0x1da   :  { %4854 = vmatmul.mubr.bf16.vlgmr.msra.gmra.mxu1 %v8531_v35  ;;  %4865 = vmatpush1.bf16.msra.mxu0 %v6513_v28  ;;  %v2901_v28 = vpop.f32.mrf.mxu1 }
 0x1db   :  { %4866 = vmatprep.subr.bf16.mxu0 %v6518_v33  ;;  %4908 = vmatpush1.bf16.msra.mxu1 %v6567_v34  ;;  %v2856_v33 = vpop.f32.mrf.mxu0  ;;  %v6554_v34 = vld [vmem:[%s9354_s3 + $0x544] ss:$16 sps:$4 sm:$0xff]  }
 0x1dc   :  { %4909 = vmatprep.subr.bf16.mxu1 %v6575_v36  ;;  %v6639_v36 = vld [vmem:[%s9354_s3 + $0x760] ss:$16 sps:$4 sm:$0xff]  }
 0x1de   :  { %4867 = vmatpush1.bf16.msra.mxu0 %v6516_v37  ;;  %v6647_v37 = vld [vmem:[%s9354_s3 + $0x744] ss:$16 sps:$4 sm:$0xff]  }
 0x1df   :  { %4868 = vmatprep.subr.bf16.mxu0 %v6521_v39  ;;  %4910 = vmatpush1.bf16.msra.mxu1 %v6573_v59  ;;  %v456_v39 = vrot.slane %v8236_v42, %v455_v20  ;;  %v460_v59 = vrot.slane %v8236_v42, %v459_v54  ;;  %v6653_v42 = vld [vmem:[%s9354_s3 + $0x724] ss:$16 sps:$4 sm:$0xff]  }
 0x1e0   :  { %4911 = vmatprep.subr.bf16.mxu1 %v6581_v18  ;;  %v2903_v18 = vpop.f32.mrf.mxu1 }
 0x1e2   :  { %4869 = vmatpush1.bf16.msra.mxu0 %v6519_v2  ;;  %v6552_v2 = vld [vmem:[%s9354_s3 + $0x540] ss:$16 sps:$4 sm:$0xff]  }
 0x1e3   :  { %4870 = vmatprep.subr.bf16.mxu0 %v6524_v23  ;;  %4912 = vmatpush1.bf16.msra.mxu1 %v6579_v43  ;;  %v2858_v23 = vpop.f32.mrf.mxu0  ;;  %v6557_v43 = vld [vmem:[%s9354_s3 + $0x524] ss:$16 sps:$4 sm:$0xff]  }
 0x1e4   :  { %4913 = vmatprep.subr.bf16.mxu1 %v6587_v44  ;;  %v6645_v44 = vld [vmem:[%s9354_s3 + $0x740] ss:$16 sps:$4 sm:$0xff]  }
 0x1e6   :  { %4871 = vmatpush1.bf16.msra.mxu0 %v6522_v45  ;;  %v2855_v45 = vadd.f32 %v2854_v38, %v456_v39 }
 0x1e7   :  { %4872 = vmatprep.subr.bf16.mxu0 %v6527_v47  ;;  %4914 = vmatpush1.bf16.msra.mxu1 %v6585_v25  ;;  %v2857_v47 = vadd.f32 %v2856_v33, %v460_v59  ;;  %v2983_v25 = vpop.f32.mrf.mxu1 }
 0x1e8   :  { %4915 = vmatprep.subr.bf16.mxu1 %v6593_v49  ;;  %v6555_v49 = vld [vmem:[%s9354_s3 + $0x520] ss:$16 sps:$4 sm:$0xff]  }
 0x1ea   :  { %4873 = vmatpush1.bf16.msra.mxu0 %v6525_v56  ;;  %v2860_v56 = vpop.f32.mrf.mxu0 }
 0x1eb   :  { %4874 = vmatprep.subr.bf16.mxu0 %v6530_v52  ;;  %4916 = vmatpush1.bf16.msra.mxu1 %v6591_v53  ;;  %v6560_v52 = vld [vmem:[%s9354_s3 + $0x504] ss:$16 sps:$4 sm:$0xff]   ;;  %v6651_v53 = vld [vmem:[%s9354_s3 + $0x720] ss:$16 sps:$4 sm:$0xff]  }
 0x1ec   :  { %4917 = vmatprep.subr.bf16.mxu1 %v6599_v12  ;;  %v2859_v12 = vadd.f32 %v2858_v23, %v456_v39  ;;  %v6570_v39 = vld [vmem:[%s9354_s3 + $0xa8] ss:$16 sps:$4 sm:$0xff]   ;;  %v6590_v23 = vld [vmem:[%s9354_s3 + $0x4c] ss:$16 sps:$4 sm:$0xff]  }
 0x1ee   :  { %4875 = vmatpush1.bf16.msra.mxu0 %v6528_v58  ;;  %v6659_v58 = vld [vmem:[%s9354_s3 + $0x704] ss:$16 sps:$4 sm:$0xff]  }
 0x1ef   :  { %4876 = vmatprep.subr.bf16.mxu0 %v6533_v1  ;;  %4918 = vmatpush1.bf16.msra.mxu1 %v6597_v60  ;;  %v2898_v60 = vadd.f32 %v2897_v13, %v2855_v45  ;;  %v6602_v45 = vld [vmem:[%s9354_s3 + $0xc] ss:$16 sps:$4 sm:$0xff]  }
 0x1f0   :  { %4919 = vmatprep.subr.bf16.mxu1 %v6605_v61  ;;  %v2900_v61 = vadd.f32 %v2899_v46, %v2857_v47  ;;  %v6600_v47 = vld [vmem:[%s9354_s3 + $0x8] ss:$16 sps:$4 sm:$0xff]  }
 0x1f2   :  { %4877 = vmatpush1.bf16.msra.mxu0 %v6531_v62  ;;  %v2985_v62 = vpop.f32.mrf.mxu1 }
 0x1f3   :  { %4878 = vmatprep.subr.bf16.mxu0 %v6536_v51  ;;  %4920 = vmatpush1.bf16.msra.mxu1 %v6603_v63  ;;  %v6558_v51 = vld [vmem:[%s9354_s3 + $0x500] ss:$16 sps:$4 sm:$0xff]   ;;  %v2861_v63 = vadd.f32 %v2860_v56, %v460_v59  ;;  %v6578_v59 = vld [vmem:[%s9354_s3 + $0x8c] ss:$16 sps:$4 sm:$0xff]  }
 0x1f4   :  { %4921 = vmatprep.subr.bf16.mxu1 %v6611_v0  ;;  %v6614_v56 = vld [vmem:[%s9354_s3 + $0x1cc] ss:$16 sps:$4 sm:$0xff]  }
 0x1f6   :  { %4879 = vmatpush1.bf16.msra.mxu0 %v6534_v3  ;;  %v6563_v3 = vld [vmem:[%s9354_s3 + $0xec] ss:$16 sps:$4 sm:$0xff]  }
 0x1f7   :  { %4880 = vmatprep.subr.bf16.mxu0 %v6539_v4  ;;  %4922 = vmatpush1.bf16.msra.mxu1 %v6609_v7  ;;  %v6657_v4 = vld [vmem:[%s9354_s3 + $0x700] ss:$16 sps:$4 sm:$0xff]   ;;  %v2902_v7 = vadd.f32 %v2901_v28, %v2859_v12  ;;  %v6618_v12 = vld [vmem:[%s9354_s3 + $0x1a8] ss:$16 sps:$4 sm:$0xff]  }
 0x1f8   :  { %4923 = vmatprep.subr.bf16.mxu1 %v6617_v15 }
 0x1fa   :  { %4881 = vmatpush2.bf16.msra.mxu0 %v6537_v8 }
 0x1fb   :  { %4882 = vmatprep.subr.bf16.mxu0 %v6542_v50  ;;  %4924 = vmatpush2.bf16.msra.mxu1 %v6615_v17  ;;  %v6665_v50 = vld [vmem:[%s9354_s3 + $0x2ec] ss:$16 sps:$4 sm:$0xff]  }
 0x1fc   :  { %4925 = vmatprep.subr.bf16.mxu1 %v6623_v24  ;;  %v2987_v24 = vpop.f32.mrf.mxu1 }
 0x1fe   :  { %4883 = vmatpush2.bf16.msra.mxu0 %v6540_v9 }
 0x1ff   :  { %4884 = vmatprep.subr.bf16.mxu0 %v6545_v6  ;;  %4926 = vmatpush2.bf16.msra.mxu1 %v6621_v11  ;;  %v2904_v6 = vadd.f32 %v2903_v18, %v2861_v63  ;;  %v6584_v18 = vld [vmem:[%s9354_s3 + $0x6c] ss:$16 sps:$4 sm:$0xff]   ;;  %v463_v63 = vsub.s32 6, %v7778_v19 }
 0x200   :  { %4927 = vmatprep.subr.bf16.mxu1 %v6629_v48 }
 0x202   :  { %4885 = vmatpush2.bf16.msra.mxu0 %v6543_v10 }
 0x203   :  { %4886 = vmatprep.subr.bf16.mxu0 %v6548_v41  ;;  %4928 = vmatpush2.bf16.msra.mxu1 %v6627_v31  ;;  %v2989_v31 = vpop.f32.mrf.mxu1 }
 0x204   :  { %4929 = vmatprep.subr.bf16.mxu1 %v6635_v14 }
 0x206   :  { %4887 = vmatpush2.bf16.msra.mxu0 %v6546_v55 }
 0x207   :  { %4888 = vmatprep.subr.bf16.mxu0 %v6551_v26  ;;  %4930 = vmatpush2.bf16.msra.mxu1 %v6633_v16 }
 0x208   :  { %4931 = vmatprep.subr.bf16.mxu1 %v6641_v27 }
 0x20a   :  { %4889 = vmatpush2.bf16.msra.mxu0 %v6549_v29  ;;  %v6561_v29 = vld [vmem:[%s9354_s3 + $0xe8] ss:$16 sps:$4 sm:$0xff]  }
 0x20b   :  { %4890 = vmatprep.subr.bf16.mxu0 %v6554_v34  ;;  %4932 = vmatpush2.bf16.msra.mxu1 %v6639_v36  ;;  %v6566_v34 = vld [vmem:[%s9354_s3 + $0xcc] ss:$16 sps:$4 sm:$0xff]   ;;  %v6564_v36 = vld [vmem:[%s9354_s3 + $0xc8] ss:$16 sps:$4 sm:$0xff]  }
 0x20c   :  { %4933 = vmatprep.subr.bf16.mxu1 %v6647_v37  ;;  %v6572_v37 = vld [vmem:[%s9354_s3 + $0xac] ss:$16 sps:$4 sm:$0xff]  }
 0x20e   :  { %4891 = vmatpush2.bf16.msra.mxu0 %v6552_v2  ;;  %v6582_v2 = vld [vmem:[%s9354_s3 + $0x68] ss:$16 sps:$4 sm:$0xff]  }
 0x20f   :  { %4892 = vmatprep.subr.bf16.mxu0 %v6557_v43  ;;  %4934 = vmatpush2.bf16.msra.mxu1 %v6645_v44  ;;  %v6588_v43 = vld [vmem:[%s9354_s3 + $0x48] ss:$16 sps:$4 sm:$0xff]   ;;  %v6596_v44 = vld [vmem:[%s9354_s3 + $0x2c] ss:$16 sps:$4 sm:$0xff]  }
 0x210   :  { %4935 = vmatprep.subr.bf16.mxu1 %v6653_v42  ;;  %v6594_v42 = vld [vmem:[%s9354_s3 + $0x28] ss:$16 sps:$4 sm:$0xff]  }
 0x211   :  { %v2940_v1 = vpop.f32.mrf.mxu0 }
 0x212   :  { %4893 = vmatpush2.bf16.msra.mxu0 %v6555_v49  ;;  %v2941_v15 = vadd.f32 %v2940_v1, %v2898_v60  ;;  %v6606_v49 = vld [vmem:[%s9354_s3 + $0x1e8] ss:$16 sps:$4 sm:$0xff]  }
 0x213   :  { %v2942_v0 = vpop.f32.mrf.mxu0  ;;  %4894 = vmatprep.subr.bf16.mxu0 %v6560_v52  ;;  %4936 = vmatpush2.bf16.msra.mxu1 %v6651_v53  ;;  %v6612_v52 = vld [vmem:[%s9354_s3 + $0x1c8] ss:$16 sps:$4 sm:$0xff]   ;;  %v6620_v53 = vld [vmem:[%s9354_s3 + $0x1ac] ss:$16 sps:$4 sm:$0xff]  }
 0x214   :  { %v2943_v8 = vadd.f32 %v2942_v0, %v2900_v61  ;;  %4937 = vmatprep.subr.bf16.mxu1 %v6659_v58  ;;  %v2984_v13 = vadd.f32 %v2983_v25, %v2941_v15  ;;  %v6608_v25 = vld [vmem:[%s9354_s3 + $0x1ec] ss:$16 sps:$4 sm:$0xff]   ;;  %v6624_v60 = vld [vmem:[%s9354_s3 + $0x188] ss:$16 sps:$4 sm:$0xff]   ;;  %v467_v0 = vsub.s32 7, %v7778_v19 }
 0x215   :  { %v2944_v17 = vpop.f32.mrf.mxu0  ;;  %v6626_v58 = vld [vmem:[%s9354_s3 + $0x18c] ss:$16 sps:$4 sm:$0xff]  }
 0x216   :  { %v2945_v9 = vadd.f32 %v2944_v17, %v2902_v7  ;;  %4895 = vmatpush2.bf16.msra.mxu0 %v6558_v51  ;;  %v2986_v11 = vadd.f32 %v2985_v62, %v2943_v8  ;;  %v3184_v38 = vmul.f32 0.2, %v2984_v13  ;;  %vm3168_vm11 = vcmp.gt.f32.partialorder %v2984_v13, 0.0  ;;  %v6632_v61 = vld [vmem:[%s9354_s3 + $0x16c] ss:$16 sps:$4 sm:$0xff]  }
 0x217   :  { %v2946_v48 = vpop.f32.mrf.mxu0  ;;  %4950 = vmatprep.subr.bf16.mxu0 %v6563_v3  ;;  %4938 = vmatpush2.bf16.msra.mxu1 %v6657_v4  ;;  %v6630_v51 = vld [vmem:[%s9354_s3 + $0x168] ss:$16 sps:$4 sm:$0xff]   ;;  %v6638_v4 = vld [vmem:[%s9354_s3 + $0x14c] ss:$16 sps:$4 sm:$0xff]  }
 0x218   :  { %v2988_v10 = vadd.f32 %v2987_v24, %v2945_v9  ;;  %4993 = vmatprep.subr.bf16.mxu1 %v6665_v50  ;;  %v2947_v41 = vadd.f32 %v2946_v48, %v2904_v6  ;;  %v3185_v46 = vmul.f32 0.2, %v2986_v11  ;;  %vm3169_vm10 = vcmp.gt.f32.partialorder %v2986_v11, 0.0  ;;  %v6636_v8 = vld [vmem:[%s9354_s3 + $0x148] ss:$16 sps:$4 sm:$0xff]   ;;  %v6908_v50 = vld [vmem:[%s9353_s2] sm:$0xff] }
 0x219   :  { %v3200_v54 = vsel %vm3168_vm11, %v2984_v13, %v3184_v38  ;;  %v464_v17 = vrot.slane %v6908_v50, %v463_v63  ;;  %v468_v24 = vrot.slane %v6908_v50, %v467_v0  ;;  %v6644_v6 = vld [vmem:[%s9354_s3 + $0x12c] ss:$16 sps:$4 sm:$0xff]   ;;  %v6642_v13 = vld [vmem:[%s9354_s3 + $0x128] ss:$16 sps:$4 sm:$0xff]  }
 0x21a   :  { %v3192_v14 = vmul.f32 0.2, %v2988_v10  ;;  %vm3176_vm9 = vcmp.gt.f32.partialorder %v2988_v10, 0.0  ;;  %v2990_v55 = vadd.f32 %v2989_v31, %v2947_v41  ;;  %v3201_v27 = vsel %vm3169_vm10, %v2986_v11, %v3185_v46  ;;  %v3026_v1 = vpop.f32.mrf.mxu1  ;;  %v6663_v63 = vld [vmem:[%s9354_s3 + $0x2e8] ss:$16 sps:$4 sm:$0xff]  }
 0x21b   :  { %v6677_v50 = vld [vmem:[%s9354_s3 + $0x2ac] ss:$16 sps:$4 sm:$0xff]  }
 0x21c   :  { %vm3177_vm12 = vcmp.gt.f32.partialorder %v2990_v55, 0.0  ;;  %v3193_v26 = vmul.f32 0.2, %v2990_v55  ;;  %v3208_v16 = vsel %vm3176_vm9, %v2988_v10, %v3192_v14  ;;  %v3028_v62 = vpop.f32.mrf.mxu1  ;;  %v3027_v10 = vadd.f32 %v3026_v1, %v464_v17  ;;  %v6650_v14 = vld [vmem:[%s9354_s3 + $0x10c] ss:$16 sps:$4 sm:$0xff]  }
 0x21d   :  { %v8727_v33 = vpack.c.bf16 %v3208_v16, %v3200_v54  ;;  %v3029_v41 = vadd.f32 %v3028_v62, %v468_v24 }
 0x21e   :  { %v3209_v20 = vsel %vm3177_vm12, %v2990_v55, %v3193_v26  ;;  %v3030_v15 = vpop.f32.mrf.mxu1 }
 0x21f   :  { %v8722_v28 = vpack.c.bf16 %v3209_v20, %v3201_v27  ;;  %v3031_v55 = vadd.f32 %v3030_v15, %v464_v17  ;;  %v6648_v20 = vld [vmem:[%s9354_s3 + $0x108] ss:$16 sps:$4 sm:$0xff]  }
 0x220   :  { %v3032_v48 = vpop.f32.mrf.mxu1  ;;  %v6672_v15 = vld [vmem:[%s9354_s3 + $0x488] ss:$16 sps:$4 sm:$0xff]  }
 0x221   :  { %4896 = vmatprep.mubr.bf16.mxu0 %v8722_v28  ;;  %v6675_v17 = vld [vmem:[%s9354_s3 + $0x2a8] ss:$16 sps:$4 sm:$0xff]  }
 0x222   :  { %4897 = vmatmul.mubr.bf16.vlgmr.msra.gmra.mxu0 %v8727_v33 }
 0x223   :  { %4951 = vmatpush1.bf16.msra.mxu0 %v6561_v29  ;;  %4982 = vmatprep.mubr.bf16.mxu0 %v8327_v22  ;;  %v6576_v22 = vld [vmem:[%s9354_s3 + $0x88] ss:$16 sps:$4 sm:$0xff]  }
 0x224   :  { %4952 = vmatprep.subr.bf16.mxu0 %v6566_v34 }
 0x227   :  { %4953 = vmatpush1.bf16.msra.mxu0 %v6564_v36 }
 0x228   :  { %4954 = vmatprep.subr.bf16.mxu0 %v6572_v37  ;;  %v6656_v37 = vld [vmem:[%s9354_s3 + $0x4ec] ss:$16 sps:$4 sm:$0xff]  }
 0x22b   :  { %4955 = vmatpush1.bf16.msra.mxu0 %v6570_v39  ;;  %v3033_v39 = vadd.f32 %v3032_v48, %v468_v24  ;;  %v6678_v24 = vld [vmem:[%s9354_s3 + $0x468] ss:$16 sps:$4 sm:$0xff]   ;;  %v6692_v48 = vld [vmem:[%s9354_s3 + $0x42c] ss:$16 sps:$4 sm:$0xff]  }
 0x22c   :  { %4956 = vmatprep.subr.bf16.mxu0 %v6578_v59 }
 0x22f   :  { %4957 = vmatpush1.bf16.msra.mxu0 %v6576_v22 }
 0x230   :  { %4958 = vmatprep.subr.bf16.mxu0 %v6584_v18 }
 0x233   :  { %4959 = vmatpush1.bf16.msra.mxu0 %v6582_v2 }
 0x234   :  { %4960 = vmatprep.subr.bf16.mxu0 %v6590_v23 }
 0x237   :  { %4961 = vmatpush1.bf16.msra.mxu0 %v6588_v43  ;;  %v6654_v43 = vld [vmem:[%s9354_s3 + $0x4e8] ss:$16 sps:$4 sm:$0xff]  }
 0x238   :  { %4962 = vmatprep.subr.bf16.mxu0 %v6596_v44 }
 0x23b   :  { %4963 = vmatpush1.bf16.msra.mxu0 %v6594_v42 }
 0x23c   :  { %4964 = vmatprep.subr.bf16.mxu0 %v6602_v45 }
 0x23f   :  { %4965 = vmatpush1.bf16.msra.mxu0 %v6600_v47  ;;  %v6662_v47 = vld [vmem:[%s9354_s3 + $0x4cc] ss:$16 sps:$4 sm:$0xff]  }
 0x240   :  { %4966 = vmatprep.subr.bf16.mxu0 %v6608_v25 }
 0x243   :  { %4967 = vmatpush2.bf16.msra.mxu0 %v6606_v49 }
 0x244   :  { %4968 = vmatprep.subr.bf16.mxu0 %v6614_v56 }
 0x247   :  { %4969 = vmatpush2.bf16.msra.mxu0 %v6612_v52 }
 0x248   :  { %4970 = vmatprep.subr.bf16.mxu0 %v6620_v53  ;;  %v6660_v53 = vld [vmem:[%s9354_s3 + $0x4c8] ss:$16 sps:$4 sm:$0xff]  }
 0x24b   :  { %4971 = vmatpush2.bf16.msra.mxu0 %v6618_v12 }
 0x24c   :  { %4972 = vmatprep.subr.bf16.mxu0 %v6626_v58  ;;  %v6668_v58 = vld [vmem:[%s9354_s3 + $0x4ac] ss:$16 sps:$4 sm:$0xff]  }
 0x24f   :  { %4973 = vmatpush2.bf16.msra.mxu0 %v6624_v60 }
 0x250   :  { %4974 = vmatprep.subr.bf16.mxu0 %v6632_v61 }
 0x251   :  { %v3069_v3 = vpop.f32.mrf.mxu0 }
 0x252   :  { %v3070_v38 = vadd.f32 %v3069_v3, %v3027_v10  ;;  %v6671_v3 = vld [vmem:[%s9354_s3 + $0x2cc] ss:$16 sps:$4 sm:$0xff]   ;;  %v6687_v10 = vld [vmem:[%s9354_s3 + $0x268] ss:$16 sps:$4 sm:$0xff]  }
 0x253   :  { %v3071_v7 = vpop.f32.mrf.mxu0  ;;  %4975 = vmatpush2.bf16.msra.mxu0 %v6630_v51 }
 0x254   :  { %4976 = vmatprep.subr.bf16.mxu0 %v6638_v4  ;;  %v3072_v26 = vadd.f32 %v3071_v7, %v3029_v41  ;;  %v6674_v4 = vld [vmem:[%s9354_s3 + $0x48c] ss:$16 sps:$4 sm:$0xff]   ;;  %v6669_v7 = vld [vmem:[%s9354_s3 + $0x2c8] ss:$16 sps:$4 sm:$0xff]  }
 0x255   :  { %v3073_v9 = vpop.f32.mrf.mxu0  ;;  %v6690_v41 = vld [vmem:[%s9354_s3 + $0x428] ss:$16 sps:$4 sm:$0xff]  }
 0x256   :  { %v3074_v54 = vadd.f32 %v3073_v9, %v3031_v55  ;;  %v6683_v9 = vld [vmem:[%s9354_s3 + $0x28c] ss:$16 sps:$4 sm:$0xff]   ;;  %v6696_v55 = vld [vmem:[%s9354_s3 + $0x408] ss:$16 sps:$4 sm:$0xff]  }
 0x257   :  { %v3075_v11 = vpop.f32.mrf.mxu0  ;;  %4977 = vmatpush2.bf16.msra.mxu0 %v6636_v8  ;;  %v6680_v8 = vld [vmem:[%s9354_s3 + $0x46c] ss:$16 sps:$4 sm:$0xff]  }
 0x258   :  { %4978 = vmatprep.subr.bf16.mxu0 %v6644_v6  ;;  %v3076_v18 = vadd.f32 %v3075_v11, %v3033_v39  ;;  %v6681_v6 = vld [vmem:[%s9354_s3 + $0x288] ss:$16 sps:$4 sm:$0xff]  }
 0x259   :  { %v3155_v31 = vpop.f32.mrf.mxu0  ;;  %v6684_v11 = vld [vmem:[%s9354_s3 + $0x448] ss:$16 sps:$4 sm:$0xff]  }
 0x25a   :  { %v3112_v46 = vpop.f32.mrf.mxu1  ;;  %v6714_v39 = vld [vmem:[%s9354_s3 + $0x5a8] ss:$16 sps:$4 sm:$0xff]  }
 0x25b   :  { %v3157_v16 = vpop.f32.mrf.mxu0  ;;  %4979 = vmatpush2.bf16.msra.mxu0 %v6642_v13  ;;  %v3113_v29 = vadd.f32 %v3112_v46, %v3070_v38  ;;  %v6689_v13 = vld [vmem:[%s9354_s3 + $0x26c] ss:$16 sps:$4 sm:$0xff]   ;;  %v6693_v46 = vld [vmem:[%s9354_s3 + $0x248] ss:$16 sps:$4 sm:$0xff]  }
 0x25c   :  { %v3114_v27 = vpop.f32.mrf.mxu1  ;;  %4980 = vmatprep.subr.bf16.mxu0 %v6650_v14  ;;  %v6695_v14 = vld [vmem:[%s9354_s3 + $0x24c] ss:$16 sps:$4 sm:$0xff]  }
 0x25d   :  { %v3115_v34 = vadd.f32 %v3114_v27, %v3072_v26  ;;  %v3159_v36 = vpop.f32.mrf.mxu0  ;;  %v3156_v44 = vadd.f32 %v3155_v31, %v3113_v29  ;;  %v6698_v31 = vld [vmem:[%s9354_s3 + $0x40c] ss:$16 sps:$4 sm:$0xff]   ;;  %v6699_v27 = vld [vmem:[%s9354_s3 + $0x228] ss:$16 sps:$4 sm:$0xff]  }
 0x25e   :  { %v3116_v59 = vpop.f32.mrf.mxu1  ;;  %v6704_v38 = vld [vmem:[%s9354_s3 + $0x5ec] ss:$16 sps:$4 sm:$0xff]   ;;  %v6708_v29 = vld [vmem:[%s9354_s3 + $0x5c8] ss:$16 sps:$4 sm:$0xff]  }
 0x25f   :  { %v3117_v22 = vadd.f32 %v3116_v59, %v3074_v54  ;;  %v3158_v2 = vadd.f32 %v3157_v16, %v3115_v34  ;;  %4981 = vmatpush2.bf16.msra.mxu0 %v6648_v20  ;;  %v3161_v45 = vpop.f32.mrf.mxu0  ;;  %v3186_v12 = vmul.f32 0.2, %v3156_v44  ;;  %vm3170_vm15 = vcmp.gt.f32.partialorder %v3156_v44, 0.0  ;;  %v6701_v26 = vld [vmem:[%s9354_s3 + $0x22c] ss:$16 sps:$4 sm:$0xff]  }
 0x260   :  { %v3118_v23 = vpop.f32.mrf.mxu1  ;;  %5036 = vmatprep.subr.bf16.mxu0 %v6656_v37  ;;  %v6702_v16 = vld [vmem:[%s9354_s3 + $0x5e8] ss:$16 sps:$4 sm:$0xff]   ;;  %v6710_v20 = vld [vmem:[%s9354_s3 + $0x5cc] ss:$16 sps:$4 sm:$0xff]  }
 0x261   :  { %v3160_v42 = vadd.f32 %v3159_v36, %v3117_v22  ;;  %v3119_v25 = vadd.f32 %v3118_v23, %v3076_v18  ;;  %v3187_v56 = vmul.f32 0.2, %v3158_v2  ;;  %vm3171_vm14 = vcmp.gt.f32.partialorder %v3158_v2, 0.0  ;;  %v6707_v54 = vld [vmem:[%s9354_s3 + $0x20c] ss:$16 sps:$4 sm:$0xff]  }
 0x262   :  { %4983 = vmatmul.mubr.bf16.vlgmr.msra.gmra.mxu0 %v8093_v57  ;;  %v3202_v62 = vsel %vm3170_vm15, %v3156_v44, %v3186_v12  ;;  %v6705_v34 = vld [vmem:[%s9354_s3 + $0x208] ss:$16 sps:$4 sm:$0xff]   ;;  %v6716_v36 = vld [vmem:[%s9354_s3 + $0x5ac] ss:$16 sps:$4 sm:$0xff]  }
 0x263   :  { %v3194_v49 = vmul.f32 0.2, %v3160_v42  ;;  %vm3178_vm13 = vcmp.gt.f32.partialorder %v3160_v42, 0.0  ;;  %v3162_v52 = vadd.f32 %v3161_v45, %v3119_v25  ;;  %5037 = vmatpush1.bf16.msra.mxu0 %v6654_v43  ;;  %5068 = vmatprep.mubr.bf16.mxu0 %v8722_v28  ;;  %v3203_v60 = vsel %vm3171_vm14, %v3158_v2, %v3187_v56  ;;  %v6666_v28 = vld [vmem:[%s9354_s3 + $0x4a8] ss:$16 sps:$4 sm:$0xff]  }
 0x264   :  { %5038 = vmatprep.subr.bf16.mxu0 %v6662_v47  ;;  %v6713_v37 = vld [vmem:[%s9354_s3 + $0x3ec] ss:$16 sps:$4 sm:$0xff]   ;;  %v6711_v59 = vld [vmem:[%s9354_s3 + $0x3e8] ss:$16 sps:$4 sm:$0xff]  }
 0x265   :  { %vm3179_vm0 = vcmp.gt.f32.partialorder %v3162_v52, 0.0  ;;  %v3195_v57 = vmul.f32 0.2, %v3162_v52  ;;  %v3210_v1 = vsel %vm3178_vm13, %v3160_v42, %v3194_v49  ;;  %v6722_v22 = vld [vmem:[%s9354_s3 + $0x58c] ss:$16 sps:$4 sm:$0xff]   ;;  %vm5675_vm13 = vcmask 7168  }
 0x266   :  { %v8852_v0 = vpack.c.bf16 %v3210_v1, %v3202_v62  ;;  %v6719_v18 = vld [vmem:[%s9354_s3 + $0x3cc] ss:$16 sps:$4 sm:$0xff]   ;;  %v6720_v2 = vld [vmem:[%s9354_s3 + $0x588] ss:$16 sps:$4 sm:$0xff]  }
 0x267   :  { %5039 = vmatpush1.bf16.msra.mxu0 %v6660_v53  ;;  %v3211_v61 = vsel %vm3179_vm0, %v3162_v52, %v3195_v57  ;;  %v6717_v23 = vld [vmem:[%s9354_s3 + $0x3c8] ss:$16 sps:$4 sm:$0xff]   ;;  %v6728_v43 = vld [vmem:[%s9354_s3 + $0x56c] ss:$16 sps:$4 sm:$0xff]  }
 0x268   :  { %v8847_v51 = vpack.c.bf16 %v3211_v61, %v3203_v60  ;;  %5040 = vmatprep.subr.bf16.mxu0 %v6668_v58  ;;  %v6725_v44 = vld [vmem:[%s9354_s3 + $0x3ac] ss:$16 sps:$4 sm:$0xff]   ;;  %v6726_v42 = vld [vmem:[%s9354_s3 + $0x568] ss:$16 sps:$4 sm:$0xff]  }
 0x269   :  { %v6723_v45 = vld [vmem:[%s9354_s3 + $0x3a8] ss:$16 sps:$4 sm:$0xff]   ;;  %v6734_v47 = vld [vmem:[%s9354_s3 + $0x54c] ss:$16 sps:$4 sm:$0xff]  }
 0x26a   :  { %4939 = vmatprep.mubr.bf16.mxu1 %v8847_v51  ;;  %v6731_v25 = vld [vmem:[%s9354_s3 + $0x38c] ss:$16 sps:$4 sm:$0xff]   ;;  %v6732_v49 = vld [vmem:[%s9354_s3 + $0x548] ss:$16 sps:$4 sm:$0xff]  }
 0x26b   :  { %4940 = vmatmul.mubr.bf16.vlgmr.msra.gmra.mxu1 %v8852_v0  ;;  %5041 = vmatpush1.bf16.msra.mxu0 %v6666_v28  ;;  %v6729_v56 = vld [vmem:[%s9354_s3 + $0x388] ss:$16 sps:$4 sm:$0xff]   ;;  %v6740_v52 = vld [vmem:[%s9354_s3 + $0x52c] ss:$16 sps:$4 sm:$0xff]  }
 0x26c   :  { %4994 = vmatpush1.bf16.msra.mxu1 %v6663_v63  ;;  %5025 = vmatprep.mubr.bf16.mxu1 %v8355_v21  ;;  %v6686_v21 = vld [vmem:[%s9354_s3 + $0x44c] ss:$16 sps:$4 sm:$0xff]   ;;  %v6738_v12 = vld [vmem:[%s9354_s3 + $0x528] ss:$16 sps:$4 sm:$0xff]  }
 0x26d   :  { %4995 = vmatprep.subr.bf16.mxu1 %v6671_v3  ;;  %5042 = vmatprep.subr.bf16.mxu0 %v6674_v4  ;;  %v6737_v53 = vld [vmem:[%s9354_s3 + $0x36c] ss:$16 sps:$4 sm:$0xff]   ;;  %v6735_v58 = vld [vmem:[%s9354_s3 + $0x368] ss:$16 sps:$4 sm:$0xff]  }
 0x26e   :  { %v6746_v57 = vld [vmem:[%s9354_s3 + $0x50c] ss:$16 sps:$4 sm:$0xff]   ;;  %v6744_v60 = vld [vmem:[%s9354_s3 + $0x508] ss:$16 sps:$4 sm:$0xff]  }
 0x26f   :  { %5043 = vmatpush1.bf16.msra.mxu0 %v6672_v15  ;;  %v6743_v1 = vld [vmem:[%s9354_s3 + $0x34c] ss:$16 sps:$4 sm:$0xff]   ;;  %v6741_v61 = vld [vmem:[%s9354_s3 + $0x348] ss:$16 sps:$4 sm:$0xff]  }
 0x270   :  { %4996 = vmatpush1.bf16.msra.mxu1 %v6669_v7  ;;  %5044 = vmatprep.subr.bf16.mxu0 %v6680_v8  ;;  %v6803_v28 = vld [vmem:[%s9355_s5 + $0x74] ss:$8 sps:$4 sm:$0xff]   ;;  %v6801_v63 = vld [vmem:[%s9355_s5 + $0x70] ss:$8 sps:$4 sm:$0xff]   ;;  %v6806_v4 = vld [vmem:[%s9355_s5 + $0x64] ss:$8 sps:$4 sm:$0xff]  }
 0x271   :  { %4997 = vmatprep.subr.bf16.mxu1 %v6677_v50  ;;  %v6749_v62 = vld [vmem:[%s9354_s3 + $0x32c] ss:$16 sps:$4 sm:$0xff]   ;;  %v6747_v3 = vld [vmem:[%s9354_s3 + $0x328] ss:$16 sps:$4 sm:$0xff]  }
 0x272   :  { %v6752_v7 = vld [vmem:[%s9354_s3 + $0x30c] ss:$16 sps:$4 sm:$0xff]   ;;  %v6804_v15 = vld [vmem:[%s9355_s5 + $0x60] ss:$8 sps:$4 sm:$0xff]  }
 0x273   :  { %5045 = vmatpush1.bf16.msra.mxu0 %v6678_v24  ;;  %v6750_v8 = vld [vmem:[%s9354_s3 + $0x308] ss:$16 sps:$4 sm:$0xff]   ;;  %v6809_v50 = vld [vmem:[%s9355_s5 + $0x54] ss:$8 sps:$4 sm:$0xff]  }
 0x274   :  { %4998 = vmatpush1.bf16.msra.mxu1 %v6675_v17  ;;  %5046 = vmatprep.subr.bf16.mxu0 %v6686_v21  ;;  %v6807_v17 = vld [vmem:[%s9355_s5 + $0x50] ss:$8 sps:$4 sm:$0xff]   ;;  %v6758_v21 = vld [vmem:[%s9354_s3 + $0x6cc] ss:$16 sps:$4 sm:$0xff]  }
 0x275   :  { %4999 = vmatprep.subr.bf16.mxu1 %v6683_v9  ;;  %v6753_v24 = vld [vmem:[%s9354_s3 + $0x6e8] ss:$16 sps:$4 sm:$0xff]   ;;  %v6812_v9 = vld [vmem:[%s9355_s5 + $0x44] ss:$8 sps:$4 sm:$0xff]  }
 0x277   :  { %5047 = vmatpush1.bf16.msra.mxu0 %v6684_v11  ;;  %v6756_v11 = vld [vmem:[%s9354_s3 + $0x6c8] ss:$16 sps:$4 sm:$0xff]  }
 0x278   :  { %5000 = vmatpush1.bf16.msra.mxu1 %v6681_v6  ;;  %5048 = vmatprep.subr.bf16.mxu0 %v6692_v48  ;;  %v6810_v6 = vld [vmem:[%s9355_s5 + $0x40] ss:$8 sps:$4 sm:$0xff]   ;;  %v6815_v48 = vld [vmem:[%s9355_s5 + $0x34] ss:$8 sps:$4 sm:$0xff]  }
 0x279   :  { %5001 = vmatprep.subr.bf16.mxu1 %v6689_v13  ;;  %v6813_v13 = vld [vmem:[%s9355_s5 + $0x30] ss:$8 sps:$4 sm:$0xff]  }
 0x27b   :  { %5049 = vmatpush1.bf16.msra.mxu0 %v6690_v41  ;;  %v6764_v41 = vld [vmem:[%s9354_s3 + $0x68c] ss:$16 sps:$4 sm:$0xff]  }
 0x27c   :  { %5002 = vmatpush1.bf16.msra.mxu1 %v6687_v10  ;;  %5050 = vmatprep.subr.bf16.mxu0 %v6698_v31  ;;  %v6818_v10 = vld [vmem:[%s9355_s5 + $0x24] ss:$8 sps:$4 sm:$0xff]   ;;  %v6816_v31 = vld [vmem:[%s9355_s5 + $0x20] ss:$8 sps:$4 sm:$0xff]  }
 0x27d   :  { %5003 = vmatprep.subr.bf16.mxu1 %v6695_v14  ;;  %v6762_v14 = vld [vmem:[%s9354_s3 + $0x688] ss:$16 sps:$4 sm:$0xff]  }
 0x27f   :  { %5051 = vmatpush1.bf16.msra.mxu0 %v6696_v55  ;;  %v6767_v55 = vld [vmem:[%s9354_s3 + $0x66c] ss:$16 sps:$4 sm:$0xff]  }
 0x280   :  { %5004 = vmatpush1.bf16.msra.mxu1 %v6693_v46  ;;  %5052 = vmatprep.subr.bf16.mxu0 %v6704_v38  ;;  %v6821_v46 = vld [vmem:[%s9355_s5 + $0x14] ss:$8 sps:$4 sm:$0xff]   ;;  %v6819_v38 = vld [vmem:[%s9355_s5 + $0x10] ss:$8 sps:$4 sm:$0xff]  }
 0x281   :  { %5005 = vmatprep.subr.bf16.mxu1 %v6701_v26  ;;  %v6765_v26 = vld [vmem:[%s9354_s3 + $0x668] ss:$16 sps:$4 sm:$0xff]  }
 0x283   :  { %5053 = vmatpush2.bf16.msra.mxu0 %v6702_v16  ;;  %v6824_v16 = vld [vmem:[%s9355_s5 + $0x4] ss:$8 sps:$4 sm:$0xff]  }
 0x284   :  { %5006 = vmatpush1.bf16.msra.mxu1 %v6699_v27  ;;  %5054 = vmatprep.subr.bf16.mxu0 %v6710_v20  ;;  %v6770_v27 = vld [vmem:[%s9354_s3 + $0x64c] ss:$16 sps:$4 sm:$0xff]   ;;  %v6822_v20 = vld [vmem:[%s9355_s5] ss:$8 sps:$4 sm:$0xff]  }
 0x285   :  { %5007 = vmatprep.subr.bf16.mxu1 %v6707_v54  ;;  %v6768_v54 = vld [vmem:[%s9354_s3 + $0x648] ss:$16 sps:$4 sm:$0xff]  }
 0x287   :  { %5055 = vmatpush2.bf16.msra.mxu0 %v6708_v29  ;;  %v6827_v29 = vld [vmem:[%s9355_s5 + $0xf4] ss:$8 sps:$4 sm:$0xff]  }
 0x288   :  { %5008 = vmatpush1.bf16.msra.mxu1 %v6705_v34  ;;  %5056 = vmatprep.subr.bf16.mxu0 %v6716_v36  ;;  %v6773_v34 = vld [vmem:[%s9354_s3 + $0x62c] ss:$16 sps:$4 sm:$0xff]   ;;  %v6825_v36 = vld [vmem:[%s9355_s5 + $0xf0] ss:$8 sps:$4 sm:$0xff]  }
 0x289   :  { %5009 = vmatprep.subr.bf16.mxu1 %v6713_v37  ;;  %v6771_v37 = vld [vmem:[%s9354_s3 + $0x628] ss:$16 sps:$4 sm:$0xff]  }
 0x28b   :  { %5057 = vmatpush2.bf16.msra.mxu0 %v6714_v39  ;;  %v6830_v39 = vld [vmem:[%s9355_s5 + $0xe4] ss:$8 sps:$4 sm:$0xff]  }
 0x28c   :  { %5010 = vmatpush2.bf16.msra.mxu1 %v6711_v59  ;;  %5058 = vmatprep.subr.bf16.mxu0 %v6722_v22  ;;  %v6776_v59 = vld [vmem:[%s9354_s3 + $0x60c] ss:$16 sps:$4 sm:$0xff]   ;;  %v6828_v22 = vld [vmem:[%s9355_s5 + $0xe0] ss:$8 sps:$4 sm:$0xff]  }
 0x28d   :  { %5011 = vmatprep.subr.bf16.mxu1 %v6719_v18  ;;  %v6774_v18 = vld [vmem:[%s9354_s3 + $0x608] ss:$16 sps:$4 sm:$0xff]  }
 0x28f   :  { %5059 = vmatpush2.bf16.msra.mxu0 %v6720_v2  ;;  %v6833_v2 = vld [vmem:[%s9355_s5 + $0xd4] ss:$8 sps:$4 sm:$0xff]  }
 0x290   :  { %5012 = vmatpush2.bf16.msra.mxu1 %v6717_v23  ;;  %5060 = vmatprep.subr.bf16.mxu0 %v6728_v43  ;;  %v6779_v23 = vld [vmem:[%s9354_s3 + $0x7ec] ss:$16 sps:$4 sm:$0xff]   ;;  %v6831_v43 = vld [vmem:[%s9355_s5 + $0xd0] ss:$8 sps:$4 sm:$0xff]  }
 0x291   :  { %5013 = vmatprep.subr.bf16.mxu1 %v6725_v44  ;;  %v6777_v44 = vld [vmem:[%s9354_s3 + $0x7e8] ss:$16 sps:$4 sm:$0xff]  }
 0x293   :  { %5061 = vmatpush2.bf16.msra.mxu0 %v6726_v42  ;;  %v6836_v42 = vld [vmem:[%s9355_s5 + $0xc4] ss:$8 sps:$4 sm:$0xff]  }
 0x294   :  { %5014 = vmatpush2.bf16.msra.mxu1 %v6723_v45  ;;  %5062 = vmatprep.subr.bf16.mxu0 %v6734_v47  ;;  %v6782_v45 = vld [vmem:[%s9354_s3 + $0x7cc] ss:$16 sps:$4 sm:$0xff]   ;;  %v6834_v47 = vld [vmem:[%s9355_s5 + $0xc0] ss:$8 sps:$4 sm:$0xff]  }
 0x295   :  { %5015 = vmatprep.subr.bf16.mxu1 %v6731_v25  ;;  %v6780_v25 = vld [vmem:[%s9354_s3 + $0x7c8] ss:$16 sps:$4 sm:$0xff]  }
 0x297   :  { %5063 = vmatpush2.bf16.msra.mxu0 %v6732_v49  ;;  %v6839_v49 = vld [vmem:[%s9355_s5 + $0xb4] ss:$8 sps:$4 sm:$0xff]  }
 0x298   :  { %5016 = vmatpush2.bf16.msra.mxu1 %v6729_v56  ;;  %5064 = vmatprep.subr.bf16.mxu0 %v6740_v52  ;;  %v6785_v56 = vld [vmem:[%s9354_s3 + $0x7ac] ss:$16 sps:$4 sm:$0xff]   ;;  %v6837_v52 = vld [vmem:[%s9355_s5 + $0xb0] ss:$8 sps:$4 sm:$0xff]  }
 0x299   :  { %5017 = vmatprep.subr.bf16.mxu1 %v6737_v53  ;;  %v6783_v53 = vld [vmem:[%s9354_s3 + $0x7a8] ss:$16 sps:$4 sm:$0xff]  }
 0x29b   :  { %5065 = vmatpush2.bf16.msra.mxu0 %v6738_v12  ;;  %v6842_v12 = vld [vmem:[%s9355_s5 + $0xa4] ss:$8 sps:$4 sm:$0xff]  }
 0x29c   :  { %5018 = vmatpush2.bf16.msra.mxu1 %v6735_v58  ;;  %5066 = vmatprep.subr.bf16.mxu0 %v6746_v57  ;;  %v6788_v58 = vld [vmem:[%s9354_s3 + $0x78c] ss:$16 sps:$4 sm:$0xff]   ;;  %v6840_v57 = vld [vmem:[%s9355_s5 + $0xa0] ss:$8 sps:$4 sm:$0xff]  }
 0x29d   :  { %5019 = vmatprep.subr.bf16.mxu1 %v6743_v1  ;;  %v6786_v1 = vld [vmem:[%s9354_s3 + $0x788] ss:$16 sps:$4 sm:$0xff]  }
 0x29f   :  { %5067 = vmatpush2.bf16.msra.mxu0 %v6744_v60  ;;  %v6845_v60 = vld [vmem:[%s9355_s5 + $0x94] ss:$8 sps:$4 sm:$0xff]  }
 0x2a0   :  { %5020 = vmatpush2.bf16.msra.mxu1 %v6741_v61  ;;  %5546 = vmatprep.subr.bf16.mxu0 %v6803_v28  ;;  %v6791_v61 = vld [vmem:[%s9354_s3 + $0x76c] ss:$16 sps:$4 sm:$0xff]   ;;  %v6843_v28 = vld [vmem:[%s9355_s5 + $0x90] ss:$8 sps:$4 sm:$0xff]  }
 0x2a1   :  { %5021 = vmatprep.subr.bf16.mxu1 %v6749_v62  ;;  %v6789_v62 = vld [vmem:[%s9354_s3 + $0x768] ss:$16 sps:$4 sm:$0xff]  }
 0x2a2   :  { %5069 = vmatmul.mubr.bf16.vlgmr.msra.gmra.mxu0 %v8727_v33  ;;  %v6755_v33 = vld [vmem:[%s9354_s3 + $0x6ec] ss:$16 sps:$4 sm:$0xff]  }
 0x2a3   :  { %5547 = vmatpush1.bf16.msra.mxu0 %v6801_v63  ;;  %v6848_v63 = vld [vmem:[%s9355_s5 + $0x84] ss:$8 sps:$4 sm:$0xff]  }
 0x2a4   :  { %5022 = vmatpush2.bf16.msra.mxu1 %v6747_v3  ;;  %5548 = vmatprep.subr.bf16.mxu0 %v6806_v4  ;;  %v6794_v3 = vld [vmem:[%s9354_s3 + $0x74c] ss:$16 sps:$4 sm:$0xff]   ;;  %v6846_v4 = vld [vmem:[%s9355_s5 + $0x80] ss:$8 sps:$4 sm:$0xff]  }
 0x2a5   :  { %5023 = vmatprep.subr.bf16.mxu1 %v6752_v7  ;;  %v6792_v7 = vld [vmem:[%s9354_s3 + $0x748] ss:$16 sps:$4 sm:$0xff]  }
 0x2a7   :  { %5549 = vmatpush1.bf16.msra.mxu0 %v6804_v15  ;;  %v6797_v15 = vld [vmem:[%s9354_s3 + $0x72c] ss:$16 sps:$4 sm:$0xff]  }
 0x2a8   :  { %5024 = vmatpush2.bf16.msra.mxu1 %v6750_v8  ;;  %5550 = vmatprep.subr.bf16.mxu0 %v6809_v50  ;;  %v6795_v8 = vld [vmem:[%s9354_s3 + $0x728] ss:$16 sps:$4 sm:$0xff]   ;;  %v6800_v50 = vld [vmem:[%s9354_s3 + $0x70c] ss:$16 sps:$4 sm:$0xff]  }
 0x2a9   :  { %5079 = vmatprep.subr.bf16.mxu1 %v6755_v33  ;;  %v6798_v33 = vld [vmem:[%s9354_s3 + $0x708] ss:$16 sps:$4 sm:$0xff]  }
 0x2ab   :  { %5026 = vmatmul.mubr.bf16.vlgmr.msra.gmra.mxu1 %v8531_v35  ;;  %5551 = vmatpush1.bf16.msra.mxu0 %v6807_v17  ;;  %v6761_v35 = vld [vmem:[%s9354_s3 + $0x6ac] ss:$16 sps:$4 sm:$0xff]   ;;  %v6849_v17 = vld [vmem:[%s9355_s5 + $0x170] ss:$8 sps:$4 sm:$0xff]  }
 0x2ac   :  { %5080 = vmatpush1.bf16.msra.mxu1 %v6753_v24  ;;  %5111 = vmatprep.mubr.bf16.mxu1 %v8847_v51  ;;  %v6759_v51 = vld [vmem:[%s9354_s3 + $0x6a8] ss:$16 sps:$4 sm:$0xff]   ;;  %v6851_v24 = vld [vmem:[%s9355_s5 + $0x174] ss:$8 sps:$4 sm:$0xff]  }
 0x2ad   :  { %5081 = vmatprep.subr.bf16.mxu1 %v6758_v21  ;;  %5552 = vmatprep.subr.bf16.mxu0 %v6812_v9  ;;  %v6854_v21 = vld [vmem:[%s9355_s5 + $0x164] ss:$8 sps:$4 sm:$0xff]   ;;  %v6852_v9 = vld [vmem:[%s9355_s5 + $0x160] ss:$8 sps:$4 sm:$0xff]  }
 0x2af   :  { %5553 = vmatpush1.bf16.msra.mxu0 %v6810_v6  ;;  %v6855_v6 = vld [vmem:[%s9355_s5 + $0x150] ss:$8 sps:$4 sm:$0xff]  }
 0x2b0   :  { %5082 = vmatpush1.bf16.msra.mxu1 %v6756_v11  ;;  %5554 = vmatprep.subr.bf16.mxu0 %v6815_v48  ;;  %v6860_v11 = vld [vmem:[%s9355_s5 + $0x144] ss:$8 sps:$4 sm:$0xff]   ;;  %v6858_v48 = vld [vmem:[%s9355_s5 + $0x140] ss:$8 sps:$4 sm:$0xff]  }
 0x2b1   :  { %5083 = vmatprep.subr.bf16.mxu1 %v6761_v35  ;;  %v6863_v35 = vld [vmem:[%s9355_s5 + $0x134] ss:$8 sps:$4 sm:$0xff]  }
 0x2b3   :  { %5555 = vmatpush1.bf16.msra.mxu0 %v6813_v13  ;;  %v6861_v13 = vld [vmem:[%s9355_s5 + $0x130] ss:$8 sps:$4 sm:$0xff]  }
 0x2b4   :  { %5084 = vmatpush1.bf16.msra.mxu1 %v6759_v51  ;;  %5556 = vmatprep.subr.bf16.mxu0 %v6818_v10  ;;  %v6866_v51 = vld [vmem:[%s9355_s5 + $0x124] ss:$8 sps:$4 sm:$0xff]   ;;  %v6864_v10 = vld [vmem:[%s9355_s5 + $0x120] ss:$8 sps:$4 sm:$0xff]  }
 0x2b5   :  { %5085 = vmatprep.subr.bf16.mxu1 %v6764_v41  ;;  %v6869_v41 = vld [vmem:[%s9355_s5 + $0x114] ss:$8 sps:$4 sm:$0xff]  }
 0x2b7   :  { %5557 = vmatpush1.bf16.msra.mxu0 %v6816_v31  ;;  %v6867_v31 = vld [vmem:[%s9355_s5 + $0x110] ss:$8 sps:$4 sm:$0xff]  }
 0x2b8   :  { %5086 = vmatpush1.bf16.msra.mxu1 %v6762_v14  ;;  %5558 = vmatprep.subr.bf16.mxu0 %v6821_v46  ;;  %v6872_v14 = vld [vmem:[%s9355_s5 + $0x104] ss:$8 sps:$4 sm:$0xff]   ;;  %v6870_v46 = vld [vmem:[%s9355_s5 + $0x100] ss:$8 sps:$4 sm:$0xff]  }
 0x2b9   :  { %5087 = vmatprep.subr.bf16.mxu1 %v6767_v55  ;;  %v6875_v55 = vld [vmem:[%s9355_s5 + $0x1f4] ss:$8 sps:$4 sm:$0xff]  }
 0x2bb   :  { %5559 = vmatpush1.bf16.msra.mxu0 %v6819_v38  ;;  %v6873_v38 = vld [vmem:[%s9355_s5 + $0x1f0] ss:$8 sps:$4 sm:$0xff]  }
 0x2bc   :  { %5088 = vmatpush1.bf16.msra.mxu1 %v6765_v26  ;;  %5560 = vmatprep.subr.bf16.mxu0 %v6824_v16  ;;  %v6878_v26 = vld [vmem:[%s9355_s5 + $0x1e4] ss:$8 sps:$4 sm:$0xff]   ;;  %v4812_v16 = vpop.f32.mrf.mxu0 }
 0x2bd   :  { %5089 = vmatprep.subr.bf16.mxu1 %v6770_v27  ;;  %v6876_v27 = vld [vmem:[%s9355_s5 + $0x1e0] ss:$8 sps:$4 sm:$0xff]  }
 0x2bf   :  { %5561 = vmatpush1.bf16.msra.mxu0 %v6822_v20  ;;  %v6881_v20 = vld [vmem:[%s9355_s5 + $0x1d4] ss:$8 sps:$4 sm:$0xff]  }
 0x2c0   :  { %5090 = vmatpush1.bf16.msra.mxu1 %v6768_v54  ;;  %5562 = vmatprep.subr.bf16.mxu0 %v6827_v29  ;;  %v4814_v54 = vpop.f32.mrf.mxu0  ;;  %v6879_v29 = vld [vmem:[%s9355_s5 + $0x1d0] ss:$8 sps:$4 sm:$0xff]  }
 0x2c1   :  { %5091 = vmatprep.subr.bf16.mxu1 %v6773_v34  ;;  %v6884_v34 = vld [vmem:[%s9355_s5 + $0x1c4] ss:$8 sps:$4 sm:$0xff]  }
 0x2c3   :  { %5563 = vmatpush2.bf16.msra.mxu0 %v6825_v36  ;;  %v4816_v36 = vpop.f32.mrf.mxu0 }
 0x2c4   :  { %5092 = vmatpush1.bf16.msra.mxu1 %v6771_v37  ;;  %5564 = vmatprep.subr.bf16.mxu0 %v6830_v39  ;;  %v4855_v37 = vpop.f32.mrf.mxu1  ;;  %v6882_v39 = vld [vmem:[%s9355_s5 + $0x1c0] ss:$8 sps:$4 sm:$0xff]  }
 0x2c5   :  { %5093 = vmatprep.subr.bf16.mxu1 %v6776_v59  ;;  %v6887_v59 = vld [vmem:[%s9355_s5 + $0x1b4] ss:$8 sps:$4 sm:$0xff]  }
 0x2c7   :  { %5565 = vmatpush2.bf16.msra.mxu0 %v6828_v22  ;;  %v4818_v22 = vpop.f32.mrf.mxu0 }
 0x2c8   :  { %5094 = vmatpush1.bf16.msra.mxu1 %v6774_v18  ;;  %5566 = vmatprep.subr.bf16.mxu0 %v6833_v2  ;;  %v9299_v18 = vld [vmem:[%s9356_s4] sm:$0xf]  ;;  %v4857_v2 = vpop.f32.mrf.mxu1 }
 0x2c9   :  { %5095 = vmatprep.subr.bf16.mxu1 %v6779_v23 }
 0x2cb   :  { %5567 = vmatpush2.bf16.msra.mxu0 %v6831_v43  ;;  %v6885_v43 = vld [vmem:[%s9355_s5 + $0x1b0] ss:$8 sps:$4 sm:$0xff]  }
 0x2cc   :  { %5096 = vmatpush2.bf16.msra.mxu1 %v6777_v44  ;;  %5568 = vmatprep.subr.bf16.mxu0 %v6836_v42  ;;  %v3485_v44 = vrot.slane %v9299_v18, %v8218_v30  ;;  %v3481_v42 = vrot.slane %v9299_v18, %v7793_v32 }
 0x2cd   :  { %5097 = vmatprep.subr.bf16.mxu1 %v6782_v45  ;;  %v4859_v45 = vpop.f32.mrf.mxu1 }
 0x2cf   :  { %5569 = vmatpush2.bf16.msra.mxu0 %v6834_v47 }
 0x2d0   :  { %5098 = vmatpush2.bf16.msra.mxu1 %v6780_v25  ;;  %5570 = vmatprep.subr.bf16.mxu0 %v6839_v49  ;;  %v4815_v25 = vadd.f32 %v4814_v54, %v3485_v44  ;;  %v4813_v49 = vadd.f32 %v4812_v16, %v3481_v42 }
 0x2d1   :  { %5099 = vmatprep.subr.bf16.mxu1 %v6785_v56  ;;  %v4817_v56 = vadd.f32 %v4816_v36, %v3481_v42  ;;  %v3489_v36 = vrot.slane %v9299_v18, %v447_v40 }
 0x2d3   :  { %5571 = vmatpush2.bf16.msra.mxu0 %v6837_v52  ;;  %v4861_v52 = vpop.f32.mrf.mxu1 }
 0x2d4   :  { %5100 = vmatpush2.bf16.msra.mxu1 %v6783_v53  ;;  %5572 = vmatprep.subr.bf16.mxu0 %v6842_v12  ;;  %v4858_v12 = vadd.f32 %v4857_v2, %v4815_v25 }
 0x2d5   :  { %5101 = vmatprep.subr.bf16.mxu1 %v6788_v58  ;;  %v4819_v58 = vadd.f32 %v4818_v22, %v3485_v44 }
 0x2d7   :  { %5573 = vmatpush2.bf16.msra.mxu0 %v6840_v57  ;;  %v4856_v57 = vadd.f32 %v4855_v37, %v4813_v49 }
 0x2d8   :  { %5102 = vmatpush2.bf16.msra.mxu1 %v6786_v1  ;;  %5574 = vmatprep.subr.bf16.mxu0 %v6845_v60  ;;  %v4860_v60 = vadd.f32 %v4859_v45, %v4817_v56 }
 0x2d9   :  { %5103 = vmatprep.subr.bf16.mxu1 %v6791_v61 }
 0x2db   :  { %5575 = vmatpush2.bf16.msra.mxu0 %v6843_v28  ;;  %v6890_v28 = vld [vmem:[%s9355_s5 + $0x1a4] ss:$8 sps:$4 sm:$0xff]  }
 0x2dc   :  { %5104 = vmatpush2.bf16.msra.mxu1 %v6789_v62  ;;  %5576 = vmatprep.subr.bf16.mxu0 %v6848_v63 }
 0x2dd   :  { %5105 = vmatprep.subr.bf16.mxu1 %v6794_v3 }
 0x2df   :  { %5577 = vmatpush2.bf16.msra.mxu0 %v6846_v4  ;;  %v6888_v4 = vld [vmem:[%s9355_s5 + $0x1a0] ss:$8 sps:$4 sm:$0xff]  }
 0x2e0   :  { %5106 = vmatpush2.bf16.msra.mxu1 %v6792_v7  ;;  %v4862_v7 = vadd.f32 %v4861_v52, %v4819_v58 }
 0x2e1   :  { %5107 = vmatprep.subr.bf16.mxu1 %v6797_v15 }
 0x2e2   :  { %v4898_v23 = vpop.f32.mrf.mxu0 }
 0x2e3   :  { %v4899_v62 = vadd.f32 %v4898_v23, %v4856_v57 }
 0x2e4   :  { %5108 = vmatpush2.bf16.msra.mxu1 %v6795_v8  ;;  %v4900_v47 = vpop.f32.mrf.mxu0 }
 0x2e5   :  { %5109 = vmatprep.subr.bf16.mxu1 %v6800_v50  ;;  %v4901_v61 = vadd.f32 %v4900_v47, %v4858_v12 }
 0x2e6   :  { %v4902_v53 = vpop.f32.mrf.mxu0 }
 0x2e7   :  { %v4903_v15 = vadd.f32 %v4902_v53, %v4860_v60 }
 0x2e8   :  { %5110 = vmatpush2.bf16.msra.mxu1 %v6798_v33  ;;  %v4904_v63 = vpop.f32.mrf.mxu0 }
 0x2e9   :  { %5589 = vmatprep.subr.bf16.mxu1 %v6851_v24 }
 0x2eb   :  { %5112 = vmatmul.mubr.bf16.vlgmr.msra.gmra.mxu1 %v8852_v0  ;;  %v6857_v0 = vld [vmem:[%s9355_s5 + $0x154] ss:$8 sps:$4 sm:$0xff]  }
 0x2ec   :  { %5590 = vmatpush1.bf16.msra.mxu1 %v6849_v17  ;;  %v4905_v17 = vadd.f32 %v4904_v63, %v4862_v7 }
 0x2ed   :  { %5591 = vmatprep.subr.bf16.mxu1 %v6854_v21  ;;  %v6893_v21 = vld [vmem:[%s9355_s5 + $0x194] ss:$8 sps:$4 sm:$0xff]  }
 0x2f0   :  { %5592 = vmatpush1.bf16.msra.mxu1 %v6852_v9 }
 0x2f1   :  { %5593 = vmatprep.subr.bf16.mxu1 %v6857_v0  ;;  %v6891_v0 = vld [vmem:[%s9355_s5 + $0x190] ss:$8 sps:$4 sm:$0xff]  }
 0x2f4   :  { %5594 = vmatpush1.bf16.msra.mxu1 %v6855_v6 }
 0x2f5   :  { %5595 = vmatprep.subr.bf16.mxu1 %v6860_v11 }
 0x2f8   :  { %5596 = vmatpush1.bf16.msra.mxu1 %v6858_v48 }
 0x2f9   :  { %5597 = vmatprep.subr.bf16.mxu1 %v6863_v35 }
 0x2fc   :  { %5598 = vmatpush1.bf16.msra.mxu1 %v6861_v13 }
 0x2fd   :  { %5599 = vmatprep.subr.bf16.mxu1 %v6866_v51  ;;  %v6896_v51 = vld [vmem:[%s9355_s5 + $0x184] ss:$8 sps:$4 sm:$0xff]  }
 0x300   :  { %5600 = vmatpush1.bf16.msra.mxu1 %v6864_v10 }
 0x301   :  { %5601 = vmatprep.subr.bf16.mxu1 %v6869_v41  ;;  %v6894_v41 = vld [vmem:[%s9355_s5 + $0x180] ss:$8 sps:$4 sm:$0xff]  }
 0x304   :  { %5602 = vmatpush1.bf16.msra.mxu1 %v6867_v31 }
 0x305   :  { %5603 = vmatprep.subr.bf16.mxu1 %v6872_v14 }
 0x308   :  { %5604 = vmatpush1.bf16.msra.mxu1 %v6870_v46 }
 0x309   :  { %5605 = vmatprep.subr.bf16.mxu1 %v6875_v55 }
 0x30c   :  { %5606 = vmatpush2.bf16.msra.mxu1 %v6873_v38 }
 0x30d   :  { %5607 = vmatprep.subr.bf16.mxu1 %v6878_v26 }
 0x310   :  { %5608 = vmatpush2.bf16.msra.mxu1 %v6876_v27 }
 0x311   :  { %5609 = vmatprep.subr.bf16.mxu1 %v6881_v20 }
 0x314   :  { %5610 = vmatpush2.bf16.msra.mxu1 %v6879_v29 }
 0x315   :  { %5611 = vmatprep.subr.bf16.mxu1 %v6884_v34  ;;  %v3493_v34 = vrot.slane %v9299_v18, %v451_v5 }
 0x318   :  { %5612 = vmatpush2.bf16.msra.mxu1 %v6882_v39 }
 0x319   :  { %5613 = vmatprep.subr.bf16.mxu1 %v6887_v59 }
 0x31c   :  { %5614 = vmatpush2.bf16.msra.mxu1 %v6885_v43 }
 0x31d   :  { %5615 = vmatprep.subr.bf16.mxu1 %v6890_v28 }
 0x320   :  { %5616 = vmatpush2.bf16.msra.mxu1 %v6888_v4 }
 0x321   :  { %5617 = vmatprep.subr.bf16.mxu1 %v6893_v21  ;;  %v5214_v21 = vld [vmem:[%s9358_s6] sm:$0x3] }
 0x322   :  { %v4984_v26 = vpop.f32.mrf.mxu0 }
 0x323   :  { %v4985_v22 = vadd.f32 %v4984_v26, %v3489_v36 }
 0x324   :  { %5618 = vmatpush2.bf16.msra.mxu1 %v6891_v0  ;;  %v4986_v16 = vpop.f32.mrf.mxu0  ;;  %v5219_v0 = vrot.slane %v5214_v21, %v7793_v32 }
 0x325   :  { %5619 = vmatprep.subr.bf16.mxu1 %v6896_v51  ;;  %v4987_v59 = vadd.f32 %v4986_v16, %v3493_v34 }
 0x326   :  { %v4988_v27 = vpop.f32.mrf.mxu0 }
 0x327   :  { %v4989_v23 = vadd.f32 %v4988_v27, %v3489_v36 }
 0x328   :  { %5620 = vmatpush2.bf16.msra.mxu1 %v6894_v41  ;;  %v4990_v54 = vpop.f32.mrf.mxu0  ;;  %v5644_v41 = vld [vmem:[%s9359_s7] sm:$0x3] }
 0x329   :  { %v4991_v45 = vadd.f32 %v4990_v54, %v3493_v34  ;;  %v5649_v16 = vrot.slane %v5644_v41, %v7793_v32  ;;  %v5653_v27 = vrot.slane %v5644_v41, %v8218_v30 }
 0x32b   :  { %v4941_v1 = vpop.f32.mrf.mxu1 }
 0x32c   :  { %v4942_v50 = vadd.f32 %v4941_v1, %v4899_v62 }
 0x32d   :  { %v4943_v3 = vpop.f32.mrf.mxu1 }
 0x32e   :  { %v4944_v8 = vadd.f32 %v4943_v3, %v4901_v61  ;;  %v5130_v35 = vmul.f32 0.2, %v4942_v50  ;;  %vm5122_vm3 = vcmp.gt.f32.partialorder %v4942_v50, 0.0 }
 0x32f   :  { %v4945_v33 = vpop.f32.mrf.mxu1 }
 0x330   :  { %v4946_v24 = vadd.f32 %v4945_v33, %v4903_v15  ;;  %v5131_v6 = vmul.f32 0.2, %v4944_v8  ;;  %vm5123_vm2 = vcmp.gt.f32.partialorder %v4944_v8, 0.0  ;;  %v5138_v46 = vsel %vm5122_vm3, %v4942_v50, %v5130_v35 }
 0x331   :  { %v4947_v9 = vpop.f32.mrf.mxu1 }
 0x332   :  { %vm5126_vm1 = vcmp.gt.f32.partialorder %v4946_v24, 0.0  ;;  %v5134_v11 = vmul.f32 0.2, %v4946_v24  ;;  %v4948_v48 = vadd.f32 %v4947_v9, %v4905_v17  ;;  %v5139_v31 = vsel %vm5123_vm2, %v4944_v8, %v5131_v6 }
 0x333   :  { %v14_v17 = vstv %s9357_s8  ;;  %v5223_v6 = vrot.slane %v5214_v21, %v8218_v30 }
 0x334   :  { %vm5127_vm4 = vcmp.gt.f32.partialorder %v4948_v48, 0.0  ;;  %v5135_v13 = vmul.f32 0.2, %v4948_v48  ;;  %v5142_v10 = vsel %vm5126_vm1, %v4946_v24, %v5134_v11  ;;  %15 = vst [vmem:[#allocation2] sm:$0x1] %v14_v17 }
 0x335   :  { %v5146_v38 = vpack.c.bf16 %v5142_v10, %v5138_v46 }
 0x336   :  { %v5143_v14 = vsel %vm5127_vm4, %v4948_v48, %v5135_v13 }
 0x337   :  { %v5147_v55 = vpack.c.bf16 %v5143_v14, %v5139_v31 }
 0x339   :  { %5578 = vmatprep.mubr.bf16.mxu0 %v5147_v55 }
 0x33a   :  { %5579 = vmatmul.mubr.bf16.vlgmr.msra.gmra.mxu0 %v5146_v38 }
 0x362   :  { %v5070_v37 = vpop.f32.mrf.mxu0 }
 0x364   :  { %v5072_v2 = vpop.f32.mrf.mxu0 }
 0x366   :  { %v5074_v25 = vpop.f32.mrf.mxu0 }
 0x368   :  { %v5076_v40 = vpop.f32.mrf.mxu0 }
 0x36b   :  { %v5027_v20 = vpop.f32.mrf.mxu1 }
 0x36c   :  { %v5028_v44 = vadd.f32 %v5027_v20, %v4985_v22 }
 0x36d   :  { %v5029_v29 = vpop.f32.mrf.mxu1 }
 0x36e   :  { %v5030_v43 = vadd.f32 %v5029_v29, %v4987_v59  ;;  %v5071_v5 = vadd.f32 %v5070_v37, %v5028_v44 }
 0x36f   :  { %v5031_v39 = vpop.f32.mrf.mxu1 }
 0x370   :  { %v5032_v47 = vadd.f32 %v5031_v39, %v4989_v23  ;;  %v5073_v52 = vadd.f32 %v5072_v2, %v5030_v43 }
 0x371   :  { %v5033_v42 = vpop.f32.mrf.mxu1 }
 0x372   :  { %v5034_v56 = vadd.f32 %v5033_v42, %v4991_v45  ;;  %v5075_v12 = vadd.f32 %v5074_v25, %v5032_v47  ;;  %v6405_v45 = vld [vmem:[#allocation2] ss:$0 sm:$0xff] }
 0x374   :  { %v5077_v1 = vadd.f32 %v5076_v40, %v5034_v56 }
 0x3ab   :  { %v5113_v49 = vpop.f32.mrf.mxu1 }
 0x3ac   :  { %v5114_v18 = vadd.f32 %v5113_v49, %v5071_v5 }
 0x3ad   :  { %v5115_v53 = vpop.f32.mrf.mxu1 }
 0x3ae   :  { %v5116_v19 = vadd.f32 %v5115_v53, %v5073_v52  ;;  %v5132_v63 = vmul.f32 0.2, %v5114_v18  ;;  %vm5124_vm7 = vcmp.gt.f32.partialorder %v5114_v18, 0.0 }
 0x3af   :  { %v5117_v58 = vpop.f32.mrf.mxu1 }
 0x3b0   :  { %v5118_v57 = vadd.f32 %v5117_v58, %v5075_v12  ;;  %v5133_v61 = vmul.f32 0.2, %v5116_v19  ;;  %vm5125_vm6 = vcmp.gt.f32.partialorder %v5116_v19, 0.0  ;;  %v5140_v8 = vsel %vm5124_vm7, %v5114_v18, %v5132_v63 }
 0x3b1   :  { %v5119_v60 = vpop.f32.mrf.mxu1 }
 0x3b2   :  { %vm5128_vm5 = vcmp.gt.f32.partialorder %v5118_v57, 0.0  ;;  %v5136_v28 = vmul.f32 0.2, %v5118_v57  ;;  %v5120_v62 = vadd.f32 %v5119_v60, %v5077_v1  ;;  %v5141_v7 = vsel %vm5125_vm6, %v5116_v19, %v5133_v61 }
 0x3b4   :  { %vm5129_vm8 = vcmp.gt.f32.partialorder %v5120_v62, 0.0  ;;  %v5137_v3 = vmul.f32 0.2, %v5120_v62  ;;  %v5144_v4 = vsel %vm5128_vm5, %v5118_v57, %v5136_v28 }
 0x3b5   :  { %v5148_v33 = vpack.c.bf16 %v5144_v4, %v5140_v8 }
 0x3b6   :  { %v5145_v15 = vsel %vm5129_vm8, %v5120_v62, %v5137_v3 }
 0x3b7   :  { %v5149_v50 = vpack.c.bf16 %v5145_v15, %v5141_v7 }
 0x3b9   :  { %5621 = vmatprep.mubr.bf16.mxu1 %v5149_v50 }
 0x3ba   :  { %5622 = vmatmul.mubr.bf16.vlgmr.msra.gmra.mxu1 %v5148_v33 }
 0x3fa   :  { %v5580_v24 = vpop.f32.mrf.mxu0 }
 0x3fb   :  { %v5581_v48 = vadd.f32 %v5580_v24, %v5219_v0 }
 0x3fc   :  { %v5582_v9 = vpop.f32.mrf.mxu0 }
 0x3fd   :  { %v5583_v13 = vadd.f32 %v5582_v9, %v5223_v6 }
 0x3fe   :  { %v5584_v11 = vpop.f32.mrf.mxu0 }
 0x3ff   :  { %v5585_v14 = vadd.f32 %v5584_v11, %v5219_v0 }
 0x400   :  { %v5586_v51 = vpop.f32.mrf.mxu0 }
 0x401   :  { %v5587_v38 = vadd.f32 %v5586_v51, %v5223_v6 }
 0x47a   :  { %v5623_v35 = vpop.f32.mrf.mxu1 }
 0x47b   :  { %v5624_v10 = vadd.f32 %v5623_v35, %v5581_v48 }
 0x47c   :  { %v5625_v31 = vpop.f32.mrf.mxu1 }
 0x47d   :  { %vm5632_vm9 = vcmp.gt.f32.partialorder %v5624_v10, 0.0  ;;  %v5636_v46 = vmul.f32 0.2, %v5624_v10  ;;  %v5626_v55 = vadd.f32 %v5625_v31, %v5583_v13 }
 0x47e   :  { %v5627_v26 = vpop.f32.mrf.mxu1 }
 0x47f   :  { %vm5633_vm10 = vcmp.gt.f32.partialorder %v5626_v55, 0.0  ;;  %v5637_v20 = vmul.f32 0.2, %v5626_v55  ;;  %v5628_v54 = vadd.f32 %v5627_v26, %v5585_v14  ;;  %v5640_v29 = vsel %vm5632_vm9, %v5624_v10, %v5636_v46 }
 0x480   :  { %v5629_v34 = vpop.f32.mrf.mxu1  ;;  %v5656_v59 = vmul.f32 %v5649_v16, %v5640_v29 }
 0x481   :  { %vm5634_vm11 = vcmp.gt.f32.partialorder %v5628_v54, 0.0  ;;  %v5638_v36 = vmul.f32 0.2, %v5628_v54  ;;  %v5630_v37 = vadd.f32 %v5629_v34, %v5587_v38  ;;  %v5641_v39 = vsel %vm5633_vm10, %v5626_v55, %v5637_v20 }
 0x482   :  { %v5657_v22 = vmul.f32 %v5653_v27, %v5641_v39 }
 0x483   :  { %vm5635_vm12 = vcmp.gt.f32.partialorder %v5630_v37, 0.0  ;;  %v5639_v2 = vmul.f32 0.2, %v5630_v37  ;;  %v5642_v23 = vsel %vm5634_vm11, %v5628_v54, %v5638_v36 }
 0x484   :  { %v5660_v43 = vadd.f32 %v5657_v22, %v5656_v59  ;;  %v5658_v32 = vmul.f32 %v5649_v16, %v5642_v23 }
 0x485   :  { %v5643_v44 = vsel %vm5635_vm12, %v5630_v37, %v5639_v2 }
 0x486   :  { %5661 = vadd.xlane.f32.xlu0 %v5660_v43  ;;  %v5659_v42 = vmul.f32 %v5653_v27, %v5643_v44 }
 0x488   :  { %v5663_v30 = vadd.f32 %v5659_v42, %v5658_v32 }
 0x48a   :  { %5664 = vadd.xlane.f32.xlu0 %v5663_v30 }
 0x50f   :  { %v5662_v47 = vpop.xlane.xlu0 %5661 }
 0x510   :  { %v5673_v25 = vadd.f32 %v6405_v45, %v5662_v47 }
 0x512   :  { %5676 = vst.msk [vmem:[%s9360_s9] sm:$0xff] %vm5675_vm13, %v5673_v25 }
 0x513   :  { %v5665_v49 = vpop.xlane.xlu0 %5664 }
 0x514   :  { %v5674_v56 = vadd.f32 %v6405_v45, %v5665_v49 }
 0x516   :  { %5677 = vst.msk [vmem:[%s9360_s9 + $0x8] sm:$0xff] %vm5675_vm13, %v5674_v56 }

// kernel: _critic_forward_impl.1
= control target key start
LH: loop header
LB: loop body
LE: loop exit
PB: predicated region body
PF: predicated region fallthrough
CT: control target
= control target key end

     0   :  { %vm2472_vm0 = vcmask 130048   ;;  %s9351_s1 = inlined_call_operand.vmem [shape: bf16[784,1024], index: 1, kind: input, shape index: {}]   ;;  %s9352_s0 = inlined_call_operand.vmem [shape: bf16[16,784], index: 0, kind: input, shape index: {}]   ;;  %s9353_s2 = inlined_call_operand.vmem [shape: f32[1,1024], index: 2, kind: input, shape index: {}]   ;;  %s9354_s3 = inlined_call_operand.vmem [shape: bf16[1024,512], index: 3, kind: input, shape index: {}]   ;;  %s9355_s5 = inlined_call_operand.vmem [shape: bf16[512,256], index: 5, kind: input, shape index: {}]   ;;  %s9356_s4 = inlined_call_operand.vmem [shape: f32[1,512], index: 4, kind: input, shape index: {}]   ;;  %s9357_s8 = inlined_call_operand.<no memory space> [shape: f32[1,1], index: 8, kind: input, shape index: {}]   ;;  %s9358_s6 = inlined_call_operand.vmem [shape: f32[1,256], index: 6, kind: input, shape index: {}]   ;;  %s9359_s7 = inlined_call_operand.vmem [shape: f32[1,256], index: 7, kind: input, shape index: {}]   ;;  %s9360_s9 = inlined_call_operand.vmem [shape: f32[16,1], index: 9, kind: output, shape index: {}]  }
   0x1   :  { %v99_v0 = vld [vmem:[%s9351_s1 + $0x1c0] sm:$0xff]  ;;  %v7064_v59 = vld [vmem:[%s9352_s0 + $0xc] ss:$28 sps:$4 sm:$0xff]  }
   0x2   :  { %v103_v1 = vld [vmem:[%s9351_s1 + $0x1e0] sm:$0xff]  ;;  %2551 = vmatprep.mubr.bf16.mxu1 %v7064_v59 }
   0x3   :  { %v227_v2 = vld [vmem:[%s9351_s1 + $0x5c0] sm:$0xff]  ;;  %v5746_v3 = vcombine.high %v99_v0, %v103_v1  ;;  %v5745_v5 = vcombine.low %v99_v0, %v103_v1 }
   0x4   :  { %v231_v4 = vld [vmem:[%s9351_s1 + $0x5e0] sm:$0xff] }
   0x5   :  { %v91_v6 = vld [vmem:[%s9351_s1 + $0x180] sm:$0xff]  ;;  %v5874_v8 = vcombine.high %v227_v2, %v231_v4  ;;  %v5873_v9 = vcombine.low %v227_v2, %v231_v4  ;;  %2476 = vmatprep.subr.bf16.mxu0 %v5746_v3 }
   0x6   :  { %v95_v7 = vld [vmem:[%s9351_s1 + $0x1a0] sm:$0xff]  ;;  %2477 = vmatpush1.bf16.msra.mxu0 %v5745_v5 }
   0x7   :  { %v5738_v10 = vcombine.high %v91_v6, %v95_v7  ;;  %v219_v11 = vld [vmem:[%s9351_s1 + $0x580] sm:$0xff]  ;;  %2519 = vmatprep.subr.bf16.mxu1 %v5874_v8  ;;  %v5737_v18 = vcombine.low %v91_v6, %v95_v7 }
   0x8   :  { %v223_v12 = vld [vmem:[%s9351_s1 + $0x5a0] sm:$0xff]  ;;  %2520 = vmatpush1.bf16.msra.mxu1 %v5873_v9 }
   0x9   :  { %v83_v13 = vld [vmem:[%s9351_s1 + $0x140] sm:$0xff]  ;;  %v5866_v14 = vcombine.high %v219_v11, %v223_v12  ;;  %2478 = vmatprep.subr.bf16.mxu0 %v5738_v10  ;;  %v5865_v19 = vcombine.low %v219_v11, %v223_v12 }
   0xa   :  { %v87_v15 = vld [vmem:[%s9351_s1 + $0x160] sm:$0xff]  ;;  %2479 = vmatpush1.bf16.msra.mxu0 %v5737_v18 }
   0xb   :  { %v211_v16 = vld [vmem:[%s9351_s1 + $0x540] sm:$0xff]  ;;  %v5730_v20 = vcombine.high %v83_v13, %v87_v15  ;;  %2521 = vmatprep.subr.bf16.mxu1 %v5866_v14  ;;  %v5729_v26 = vcombine.low %v83_v13, %v87_v15 }
   0xc   :  { %v215_v17 = vld [vmem:[%s9351_s1 + $0x560] sm:$0xff]  ;;  %2522 = vmatpush1.bf16.msra.mxu1 %v5865_v19 }
   0xd   :  { %v5858_v21 = vcombine.high %v211_v16, %v215_v17  ;;  %v75_v22 = vld [vmem:[%s9351_s1 + $0x100] sm:$0xff]  ;;  %2480 = vmatprep.subr.bf16.mxu0 %v5730_v20  ;;  %v5857_v27 = vcombine.low %v211_v16, %v215_v17 }
   0xe   :  { %v79_v23 = vld [vmem:[%s9351_s1 + $0x120] sm:$0xff]  ;;  %2481 = vmatpush1.bf16.msra.mxu0 %v5729_v26 }
   0xf   :  { %v203_v24 = vld [vmem:[%s9351_s1 + $0x500] sm:$0xff]  ;;  %v5722_v28 = vcombine.high %v75_v22, %v79_v23  ;;  %2523 = vmatprep.subr.bf16.mxu1 %v5858_v21  ;;  %v5721_v34 = vcombine.low %v75_v22, %v79_v23 }
  0x10   :  { %v207_v25 = vld [vmem:[%s9351_s1 + $0x520] sm:$0xff]  ;;  %2524 = vmatpush1.bf16.msra.mxu1 %v5857_v27 }
  0x11   :  { %v5850_v29 = vcombine.high %v203_v24, %v207_v25  ;;  %v67_v30 = vld [vmem:[%s9351_s1 + $0xc0] sm:$0xff]  ;;  %2482 = vmatprep.subr.bf16.mxu0 %v5722_v28  ;;  %v5849_v35 = vcombine.low %v203_v24, %v207_v25 }
  0x12   :  { %v71_v31 = vld [vmem:[%s9351_s1 + $0xe0] sm:$0xff]  ;;  %2483 = vmatpush1.bf16.msra.mxu0 %v5721_v34 }
  0x13   :  { %v195_v32 = vld [vmem:[%s9351_s1 + $0x4c0] sm:$0xff]  ;;  %v5714_v36 = vcombine.high %v67_v30, %v71_v31  ;;  %2525 = vmatprep.subr.bf16.mxu1 %v5850_v29  ;;  %v5713_v42 = vcombine.low %v67_v30, %v71_v31 }
  0x14   :  { %v199_v33 = vld [vmem:[%s9351_s1 + $0x4e0] sm:$0xff]  ;;  %2526 = vmatpush1.bf16.msra.mxu1 %v5849_v35 }
  0x15   :  { %v5842_v37 = vcombine.high %v195_v32, %v199_v33  ;;  %v59_v38 = vld [vmem:[%s9351_s1 + $0x80] sm:$0xff]  ;;  %2484 = vmatprep.subr.bf16.mxu0 %v5714_v36  ;;  %v5841_v43 = vcombine.low %v195_v32, %v199_v33 }
  0x16   :  { %v63_v39 = vld [vmem:[%s9351_s1 + $0xa0] sm:$0xff]  ;;  %2485 = vmatpush1.bf16.msra.mxu0 %v5713_v42 }
  0x17   :  { %v187_v40 = vld [vmem:[%s9351_s1 + $0x480] sm:$0xff]  ;;  %v5706_v44 = vcombine.high %v59_v38, %v63_v39  ;;  %2527 = vmatprep.subr.bf16.mxu1 %v5842_v37  ;;  %v5705_v50 = vcombine.low %v59_v38, %v63_v39 }
  0x18   :  { %v191_v41 = vld [vmem:[%s9351_s1 + $0x4a0] sm:$0xff]  ;;  %2528 = vmatpush1.bf16.msra.mxu1 %v5841_v43 }
  0x19   :  { %v5834_v45 = vcombine.high %v187_v40, %v191_v41  ;;  %v51_v46 = vld [vmem:[%s9351_s1 + $0x40] sm:$0xff]  ;;  %2486 = vmatprep.subr.bf16.mxu0 %v5706_v44  ;;  %v5833_v52 = vcombine.low %v187_v40, %v191_v41 }
  0x1a   :  { %v55_v47 = vld [vmem:[%s9351_s1 + $0x60] sm:$0xff]  ;;  %2487 = vmatpush1.bf16.msra.mxu0 %v5705_v50 }
  0x1b   :  { %v179_v48 = vld [vmem:[%s9351_s1 + $0x440] sm:$0xff]  ;;  %v5698_v53 = vcombine.high %v51_v46, %v55_v47  ;;  %2529 = vmatprep.subr.bf16.mxu1 %v5834_v45  ;;  %v5697_v60 = vcombine.low %v51_v46, %v55_v47 }
  0x1c   :  { %v183_v49 = vld [vmem:[%s9351_s1 + $0x460] sm:$0xff]  ;;  %2530 = vmatpush1.bf16.msra.mxu1 %v5833_v52 }
  0x1d   :  { %v43_v51 = vld [vmem:[%s9351_s1] sm:$0xff]  ;;  %v5826_v55 = vcombine.high %v179_v48, %v183_v49  ;;  %2488 = vmatprep.subr.bf16.mxu0 %v5698_v53  ;;  %v5825_v61 = vcombine.low %v179_v48, %v183_v49 }
  0x1e   :  { %v47_v54 = vld [vmem:[%s9351_s1 + $0x20] sm:$0xff]  ;;  %2489 = vmatpush1.bf16.msra.mxu0 %v5697_v60 }
  0x1f   :  { %v7053_v56 = vld [vmem:[%s9352_s0 + $0x4] ss:$28 sps:$4 sm:$0xff]   ;;  %v5690_v62 = vcombine.high %v43_v51, %v47_v54  ;;  %2531 = vmatprep.subr.bf16.mxu1 %v5826_v55  ;;  %v5689_v4 = vcombine.low %v43_v51, %v47_v54 }
  0x20   :  { %v171_v57 = vld [vmem:[%s9351_s1 + $0x400] sm:$0xff]  ;;  %2508 = vmatprep.mubr.bf16.mxu0 %v7053_v56  ;;  %2532 = vmatpush1.bf16.msra.mxu1 %v5825_v61 }
  0x21   :  { %v175_v58 = vld [vmem:[%s9351_s1 + $0x420] sm:$0xff]  ;;  %2490 = vmatprep.subr.bf16.mxu0 %v5690_v62 }
  0x22   :  { %v5818_v63 = vcombine.high %v171_v57, %v175_v58  ;;  %v163_v0 = vld [vmem:[%s9351_s1 + $0x3c0] sm:$0xff]  ;;  %v5817_v5 = vcombine.low %v171_v57, %v175_v58  ;;  %2491 = vmatpush1.bf16.msra.mxu0 %v5689_v4 }
  0x23   :  { %v167_v1 = vld [vmem:[%s9351_s1 + $0x3e0] sm:$0xff] }
  0x24   :  { %v291_v2 = vld [vmem:[%s9351_s1 + $0x7c0] sm:$0xff]  ;;  %v5810_v6 = vcombine.high %v163_v0, %v167_v1  ;;  %2533 = vmatprep.subr.bf16.mxu1 %v5818_v63  ;;  %v5809_v12 = vcombine.low %v163_v0, %v167_v1 }
  0x25   :  { %v295_v3 = vld [vmem:[%s9351_s1 + $0x7e0] sm:$0xff]  ;;  %2534 = vmatpush1.bf16.msra.mxu1 %v5817_v5 }
  0x26   :  { %v5938_v7 = vcombine.high %v291_v2, %v295_v3  ;;  %v155_v8 = vld [vmem:[%s9351_s1 + $0x380] sm:$0xff]  ;;  %2492 = vmatprep.subr.bf16.mxu0 %v5810_v6  ;;  %v5937_v13 = vcombine.low %v291_v2, %v295_v3 }
  0x27   :  { %v159_v9 = vld [vmem:[%s9351_s1 + $0x3a0] sm:$0xff]  ;;  %2493 = vmatpush2.bf16.msra.mxu0 %v5809_v12 }
  0x28   :  { %v283_v10 = vld [vmem:[%s9351_s1 + $0x780] sm:$0xff]  ;;  %v5802_v14 = vcombine.high %v155_v8, %v159_v9  ;;  %2535 = vmatprep.subr.bf16.mxu1 %v5938_v7  ;;  %v5801_v20 = vcombine.low %v155_v8, %v159_v9 }
  0x29   :  { %v287_v11 = vld [vmem:[%s9351_s1 + $0x7a0] sm:$0xff]  ;;  %2536 = vmatpush2.bf16.msra.mxu1 %v5937_v13  ;;  %v100_v13 = vld [vmem:[%s9351_s1 + $0x1c8] sm:$0xff] }
  0x2a   :  { %v5930_v15 = vcombine.high %v283_v10, %v287_v11  ;;  %v147_v16 = vld [vmem:[%s9351_s1 + $0x340] sm:$0xff]  ;;  %2494 = vmatprep.subr.bf16.mxu0 %v5802_v14  ;;  %v5929_v21 = vcombine.low %v283_v10, %v287_v11  ;;  %v104_v14 = vld [vmem:[%s9351_s1 + $0x1e8] sm:$0xff] }
  0x2b   :  { %v151_v17 = vld [vmem:[%s9351_s1 + $0x360] sm:$0xff]  ;;  %2495 = vmatpush2.bf16.msra.mxu0 %v5801_v20 }
  0x2c   :  { %v275_v18 = vld [vmem:[%s9351_s1 + $0x740] sm:$0xff]  ;;  %v5794_v22 = vcombine.high %v147_v16, %v151_v17  ;;  %2537 = vmatprep.subr.bf16.mxu1 %v5930_v15  ;;  %v5793_v28 = vcombine.low %v147_v16, %v151_v17 }
  0x2d   :  { %v279_v19 = vld [vmem:[%s9351_s1 + $0x760] sm:$0xff]  ;;  %2538 = vmatpush2.bf16.msra.mxu1 %v5929_v21 }
  0x2e   :  { %v5922_v23 = vcombine.high %v275_v18, %v279_v19  ;;  %v139_v24 = vld [vmem:[%s9351_s1 + $0x300] sm:$0xff]  ;;  %2496 = vmatprep.subr.bf16.mxu0 %v5794_v22  ;;  %v5921_v29 = vcombine.low %v275_v18, %v279_v19  ;;  %v5748_v19 = vcombine.high %v100_v13, %v104_v14  ;;  %v7208_v22 = vld [vmem:[%s9352_s0 + $0x14] ss:$28 sps:$4 sm:$0xff]  }
  0x2f   :  { %v143_v25 = vld [vmem:[%s9351_s1 + $0x320] sm:$0xff]  ;;  %2497 = vmatpush2.bf16.msra.mxu0 %v5793_v28  ;;  %v92_v28 = vld [vmem:[%s9351_s1 + $0x188] sm:$0xff] }
  0x30   :  { %v267_v26 = vld [vmem:[%s9351_s1 + $0x700] sm:$0xff]  ;;  %v5786_v30 = vcombine.high %v139_v24, %v143_v25  ;;  %2539 = vmatprep.subr.bf16.mxu1 %v5922_v23  ;;  %v5785_v36 = vcombine.low %v139_v24, %v143_v25  ;;  %v6909_v25 = vmov 0  }
  0x31   :  { %v271_v27 = vld [vmem:[%s9351_s1 + $0x720] sm:$0xff]  ;;  %2540 = vmatpush2.bf16.msra.mxu1 %v5921_v29  ;;  %v96_v29 = vld [vmem:[%s9351_s1 + $0x1a8] sm:$0xff] }
  0x32   :  { %v5914_v31 = vcombine.high %v267_v26, %v271_v27  ;;  %v131_v32 = vld [vmem:[%s9351_s1 + $0x2c0] sm:$0xff]  ;;  %2498 = vmatprep.subr.bf16.mxu0 %v5786_v30  ;;  %v5913_v37 = vcombine.low %v267_v26, %v271_v27 }
  0x33   :  { %v135_v33 = vld [vmem:[%s9351_s1 + $0x2e0] sm:$0xff]  ;;  %2499 = vmatpush2.bf16.msra.mxu0 %v5785_v36 }
  0x34   :  { %v259_v34 = vld [vmem:[%s9351_s1 + $0x6c0] sm:$0xff]  ;;  %v5778_v38 = vcombine.high %v131_v32, %v135_v33  ;;  %2541 = vmatprep.subr.bf16.mxu1 %v5914_v31  ;;  %v5777_v44 = vcombine.low %v131_v32, %v135_v33  ;;  %v7228_v31 = vld [vmem:[%s9352_s0 + $0x18] ss:$28 sps:$4 sm:$0xff]   ;;  %v5747_v32 = vcombine.low %v100_v13, %v104_v14 }
  0x35   :  { %v263_v35 = vld [vmem:[%s9351_s1 + $0x6e0] sm:$0xff]  ;;  %2542 = vmatpush2.bf16.msra.mxu1 %v5913_v37  ;;  %v84_v37 = vld [vmem:[%s9351_s1 + $0x148] sm:$0xff] }
  0x36   :  { %v5906_v39 = vcombine.high %v259_v34, %v263_v35  ;;  %v123_v40 = vld [vmem:[%s9351_s1 + $0x280] sm:$0xff]  ;;  %2500 = vmatprep.subr.bf16.mxu0 %v5778_v38  ;;  %v5905_v45 = vcombine.low %v259_v34, %v263_v35  ;;  %v5740_v34 = vcombine.high %v92_v28, %v96_v29  ;;  %v88_v38 = vld [vmem:[%s9351_s1 + $0x168] sm:$0xff] }
  0x37   :  { %v127_v41 = vld [vmem:[%s9351_s1 + $0x2a0] sm:$0xff]  ;;  %2501 = vmatpush2.bf16.msra.mxu0 %v5777_v44 }
  0x38   :  { %v251_v42 = vld [vmem:[%s9351_s1 + $0x680] sm:$0xff]  ;;  %v5770_v46 = vcombine.high %v123_v40, %v127_v41  ;;  %2543 = vmatprep.subr.bf16.mxu1 %v5906_v39  ;;  %v5769_v52 = vcombine.low %v123_v40, %v127_v41  ;;  %v5739_v40 = vcombine.low %v92_v28, %v96_v29 }
  0x39   :  { %v255_v43 = vld [vmem:[%s9351_s1 + $0x6a0] sm:$0xff]  ;;  %2544 = vmatpush2.bf16.msra.mxu1 %v5905_v45  ;;  %v76_v45 = vld [vmem:[%s9351_s1 + $0x108] sm:$0xff] }
  0x3a   :  { %v5898_v47 = vcombine.high %v251_v42, %v255_v43  ;;  %v115_v48 = vld [vmem:[%s9351_s1 + $0x240] sm:$0xff]  ;;  %2502 = vmatprep.subr.bf16.mxu0 %v5770_v46  ;;  %v5897_v53 = vcombine.low %v251_v42, %v255_v43  ;;  %v5732_v42 = vcombine.high %v84_v37, %v88_v38  ;;  %v80_v46 = vld [vmem:[%s9351_s1 + $0x128] sm:$0xff] }
  0x3b   :  { %v119_v49 = vld [vmem:[%s9351_s1 + $0x260] sm:$0xff]  ;;  %2503 = vmatpush2.bf16.msra.mxu0 %v5769_v52  ;;  %v68_v52 = vld [vmem:[%s9351_s1 + $0xc8] sm:$0xff] }
  0x3c   :  { %v243_v50 = vld [vmem:[%s9351_s1 + $0x640] sm:$0xff]  ;;  %v5762_v54 = vcombine.high %v115_v48, %v119_v49  ;;  %2545 = vmatprep.subr.bf16.mxu1 %v5898_v47  ;;  %v5761_v62 = vcombine.low %v115_v48, %v119_v49  ;;  %v5731_v48 = vcombine.low %v84_v37, %v88_v38 }
  0x3d   :  { %v247_v51 = vld [vmem:[%s9351_s1 + $0x660] sm:$0xff]  ;;  %2546 = vmatpush2.bf16.msra.mxu1 %v5897_v53  ;;  %v72_v53 = vld [vmem:[%s9351_s1 + $0xe8] sm:$0xff] }
  0x3e   :  { %v5890_v55 = vcombine.high %v243_v50, %v247_v51  ;;  %v107_v57 = vld [vmem:[%s9351_s1 + $0x200] sm:$0xff]  ;;  %2504 = vmatprep.subr.bf16.mxu0 %v5762_v54  ;;  %v5889_v63 = vcombine.low %v243_v50, %v247_v51  ;;  %v5724_v50 = vcombine.high %v76_v45, %v80_v46 }
  0x3f   :  { %v111_v58 = vld [vmem:[%s9351_s1 + $0x220] sm:$0xff]  ;;  %2505 = vmatpush2.bf16.msra.mxu0 %v5761_v62  ;;  %v60_v62 = vld [vmem:[%s9351_s1 + $0x88] sm:$0xff] }
  0x40   :  { %v235_v60 = vld [vmem:[%s9351_s1 + $0x600] sm:$0xff]  ;;  %v5754_v0 = vcombine.high %v107_v57, %v111_v58  ;;  %2547 = vmatprep.subr.bf16.mxu1 %v5890_v55  ;;  %v5753_v6 = vcombine.low %v107_v57, %v111_v58  ;;  %v5723_v55 = vcombine.low %v76_v45, %v80_v46  ;;  %v5716_v58 = vcombine.high %v68_v52, %v72_v53 }
  0x41   :  { %v239_v61 = vld [vmem:[%s9351_s1 + $0x620] sm:$0xff]  ;;  %2548 = vmatpush2.bf16.msra.mxu1 %v5889_v63  ;;  %v64_v63 = vld [vmem:[%s9351_s1 + $0xa8] sm:$0xff] }
  0x42   :  { %v5882_v1 = vcombine.high %v235_v60, %v239_v61  ;;  %v355_v2 = vld [vmem:[%s9351_s1 + $0x9c0] sm:$0xff]  ;;  %2506 = vmatprep.subr.bf16.mxu0 %v5754_v0  ;;  %v5881_v7 = vcombine.low %v235_v60, %v239_v61 }
  0x43   :  { %v359_v3 = vld [vmem:[%s9351_s1 + $0x9e0] sm:$0xff]  ;;  %2507 = vmatpush2.bf16.msra.mxu0 %v5753_v6  ;;  %v52_v6 = vld [vmem:[%s9351_s1 + $0x48] sm:$0xff] }
  0x44   :  { %v427_v4 = vld [vmem:[%s9351_s1 + $0xc00] sm:$0xff]  ;;  %v6002_v8 = vcombine.high %v355_v2, %v359_v3  ;;  %2549 = vmatprep.subr.bf16.mxu1 %v5882_v1  ;;  %v6001_v16 = vcombine.low %v355_v2, %v359_v3  ;;  %v5715_v1 = vcombine.low %v68_v52, %v72_v53  ;;  %v5708_v3 = vcombine.high %v60_v62, %v64_v63 }
  0x45   :  { %v431_v5 = vld [vmem:[%s9351_s1 + $0xc20] sm:$0xff]  ;;  %2550 = vmatpush2.bf16.msra.mxu1 %v5881_v7  ;;  %v56_v7 = vld [vmem:[%s9351_s1 + $0x68] sm:$0xff] }
  0x46   :  { %v6074_v9 = vcombine.high %v427_v4, %v431_v5  ;;  %v347_v10 = vld [vmem:[%s9351_s1 + $0x980] sm:$0xff]  ;;  %2562 = vmatprep.subr.bf16.mxu0 %v6002_v8  ;;  %v6073_v17 = vcombine.low %v427_v4, %v431_v5 }
  0x47   :  { %v351_v11 = vld [vmem:[%s9351_s1 + $0x9a0] sm:$0xff] }
  0x48   :  { %v7185_v12 = vld [vmem:[%s9352_s0] ss:$28 sps:$4 sm:$0xff]   ;;  %v7196_v15 = vld [vmem:[%s9352_s0 + $0x8] ss:$28 sps:$4 sm:$0xff]   ;;  %v5994_v18 = vcombine.high %v347_v10, %v351_v11  ;;  %2619 = vmatprep.subr.bf16.mxu1 %v6074_v9  ;;  %v5993_v23 = vcombine.low %v347_v10, %v351_v11  ;;  %v5707_v9 = vcombine.low %v60_v62, %v64_v63  ;;  %v5700_v11 = vcombine.high %v52_v6, %v56_v7 }
  0x49   :  { %v339_v20 = vld [vmem:[%s9351_s1 + $0x940] sm:$0xff]  ;;  %2509 = vmatmul.mubr.bf16.vlgmr.msra.gmra.mxu0 %v7185_v12  ;;  %2552 = vmatmul.mubr.bf16.vlgmr.msra.gmra.mxu1 %v7196_v15 }
  0x4a   :  { %v343_v21 = vld [vmem:[%s9351_s1 + $0x960] sm:$0xff]  ;;  %2563 = vmatpush1.bf16.msra.mxu0 %v6001_v16  ;;  %2620 = vmatpush1.bf16.msra.mxu1 %v6073_v17  ;;  %v44_v16 = vld [vmem:[%s9351_s1 + $0x8] sm:$0xff] }
  0x4b   :  { %2564 = vmatprep.subr.bf16.mxu0 %v5994_v18  ;;  %v5986_v24 = vcombine.high %v339_v20, %v343_v21  ;;  %2637 = vmatprep.mubr.bf16.mxu1 %v6909_v25  ;;  %v331_v26 = vld [vmem:[%s9351_s1 + $0x900] sm:$0xff]  ;;  %v5985_v30 = vcombine.low %v339_v20, %v343_v21  ;;  %v48_v17 = vld [vmem:[%s9351_s1 + $0x28] sm:$0xff] }
  0x4c   :  { %2648 = vmatprep.subr.bf16.mxu1 %v5748_v19  ;;  %v335_v27 = vld [vmem:[%s9351_s1 + $0x920] sm:$0xff]  ;;  %2594 = vmatprep.mubr.bf16.mxu0 %v7208_v22  ;;  %v5699_v19 = vcombine.low %v52_v6, %v56_v7  ;;  %v5692_v21 = vcombine.high %v44_v16, %v48_v17  ;;  %v5691_v29 = vcombine.low %v44_v16, %v48_v17 }
  0x4d   :  { %v5978_v33 = vcombine.high %v331_v26, %v335_v27  ;;  %v323_v35 = vld [vmem:[%s9351_s1 + $0x8c0] sm:$0xff]  ;;  %v5977_v39 = vcombine.low %v331_v26, %v335_v27  ;;  %v164_v26 = vld [vmem:[%s9351_s1 + $0x3c8] sm:$0xff] }
  0x4e   :  { %2565 = vmatpush1.bf16.msra.mxu0 %v5993_v23  ;;  %v327_v36 = vld [vmem:[%s9351_s1 + $0x8e0] sm:$0xff]  ;;  %v168_v27 = vld [vmem:[%s9351_s1 + $0x3e8] sm:$0xff] }
  0x4f   :  { %2566 = vmatprep.subr.bf16.mxu0 %v5986_v24  ;;  %v5970_v41 = vcombine.high %v323_v35, %v327_v36  ;;  %v315_v43 = vld [vmem:[%s9351_s1 + $0x880] sm:$0xff]  ;;  %v5969_v47 = vcombine.low %v323_v35, %v327_v36  ;;  %v156_v35 = vld [vmem:[%s9351_s1 + $0x388] sm:$0xff]  ;;  %v5811_v38 = vcombine.low %v164_v26, %v168_v27 }
  0x50   :  { %v319_v44 = vld [vmem:[%s9351_s1 + $0x8a0] sm:$0xff]  ;;  %v160_v36 = vld [vmem:[%s9351_s1 + $0x3a8] sm:$0xff] }
  0x51   :  { %6081 = vmatmul.mubr.msk.bf16.vlgmr.msra.gmra.mxu1 %vm2472_vm0, %v7228_v31  ;;  %v5962_v49 = vcombine.high %v315_v43, %v319_v44  ;;  %v311_v51 = vld [vmem:[%s9351_s1 + $0x860] sm:$0xff]  ;;  %v5961_v54 = vcombine.low %v315_v43, %v319_v44  ;;  %v148_v43 = vld [vmem:[%s9351_s1 + $0x348] sm:$0xff]  ;;  %v5803_v46 = vcombine.low %v156_v35, %v160_v36 }
  0x52   :  { %2567 = vmatpush1.bf16.msra.mxu0 %v5985_v30  ;;  %2649 = vmatpush1.bf16.msra.mxu1 %v5747_v32  ;;  %v299_v60 = vld [vmem:[%s9351_s1 + $0x800] sm:$0xff]  ;;  %v5812_v32 = vcombine.high %v164_v26, %v168_v27  ;;  %v152_v44 = vld [vmem:[%s9351_s1 + $0x368] sm:$0xff] }
  0x53   :  { %2568 = vmatprep.subr.bf16.mxu0 %v5978_v33  ;;  %2650 = vmatprep.subr.bf16.mxu1 %v5740_v34  ;;  %v303_v61 = vld [vmem:[%s9351_s1 + $0x820] sm:$0xff]  ;;  %v5795_v53 = vcombine.low %v148_v43, %v152_v44  ;;  %v112_v26 = vld [vmem:[%s9351_s1 + $0x228] sm:$0xff] }
  0x54   :  { %2680 = vmatprep.mubr.bf16.mxu1 %v7053_v56  ;;  %v307_v56 = vld [vmem:[%s9351_s1 + $0x840] sm:$0xff]  ;;  %v5946_v2 = vcombine.high %v299_v60, %v303_v61  ;;  %v5945_v8 = vcombine.low %v299_v60, %v303_v61  ;;  %v132_v60 = vld [vmem:[%s9351_s1 + $0x2c8] sm:$0xff] }
  0x55   :  { %v5954_v57 = vcombine.high %v307_v56, %v311_v51  ;;  %v5953_v0 = vcombine.low %v307_v56, %v311_v51  ;;  %v419_v4 = vld [vmem:[%s9351_s1 + $0xbc0] sm:$0xff]  ;;  %v140_v56 = vld [vmem:[%s9351_s1 + $0x308] sm:$0xff] }
  0x56   :  { %2569 = vmatpush1.bf16.msra.mxu0 %v5977_v39  ;;  %2651 = vmatpush1.bf16.msra.mxu1 %v5739_v40  ;;  %v423_v5 = vld [vmem:[%s9351_s1 + $0xbe0] sm:$0xff]  ;;  %v5804_v40 = vcombine.high %v156_v35, %v160_v36  ;;  %v144_v51 = vld [vmem:[%s9351_s1 + $0x328] sm:$0xff] }
  0x57   :  { %2570 = vmatprep.subr.bf16.mxu0 %v5970_v41  ;;  %2652 = vmatprep.subr.bf16.mxu1 %v5732_v42  ;;  %v6066_v10 = vcombine.high %v419_v4, %v423_v5  ;;  %v411_v13 = vld [vmem:[%s9351_s1 + $0xb80] sm:$0xff]  ;;  %v6065_v18 = vcombine.low %v419_v4, %v423_v5  ;;  %v136_v61 = vld [vmem:[%s9351_s1 + $0x2e8] sm:$0xff]  ;;  %v5787_v63 = vcombine.low %v140_v56, %v144_v51 }
  0x58   :  { %v415_v14 = vld [vmem:[%s9351_s1 + $0xba0] sm:$0xff]  ;;  %v124_v4 = vld [vmem:[%s9351_s1 + $0x288] sm:$0xff]  ;;  %v5779_v7 = vcombine.low %v132_v60, %v136_v61 }
  0x59   :  { %v6058_v20 = vcombine.high %v411_v13, %v415_v14  ;;  %v403_v23 = vld [vmem:[%s9351_s1 + $0xb40] sm:$0xff]  ;;  %v6057_v28 = vcombine.low %v411_v13, %v415_v14  ;;  %v128_v5 = vld [vmem:[%s9351_s1 + $0x2a8] sm:$0xff] }
  0x5a   :  { %2571 = vmatpush1.bf16.msra.mxu0 %v5969_v47  ;;  %2653 = vmatpush1.bf16.msra.mxu1 %v5731_v48  ;;  %v407_v24 = vld [vmem:[%s9351_s1 + $0xb60] sm:$0xff]  ;;  %v5796_v48 = vcombine.high %v148_v43, %v152_v44  ;;  %v116_v13 = vld [vmem:[%s9351_s1 + $0x248] sm:$0xff]  ;;  %v5771_v17 = vcombine.low %v124_v4, %v128_v5 }
  0x5b   :  { %2572 = vmatprep.subr.bf16.mxu0 %v5962_v49  ;;  %2654 = vmatprep.subr.bf16.mxu1 %v5724_v50  ;;  %v6050_v30 = vcombine.high %v403_v23, %v407_v24  ;;  %v395_v33 = vld [vmem:[%s9351_s1 + $0xb00] sm:$0xff]  ;;  %v6049_v37 = vcombine.low %v403_v23, %v407_v24  ;;  %v120_v14 = vld [vmem:[%s9351_s1 + $0x268] sm:$0xff] }
  0x5c   :  { %v399_v34 = vld [vmem:[%s9351_s1 + $0xb20] sm:$0xff]  ;;  %v7398_v23 = vld [vmem:[%s9352_s0 + $0x10] ss:$28 sps:$4 sm:$0xff]  }
  0x5d   :  { %v6042_v39 = vcombine.high %v395_v33, %v399_v34  ;;  %v387_v41 = vld [vmem:[%s9351_s1 + $0xac0] sm:$0xff]  ;;  %v6041_v45 = vcombine.low %v395_v33, %v399_v34  ;;  %v108_v24 = vld [vmem:[%s9351_s1 + $0x208] sm:$0xff] }
  0x5e   :  { %2573 = vmatpush1.bf16.msra.mxu0 %v5961_v54  ;;  %2655 = vmatpush1.bf16.msra.mxu1 %v5723_v55  ;;  %v391_v42 = vld [vmem:[%s9351_s1 + $0xae0] sm:$0xff]  ;;  %v5788_v55 = vcombine.high %v140_v56, %v144_v51  ;;  %v216_v33 = vld [vmem:[%s9351_s1 + $0x568] sm:$0xff] }
  0x5f   :  { %2574 = vmatprep.subr.bf16.mxu0 %v5954_v57  ;;  %2656 = vmatprep.subr.bf16.mxu1 %v5716_v58  ;;  %v6034_v47 = vcombine.high %v387_v41, %v391_v42  ;;  %v379_v49 = vld [vmem:[%s9351_s1 + $0xa80] sm:$0xff]  ;;  %v6033_v52 = vcombine.low %v387_v41, %v391_v42  ;;  %v356_v34 = vld [vmem:[%s9351_s1 + $0x9c8] sm:$0xff] }
  0x60   :  { %v383_v50 = vld [vmem:[%s9351_s1 + $0xaa0] sm:$0xff]  ;;  %v360_v35 = vld [vmem:[%s9351_s1 + $0x9e8] sm:$0xff] }
  0x61   :  { %v6026_v54 = vcombine.high %v379_v49, %v383_v50  ;;  %v371_v57 = vld [vmem:[%s9351_s1 + $0xa40] sm:$0xff]  ;;  %v6025_v62 = vcombine.low %v379_v49, %v383_v50  ;;  %v208_v41 = vld [vmem:[%s9351_s1 + $0x528] sm:$0xff]  ;;  %v6003_v44 = vcombine.low %v356_v34, %v360_v35 }
  0x62   :  { %2575 = vmatpush1.bf16.msra.mxu0 %v5953_v0  ;;  %2657 = vmatpush1.bf16.msra.mxu1 %v5715_v1  ;;  %v375_v58 = vld [vmem:[%s9351_s1 + $0xa60] sm:$0xff]  ;;  %v5780_v1 = vcombine.high %v132_v60, %v136_v61  ;;  %v348_v42 = vld [vmem:[%s9351_s1 + $0x988] sm:$0xff] }
  0x63   :  { %2576 = vmatprep.subr.bf16.mxu0 %v5946_v2  ;;  %2658 = vmatprep.subr.bf16.mxu1 %v5708_v3  ;;  %v6018_v0 = vcombine.high %v371_v57, %v375_v58  ;;  %v363_v2 = vld [vmem:[%s9351_s1 + $0xa00] sm:$0xff]  ;;  %v6017_v6 = vcombine.low %v371_v57, %v375_v58  ;;  %v340_v49 = vld [vmem:[%s9351_s1 + $0x948] sm:$0xff] }
  0x64   :  { %v367_v3 = vld [vmem:[%s9351_s1 + $0xa20] sm:$0xff]  ;;  %v344_v50 = vld [vmem:[%s9351_s1 + $0x968] sm:$0xff] }
  0x65   :  { %v6009_v16 = vcombine.low %v363_v2, %v367_v3  ;;  %v336_v57 = vld [vmem:[%s9351_s1 + $0x928] sm:$0xff]  ;;  %v5987_v60 = vcombine.low %v340_v49, %v344_v50 }
  0x66   :  { %2577 = vmatpush1.bf16.msra.mxu0 %v5945_v8  ;;  %2659 = vmatpush1.bf16.msra.mxu1 %v5707_v9  ;;  %v6010_v8 = vcombine.high %v363_v2, %v367_v3  ;;  %v5772_v9 = vcombine.high %v124_v4, %v128_v5 }
  0x67   :  { %2578 = vmatprep.subr.bf16.mxu0 %v6066_v10  ;;  %2660 = vmatprep.subr.bf16.mxu1 %v5700_v11  ;;  %v228_v10 = vld [vmem:[%s9351_s1 + $0x5c8] sm:$0xff] }
  0x68   :  { %v232_v11 = vld [vmem:[%s9351_s1 + $0x5e8] sm:$0xff] }
  0x69   :  { %v5875_v27 = vcombine.low %v228_v10, %v232_v11 }
  0x6a   :  { %2579 = vmatpush2.bf16.msra.mxu0 %v6065_v18  ;;  %2661 = vmatpush1.bf16.msra.mxu1 %v5699_v19  ;;  %v5876_v18 = vcombine.high %v228_v10, %v232_v11  ;;  %v5764_v19 = vcombine.high %v116_v13, %v120_v14 }
  0x6b   :  { %2580 = vmatprep.subr.bf16.mxu0 %v6058_v20  ;;  %2662 = vmatprep.subr.bf16.mxu1 %v5692_v21  ;;  %v220_v20 = vld [vmem:[%s9351_s1 + $0x588] sm:$0xff] }
  0x6c   :  { %v224_v21 = vld [vmem:[%s9351_s1 + $0x5a8] sm:$0xff] }
  0x6d   :  { %v5867_v36 = vcombine.low %v220_v20, %v224_v21 }
  0x6e   :  { %2581 = vmatpush2.bf16.msra.mxu0 %v6057_v28  ;;  %2663 = vmatpush1.bf16.msra.mxu1 %v5691_v29  ;;  %v5763_v28 = vcombine.low %v116_v13, %v120_v14  ;;  %v5868_v29 = vcombine.high %v220_v20, %v224_v21 }
  0x6f   :  { %2582 = vmatprep.subr.bf16.mxu0 %v6050_v30  ;;  %2664 = vmatprep.subr.bf16.mxu1 %v5812_v32  ;;  %v5756_v30 = vcombine.high %v108_v24, %v112_v26  ;;  %v212_v32 = vld [vmem:[%s9351_s1 + $0x548] sm:$0xff] }
  0x70   :  { %v5859_v43 = vcombine.low %v212_v32, %v216_v33 }
  0x72   :  { %2583 = vmatpush2.bf16.msra.mxu0 %v6049_v37  ;;  %2665 = vmatpush2.bf16.msra.mxu1 %v5811_v38  ;;  %v5755_v37 = vcombine.low %v108_v24, %v112_v26  ;;  %v5860_v38 = vcombine.high %v212_v32, %v216_v33 }
  0x73   :  { %2584 = vmatprep.subr.bf16.mxu0 %v6042_v39  ;;  %2666 = vmatprep.subr.bf16.mxu1 %v5804_v40  ;;  %v6004_v39 = vcombine.high %v356_v34, %v360_v35  ;;  %v204_v40 = vld [vmem:[%s9351_s1 + $0x508] sm:$0xff] }
  0x74   :  { %v5851_v56 = vcombine.low %v204_v40, %v208_v41 }
  0x76   :  { %2585 = vmatpush2.bf16.msra.mxu0 %v6041_v45  ;;  %2667 = vmatpush2.bf16.msra.mxu1 %v5803_v46  ;;  %v5852_v45 = vcombine.high %v204_v40, %v208_v41 }
  0x77   :  { %2586 = vmatprep.subr.bf16.mxu0 %v6034_v47  ;;  %2668 = vmatprep.subr.bf16.mxu1 %v5796_v48  ;;  %v196_v47 = vld [vmem:[%s9351_s1 + $0x4c8] sm:$0xff] }
  0x78   :  { %v200_v48 = vld [vmem:[%s9351_s1 + $0x4e8] sm:$0xff] }
  0x79   :  { %v5843_v58 = vcombine.low %v196_v47, %v200_v48 }
  0x7a   :  { %2587 = vmatpush2.bf16.msra.mxu0 %v6033_v52  ;;  %2669 = vmatpush2.bf16.msra.mxu1 %v5795_v53  ;;  %v5844_v52 = vcombine.high %v196_v47, %v200_v48  ;;  %v5988_v53 = vcombine.high %v340_v49, %v344_v50 }
  0x7b   :  { %2588 = vmatprep.subr.bf16.mxu0 %v6026_v54  ;;  %2670 = vmatprep.subr.bf16.mxu1 %v5788_v55  ;;  %v188_v54 = vld [vmem:[%s9351_s1 + $0x488] sm:$0xff] }
  0x7c   :  { %v192_v55 = vld [vmem:[%s9351_s1 + $0x4a8] sm:$0xff] }
  0x7d   :  { %v5836_v61 = vcombine.high %v188_v54, %v192_v55  ;;  %v5835_v2 = vcombine.low %v188_v54, %v192_v55 }
  0x7e   :  { %2589 = vmatpush2.bf16.msra.mxu0 %v6025_v62  ;;  %2671 = vmatpush2.bf16.msra.mxu1 %v5787_v63  ;;  %v184_v63 = vld [vmem:[%s9351_s1 + $0x468] sm:$0xff] }
  0x7f   :  { %2590 = vmatprep.subr.bf16.mxu0 %v6018_v0  ;;  %2672 = vmatprep.subr.bf16.mxu1 %v5780_v1  ;;  %v324_v0 = vld [vmem:[%s9351_s1 + $0x8c8] sm:$0xff] }
  0x80   :  { %v328_v1 = vld [vmem:[%s9351_s1 + $0x8e8] sm:$0xff] }
  0x81   :  { %v5972_v5 = vcombine.high %v324_v0, %v328_v1  ;;  %v5971_v11 = vcombine.low %v324_v0, %v328_v1 }
  0x82   :  { %2591 = vmatpush2.bf16.msra.mxu0 %v6017_v6  ;;  %2673 = vmatpush2.bf16.msra.mxu1 %v5779_v7  ;;  %v172_v6 = vld [vmem:[%s9351_s1 + $0x408] sm:$0xff] }
  0x83   :  { %2592 = vmatprep.subr.bf16.mxu0 %v6010_v8  ;;  %2674 = vmatprep.subr.bf16.mxu1 %v5772_v9  ;;  %v176_v7 = vld [vmem:[%s9351_s1 + $0x428] sm:$0xff] }
  0x84   :  { %v316_v8 = vld [vmem:[%s9351_s1 + $0x888] sm:$0xff]  ;;  %v5820_v13 = vcombine.high %v172_v6, %v176_v7  ;;  %v5819_v20 = vcombine.low %v172_v6, %v176_v7 }
  0x85   :  { %v320_v9 = vld [vmem:[%s9351_s1 + $0x8a8] sm:$0xff] }
  0x86   :  { %2593 = vmatpush2.bf16.msra.mxu0 %v6009_v16  ;;  %2675 = vmatpush2.bf16.msra.mxu1 %v5771_v17  ;;  %v5964_v14 = vcombine.high %v316_v8, %v320_v9  ;;  %v292_v16 = vld [vmem:[%s9351_s1 + $0x7c8] sm:$0xff]  ;;  %v5963_v21 = vcombine.low %v316_v8, %v320_v9 }
  0x87   :  { %2691 = vmatprep.subr.bf16.mxu0 %v5876_v18  ;;  %2676 = vmatprep.subr.bf16.mxu1 %v5764_v19  ;;  %v296_v17 = vld [vmem:[%s9351_s1 + $0x7e8] sm:$0xff] }
  0x88   :  { %v308_v18 = vld [vmem:[%s9351_s1 + $0x848] sm:$0xff]  ;;  %v5940_v24 = vcombine.high %v292_v16, %v296_v17  ;;  %v5939_v32 = vcombine.low %v292_v16, %v296_v17 }
  0x89   :  { %2595 = vmatmul.mubr.bf16.vlgmr.msra.gmra.mxu0 %v7398_v23  ;;  %v312_v19 = vld [vmem:[%s9351_s1 + $0x868] sm:$0xff] }
  0x8a   :  { %2692 = vmatpush1.bf16.msra.mxu0 %v5875_v27  ;;  %2723 = vmatprep.mubr.bf16.mxu0 %v7064_v59  ;;  %v352_v59 = vld [vmem:[%s9351_s1 + $0x9a8] sm:$0xff]  ;;  %v5956_v26 = vcombine.high %v308_v18, %v312_v19  ;;  %v5955_v33 = vcombine.low %v308_v18, %v312_v19 }
  0x8b   :  { %2677 = vmatpush2.bf16.msra.mxu1 %v5763_v28  ;;  %2693 = vmatprep.subr.bf16.mxu0 %v5868_v29  ;;  %v5996_v46 = vcombine.high %v348_v42, %v352_v59  ;;  %v5995_v51 = vcombine.low %v348_v42, %v352_v59  ;;  %v284_v27 = vld [vmem:[%s9351_s1 + $0x788] sm:$0xff] }
  0x8c   :  { %2678 = vmatprep.subr.bf16.mxu1 %v5756_v30  ;;  %v288_v28 = vld [vmem:[%s9351_s1 + $0x7a8] sm:$0xff] }
  0x8d   :  { %v300_v29 = vld [vmem:[%s9351_s1 + $0x808] sm:$0xff]  ;;  %v5932_v34 = vcombine.high %v284_v27, %v288_v28  ;;  %v5931_v40 = vcombine.low %v284_v27, %v288_v28 }
  0x8e   :  { %2694 = vmatpush1.bf16.msra.mxu0 %v5867_v36  ;;  %v304_v30 = vld [vmem:[%s9351_s1 + $0x828] sm:$0xff] }
  0x8f   :  { %2679 = vmatpush2.bf16.msra.mxu1 %v5755_v37  ;;  %2695 = vmatprep.subr.bf16.mxu0 %v5860_v38  ;;  %v5948_v35 = vcombine.high %v300_v29, %v304_v30  ;;  %v276_v36 = vld [vmem:[%s9351_s1 + $0x748] sm:$0xff]  ;;  %v5947_v41 = vcombine.low %v300_v29, %v304_v30 }
  0x90   :  { %2734 = vmatprep.subr.bf16.mxu1 %v6004_v39  ;;  %v280_v37 = vld [vmem:[%s9351_s1 + $0x768] sm:$0xff] }
  0x91   :  { %v420_v38 = vld [vmem:[%s9351_s1 + $0xbc8] sm:$0xff]  ;;  %v5924_v42 = vcombine.high %v276_v36, %v280_v37  ;;  %v5923_v47 = vcombine.low %v276_v36, %v280_v37 }
  0x92   :  { %2681 = vmatmul.mubr.bf16.vlgmr.msra.gmra.mxu1 %v7185_v12  ;;  %2696 = vmatpush1.bf16.msra.mxu0 %v5859_v43  ;;  %v332_v12 = vld [vmem:[%s9351_s1 + $0x908] sm:$0xff] }
  0x93   :  { %2735 = vmatpush1.bf16.msra.mxu1 %v6003_v44  ;;  %2697 = vmatprep.subr.bf16.mxu0 %v5852_v45  ;;  %v5980_v62 = vcombine.high %v332_v12, %v336_v57  ;;  %v5979_v3 = vcombine.low %v332_v12, %v336_v57  ;;  %v424_v39 = vld [vmem:[%s9351_s1 + $0xbe8] sm:$0xff] }
  0x94   :  { %2736 = vmatprep.subr.bf16.mxu1 %v5996_v46  ;;  %2766 = vmatprep.mubr.bf16.mxu1 %v7208_v22  ;;  %v180_v22 = vld [vmem:[%s9351_s1 + $0x448] sm:$0xff]  ;;  %v6068_v59 = vcombine.high %v420_v38, %v424_v39  ;;  %v6067_v48 = vcombine.low %v420_v38, %v424_v39 }
  0x95   :  { %v5828_v4 = vcombine.high %v180_v22, %v184_v63  ;;  %v5827_v10 = vcombine.low %v180_v22, %v184_v63  ;;  %v268_v43 = vld [vmem:[%s9351_s1 + $0x708] sm:$0xff] }
  0x96   :  { %2698 = vmatpush1.bf16.msra.mxu0 %v5851_v56  ;;  %v272_v44 = vld [vmem:[%s9351_s1 + $0x728] sm:$0xff] }
  0x97   :  { %2737 = vmatpush1.bf16.msra.mxu1 %v5995_v51  ;;  %2699 = vmatprep.subr.bf16.mxu0 %v5844_v52  ;;  %v412_v45 = vld [vmem:[%s9351_s1 + $0xb88] sm:$0xff]  ;;  %v5916_v49 = vcombine.high %v268_v43, %v272_v44  ;;  %v5915_v54 = vcombine.low %v268_v43, %v272_v44  ;;  %v97_v43 = vld [vmem:[%s9351_s1 + $0x1b0] sm:$0xff] }
  0x98   :  { %2738 = vmatprep.subr.bf16.mxu1 %v5988_v53  ;;  %v416_v46 = vld [vmem:[%s9351_s1 + $0xba8] sm:$0xff]  ;;  %v221_v44 = vld [vmem:[%s9351_s1 + $0x590] sm:$0xff] }
  0x99   :  { %v6060_v50 = vcombine.high %v412_v45, %v416_v46  ;;  %v260_v56 = vld [vmem:[%s9351_s1 + $0x6c8] sm:$0xff]  ;;  %v6059_v55 = vcombine.low %v412_v45, %v416_v46  ;;  %v225_v45 = vld [vmem:[%s9351_s1 + $0x5b0] sm:$0xff] }
  0x9a   :  { %2700 = vmatpush1.bf16.msra.mxu0 %v5843_v58  ;;  %v264_v51 = vld [vmem:[%s9351_s1 + $0x6e8] sm:$0xff] }
  0x9b   :  { %2739 = vmatpush1.bf16.msra.mxu1 %v5987_v60  ;;  %2701 = vmatprep.subr.bf16.mxu0 %v5836_v61  ;;  %v404_v52 = vld [vmem:[%s9351_s1 + $0xb48] sm:$0xff]  ;;  %v5908_v12 = vcombine.high %v260_v56, %v264_v51  ;;  %v5907_v22 = vcombine.low %v260_v56, %v264_v51  ;;  %v89_v56 = vld [vmem:[%s9351_s1 + $0x170] sm:$0xff] }
  0x9c   :  { %2740 = vmatprep.subr.bf16.mxu1 %v5980_v62  ;;  %v408_v53 = vld [vmem:[%s9351_s1 + $0xb68] sm:$0xff]  ;;  %v213_v51 = vld [vmem:[%s9351_s1 + $0x550] sm:$0xff] }
  0x9d   :  { %v6052_v57 = vcombine.high %v404_v52, %v408_v53  ;;  %v252_v58 = vld [vmem:[%s9351_s1 + $0x688] sm:$0xff]  ;;  %v6051_v63 = vcombine.low %v404_v52, %v408_v53  ;;  %v217_v52 = vld [vmem:[%s9351_s1 + $0x570] sm:$0xff] }
  0x9e   :  { %2702 = vmatpush1.bf16.msra.mxu0 %v5835_v2  ;;  %v256_v60 = vld [vmem:[%s9351_s1 + $0x6a8] sm:$0xff] }
  0x9f   :  { %2741 = vmatpush1.bf16.msra.mxu1 %v5979_v3  ;;  %2703 = vmatprep.subr.bf16.mxu0 %v5828_v4  ;;  %v396_v61 = vld [vmem:[%s9351_s1 + $0xb08] sm:$0xff]  ;;  %v5900_v0 = vcombine.high %v252_v58, %v256_v60  ;;  %v5899_v6 = vcombine.low %v252_v58, %v256_v60  ;;  %v205_v58 = vld [vmem:[%s9351_s1 + $0x510] sm:$0xff] }
  0xa0   :  { %2742 = vmatprep.subr.bf16.mxu1 %v5972_v5  ;;  %v400_v62 = vld [vmem:[%s9351_s1 + $0xb28] sm:$0xff]  ;;  %v209_v60 = vld [vmem:[%s9351_s1 + $0x530] sm:$0xff] }
  0xa1   :  { %v6044_v1 = vcombine.high %v396_v61, %v400_v62  ;;  %v244_v2 = vld [vmem:[%s9351_s1 + $0x648] sm:$0xff]  ;;  %v6043_v7 = vcombine.low %v396_v61, %v400_v62 }
  0xa2   :  { %2704 = vmatpush1.bf16.msra.mxu0 %v5827_v10  ;;  %v248_v3 = vld [vmem:[%s9351_s1 + $0x668] sm:$0xff] }
  0xa3   :  { %2743 = vmatpush1.bf16.msra.mxu1 %v5971_v11  ;;  %2705 = vmatprep.subr.bf16.mxu0 %v5820_v13  ;;  %v388_v4 = vld [vmem:[%s9351_s1 + $0xac8] sm:$0xff]  ;;  %v5892_v8 = vcombine.high %v244_v2, %v248_v3  ;;  %v5891_v16 = vcombine.low %v244_v2, %v248_v3  ;;  %v73_v2 = vld [vmem:[%s9351_s1 + $0xf0] sm:$0xff] }
  0xa4   :  { %2744 = vmatprep.subr.bf16.mxu1 %v5964_v14  ;;  %v392_v5 = vld [vmem:[%s9351_s1 + $0xae8] sm:$0xff]  ;;  %v197_v3 = vld [vmem:[%s9351_s1 + $0x4d0] sm:$0xff] }
  0xa5   :  { %v6036_v9 = vcombine.high %v388_v4, %v392_v5  ;;  %v236_v10 = vld [vmem:[%s9351_s1 + $0x608] sm:$0xff]  ;;  %v6035_v17 = vcombine.low %v388_v4, %v392_v5  ;;  %v201_v4 = vld [vmem:[%s9351_s1 + $0x4f0] sm:$0xff] }
  0xa6   :  { %2706 = vmatpush1.bf16.msra.mxu0 %v5819_v20  ;;  %v240_v11 = vld [vmem:[%s9351_s1 + $0x628] sm:$0xff] }
  0xa7   :  { %2745 = vmatpush1.bf16.msra.mxu1 %v5963_v21  ;;  %2707 = vmatprep.subr.bf16.mxu0 %v5940_v24  ;;  %v380_v13 = vld [vmem:[%s9351_s1 + $0xa88] sm:$0xff]  ;;  %v5884_v18 = vcombine.high %v236_v10, %v240_v11  ;;  %v5883_v27 = vcombine.low %v236_v10, %v240_v11  ;;  %v65_v10 = vld [vmem:[%s9351_s1 + $0xb0] sm:$0xff] }
  0xa8   :  { %2746 = vmatprep.subr.bf16.mxu1 %v5956_v26  ;;  %v384_v14 = vld [vmem:[%s9351_s1 + $0xaa8] sm:$0xff]  ;;  %v189_v11 = vld [vmem:[%s9351_s1 + $0x490] sm:$0xff] }
  0xa9   :  { %v6028_v19 = vcombine.high %v380_v13, %v384_v14  ;;  %v428_v20 = vld [vmem:[%s9351_s1 + $0xc08] sm:$0xff]  ;;  %v6027_v28 = vcombine.low %v380_v13, %v384_v14  ;;  %v193_v13 = vld [vmem:[%s9351_s1 + $0x4b0] sm:$0xff] }
  0xaa   :  { %2708 = vmatpush2.bf16.msra.mxu0 %v5939_v32  ;;  %v432_v21 = vld [vmem:[%s9351_s1 + $0xc28] sm:$0xff]  ;;  %v101_v32 = vld [vmem:[%s9351_s1 + $0x1d0] sm:$0xff] }
  0xab   :  { %2747 = vmatpush1.bf16.msra.mxu1 %v5955_v33  ;;  %2709 = vmatprep.subr.bf16.mxu0 %v5932_v34  ;;  %v372_v24 = vld [vmem:[%s9351_s1 + $0xa48] sm:$0xff]  ;;  %v6076_v29 = vcombine.high %v428_v20, %v432_v21  ;;  %v105_v33 = vld [vmem:[%s9351_s1 + $0x1f0] sm:$0xff]  ;;  %v6075_v36 = vcombine.low %v428_v20, %v432_v21 }
  0xac   :  { %2748 = vmatprep.subr.bf16.mxu1 %v5948_v35  ;;  %v376_v26 = vld [vmem:[%s9351_s1 + $0xa68] sm:$0xff]  ;;  %v5750_v38 = vcombine.high %v101_v32, %v105_v33  ;;  %v5749_v46 = vcombine.low %v101_v32, %v105_v33  ;;  %v57_v20 = vld [vmem:[%s9351_s1 + $0x70] sm:$0xff] }
  0xad   :  { %v6020_v30 = vcombine.high %v372_v24, %v376_v26  ;;  %v364_v34 = vld [vmem:[%s9351_s1 + $0xa08] sm:$0xff]  ;;  %v6019_v37 = vcombine.low %v372_v24, %v376_v26  ;;  %v181_v21 = vld [vmem:[%s9351_s1 + $0x450] sm:$0xff] }
  0xae   :  { %2710 = vmatpush2.bf16.msra.mxu0 %v5931_v40  ;;  %v368_v35 = vld [vmem:[%s9351_s1 + $0xa28] sm:$0xff]  ;;  %v229_v40 = vld [vmem:[%s9351_s1 + $0x5d0] sm:$0xff] }
  0xaf   :  { %2749 = vmatpush1.bf16.msra.mxu1 %v5947_v41  ;;  %2711 = vmatprep.subr.bf16.mxu0 %v5924_v42  ;;  %v6012_v39 = vcombine.high %v364_v34, %v368_v35  ;;  %v233_v41 = vld [vmem:[%s9351_s1 + $0x5f0] sm:$0xff]  ;;  %v6011_v42 = vcombine.low %v364_v34, %v368_v35  ;;  %v6898_v61 = vld [vmem:[%s9352_s0 + $0xc] ss:$28 sps:$4 sm:$0xff]  }
  0xb0   :  { %2750 = vmatprep.subr.bf16.mxu1 %v6068_v59  ;;  %v5878_v59 = vcombine.high %v229_v40, %v233_v41  ;;  %v185_v24 = vld [vmem:[%s9351_s1 + $0x470] sm:$0xff] }
  0xb1   :  { %v49_v32 = vld [vmem:[%s9351_s1 + $0x30] sm:$0xff] }
  0xb2   :  { %2712 = vmatpush2.bf16.msra.mxu0 %v5923_v47  ;;  %v5877_v47 = vcombine.low %v229_v40, %v233_v41  ;;  %v173_v33 = vld [vmem:[%s9351_s1 + $0x410] sm:$0xff] }
  0xb3   :  { %2751 = vmatpush2.bf16.msra.mxu1 %v6067_v48  ;;  %2713 = vmatprep.subr.bf16.mxu0 %v5916_v49  ;;  %v5870_v49 = vcombine.high %v221_v44, %v225_v45  ;;  %v177_v34 = vld [vmem:[%s9351_s1 + $0x430] sm:$0xff] }
  0xb4   :  { %2752 = vmatprep.subr.bf16.mxu1 %v6060_v50  ;;  %v85_v50 = vld [vmem:[%s9351_s1 + $0x150] sm:$0xff] }
  0xb5   :  { %v5733_v62 = vcombine.low %v85_v50, %v89_v56  ;;  %v169_v40 = vld [vmem:[%s9351_s1 + $0x3f0] sm:$0xff] }
  0xb6   :  { %2714 = vmatpush2.bf16.msra.mxu0 %v5915_v54  ;;  %v5869_v54 = vcombine.low %v221_v44, %v225_v45  ;;  %v293_v41 = vld [vmem:[%s9351_s1 + $0x7d0] sm:$0xff] }
  0xb7   :  { %2753 = vmatpush2.bf16.msra.mxu1 %v6059_v55  ;;  %2715 = vmatprep.subr.bf16.mxu0 %v5908_v12  ;;  %v5734_v55 = vcombine.high %v85_v50, %v89_v56  ;;  %v5862_v12 = vcombine.high %v213_v51, %v217_v52  ;;  %v157_v45 = vld [vmem:[%s9351_s1 + $0x390] sm:$0xff] }
  0xb8   :  { %2754 = vmatprep.subr.bf16.mxu1 %v6052_v57  ;;  %v81_v57 = vld [vmem:[%s9351_s1 + $0x130] sm:$0xff] }
  0xba   :  { %2716 = vmatpush2.bf16.msra.mxu0 %v5907_v22  ;;  %v5861_v22 = vcombine.low %v213_v51, %v217_v52  ;;  %v149_v52 = vld [vmem:[%s9351_s1 + $0x350] sm:$0xff] }
  0xbb   :  { %2755 = vmatpush2.bf16.msra.mxu1 %v6051_v63  ;;  %2717 = vmatprep.subr.bf16.mxu0 %v5900_v0  ;;  %v5854_v0 = vcombine.high %v205_v58, %v209_v60 }
  0xbc   :  { %2756 = vmatprep.subr.bf16.mxu1 %v6044_v1  ;;  %v69_v1 = vld [vmem:[%s9351_s1 + $0xd0] sm:$0xff] }
  0xbd   :  { %v5717_v14 = vcombine.low %v69_v1, %v73_v2 }
  0xbe   :  { %2718 = vmatpush2.bf16.msra.mxu0 %v5899_v6  ;;  %v5853_v6 = vcombine.low %v205_v58, %v209_v60  ;;  %v141_v60 = vld [vmem:[%s9351_s1 + $0x310] sm:$0xff] }
  0xbf   :  { %2757 = vmatpush2.bf16.msra.mxu1 %v6043_v7  ;;  %2719 = vmatprep.subr.bf16.mxu0 %v5892_v8  ;;  %v5718_v7 = vcombine.high %v69_v1, %v73_v2  ;;  %v5846_v8 = vcombine.high %v197_v3, %v201_v4 }
  0xc0   :  { %2758 = vmatprep.subr.bf16.mxu1 %v6036_v9  ;;  %v61_v9 = vld [vmem:[%s9351_s1 + $0x90] sm:$0xff] }
  0xc1   :  { %v5709_v26 = vcombine.low %v61_v9, %v65_v10 }
  0xc2   :  { %2720 = vmatpush2.bf16.msra.mxu0 %v5891_v16  ;;  %v5845_v16 = vcombine.low %v197_v3, %v201_v4  ;;  %v133_v3 = vld [vmem:[%s9351_s1 + $0x2d0] sm:$0xff] }
  0xc3   :  { %2759 = vmatpush2.bf16.msra.mxu1 %v6035_v17  ;;  %2721 = vmatprep.subr.bf16.mxu0 %v5884_v18  ;;  %v5710_v17 = vcombine.high %v61_v9, %v65_v10  ;;  %v5838_v18 = vcombine.high %v189_v11, %v193_v13  ;;  %v137_v4 = vld [vmem:[%s9351_s1 + $0x2f0] sm:$0xff] }
  0xc4   :  { %2760 = vmatprep.subr.bf16.mxu1 %v6028_v19  ;;  %v53_v19 = vld [vmem:[%s9351_s1 + $0x50] sm:$0xff]  ;;  %v5782_v10 = vcombine.high %v133_v3, %v137_v4 }
  0xc5   :  { %v5701_v35 = vcombine.low %v53_v19, %v57_v20 }
  0xc6   :  { %2722 = vmatpush2.bf16.msra.mxu0 %v5883_v27  ;;  %v5837_v27 = vcombine.low %v189_v11, %v193_v13  ;;  %v125_v13 = vld [vmem:[%s9351_s1 + $0x290] sm:$0xff] }
  0xc7   :  { %2761 = vmatpush2.bf16.msra.mxu1 %v6027_v28  ;;  %2791 = vmatprep.subr.bf16.mxu0 %v6076_v29  ;;  %v5702_v28 = vcombine.high %v53_v19, %v57_v20  ;;  %v5830_v29 = vcombine.high %v181_v21, %v185_v24 }
  0xc8   :  { %2762 = vmatprep.subr.bf16.mxu1 %v6020_v30  ;;  %v45_v30 = vld [vmem:[%s9351_s1 + $0x10] sm:$0xff] }
  0xc9   :  { %2724 = vmatmul.mubr.bf16.vlgmr.msra.gmra.mxu0 %v7196_v15  ;;  %v93_v15 = vld [vmem:[%s9351_s1 + $0x190] sm:$0xff] }
  0xca   :  { %2792 = vmatpush1.bf16.msra.mxu0 %v6075_v36  ;;  %2809 = vmatprep.mubr.bf16.mxu0 %v6909_v25  ;;  %v5742_v48 = vcombine.high %v93_v15, %v97_v43  ;;  %v5741_v53 = vcombine.low %v93_v15, %v97_v43  ;;  %v5829_v36 = vcombine.low %v181_v21, %v185_v24 }
  0xcb   :  { %2763 = vmatpush2.bf16.msra.mxu1 %v6019_v37  ;;  %2820 = vmatprep.subr.bf16.mxu0 %v5750_v38  ;;  %v5694_v37 = vcombine.high %v45_v30, %v49_v32  ;;  %v5822_v38 = vcombine.high %v173_v33, %v177_v34  ;;  %v5821_v15 = vcombine.low %v173_v33, %v177_v34 }
  0xcc   :  { %2764 = vmatprep.subr.bf16.mxu1 %v6012_v39  ;;  %v165_v39 = vld [vmem:[%s9351_s1 + $0x3d0] sm:$0xff] }
  0xcd   :  { %v5814_v43 = vcombine.high %v165_v39, %v169_v40 }
  0xcf   :  { %2765 = vmatpush2.bf16.msra.mxu1 %v6011_v42  ;;  %v297_v42 = vld [vmem:[%s9351_s1 + $0x7f0] sm:$0xff] }
  0xd0   :  { %2863 = vmatprep.subr.bf16.mxu1 %v5878_v59  ;;  %v5693_v59 = vcombine.low %v45_v30, %v49_v32  ;;  %v5942_v44 = vcombine.high %v293_v41, %v297_v42  ;;  %v5941_v50 = vcombine.low %v293_v41, %v297_v42 }
  0xd1   :  { %6082 = vmatmul.mubr.msk.bf16.vlgmr.msra.gmra.mxu0 %vm2472_vm0, %v7228_v31  ;;  %v77_v31 = vld [vmem:[%s9351_s1 + $0x110] sm:$0xff] }
  0xd2   :  { %2767 = vmatmul.mubr.bf16.vlgmr.msra.gmra.mxu1 %v7398_v23  ;;  %2821 = vmatpush1.bf16.msra.mxu0 %v5749_v46  ;;  %v7646_v23 = vld [vmem:[%s9352_s0 + $0x4] ss:$28 sps:$4 sm:$0xff]   ;;  %v5726_v63 = vcombine.high %v77_v31, %v81_v57  ;;  %v5725_v5 = vcombine.low %v77_v31, %v81_v57  ;;  %v161_v46 = vld [vmem:[%s9351_s1 + $0x3b0] sm:$0xff] }
  0xd3   :  { %2864 = vmatpush1.bf16.msra.mxu1 %v5877_v47  ;;  %2822 = vmatprep.subr.bf16.mxu0 %v5742_v48  ;;  %v285_v47 = vld [vmem:[%s9351_s1 + $0x790] sm:$0xff]  ;;  %v5806_v56 = vcombine.high %v157_v45, %v161_v46 }
  0xd4   :  { %2865 = vmatprep.subr.bf16.mxu1 %v5870_v49  ;;  %2852 = vmatprep.mubr.bf16.mxu0 %v7646_v23  ;;  %v289_v48 = vld [vmem:[%s9351_s1 + $0x7b0] sm:$0xff]  ;;  %v5813_v49 = vcombine.low %v165_v39, %v169_v40 }
  0xd5   :  { %2895 = vmatprep.mubr.bf16.mxu1 %v6898_v61  ;;  %v5934_v51 = vcombine.high %v285_v47, %v289_v48  ;;  %v5933_v31 = vcombine.low %v285_v47, %v289_v48  ;;  %v145_v61 = vld [vmem:[%s9351_s1 + $0x330] sm:$0xff] }
  0xd6   :  { %2823 = vmatpush1.bf16.msra.mxu0 %v5741_v53  ;;  %v153_v53 = vld [vmem:[%s9351_s1 + $0x370] sm:$0xff]  ;;  %v5790_v1 = vcombine.high %v141_v60, %v145_v61 }
  0xd7   :  { %2866 = vmatpush1.bf16.msra.mxu1 %v5869_v54  ;;  %2824 = vmatprep.subr.bf16.mxu0 %v5734_v55  ;;  %v277_v54 = vld [vmem:[%s9351_s1 + $0x750] sm:$0xff]  ;;  %v5798_v57 = vcombine.high %v149_v52, %v153_v53 }
  0xd8   :  { %2867 = vmatprep.subr.bf16.mxu1 %v5862_v12  ;;  %v281_v55 = vld [vmem:[%s9351_s1 + $0x770] sm:$0xff]  ;;  %v5805_v12 = vcombine.low %v157_v45, %v161_v46 }
  0xd9   :  { %v5926_v58 = vcombine.high %v277_v54, %v281_v55  ;;  %v237_v39 = vld [vmem:[%s9351_s1 + $0x610] sm:$0xff] }
  0xda   :  { %2825 = vmatpush1.bf16.msra.mxu0 %v5733_v62  ;;  %v269_v62 = vld [vmem:[%s9351_s1 + $0x710] sm:$0xff] }
  0xdb   :  { %2868 = vmatpush1.bf16.msra.mxu1 %v5861_v22  ;;  %2826 = vmatprep.subr.bf16.mxu0 %v5726_v63  ;;  %v273_v22 = vld [vmem:[%s9351_s1 + $0x730] sm:$0xff]  ;;  %v5797_v63 = vcombine.low %v149_v52, %v153_v53 }
  0xdc   :  { %2869 = vmatprep.subr.bf16.mxu1 %v5854_v0  ;;  %v5925_v0 = vcombine.low %v277_v54, %v281_v55  ;;  %v5918_v2 = vcombine.high %v269_v62, %v273_v22  ;;  %v5917_v9 = vcombine.low %v269_v62, %v273_v22  ;;  %v241_v40 = vld [vmem:[%s9351_s1 + $0x630] sm:$0xff] }
  0xdd   :  { %v361_v45 = vld [vmem:[%s9351_s1 + $0x9f0] sm:$0xff]  ;;  %v5885_v52 = vcombine.low %v237_v39, %v241_v40 }
  0xde   :  { %2827 = vmatpush1.bf16.msra.mxu0 %v5725_v5  ;;  %v261_v5 = vld [vmem:[%s9351_s1 + $0x6d0] sm:$0xff] }
  0xdf   :  { %2870 = vmatpush1.bf16.msra.mxu1 %v5853_v6  ;;  %2828 = vmatprep.subr.bf16.mxu0 %v5718_v7  ;;  %v265_v6 = vld [vmem:[%s9351_s1 + $0x6f0] sm:$0xff]  ;;  %v5789_v7 = vcombine.low %v141_v60, %v145_v61  ;;  %v102_v60 = vld [vmem:[%s9351_s1 + $0x1d8] sm:$0xff] }
  0xe0   :  { %2871 = vmatprep.subr.bf16.mxu1 %v5846_v8  ;;  %v437_v8 = vlaneseq  ;;  %v5910_v11 = vcombine.high %v261_v5, %v265_v6  ;;  %v5909_v20 = vcombine.low %v261_v5, %v265_v6  ;;  %v429_v47 = vld [vmem:[%s9351_s1 + $0xc10] sm:$0xff]  ;;  %v106_v61 = vld [vmem:[%s9351_s1 + $0x1f8] sm:$0xff] }
  0xe1   :  { %v433_v48 = vld [vmem:[%s9351_s1 + $0xc30] sm:$0xff]  ;;  %v7852_v6 = vld [vmem:[%s9352_s0] ss:$28 sps:$4 sm:$0xff]  }
  0xe2   :  { %2829 = vmatpush1.bf16.msra.mxu0 %v5717_v14  ;;  %v129_v14 = vld [vmem:[%s9351_s1 + $0x2b0] sm:$0xff]  ;;  %v7778_v19 = vshrl.u32 %v437_v8, 7 }
  0xe3   :  { %2872 = vmatpush1.bf16.msra.mxu1 %v5845_v16  ;;  %2830 = vmatprep.subr.bf16.mxu0 %v5710_v17  ;;  %v253_v16 = vld [vmem:[%s9351_s1 + $0x690] sm:$0xff]  ;;  %v5774_v21 = vcombine.high %v125_v13, %v129_v14  ;;  %v5773_v30 = vcombine.low %v125_v13, %v129_v14  ;;  %v94_v13 = vld [vmem:[%s9351_s1 + $0x198] sm:$0xff] }
  0xe4   :  { %2873 = vmatprep.subr.bf16.mxu1 %v5838_v18  ;;  %v257_v17 = vld [vmem:[%s9351_s1 + $0x6b0] sm:$0xff]  ;;  %v5781_v18 = vcombine.low %v133_v3, %v137_v4  ;;  %v7793_v32 = vsub.s32 0, %v7778_v19  ;;  %v5752_v3 = vcombine.high %v102_v60, %v106_v61  ;;  %v98_v14 = vld [vmem:[%s9351_s1 + $0x1b8] sm:$0xff] }
  0xe5   :  { %v5902_v24 = vcombine.high %v253_v16, %v257_v17  ;;  %v5901_v33 = vcombine.low %v253_v16, %v257_v17  ;;  %v341_v4 = vld [vmem:[%s9351_s1 + $0x950] sm:$0xff] }
  0xe6   :  { %2831 = vmatpush1.bf16.msra.mxu0 %v5709_v26  ;;  %v117_v26 = vld [vmem:[%s9351_s1 + $0x250] sm:$0xff] }
  0xe7   :  { %2874 = vmatpush1.bf16.msra.mxu1 %v5837_v27  ;;  %2832 = vmatprep.subr.bf16.mxu0 %v5702_v28  ;;  %v121_v27 = vld [vmem:[%s9351_s1 + $0x270] sm:$0xff] }
  0xe8   :  { %2875 = vmatprep.subr.bf16.mxu1 %v5830_v29  ;;  %v245_v28 = vld [vmem:[%s9351_s1 + $0x650] sm:$0xff]  ;;  %v5766_v34 = vcombine.high %v117_v26, %v121_v27  ;;  %v5765_v41 = vcombine.low %v117_v26, %v121_v27  ;;  %v5744_v26 = vcombine.high %v94_v13, %v98_v14 }
  0xe9   :  { %v249_v29 = vld [vmem:[%s9351_s1 + $0x670] sm:$0xff] }
  0xea   :  { %2833 = vmatpush1.bf16.msra.mxu0 %v5701_v35  ;;  %v435_v35 = vld [vmem:[%s9353_s2] sm:$0xff]  ;;  %v345_v5 = vld [vmem:[%s9351_s1 + $0x970] sm:$0xff] }
  0xeb   :  { %2876 = vmatpush1.bf16.msra.mxu1 %v5829_v36  ;;  %2834 = vmatprep.subr.bf16.mxu0 %v5694_v37  ;;  %v5894_v36 = vcombine.high %v245_v28, %v249_v29  ;;  %v109_v37 = vld [vmem:[%s9351_s1 + $0x210] sm:$0xff]  ;;  %v440_v42 = vrot.slane %v435_v35, %v7793_v32  ;;  %v5989_v17 = vcombine.low %v341_v4, %v345_v5 }
  0xec   :  { %2877 = vmatprep.subr.bf16.mxu1 %v5822_v38  ;;  %v113_v38 = vld [vmem:[%s9351_s1 + $0x230] sm:$0xff] }
  0xed   :  { %v7874_v16 = vld [vmem:[%s9352_s0 + $0x14] ss:$28 sps:$4 sm:$0xff]  }
  0xee   :  { %2835 = vmatpush1.bf16.msra.mxu0 %v5693_v59  ;;  %v5893_v59 = vcombine.low %v245_v28, %v249_v29  ;;  %v329_v27 = vld [vmem:[%s9351_s1 + $0x8f0] sm:$0xff]  ;;  %v90_v28 = vld [vmem:[%s9351_s1 + $0x178] sm:$0xff] }
  0xef   :  { %2878 = vmatpush1.bf16.msra.mxu1 %v5821_v15  ;;  %2836 = vmatprep.subr.bf16.mxu0 %v5814_v43  ;;  %v5758_v15 = vcombine.high %v109_v37, %v113_v38  ;;  %v5886_v43 = vcombine.high %v237_v39, %v241_v40  ;;  %v6902_v29 = vld [vmem:[%s9352_s0 + $0x18] ss:$28 sps:$4 sm:$0xff]  }
  0xf0   :  { %2879 = vmatprep.subr.bf16.mxu1 %v5942_v44  ;;  %v357_v44 = vld [vmem:[%s9351_s1 + $0x9d0] sm:$0xff]  ;;  %v82_v39 = vld [vmem:[%s9351_s1 + $0x138] sm:$0xff] }
  0xf1   :  { %v6006_v53 = vcombine.high %v357_v44, %v361_v45  ;;  %v6005_v22 = vcombine.low %v357_v44, %v361_v45  ;;  %v313_v44 = vld [vmem:[%s9351_s1 + $0x870] sm:$0xff] }
  0xf2   :  { %2837 = vmatpush2.bf16.msra.mxu0 %v5813_v49 }
  0xf3   :  { %2880 = vmatpush2.bf16.msra.mxu1 %v5941_v50  ;;  %2838 = vmatprep.subr.bf16.mxu0 %v5806_v56  ;;  %v5757_v56 = vcombine.low %v109_v37, %v113_v38  ;;  %v321_v37 = vld [vmem:[%s9351_s1 + $0x8b0] sm:$0xff]  ;;  %v78_v38 = vld [vmem:[%s9351_s1 + $0x118] sm:$0xff] }
  0xf4   :  { %2881 = vmatprep.subr.bf16.mxu1 %v5934_v51 }
  0xf6   :  { %2839 = vmatpush2.bf16.msra.mxu0 %v5805_v12  ;;  %v6078_v12 = vcombine.high %v429_v47, %v433_v48 }
  0xf7   :  { %2882 = vmatpush2.bf16.msra.mxu1 %v5933_v31  ;;  %2840 = vmatprep.subr.bf16.mxu0 %v5798_v57  ;;  %v349_v31 = vld [vmem:[%s9351_s1 + $0x990] sm:$0xff] }
  0xf8   :  { %2883 = vmatprep.subr.bf16.mxu1 %v5926_v58  ;;  %v353_v57 = vld [vmem:[%s9351_s1 + $0x9b0] sm:$0xff] }
  0xf9   :  { %v5997_v8 = vcombine.low %v349_v31, %v353_v57 }
  0xfa   :  { %2841 = vmatpush2.bf16.msra.mxu0 %v5797_v63 }
  0xfb   :  { %2884 = vmatpush2.bf16.msra.mxu1 %v5925_v0  ;;  %2842 = vmatprep.subr.bf16.mxu0 %v5790_v1  ;;  %v6077_v0 = vcombine.low %v429_v47, %v433_v48  ;;  %v5998_v1 = vcombine.high %v349_v31, %v353_v57  ;;  %v62_v48 = vld [vmem:[%s9351_s1 + $0x98] sm:$0xff] }
  0xfc   :  { %2885 = vmatprep.subr.bf16.mxu1 %v5918_v2  ;;  %v54_v57 = vld [vmem:[%s9351_s1 + $0x58] sm:$0xff] }
  0xfe   :  { %2843 = vmatpush2.bf16.msra.mxu0 %v5789_v7  ;;  %v6900_v7 = vld [vmem:[%s9352_s0 + $0x8] ss:$28 sps:$4 sm:$0xff]  }
  0xff   :  { %2886 = vmatpush2.bf16.msra.mxu1 %v5917_v9  ;;  %2844 = vmatprep.subr.bf16.mxu0 %v5782_v10  ;;  %v5990_v9 = vcombine.high %v341_v4, %v345_v5  ;;  %v333_v10 = vld [vmem:[%s9351_s1 + $0x910] sm:$0xff] }
 0x100   :  { %2887 = vmatprep.subr.bf16.mxu1 %v5910_v11  ;;  %v337_v11 = vld [vmem:[%s9351_s1 + $0x930] sm:$0xff] }
 0x101   :  { %v413_v4 = vld [vmem:[%s9351_s1 + $0xb90] sm:$0xff] }
 0x102   :  { %2845 = vmatpush2.bf16.msra.mxu0 %v5781_v18  ;;  %v5751_v18 = vcombine.low %v102_v60, %v106_v61  ;;  %v421_v60 = vld [vmem:[%s9351_s1 + $0xbd0] sm:$0xff] }
 0x103   :  { %2888 = vmatpush2.bf16.msra.mxu1 %v5909_v20  ;;  %2846 = vmatprep.subr.bf16.mxu0 %v5774_v21  ;;  %v5982_v20 = vcombine.high %v333_v10, %v337_v11  ;;  %v86_v21 = vld [vmem:[%s9351_s1 + $0x158] sm:$0xff] }
 0x104   :  { %2889 = vmatprep.subr.bf16.mxu1 %v5902_v24  ;;  %v325_v24 = vld [vmem:[%s9351_s1 + $0x8d0] sm:$0xff]  ;;  %v5736_v35 = vcombine.high %v86_v21, %v90_v28 }
 0x105   :  { %v5973_v40 = vcombine.low %v325_v24, %v329_v27 }
 0x106   :  { %2847 = vmatpush2.bf16.msra.mxu0 %v5773_v30  ;;  %v5981_v30 = vcombine.low %v333_v10, %v337_v11  ;;  %v166_v11 = vld [vmem:[%s9351_s1 + $0x3d8] sm:$0xff] }
 0x107   :  { %2890 = vmatpush2.bf16.msra.mxu1 %v5901_v33  ;;  %2848 = vmatprep.subr.bf16.mxu0 %v5766_v34  ;;  %v5743_v33 = vcombine.low %v94_v13, %v98_v14  ;;  %v5974_v34 = vcombine.high %v325_v24, %v329_v27  ;;  %v170_v13 = vld [vmem:[%s9351_s1 + $0x3f8] sm:$0xff]  ;;  %v405_v14 = vld [vmem:[%s9351_s1 + $0xb50] sm:$0xff] }
 0x108   :  { %2891 = vmatprep.subr.bf16.mxu1 %v5894_v36  ;;  %v317_v36 = vld [vmem:[%s9351_s1 + $0x890] sm:$0xff]  ;;  %v162_v27 = vld [vmem:[%s9351_s1 + $0x3b8] sm:$0xff] }
 0x109   :  { %v2510_v46 = vpop.f32.mrf.mxu0  ;;  %v2553_v50 = vpop.f32.mrf.mxu1  ;;  %v5965_v45 = vcombine.low %v317_v36, %v321_v37 }
 0x10a   :  { %v2511_v49 = vadd.f32 %v2510_v46, %v440_v42  ;;  %2849 = vmatpush2.bf16.msra.mxu0 %v5765_v41  ;;  %v5735_v41 = vcombine.low %v86_v21, %v90_v28  ;;  %v5727_v46 = vcombine.low %v78_v38, %v82_v39  ;;  %v397_v28 = vld [vmem:[%s9351_s1 + $0xb10] sm:$0xff] }
 0x10b   :  { %2892 = vmatpush2.bf16.msra.mxu1 %v5893_v59  ;;  %v7823_v51 = vpop.f32.mrf.mxu0  ;;  %2850 = vmatprep.subr.bf16.mxu0 %v5758_v15  ;;  %v7827_v55 = vpop.f32.mrf.mxu1  ;;  %v70_v59 = vld [vmem:[%s9351_s1 + $0xd8] sm:$0xff]  ;;  %v309_v15 = vld [vmem:[%s9351_s1 + $0x850] sm:$0xff] }
 0x10c   :  { %v7825_v54 = vadd.f32 %v2553_v50, %v2511_v49  ;;  %2893 = vmatprep.subr.bf16.mxu1 %v5886_v43  ;;  %v5728_v43 = vcombine.high %v78_v38, %v82_v39  ;;  %v5958_v47 = vcombine.high %v309_v15, %v313_v44  ;;  %v66_v49 = vld [vmem:[%s9351_s1 + $0xb8] sm:$0xff]  ;;  %v389_v38 = vld [vmem:[%s9351_s1 + $0xad0] sm:$0xff] }
 0x10d   :  { %v2514_v58 = vpop.f32.mrf.mxu0  ;;  %v2557_v63 = vpop.f32.mrf.mxu1  ;;  %v5712_v61 = vcombine.high %v62_v48, %v66_v49 }
 0x10e   :  { %v2515_v62 = vadd.f32 %v2514_v58, %v440_v42  ;;  %2851 = vmatpush2.bf16.msra.mxu0 %v5757_v56  ;;  %v5966_v42 = vcombine.high %v317_v36, %v321_v37  ;;  %v301_v56 = vld [vmem:[%s9351_s1 + $0x810] sm:$0xff]  ;;  %v58_v58 = vld [vmem:[%s9351_s1 + $0x78] sm:$0xff] }
 0x10f   :  { %2894 = vmatpush2.bf16.msra.mxu1 %v5885_v52  ;;  %2906 = vmatprep.subr.bf16.mxu0 %v6006_v53  ;;  %v305_v52 = vld [vmem:[%s9351_s1 + $0x830] sm:$0xff]  ;;  %v5957_v53 = vcombine.low %v309_v15, %v313_v44  ;;  %v5704_v5 = vcombine.high %v54_v57, %v58_v58  ;;  %v150_v36 = vld [vmem:[%s9351_s1 + $0x358] sm:$0xff] }
 0x110   :  { %v7841_v2 = vadd.f32 %v2557_v63, %v2515_v62  ;;  %2963 = vmatprep.subr.bf16.mxu1 %v6078_v12  ;;  %v5950_v31 = vcombine.high %v301_v56, %v305_v52  ;;  %v425_v62 = vld [vmem:[%s9351_s1 + $0xbf0] sm:$0xff]  ;;  %v5711_v63 = vcombine.low %v62_v48, %v66_v49  ;;  %v154_v37 = vld [vmem:[%s9351_s1 + $0x378] sm:$0xff] }
 0x111   :  { %2853 = vmatmul.mubr.bf16.vlgmr.msra.gmra.mxu0 %v7852_v6  ;;  %v146_v15 = vld [vmem:[%s9351_s1 + $0x338] sm:$0xff]  ;;  %v5800_v44 = vcombine.high %v150_v36, %v154_v37 }
 0x112   :  { %2896 = vmatmul.mubr.bf16.vlgmr.msra.gmra.mxu1 %v6900_v7  ;;  %2907 = vmatpush1.bf16.msra.mxu0 %v6005_v22  ;;  %v5949_v22 = vcombine.low %v301_v56, %v305_v52  ;;  %v417_v7 = vld [vmem:[%s9351_s1 + $0xbb0] sm:$0xff]  ;;  %v134_v49 = vld [vmem:[%s9351_s1 + $0x2d8] sm:$0xff] }
 0x113   :  { %2964 = vmatpush1.bf16.msra.mxu1 %v6077_v0  ;;  %2908 = vmatprep.subr.bf16.mxu0 %v5998_v1  ;;  %v6070_v0 = vcombine.high %v421_v60, %v425_v62  ;;  %v46_v1 = vld [vmem:[%s9351_s1 + $0x18] sm:$0xff]  ;;  %v6062_v10 = vcombine.high %v413_v4, %v417_v7  ;;  %v373_v56 = vld [vmem:[%s9351_s1 + $0xa50] sm:$0xff] }
 0x114   :  { %2981 = vmatprep.mubr.bf16.mxu1 %v6909_v25  ;;  %2992 = vmatprep.subr.bf16.mxu1 %v5752_v3  ;;  %v50_v3 = vld [vmem:[%s9351_s1 + $0x38] sm:$0xff] }
 0x115   :  { %2938 = vmatprep.mubr.bf16.mxu0 %v7874_v16  ;;  %v5695_v21 = vcombine.low %v46_v1, %v50_v3 }
 0x116   :  { %2909 = vmatpush1.bf16.msra.mxu0 %v5997_v8  ;;  %v6069_v8 = vcombine.low %v421_v60, %v425_v62  ;;  %v126_v60 = vld [vmem:[%s9351_s1 + $0x298] sm:$0xff]  ;;  %v365_v62 = vld [vmem:[%s9351_s1 + $0xa10] sm:$0xff] }
 0x117   :  { %2910 = vmatprep.subr.bf16.mxu0 %v5990_v9  ;;  %v5703_v9 = vcombine.low %v54_v57, %v58_v58 }
 0x11a   :  { %6083 = vmatmul.mubr.msk.bf16.vlgmr.msra.gmra.mxu1 %vm2472_vm0, %v6902_v29  ;;  %2911 = vmatpush1.bf16.msra.mxu0 %v5989_v17  ;;  %v5696_v17 = vcombine.high %v46_v1, %v50_v3  ;;  %v5816_v29 = vcombine.high %v166_v11, %v170_v13  ;;  %v8028_v1 = vpop.f32.mrf.mxu0 }
 0x11b   :  { %2993 = vmatpush1.bf16.msra.mxu1 %v5751_v18  ;;  %2912 = vmatprep.subr.bf16.mxu0 %v5982_v20  ;;  %v409_v18 = vld [vmem:[%s9351_s1 + $0xb70] sm:$0xff]  ;;  %v6061_v20 = vcombine.low %v413_v4, %v417_v7  ;;  %v118_v7 = vld [vmem:[%s9351_s1 + $0x258] sm:$0xff] }
 0x11c   :  { %2994 = vmatprep.subr.bf16.mxu1 %v5744_v26  ;;  %3024 = vmatprep.mubr.bf16.mxu1 %v7646_v23  ;;  %v74_v23 = vld [vmem:[%s9351_s1 + $0xf8] sm:$0xff]  ;;  %v6054_v24 = vcombine.high %v405_v14, %v409_v18 }
 0x11d   :  { %v5720_v50 = vcombine.high %v70_v59, %v74_v23  ;;  %v5719_v12 = vcombine.low %v70_v59, %v74_v23  ;;  %v158_v26 = vld [vmem:[%s9351_s1 + $0x398] sm:$0xff] }
 0x11e   :  { %2913 = vmatpush1.bf16.msra.mxu0 %v5981_v30  ;;  %v401_v30 = vld [vmem:[%s9351_s1 + $0xb30] sm:$0xff]  ;;  %v5808_v39 = vcombine.high %v158_v26, %v162_v27  ;;  %v142_v23 = vld [vmem:[%s9351_s1 + $0x318] sm:$0xff] }
 0x11f   :  { %2995 = vmatpush1.bf16.msra.mxu1 %v5743_v33  ;;  %2914 = vmatprep.subr.bf16.mxu0 %v5974_v34  ;;  %v6053_v33 = vcombine.low %v405_v14, %v409_v18  ;;  %v5815_v34 = vcombine.low %v166_v11, %v170_v13  ;;  %v5792_v52 = vcombine.high %v142_v23, %v146_v15  ;;  %v234_v11 = vld [vmem:[%s9351_s1 + $0x5f8] sm:$0xff] }
 0x120   :  { %2996 = vmatprep.subr.bf16.mxu1 %v5736_v35  ;;  %v6046_v35 = vcombine.high %v397_v28, %v401_v30  ;;  %v5791_v57 = vcombine.low %v142_v23, %v146_v15  ;;  %v218_v23 = vld [vmem:[%s9351_s1 + $0x578] sm:$0xff]  ;;  %v8075_v15 = vld [vmem:[%s9352_s0 + $0x10] ss:$28 sps:$4 sm:$0xff]  }
 0x122   :  { %2915 = vmatpush1.bf16.msra.mxu0 %v5973_v40  ;;  %v393_v40 = vld [vmem:[%s9351_s1 + $0xaf0] sm:$0xff] }
 0x123   :  { %2997 = vmatpush1.bf16.msra.mxu1 %v5735_v41  ;;  %2916 = vmatprep.subr.bf16.mxu0 %v5966_v42  ;;  %v6045_v41 = vcombine.low %v397_v28, %v401_v30  ;;  %v5807_v42 = vcombine.low %v158_v26, %v162_v27  ;;  %v6038_v59 = vcombine.high %v389_v38, %v393_v40  ;;  %v110_v26 = vld [vmem:[%s9351_s1 + $0x218] sm:$0xff] }
 0x124   :  { %2998 = vmatprep.subr.bf16.mxu1 %v5728_v43  ;;  %v381_v43 = vld [vmem:[%s9351_s1 + $0xa90] sm:$0xff]  ;;  %v114_v27 = vld [vmem:[%s9351_s1 + $0x238] sm:$0xff] }
 0x125   :  { %v226_v30 = vld [vmem:[%s9351_s1 + $0x5b8] sm:$0xff] }
 0x126   :  { %2917 = vmatpush1.bf16.msra.mxu0 %v5965_v45  ;;  %v385_v45 = vld [vmem:[%s9351_s1 + $0xab0] sm:$0xff] }
 0x127   :  { %2999 = vmatpush1.bf16.msra.mxu1 %v5727_v46  ;;  %2918 = vmatprep.subr.bf16.mxu0 %v5958_v47  ;;  %v6037_v46 = vcombine.low %v389_v38, %v393_v40  ;;  %v5799_v47 = vcombine.low %v150_v36, %v154_v37  ;;  %v6030_v48 = vcombine.high %v381_v43, %v385_v45  ;;  %v362_v40 = vld [vmem:[%s9351_s1 + $0x9f8] sm:$0xff] }
 0x128   :  { %3000 = vmatprep.subr.bf16.mxu1 %v5720_v50  ;;  %v138_v50 = vld [vmem:[%s9351_s1 + $0x2f8] sm:$0xff] }
 0x129   :  { %v5783_v4 = vcombine.low %v134_v49, %v138_v50 }
 0x12a   :  { %2919 = vmatpush1.bf16.msra.mxu0 %v5957_v53  ;;  %v377_v53 = vld [vmem:[%s9351_s1 + $0xa70] sm:$0xff] }
 0x12b   :  { %3001 = vmatpush1.bf16.msra.mxu1 %v5719_v12  ;;  %2920 = vmatprep.subr.bf16.mxu0 %v5950_v31  ;;  %v6029_v12 = vcombine.low %v381_v43, %v385_v45  ;;  %v8014_v31 = vpop.f32.mrf.mxu1  ;;  %v6022_v58 = vcombine.high %v373_v56, %v377_v53  ;;  %v6904_v45 = vld [vmem:[%s9352_s0 + $0xc] ss:$28 sps:$4 sm:$0xff]  }
 0x12c   :  { %3002 = vmatprep.subr.bf16.mxu1 %v5712_v61  ;;  %v130_v61 = vld [vmem:[%s9351_s1 + $0x2b8] sm:$0xff] }
 0x12d   :  { %v2639_v3 = vpop.f32.mrf.mxu1 }
 0x12e   :  { %2921 = vmatpush1.bf16.msra.mxu0 %v5949_v22  ;;  %v5784_v22 = vcombine.high %v134_v49, %v138_v50 }
 0x12f   :  { %3003 = vmatpush1.bf16.msra.mxu1 %v5711_v63  ;;  %2922 = vmatprep.subr.bf16.mxu0 %v6070_v0  ;;  %v369_v63 = vld [vmem:[%s9351_s1 + $0xa30] sm:$0xff]  ;;  %v6021_v0 = vcombine.low %v373_v56, %v377_v53  ;;  %v8043_v18 = vpop.f32.mrf.mxu1  ;;  %v206_v56 = vld [vmem:[%s9351_s1 + $0x518] sm:$0xff] }
 0x130   :  { %3004 = vmatprep.subr.bf16.mxu1 %v5704_v5  ;;  %v6014_v5 = vcombine.high %v365_v62, %v369_v63  ;;  %v350_v53 = vld [vmem:[%s9351_s1 + $0x998] sm:$0xff] }
 0x131   :  { %v2643_v36 = vpop.f32.mrf.mxu1 }
 0x132   :  { %2923 = vmatpush2.bf16.msra.mxu0 %v6069_v8  ;;  %v122_v8 = vld [vmem:[%s9351_s1 + $0x278] sm:$0xff] }
 0x133   :  { %3005 = vmatpush1.bf16.msra.mxu1 %v5703_v9  ;;  %2924 = vmatprep.subr.bf16.mxu0 %v6062_v10  ;;  %v230_v9 = vld [vmem:[%s9351_s1 + $0x5d8] sm:$0xff]  ;;  %v5776_v10 = vcombine.high %v126_v60, %v130_v61  ;;  %v5767_v37 = vcombine.low %v118_v7, %v122_v8 }
 0x134   :  { %3006 = vmatprep.subr.bf16.mxu1 %v5696_v17  ;;  %v6013_v17 = vcombine.low %v365_v62, %v369_v63  ;;  %v342_v63 = vld [vmem:[%s9351_s1 + $0x958] sm:$0xff] }
 0x136   :  { %2925 = vmatpush2.bf16.msra.mxu0 %v6061_v20 }
 0x137   :  { %3007 = vmatpush1.bf16.msra.mxu1 %v5695_v21  ;;  %2926 = vmatprep.subr.bf16.mxu0 %v6054_v24  ;;  %v5775_v21 = vcombine.low %v126_v60, %v130_v61  ;;  %v5880_v24 = vcombine.high %v230_v9, %v234_v11  ;;  %v198_v60 = vld [vmem:[%s9351_s1 + $0x4d8] sm:$0xff] }
 0x138   :  { %3008 = vmatprep.subr.bf16.mxu1 %v5816_v29  ;;  %v5768_v29 = vcombine.high %v118_v7, %v122_v8  ;;  %v202_v61 = vld [vmem:[%s9351_s1 + $0x4f8] sm:$0xff] }
 0x139   :  { %v194_v7 = vld [vmem:[%s9351_s1 + $0x4b8] sm:$0xff] }
 0x13a   :  { %2927 = vmatpush2.bf16.msra.mxu0 %v6053_v33 }
 0x13b   :  { %3009 = vmatpush2.bf16.msra.mxu1 %v5815_v34  ;;  %2928 = vmatprep.subr.bf16.mxu0 %v6046_v35  ;;  %v5879_v35 = vcombine.low %v230_v9, %v234_v11  ;;  %v5848_v9 = vcombine.high %v198_v60, %v202_v61 }
 0x13c   :  { %3010 = vmatprep.subr.bf16.mxu1 %v5808_v39  ;;  %v358_v39 = vld [vmem:[%s9351_s1 + $0x9d8] sm:$0xff] }
 0x13d   :  { %v6008_v50 = vcombine.high %v358_v39, %v362_v40  ;;  %v6007_v62 = vcombine.low %v358_v39, %v362_v40  ;;  %v298_v39 = vld [vmem:[%s9351_s1 + $0x7f8] sm:$0xff] }
 0x13e   :  { %2929 = vmatpush2.bf16.msra.mxu0 %v6045_v41 }
 0x13f   :  { %3011 = vmatpush2.bf16.msra.mxu1 %v5807_v42  ;;  %2930 = vmatprep.subr.bf16.mxu0 %v6038_v59  ;;  %v5760_v59 = vcombine.high %v110_v26, %v114_v27 }
 0x140   :  { %3012 = vmatprep.subr.bf16.mxu1 %v5800_v44 }
 0x142   :  { %2931 = vmatpush2.bf16.msra.mxu0 %v6037_v46  ;;  %v5759_v46 = vcombine.low %v110_v26, %v114_v27  ;;  %v186_v26 = vld [vmem:[%s9351_s1 + $0x478] sm:$0xff] }
 0x143   :  { %3013 = vmatpush2.bf16.msra.mxu1 %v5799_v47  ;;  %2932 = vmatprep.subr.bf16.mxu0 %v6030_v48  ;;  %v330_v27 = vld [vmem:[%s9351_s1 + $0x8f8] sm:$0xff] }
 0x144   :  { %3014 = vmatprep.subr.bf16.mxu1 %v5792_v52  ;;  %v210_v52 = vld [vmem:[%s9351_s1 + $0x538] sm:$0xff] }
 0x146   :  { %2933 = vmatpush2.bf16.msra.mxu0 %v6029_v12  ;;  %v354_v12 = vld [vmem:[%s9351_s1 + $0x9b8] sm:$0xff] }
 0x147   :  { %3015 = vmatpush2.bf16.msra.mxu1 %v5791_v57  ;;  %2934 = vmatprep.subr.bf16.mxu0 %v6022_v58  ;;  %v5999_v8 = vcombine.low %v350_v53, %v354_v12 }
 0x148   :  { %3016 = vmatprep.subr.bf16.mxu1 %v5784_v22  ;;  %v5856_v22 = vcombine.high %v206_v56, %v210_v52 }
 0x149   :  { %v2596_v13 = vpop.f32.mrf.mxu0 }
 0x14a   :  { %v2597_v14 = vadd.f32 %v2596_v13, %v7825_v54  ;;  %2935 = vmatpush2.bf16.msra.mxu0 %v6021_v0  ;;  %v222_v54 = vld [vmem:[%s9351_s1 + $0x598] sm:$0xff]  ;;  %v5847_v13 = vcombine.low %v198_v60, %v202_v61 }
 0x14b   :  { %3017 = vmatpush2.bf16.msra.mxu1 %v5783_v4  ;;  %v8045_v20 = vpop.f32.mrf.mxu0  ;;  %2936 = vmatprep.subr.bf16.mxu0 %v6014_v5  ;;  %v5872_v38 = vcombine.high %v222_v54, %v226_v30  ;;  %v5871_v44 = vcombine.low %v222_v54, %v226_v30  ;;  %v346_v0 = vld [vmem:[%s9351_s1 + $0x978] sm:$0xff]  ;;  %v5855_v4 = vcombine.low %v206_v56, %v210_v52 }
 0x14c   :  { %v2640_v28 = vadd.f32 %v2639_v3, %v2597_v14  ;;  %3018 = vmatprep.subr.bf16.mxu1 %v5776_v10  ;;  %v6000_v3 = vcombine.high %v350_v53, %v354_v12  ;;  %v190_v5 = vld [vmem:[%s9351_s1 + $0x498] sm:$0xff]  ;;  %v5992_v11 = vcombine.high %v342_v63, %v346_v0  ;;  %v5991_v14 = vcombine.low %v342_v63, %v346_v0 }
 0x14d   :  { %v2600_v33 = vpop.f32.mrf.mxu0  ;;  %v334_v10 = vld [vmem:[%s9351_s1 + $0x918] sm:$0xff]  ;;  %v5839_v54 = vcombine.low %v190_v5, %v194_v7 }
 0x14e   :  { %v2601_v34 = vadd.f32 %v2600_v33, %v7841_v2  ;;  %2937 = vmatpush2.bf16.msra.mxu0 %v6013_v17  ;;  %v3180_v41 = vmul.f32 0.2, %v2640_v28  ;;  %v214_v2 = vld [vmem:[%s9351_s1 + $0x558] sm:$0xff]  ;;  %vm3164_vm1 = vcmp.gt.f32.partialorder %v2640_v28, 0.0  ;;  %v5840_v17 = vcombine.high %v190_v5, %v194_v7 }
 0x14f   :  { %3019 = vmatpush2.bf16.msra.mxu1 %v5775_v21  ;;  %3035 = vmatprep.subr.bf16.mxu0 %v5880_v24  ;;  %v5864_v47 = vcombine.high %v214_v2, %v218_v23  ;;  %v5863_v58 = vcombine.low %v214_v2, %v218_v23  ;;  %v182_v24 = vld [vmem:[%s9351_s1 + $0x458] sm:$0xff] }
 0x150   :  { %v2644_v42 = vadd.f32 %v2643_v36, %v2601_v34  ;;  %3020 = vmatprep.subr.bf16.mxu1 %v5768_v29  ;;  %v3196_v48 = vsel %vm3164_vm1, %v2640_v28, %v3180_v41  ;;  %v174_v28 = vld [vmem:[%s9351_s1 + $0x418] sm:$0xff]  ;;  %v5832_v33 = vcombine.high %v182_v24, %v186_v26 }
 0x151   :  { %2939 = vmatmul.mubr.bf16.vlgmr.msra.gmra.mxu0 %v8075_v15  ;;  %v178_v29 = vld [vmem:[%s9351_s1 + $0x438] sm:$0xff] }
 0x152   :  { %vm3172_vm2 = vcmp.gt.f32.partialorder %v2644_v42, 0.0  ;;  %v3188_v43 = vmul.f32 0.2, %v2644_v42  ;;  %3036 = vmatpush1.bf16.msra.mxu0 %v5879_v35  ;;  %3067 = vmatprep.mubr.bf16.mxu0 %v6904_v45  ;;  %v318_v34 = vld [vmem:[%s9351_s1 + $0x898] sm:$0xff]  ;;  %v5824_v41 = vcombine.high %v174_v28, %v178_v29  ;;  %v5823_v23 = vcombine.low %v174_v28, %v178_v29 }
 0x153   :  { %3021 = vmatpush2.bf16.msra.mxu1 %v5767_v37  ;;  %3037 = vmatprep.subr.bf16.mxu0 %v5872_v38  ;;  %v322_v35 = vld [vmem:[%s9351_s1 + $0x8b8] sm:$0xff]  ;;  %v5831_v37 = vcombine.low %v182_v24, %v186_v26 }
 0x154   :  { %v3204_v49 = vsel %vm3172_vm2, %v2644_v42, %v3188_v43  ;;  %3022 = vmatprep.subr.bf16.mxu1 %v5760_v59  ;;  %v294_v38 = vld [vmem:[%s9351_s1 + $0x7d8] sm:$0xff]  ;;  %v5968_v2 = vcombine.high %v318_v34, %v322_v35  ;;  %v5967_v45 = vcombine.low %v318_v34, %v322_v35 }
 0x155   :  { %v8093_v57 = vpack.c.bf16 %v3204_v49, %v3196_v48  ;;  %v310_v42 = vld [vmem:[%s9351_s1 + $0x858] sm:$0xff] }
 0x156   :  { %3038 = vmatpush1.bf16.msra.mxu0 %v5871_v44  ;;  %v314_v59 = vld [vmem:[%s9351_s1 + $0x878] sm:$0xff] }
 0x157   :  { %3023 = vmatpush2.bf16.msra.mxu1 %v5759_v46  ;;  %3039 = vmatprep.subr.bf16.mxu0 %v5864_v47  ;;  %v286_v43 = vld [vmem:[%s9351_s1 + $0x798] sm:$0xff]  ;;  %v5944_v46 = vcombine.high %v294_v38, %v298_v39  ;;  %v5960_v49 = vcombine.high %v310_v42, %v314_v59  ;;  %v5959_v53 = vcombine.low %v310_v42, %v314_v59  ;;  %v8236_v42 = vld [vmem:[%s9353_s2] sm:$0xff] }
 0x158   :  { %3078 = vmatprep.subr.bf16.mxu1 %v6008_v50  ;;  %v290_v44 = vld [vmem:[%s9351_s1 + $0x7b8] sm:$0xff]  ;;  %v5943_v50 = vcombine.low %v294_v38, %v298_v39 }
 0x159   :  { %v302_v47 = vld [vmem:[%s9351_s1 + $0x818] sm:$0xff]  ;;  %v5936_v12 = vcombine.high %v286_v43, %v290_v44 }
 0x15a   :  { %3025 = vmatmul.mubr.bf16.vlgmr.msra.gmra.mxu1 %v7852_v6  ;;  %3040 = vmatpush1.bf16.msra.mxu0 %v5863_v58  ;;  %v338_v6 = vld [vmem:[%s9351_s1 + $0x938] sm:$0xff] }
 0x15b   :  { %3079 = vmatpush1.bf16.msra.mxu1 %v6007_v62  ;;  %3041 = vmatprep.subr.bf16.mxu0 %v5856_v22  ;;  %v5984_v21 = vcombine.high %v334_v10, %v338_v6  ;;  %v5983_v30 = vcombine.low %v334_v10, %v338_v6  ;;  %v306_v48 = vld [vmem:[%s9351_s1 + $0x838] sm:$0xff]  ;;  %v5935_v62 = vcombine.low %v286_v43, %v290_v44 }
 0x15c   :  { %3080 = vmatprep.subr.bf16.mxu1 %v6000_v3  ;;  %3110 = vmatprep.mubr.bf16.mxu1 %v7874_v16  ;;  %v326_v16 = vld [vmem:[%s9351_s1 + $0x8d8] sm:$0xff]  ;;  %v5952_v61 = vcombine.high %v302_v47, %v306_v48  ;;  %v5951_v0 = vcombine.low %v302_v47, %v306_v48 }
 0x15d   :  { %v5976_v36 = vcombine.high %v326_v16, %v330_v27  ;;  %v5975_v40 = vcombine.low %v326_v16, %v330_v27  ;;  %v278_v56 = vld [vmem:[%s9351_s1 + $0x758] sm:$0xff] }
 0x15e   :  { %3042 = vmatpush1.bf16.msra.mxu0 %v5855_v4  ;;  %v282_v52 = vld [vmem:[%s9351_s1 + $0x778] sm:$0xff] }
 0x15f   :  { %3081 = vmatpush1.bf16.msra.mxu1 %v5999_v8  ;;  %3043 = vmatprep.subr.bf16.mxu0 %v5848_v9  ;;  %v422_v58 = vld [vmem:[%s9351_s1 + $0xbd8] sm:$0xff]  ;;  %v5928_v3 = vcombine.high %v278_v56, %v282_v52  ;;  %v5927_v8 = vcombine.low %v278_v56, %v282_v52 }
 0x160   :  { %3082 = vmatprep.subr.bf16.mxu1 %v5992_v11  ;;  %v426_v60 = vld [vmem:[%s9351_s1 + $0xbf8] sm:$0xff] }
 0x161   :  { %v270_v22 = vld [vmem:[%s9351_s1 + $0x718] sm:$0xff]  ;;  %v6072_v7 = vcombine.high %v422_v58, %v426_v60  ;;  %v6071_v6 = vcombine.low %v422_v58, %v426_v60  ;;  %v2602_v60 = vpop.f32.mrf.mxu0 }
 0x162   :  { %3044 = vmatpush1.bf16.msra.mxu0 %v5847_v13  ;;  %v274_v63 = vld [vmem:[%s9351_s1 + $0x738] sm:$0xff] }
 0x163   :  { %3083 = vmatpush1.bf16.msra.mxu1 %v5991_v14  ;;  %3045 = vmatprep.subr.bf16.mxu0 %v5840_v17  ;;  %v414_v4 = vld [vmem:[%s9351_s1 + $0xb98] sm:$0xff]  ;;  %v5920_v11 = vcombine.high %v270_v22, %v274_v63 }
 0x164   :  { %3084 = vmatprep.subr.bf16.mxu1 %v5984_v21  ;;  %v418_v5 = vld [vmem:[%s9351_s1 + $0xbb8] sm:$0xff]  ;;  %v5919_v21 = vcombine.low %v270_v22, %v274_v63 }
 0x165   :  { %v262_v9 = vld [vmem:[%s9351_s1 + $0x6d8] sm:$0xff]  ;;  %v6064_v17 = vcombine.high %v414_v4, %v418_v5  ;;  %v6063_v16 = vcombine.low %v414_v4, %v418_v5  ;;  %v451_v5 = vsub.s32 3, %v7778_v19 }
 0x166   :  { %3046 = vmatpush1.bf16.msra.mxu0 %v5839_v54  ;;  %v266_v10 = vld [vmem:[%s9351_s1 + $0x6f8] sm:$0xff] }
 0x167   :  { %3085 = vmatpush1.bf16.msra.mxu1 %v5983_v30  ;;  %3047 = vmatprep.subr.bf16.mxu0 %v5832_v33  ;;  %v406_v13 = vld [vmem:[%s9351_s1 + $0xb58] sm:$0xff]  ;;  %v5912_v27 = vcombine.high %v262_v9, %v266_v10  ;;  %v8218_v30 = vsub.s32 1, %v7778_v19  ;;  %v5911_v33 = vcombine.low %v262_v9, %v266_v10 }
 0x168   :  { %3086 = vmatprep.subr.bf16.mxu1 %v5976_v36  ;;  %v410_v14 = vld [vmem:[%s9351_s1 + $0xb78] sm:$0xff] }
 0x169   :  { %v254_v24 = vld [vmem:[%s9351_s1 + $0x698] sm:$0xff]  ;;  %v6056_v29 = vcombine.high %v406_v13, %v410_v14  ;;  %v6055_v36 = vcombine.low %v406_v13, %v410_v14  ;;  %v444_v59 = vrot.slane %v8236_v42, %v8218_v30 }
 0x16a   :  { %3048 = vmatpush1.bf16.msra.mxu0 %v5831_v37  ;;  %v258_v26 = vld [vmem:[%s9351_s1 + $0x6b8] sm:$0xff] }
 0x16b   :  { %3087 = vmatpush1.bf16.msra.mxu1 %v5975_v40  ;;  %3049 = vmatprep.subr.bf16.mxu0 %v5824_v41  ;;  %v398_v54 = vld [vmem:[%s9351_s1 + $0xb18] sm:$0xff]  ;;  %v5904_v37 = vcombine.high %v254_v24, %v258_v26  ;;  %v447_v40 = vsub.s32 2, %v7778_v19 }
 0x16c   :  { %3088 = vmatprep.subr.bf16.mxu1 %v5968_v2  ;;  %v402_v28 = vld [vmem:[%s9351_s1 + $0xb38] sm:$0xff]  ;;  %v2645_v2 = vpop.f32.mrf.mxu1 }
 0x16d   :  { %v246_v34 = vld [vmem:[%s9351_s1 + $0x658] sm:$0xff]  ;;  %v6048_v41 = vcombine.high %v398_v54, %v402_v28 }
 0x16e   :  { %3050 = vmatpush1.bf16.msra.mxu0 %v5823_v23  ;;  %v250_v35 = vld [vmem:[%s9351_s1 + $0x678] sm:$0xff]  ;;  %v5903_v23 = vcombine.low %v254_v24, %v258_v26  ;;  %v2682_v56 = vpop.f32.mrf.mxu1 }
 0x16f   :  { %3089 = vmatpush1.bf16.msra.mxu1 %v5967_v45  ;;  %3051 = vmatprep.subr.bf16.mxu0 %v5944_v46  ;;  %v390_v38 = vld [vmem:[%s9351_s1 + $0xad8] sm:$0xff]  ;;  %v6047_v45 = vcombine.low %v398_v54, %v402_v28  ;;  %v5896_v46 = vcombine.high %v246_v34, %v250_v35 }
 0x170   :  { %3090 = vmatprep.subr.bf16.mxu1 %v5960_v49  ;;  %v394_v39 = vld [vmem:[%s9351_s1 + $0xaf8] sm:$0xff]  ;;  %v2517_v49 = vadd.f32 %v8028_v1, %v444_v59 }
 0x171   :  { %v238_v43 = vld [vmem:[%s9351_s1 + $0x618] sm:$0xff]  ;;  %v6040_v52 = vcombine.high %v390_v38, %v394_v39 }
 0x172   :  { %3052 = vmatpush2.bf16.msra.mxu0 %v5943_v50  ;;  %v242_v44 = vld [vmem:[%s9351_s1 + $0x638] sm:$0xff]  ;;  %v8256_v50 = vrot.slane %v8236_v42, %v447_v40  ;;  %v2560_v63 = vadd.f32 %v8014_v31, %v2517_v49 }
 0x173   :  { %3091 = vmatpush1.bf16.msra.mxu1 %v5959_v53  ;;  %3053 = vmatprep.subr.bf16.mxu0 %v5936_v12  ;;  %v382_v47 = vld [vmem:[%s9351_s1 + $0xa98] sm:$0xff]  ;;  %v2513_v53 = vadd.f32 %v7823_v51, %v444_v59  ;;  %v5895_v12 = vcombine.low %v246_v34, %v250_v35 }
 0x174   :  { %3092 = vmatprep.subr.bf16.mxu1 %v5952_v61  ;;  %v386_v48 = vld [vmem:[%s9351_s1 + $0xab8] sm:$0xff]  ;;  %v6039_v61 = vcombine.low %v390_v38, %v394_v39  ;;  %v2603_v9 = vadd.f32 %v2602_v60, %v2560_v63  ;;  %v6428_v60 = vld [vmem:[%s9354_s3 + $0x2c4] ss:$16 sps:$4 sm:$0xff]   ;;  %v6423_v63 = vld [vmem:[%s9354_s3 + $0xc0] ss:$16 sps:$4 sm:$0xff]  }
 0x175   :  { %v430_v58 = vld [vmem:[%s9351_s1 + $0xc18] sm:$0xff]  ;;  %v6032_v4 = vcombine.high %v382_v47, %v386_v48  ;;  %v6031_v13 = vcombine.low %v382_v47, %v386_v48 }
 0x176   :  { %3054 = vmatpush2.bf16.msra.mxu0 %v5935_v62  ;;  %v434_v1 = vld [vmem:[%s9351_s1 + $0xc38] sm:$0xff]  ;;  %v5888_v62 = vcombine.high %v238_v43, %v242_v44 }
 0x177   :  { %3093 = vmatpush1.bf16.msra.mxu1 %v5951_v0  ;;  %3055 = vmatprep.subr.bf16.mxu0 %v5928_v3  ;;  %v374_v22 = vld [vmem:[%s9351_s1 + $0xa58] sm:$0xff]  ;;  %v2683_v0 = vadd.f32 %v2682_v56, %v8256_v50  ;;  %v2684_v3 = vpop.f32.mrf.mxu1  ;;  %v6080_v31 = vcombine.high %v430_v58, %v434_v1  ;;  %v6420_v56 = vld [vmem:[%s9354_s3 + $0x2e0] ss:$16 sps:$4 sm:$0xff]  }
 0x178   :  { %3094 = vmatprep.subr.bf16.mxu1 %v6072_v7  ;;  %v378_v51 = vld [vmem:[%s9351_s1 + $0xa78] sm:$0xff] }
 0x179   :  { %v366_v26 = vld [vmem:[%s9351_s1 + $0xa18] sm:$0xff]  ;;  %v6023_v28 = vcombine.low %v374_v22, %v378_v51 }
 0x17a   :  { %3056 = vmatpush2.bf16.msra.mxu0 %v5927_v8  ;;  %v2556_v8 = vadd.f32 %v7827_v55, %v2513_v53  ;;  %v452_v55 = vrot.slane %v8236_v42, %v451_v5 }
 0x17b   :  { %3095 = vmatpush2.bf16.msra.mxu1 %v6071_v6  ;;  %3057 = vmatprep.subr.bf16.mxu0 %v5920_v11  ;;  %v5887_v6 = vcombine.low %v238_v43, %v242_v44  ;;  %v6422_v44 = vld [vmem:[%s9354_s3 + $0x2e4] ss:$16 sps:$4 sm:$0xff]  }
 0x17c   :  { %3096 = vmatprep.subr.bf16.mxu1 %v6064_v17  ;;  %v2599_v14 = vadd.f32 %v8045_v20, %v2556_v8  ;;  %v8278_v17 = vpop.f32.mrf.mxu1  ;;  %v6079_v20 = vcombine.low %v430_v58, %v434_v1  ;;  %v6425_v1 = vld [vmem:[%s9354_s3 + $0xc4] ss:$16 sps:$4 sm:$0xff]  }
 0x17e   :  { %3058 = vmatpush2.bf16.msra.mxu0 %v5919_v21  ;;  %v6024_v21 = vcombine.high %v374_v22, %v378_v51  ;;  %v2688_v34 = vpop.f32.mrf.mxu1 }
 0x17f   :  { %3097 = vmatpush2.bf16.msra.mxu1 %v6063_v16  ;;  %3059 = vmatprep.subr.bf16.mxu0 %v5912_v27  ;;  %v370_v16 = vld [vmem:[%s9351_s1 + $0xa38] sm:$0xff]  ;;  %v2646_v27 = vadd.f32 %v2645_v2, %v2603_v9  ;;  %v2689_v47 = vadd.f32 %v2688_v34, %v452_v55  ;;  %v6429_v9 = vld [vmem:[%s9354_s3 + $0xa0] ss:$16 sps:$4 sm:$0xff]  }
 0x180   :  { %3098 = vmatprep.subr.bf16.mxu1 %v6056_v29  ;;  %v6419_v29 = vld [vmem:[%s9354_s3 + $0xe4] ss:$16 sps:$4 sm:$0xff]   ;;  %v6016_v35 = vcombine.high %v366_v26, %v370_v16  ;;  %v6015_v2 = vcombine.low %v366_v26, %v370_v16  ;;  %v6438_v26 = vld [vmem:[%s9354_s3 + $0x280] ss:$16 sps:$4 sm:$0xff]  }
 0x181   :  { %v3189_v39 = vmul.f32 0.2, %v2646_v27  ;;  %vm3173_vm3 = vcmp.gt.f32.partialorder %v2646_v27, 0.0  ;;  %v6443_v16 = vld [vmem:[%s9354_s3 + $0x64] ss:$16 sps:$4 sm:$0xff]  }
 0x182   :  { %3060 = vmatpush2.bf16.msra.mxu0 %v5911_v33  ;;  %v2642_v33 = vadd.f32 %v8043_v18, %v2599_v14  ;;  %v6440_v14 = vld [vmem:[%s9354_s3 + $0x284] ss:$16 sps:$4 sm:$0xff]   ;;  %v6450_v34 = vld [vmem:[%s9354_s3 + $0x240] ss:$16 sps:$4 sm:$0xff]  }
 0x183   :  { %3099 = vmatpush2.bf16.msra.mxu1 %v6055_v36  ;;  %3061 = vmatprep.subr.bf16.mxu0 %v5904_v37  ;;  %v2685_v36 = vadd.f32 %v2684_v3, %v452_v55  ;;  %v6906_v37 = vld [vmem:[%s9352_s0 + $0x8] ss:$28 sps:$4 sm:$0xff]   ;;  %v3205_v49 = vsel %vm3173_vm3, %v2646_v27, %v3189_v39  ;;  %v6435_v55 = vld [vmem:[%s9354_s3 + $0x80] ss:$16 sps:$4 sm:$0xff]  }
 0x184   :  { %3100 = vmatprep.subr.bf16.mxu1 %v6048_v41  ;;  %vm3165_vm4 = vcmp.gt.f32.partialorder %v2642_v33, 0.0  ;;  %v6431_v3 = vld [vmem:[%s9354_s3 + $0xa4] ss:$16 sps:$4 sm:$0xff]   ;;  %v6456_v39 = vld [vmem:[%s9354_s3 + $0x220] ss:$16 sps:$4 sm:$0xff]  }
 0x185   :  { %v6446_v27 = vld [vmem:[%s9354_s3 + $0x264] ss:$16 sps:$4 sm:$0xff]  }
 0x186   :  { %3062 = vmatpush2.bf16.msra.mxu0 %v5903_v23  ;;  %v3181_v23 = vmul.f32 0.2, %v2642_v33 }
 0x187   :  { %3101 = vmatpush2.bf16.msra.mxu1 %v6047_v45  ;;  %3063 = vmatprep.subr.bf16.mxu0 %v5896_v46 }
 0x188   :  { %3102 = vmatprep.subr.bf16.mxu1 %v6040_v52  ;;  %v3197_v58 = vsel %vm3165_vm4, %v2642_v33, %v3181_v23  ;;  %v6447_v33 = vld [vmem:[%s9354_s3 + $0x40] ss:$16 sps:$4 sm:$0xff]  }
 0x189   :  { %v2725_v7 = vpop.f32.mrf.mxu0  ;;  %v8327_v22 = vpack.c.bf16 %v3205_v49, %v3197_v58  ;;  %v6462_v23 = vld [vmem:[%s9354_s3 + $0x200] ss:$16 sps:$4 sm:$0xff]   ;;  %v6476_v49 = vld [vmem:[%s9354_s3 + $0x3c4] ss:$16 sps:$4 sm:$0xff]  }
 0x18a   :  { %v8275_v10 = vadd.f32 %v2725_v7, %v2683_v0  ;;  %3064 = vmatpush2.bf16.msra.mxu0 %v5895_v12  ;;  %v6426_v0 = vld [vmem:[%s9354_s3 + $0x2c0] ss:$16 sps:$4 sm:$0xff]  }
 0x18b   :  { %3103 = vmatpush2.bf16.msra.mxu1 %v6039_v61  ;;  %v2727_v11 = vpop.f32.mrf.mxu0  ;;  %3065 = vmatprep.subr.bf16.mxu0 %v5888_v62  ;;  %v6907_v62 = vld [vmem:[%s9352_s0 + $0x18] ss:$28 sps:$4 sm:$0xff]   ;;  %v6477_v58 = vld [vmem:[%s9354_s3 + $0x1a0] ss:$16 sps:$4 sm:$0xff]  }
 0x18c   :  { %3104 = vmatprep.subr.bf16.mxu1 %v6032_v4  ;;  %v2728_v59 = vadd.f32 %v2727_v11, %v2685_v36  ;;  %v6458_v36 = vld [vmem:[%s9354_s3 + $0x224] ss:$16 sps:$4 sm:$0xff]  }
 0x18d   :  { %v8283_v24 = vpop.f32.mrf.mxu0 }
 0x18e   :  { %3066 = vmatpush2.bf16.msra.mxu0 %v5887_v6  ;;  %v6432_v6 = vld [vmem:[%s9354_s3 + $0x2a0] ss:$16 sps:$4 sm:$0xff]  }
 0x18f   :  { %3105 = vmatpush2.bf16.msra.mxu1 %v6031_v13  ;;  %v2731_v54 = vpop.f32.mrf.mxu0  ;;  %3135 = vmatprep.subr.bf16.mxu0 %v6080_v31  ;;  %v6437_v31 = vld [vmem:[%s9354_s3 + $0x84] ss:$16 sps:$4 sm:$0xff]  }
 0x190   :  { %3106 = vmatprep.subr.bf16.mxu1 %v6024_v21  ;;  %v2732_v52 = vadd.f32 %v2731_v54, %v2689_v47  ;;  %v6444_v54 = vld [vmem:[%s9354_s3 + $0x260] ss:$16 sps:$4 sm:$0xff]  }
 0x191   :  { %3068 = vmatmul.mubr.bf16.vlgmr.msra.gmra.mxu0 %v6906_v37  ;;  %v8298_v38 = vpop.f32.mrf.mxu0  ;;  %v6453_v37 = vld [vmem:[%s9354_s3 + $0x20] ss:$16 sps:$4 sm:$0xff]  }
 0x192   :  { %v8300_v41 = vpop.f32.mrf.mxu1  ;;  %3136 = vmatpush1.bf16.msra.mxu0 %v6079_v20  ;;  %3153 = vmatprep.mubr.bf16.mxu0 %v6909_v25  ;;  %v6417_v25 = vld [vmem:[%s9354_s3 + $0xe0] ss:$16 sps:$4 sm:$0xff]  }
 0x193   :  { %3107 = vmatpush2.bf16.msra.mxu1 %v6023_v28  ;;  %v2813_v18 = vpop.f32.mrf.mxu0  ;;  %4778 = vmatprep.subr.bf16.mxu0 %v6419_v29  ;;  %v6441_v20 = vld [vmem:[%s9354_s3 + $0x60] ss:$16 sps:$4 sm:$0xff]   ;;  %v6449_v28 = vld [vmem:[%s9354_s3 + $0x44] ss:$16 sps:$4 sm:$0xff]  }
 0x194   :  { %v2770_v43 = vpop.f32.mrf.mxu1  ;;  %3108 = vmatprep.subr.bf16.mxu1 %v6016_v35  ;;  %v6452_v29 = vld [vmem:[%s9354_s3 + $0x244] ss:$16 sps:$4 sm:$0xff]   ;;  %v6468_v47 = vld [vmem:[%s9354_s3 + $0x3e0] ss:$16 sps:$4 sm:$0xff]  }
 0x195   :  { %v2771_v45 = vadd.f32 %v2770_v43, %v2728_v59  ;;  %v8306_v46 = vpop.f32.mrf.mxu0  ;;  %v6455_v35 = vld [vmem:[%s9354_s3 + $0x24] ss:$16 sps:$4 sm:$0xff]  }
 0x196   :  { %v8308_v48 = vpop.f32.mrf.mxu1  ;;  %v6461_v59 = vld [vmem:[%s9354_s3 + $0x4] ss:$16 sps:$4 sm:$0xff]  }
 0x197   :  { %3109 = vmatpush2.bf16.msra.mxu1 %v6015_v2  ;;  %v2814_v53 = vadd.f32 %v2813_v18, %v2771_v45  ;;  %v2817_v61 = vpop.f32.mrf.mxu0  ;;  %v6464_v18 = vld [vmem:[%s9354_s3 + $0x204] ss:$16 sps:$4 sm:$0xff]   ;;  %v6459_v2 = vld [vmem:[%s9354_s3] ss:$16 sps:$4 sm:$0xff]  }
 0x198   :  { %v2774_v12 = vpop.f32.mrf.mxu1  ;;  %4821 = vmatprep.subr.bf16.mxu1 %v6422_v44  ;;  %v6467_v43 = vld [vmem:[%s9354_s3 + $0x1e4] ss:$16 sps:$4 sm:$0xff]   ;;  %v6465_v45 = vld [vmem:[%s9354_s3 + $0x1e0] ss:$16 sps:$4 sm:$0xff]  }
 0x199   :  { %6084 = vmatmul.mubr.msk.bf16.vlgmr.msra.gmra.mxu0 %vm2472_vm0, %v6907_v62  ;;  %v2775_v51 = vadd.f32 %v2774_v12, %v2732_v52  ;;  %v3183_v4 = vmul.f32 0.2, %v2814_v53  ;;  %vm3167_vm5 = vcmp.gt.f32.partialorder %v2814_v53, 0.0  ;;  %v6470_v44 = vld [vmem:[%s9354_s3 + $0x3e4] ss:$16 sps:$4 sm:$0xff]  }
 0x19a   :  { %3111 = vmatmul.mubr.bf16.vlgmr.msra.gmra.mxu1 %v8075_v15  ;;  %4779 = vmatpush1.bf16.msra.mxu0 %v6417_v25  ;;  %v6434_v15 = vld [vmem:[%s9354_s3 + $0x2a4] ss:$16 sps:$4 sm:$0xff]   ;;  %v6474_v52 = vld [vmem:[%s9354_s3 + $0x3c0] ss:$16 sps:$4 sm:$0xff]  }
 0x19b   :  { %4822 = vmatpush1.bf16.msra.mxu1 %v6420_v56  ;;  %4810 = vmatprep.mubr.bf16.mxu0 %v8327_v22  ;;  %v2818_v7 = vadd.f32 %v2817_v61, %v2775_v51  ;;  %v3199_v11 = vsel %vm3167_vm5, %v2814_v53, %v3183_v4  ;;  %v6473_v25 = vld [vmem:[%s9354_s3 + $0x1c4] ss:$16 sps:$4 sm:$0xff]   ;;  %v6471_v56 = vld [vmem:[%s9354_s3 + $0x1c0] ss:$16 sps:$4 sm:$0xff]  }
 0x19c   :  { %4780 = vmatprep.subr.bf16.mxu0 %v6425_v1  ;;  %4823 = vmatprep.subr.bf16.mxu1 %v6428_v60  ;;  %v6479_v53 = vld [vmem:[%s9354_s3 + $0x1a4] ss:$16 sps:$4 sm:$0xff]   ;;  %v6480_v1 = vld [vmem:[%s9354_s3 + $0x3a0] ss:$16 sps:$4 sm:$0xff]  }
 0x19d   :  { %vm3175_vm6 = vcmp.gt.f32.partialorder %v2818_v7, 0.0  ;;  %v3191_v8 = vmul.f32 0.2, %v2818_v7  ;;  %v6482_v12 = vld [vmem:[%s9354_s3 + $0x3a4] ss:$16 sps:$4 sm:$0xff]  }
 0x19e   :  { %4781 = vmatpush1.bf16.msra.mxu0 %v6423_v63  ;;  %v6485_v60 = vld [vmem:[%s9354_s3 + $0x184] ss:$16 sps:$4 sm:$0xff]   ;;  %v6483_v62 = vld [vmem:[%s9354_s3 + $0x180] ss:$16 sps:$4 sm:$0xff]  }
 0x19f   :  { %4824 = vmatpush1.bf16.msra.mxu1 %v6426_v0  ;;  %4782 = vmatprep.subr.bf16.mxu0 %v6431_v3  ;;  %v3207_v13 = vsel %vm3175_vm6, %v2818_v7, %v3191_v8  ;;  %v6488_v61 = vld [vmem:[%s9354_s3 + $0x384] ss:$16 sps:$4 sm:$0xff]   ;;  %v6486_v51 = vld [vmem:[%s9354_s3 + $0x380] ss:$16 sps:$4 sm:$0xff]   ;;  %v2687_v3 = vadd.f32 %v8278_v17, %v8256_v50 }
 0x1a0   :  { %4825 = vmatprep.subr.bf16.mxu1 %v6434_v15  ;;  %v8355_v21 = vpack.c.bf16 %v3207_v13, %v3199_v11  ;;  %v6491_v63 = vld [vmem:[%s9354_s3 + $0x164] ss:$16 sps:$4 sm:$0xff]   ;;  %v6489_v4 = vld [vmem:[%s9354_s3 + $0x160] ss:$16 sps:$4 sm:$0xff]  }
 0x1a1   :  { %v6494_v0 = vld [vmem:[%s9354_s3 + $0x364] ss:$16 sps:$4 sm:$0xff]   ;;  %v2730_v7 = vadd.f32 %v8283_v24, %v2687_v3  ;;  %v6492_v15 = vld [vmem:[%s9354_s3 + $0x360] ss:$16 sps:$4 sm:$0xff]  }
 0x1a2   :  { %4783 = vmatpush1.bf16.msra.mxu0 %v6429_v9  ;;  %4853 = vmatprep.mubr.bf16.mxu1 %v8355_v21  ;;  %v6497_v8 = vld [vmem:[%s9354_s3 + $0x144] ss:$16 sps:$4 sm:$0xff]   ;;  %v6495_v24 = vld [vmem:[%s9354_s3 + $0x140] ss:$16 sps:$4 sm:$0xff]   ;;  %v2769_v9 = vadd.f32 %v8300_v41, %v8275_v10 }
 0x1a3   :  { %4826 = vmatpush1.bf16.msra.mxu1 %v6432_v6  ;;  %4784 = vmatprep.subr.bf16.mxu0 %v6437_v31  ;;  %v6500_v50 = vld [vmem:[%s9354_s3 + $0x344] ss:$16 sps:$4 sm:$0xff]   ;;  %v2773_v17 = vadd.f32 %v8308_v48, %v2730_v7  ;;  %v6498_v6 = vld [vmem:[%s9354_s3 + $0x340] ss:$16 sps:$4 sm:$0xff]  }
 0x1a4   :  { %4827 = vmatprep.subr.bf16.mxu1 %v6440_v14  ;;  %v6503_v11 = vld [vmem:[%s9354_s3 + $0x124] ss:$16 sps:$4 sm:$0xff]   ;;  %v6501_v10 = vld [vmem:[%s9354_s3 + $0x120] ss:$16 sps:$4 sm:$0xff]   ;;  %v2812_v41 = vadd.f32 %v8298_v38, %v2769_v9 }
 0x1a5   :  { %v6506_v48 = vld [vmem:[%s9354_s3 + $0x324] ss:$16 sps:$4 sm:$0xff]   ;;  %v2816_v13 = vadd.f32 %v8306_v46, %v2773_v17  ;;  %v6504_v31 = vld [vmem:[%s9354_s3 + $0x320] ss:$16 sps:$4 sm:$0xff]  }
 0x1a6   :  { %4785 = vmatpush1.bf16.msra.mxu0 %v6435_v55  ;;  %v6509_v14 = vld [vmem:[%s9354_s3 + $0x104] ss:$16 sps:$4 sm:$0xff]   ;;  %v6507_v38 = vld [vmem:[%s9354_s3 + $0x100] ss:$16 sps:$4 sm:$0xff]   ;;  %vm3166_vm8 = vcmp.gt.f32.partialorder %v2812_v41, 0.0 }
 0x1a7   :  { %4828 = vmatpush1.bf16.msra.mxu1 %v6438_v26  ;;  %4786 = vmatprep.subr.bf16.mxu0 %v6443_v16  ;;  %v6512_v46 = vld [vmem:[%s9354_s3 + $0x304] ss:$16 sps:$4 sm:$0xff]   ;;  %v3190_v55 = vmul.f32 0.2, %v2816_v13  ;;  %vm3174_vm7 = vcmp.gt.f32.partialorder %v2816_v13, 0.0 }
 0x1a8   :  { %4829 = vmatprep.subr.bf16.mxu1 %v6446_v27  ;;  %v3182_v26 = vmul.f32 0.2, %v2812_v41  ;;  %v6510_v16 = vld [vmem:[%s9354_s3 + $0x300] ss:$16 sps:$4 sm:$0xff]   ;;  %v6515_v27 = vld [vmem:[%s9354_s3 + $0x4e4] ss:$16 sps:$4 sm:$0xff]  }
 0x1a9   :  { %v6534_v3 = vld [vmem:[%s9354_s3 + $0x400] ss:$16 sps:$4 sm:$0xff]  }
 0x1aa   :  { %4787 = vmatpush1.bf16.msra.mxu0 %v6441_v20  ;;  %v6569_v20 = vld [vmem:[%s9354_s3 + $0x6e4] ss:$16 sps:$4 sm:$0xff]   ;;  %v6609_v7 = vld [vmem:[%s9354_s3 + $0x600] ss:$16 sps:$4 sm:$0xff]  }
 0x1ab   :  { %4830 = vmatpush1.bf16.msra.mxu1 %v6444_v54  ;;  %4788 = vmatprep.subr.bf16.mxu0 %v6449_v28  ;;  %v3206_v54 = vsel %vm3174_vm7, %v2816_v13, %v3190_v55  ;;  %v6513_v28 = vld [vmem:[%s9354_s3 + $0x4e0] ss:$16 sps:$4 sm:$0xff]  }
 0x1ac   :  { %4831 = vmatprep.subr.bf16.mxu1 %v6452_v29  ;;  %v3198_v29 = vsel %vm3166_vm8, %v2812_v41, %v3182_v26  ;;  %v6615_v17 = vld [vmem:[%s9354_s3 + $0x7e0] ss:$16 sps:$4 sm:$0xff]   ;;  %v6548_v41 = vld [vmem:[%s9354_s3 + $0x584] ss:$16 sps:$4 sm:$0xff]  }
 0x1ad   :  { %v6540_v9 = vld [vmem:[%s9354_s3 + $0x5c0] ss:$16 sps:$4 sm:$0xff]   ;;  %v6551_v26 = vld [vmem:[%s9354_s3 + $0x564] ss:$16 sps:$4 sm:$0xff]  }
 0x1ae   :  { %4789 = vmatpush1.bf16.msra.mxu0 %v6447_v33  ;;  %v6518_v33 = vld [vmem:[%s9354_s3 + $0x4c4] ss:$16 sps:$4 sm:$0xff]   ;;  %v6546_v55 = vld [vmem:[%s9354_s3 + $0x580] ss:$16 sps:$4 sm:$0xff]  }
 0x1af   :  { %4832 = vmatpush1.bf16.msra.mxu1 %v6450_v34  ;;  %4790 = vmatprep.subr.bf16.mxu0 %v6455_v35  ;;  %v6567_v34 = vld [vmem:[%s9354_s3 + $0x6e0] ss:$16 sps:$4 sm:$0xff]   ;;  %v8531_v35 = vpack.c.bf16 %v3206_v54, %v3198_v29  ;;  %v459_v54 = vsub.s32 5, %v7778_v19 }
 0x1b0   :  { %4833 = vmatprep.subr.bf16.mxu1 %v6458_v36  ;;  %v6575_v36 = vld [vmem:[%s9354_s3 + $0x6c4] ss:$16 sps:$4 sm:$0xff]   ;;  %v6549_v29 = vld [vmem:[%s9354_s3 + $0x560] ss:$16 sps:$4 sm:$0xff]  }
 0x1b2   :  { %4791 = vmatpush1.bf16.msra.mxu0 %v6453_v37  ;;  %v6516_v37 = vld [vmem:[%s9354_s3 + $0x4c0] ss:$16 sps:$4 sm:$0xff]  }
 0x1b3   :  { %4834 = vmatpush1.bf16.msra.mxu1 %v6456_v39  ;;  %4792 = vmatprep.subr.bf16.mxu0 %v6461_v59  ;;  %v6521_v39 = vld [vmem:[%s9354_s3 + $0x4a4] ss:$16 sps:$4 sm:$0xff]   ;;  %v6573_v59 = vld [vmem:[%s9354_s3 + $0x6c0] ss:$16 sps:$4 sm:$0xff]  }
 0x1b4   :  { %4835 = vmatprep.subr.bf16.mxu1 %v6464_v18  ;;  %v6581_v18 = vld [vmem:[%s9354_s3 + $0x6a4] ss:$16 sps:$4 sm:$0xff]  }
 0x1b6   :  { %4793 = vmatpush1.bf16.msra.mxu0 %v6459_v2  ;;  %v6519_v2 = vld [vmem:[%s9354_s3 + $0x4a0] ss:$16 sps:$4 sm:$0xff]  }
 0x1b7   :  { %4836 = vmatpush1.bf16.msra.mxu1 %v6462_v23  ;;  %4794 = vmatprep.subr.bf16.mxu0 %v6467_v43  ;;  %v6524_v23 = vld [vmem:[%s9354_s3 + $0x484] ss:$16 sps:$4 sm:$0xff]   ;;  %v6579_v43 = vld [vmem:[%s9354_s3 + $0x6a0] ss:$16 sps:$4 sm:$0xff]  }
 0x1b8   :  { %4837 = vmatprep.subr.bf16.mxu1 %v6470_v44  ;;  %v6587_v44 = vld [vmem:[%s9354_s3 + $0x684] ss:$16 sps:$4 sm:$0xff]  }
 0x1ba   :  { %4795 = vmatpush2.bf16.msra.mxu0 %v6465_v45  ;;  %v6522_v45 = vld [vmem:[%s9354_s3 + $0x480] ss:$16 sps:$4 sm:$0xff]  }
 0x1bb   :  { %4838 = vmatpush2.bf16.msra.mxu1 %v6468_v47  ;;  %4796 = vmatprep.subr.bf16.mxu0 %v6473_v25  ;;  %v6527_v47 = vld [vmem:[%s9354_s3 + $0x464] ss:$16 sps:$4 sm:$0xff]   ;;  %v6585_v25 = vld [vmem:[%s9354_s3 + $0x680] ss:$16 sps:$4 sm:$0xff]  }
 0x1bc   :  { %4839 = vmatprep.subr.bf16.mxu1 %v6476_v49  ;;  %v6593_v49 = vld [vmem:[%s9354_s3 + $0x664] ss:$16 sps:$4 sm:$0xff]  }
 0x1be   :  { %4797 = vmatpush2.bf16.msra.mxu0 %v6471_v56  ;;  %v6525_v56 = vld [vmem:[%s9354_s3 + $0x460] ss:$16 sps:$4 sm:$0xff]  }
 0x1bf   :  { %4840 = vmatpush2.bf16.msra.mxu1 %v6474_v52  ;;  %4798 = vmatprep.subr.bf16.mxu0 %v6479_v53  ;;  %v6530_v52 = vld [vmem:[%s9354_s3 + $0x444] ss:$16 sps:$4 sm:$0xff]   ;;  %v6591_v53 = vld [vmem:[%s9354_s3 + $0x660] ss:$16 sps:$4 sm:$0xff]  }
 0x1c0   :  { %4841 = vmatprep.subr.bf16.mxu1 %v6482_v12  ;;  %v6599_v12 = vld [vmem:[%s9354_s3 + $0x644] ss:$16 sps:$4 sm:$0xff]  }
 0x1c2   :  { %4799 = vmatpush2.bf16.msra.mxu0 %v6477_v58  ;;  %v6528_v58 = vld [vmem:[%s9354_s3 + $0x440] ss:$16 sps:$4 sm:$0xff]  }
 0x1c3   :  { %4842 = vmatpush2.bf16.msra.mxu1 %v6480_v1  ;;  %4800 = vmatprep.subr.bf16.mxu0 %v6485_v60  ;;  %v6533_v1 = vld [vmem:[%s9354_s3 + $0x424] ss:$16 sps:$4 sm:$0xff]   ;;  %v6597_v60 = vld [vmem:[%s9354_s3 + $0x640] ss:$16 sps:$4 sm:$0xff]  }
 0x1c4   :  { %4843 = vmatprep.subr.bf16.mxu1 %v6488_v61  ;;  %v6605_v61 = vld [vmem:[%s9354_s3 + $0x624] ss:$16 sps:$4 sm:$0xff]  }
 0x1c6   :  { %4801 = vmatpush2.bf16.msra.mxu0 %v6483_v62  ;;  %v6531_v62 = vld [vmem:[%s9354_s3 + $0x420] ss:$16 sps:$4 sm:$0xff]  }
 0x1c7   :  { %4844 = vmatpush2.bf16.msra.mxu1 %v6486_v51  ;;  %4802 = vmatprep.subr.bf16.mxu0 %v6491_v63  ;;  %v6536_v51 = vld [vmem:[%s9354_s3 + $0x404] ss:$16 sps:$4 sm:$0xff]   ;;  %v6603_v63 = vld [vmem:[%s9354_s3 + $0x620] ss:$16 sps:$4 sm:$0xff]  }
 0x1c8   :  { %4845 = vmatprep.subr.bf16.mxu1 %v6494_v0  ;;  %v6611_v0 = vld [vmem:[%s9354_s3 + $0x604] ss:$16 sps:$4 sm:$0xff]  }
 0x1ca   :  { %4803 = vmatpush2.bf16.msra.mxu0 %v6489_v4  ;;  %v6539_v4 = vld [vmem:[%s9354_s3 + $0x5e4] ss:$16 sps:$4 sm:$0xff]  }
 0x1cb   :  { %4846 = vmatpush2.bf16.msra.mxu1 %v6492_v15  ;;  %4804 = vmatprep.subr.bf16.mxu0 %v6497_v8  ;;  %v6617_v15 = vld [vmem:[%s9354_s3 + $0x7e4] ss:$16 sps:$4 sm:$0xff]   ;;  %v6537_v8 = vld [vmem:[%s9354_s3 + $0x5e0] ss:$16 sps:$4 sm:$0xff]  }
 0x1cc   :  { %4847 = vmatprep.subr.bf16.mxu1 %v6500_v50  ;;  %v6542_v50 = vld [vmem:[%s9354_s3 + $0x5c4] ss:$16 sps:$4 sm:$0xff]  }
 0x1ce   :  { %4805 = vmatpush2.bf16.msra.mxu0 %v6495_v24  ;;  %v6623_v24 = vld [vmem:[%s9354_s3 + $0x7c4] ss:$16 sps:$4 sm:$0xff]  }
 0x1cf   :  { %4848 = vmatpush2.bf16.msra.mxu1 %v6498_v6  ;;  %4806 = vmatprep.subr.bf16.mxu0 %v6503_v11  ;;  %v6545_v6 = vld [vmem:[%s9354_s3 + $0x5a4] ss:$16 sps:$4 sm:$0xff]   ;;  %v6621_v11 = vld [vmem:[%s9354_s3 + $0x7c0] ss:$16 sps:$4 sm:$0xff]  }
 0x1d0   :  { %4849 = vmatprep.subr.bf16.mxu1 %v6506_v48  ;;  %v6629_v48 = vld [vmem:[%s9354_s3 + $0x7a4] ss:$16 sps:$4 sm:$0xff]  }
 0x1d2   :  { %4807 = vmatpush2.bf16.msra.mxu0 %v6501_v10  ;;  %v2897_v13 = vpop.f32.mrf.mxu1  ;;  %v6543_v10 = vld [vmem:[%s9354_s3 + $0x5a0] ss:$16 sps:$4 sm:$0xff]  }
 0x1d3   :  { %4850 = vmatpush2.bf16.msra.mxu1 %v6504_v31  ;;  %4808 = vmatprep.subr.bf16.mxu0 %v6509_v14  ;;  %v6627_v31 = vld [vmem:[%s9354_s3 + $0x7a0] ss:$16 sps:$4 sm:$0xff]   ;;  %v6635_v14 = vld [vmem:[%s9354_s3 + $0x784] ss:$16 sps:$4 sm:$0xff]  }
 0x1d4   :  { %4851 = vmatprep.subr.bf16.mxu1 %v6512_v46  ;;  %v2899_v46 = vpop.f32.mrf.mxu1 }
 0x1d6   :  { %4809 = vmatpush2.bf16.msra.mxu0 %v6507_v38  ;;  %v2854_v38 = vpop.f32.mrf.mxu0 }
 0x1d7   :  { %4852 = vmatpush2.bf16.msra.mxu1 %v6510_v16  ;;  %4864 = vmatprep.subr.bf16.mxu0 %v6515_v27  ;;  %v6633_v16 = vld [vmem:[%s9354_s3 + $0x780] ss:$16 sps:$4 sm:$0xff]   ;;  %v6641_v27 = vld [vmem:[%s9354_s3 + $0x764] ss:$16 sps:$4 sm:$0xff]  }
 0x1d8   :  { %4907 = vmatprep.subr.bf16.mxu1 %v6569_v20  ;;  %v455_v20 = vsub.s32 4, %v7778_v19 }
 0x1d9   :  { %4811 = vmatmul.mubr.bf16.vlgmr.msra.gmra.mxu0 %v8093_v57 }
 0x1da   :  { %4854 = vmatmul.mubr.bf16.vlgmr.msra.gmra.mxu1 %v8531_v35  ;;  %4865 = vmatpush1.bf16.msra.mxu0 %v6513_v28  ;;  %v2901_v28 = vpop.f32.mrf.mxu1 }
 0x1db   :  { %4866 = vmatprep.subr.bf16.mxu0 %v6518_v33  ;;  %4908 = vmatpush1.bf16.msra.mxu1 %v6567_v34  ;;  %v2856_v33 = vpop.f32.mrf.mxu0  ;;  %v6554_v34 = vld [vmem:[%s9354_s3 + $0x544] ss:$16 sps:$4 sm:$0xff]  }
 0x1dc   :  { %4909 = vmatprep.subr.bf16.mxu1 %v6575_v36  ;;  %v6639_v36 = vld [vmem:[%s9354_s3 + $0x760] ss:$16 sps:$4 sm:$0xff]  }
 0x1de   :  { %4867 = vmatpush1.bf16.msra.mxu0 %v6516_v37  ;;  %v6647_v37 = vld [vmem:[%s9354_s3 + $0x744] ss:$16 sps:$4 sm:$0xff]  }
 0x1df   :  { %4868 = vmatprep.subr.bf16.mxu0 %v6521_v39  ;;  %4910 = vmatpush1.bf16.msra.mxu1 %v6573_v59  ;;  %v456_v39 = vrot.slane %v8236_v42, %v455_v20  ;;  %v460_v59 = vrot.slane %v8236_v42, %v459_v54  ;;  %v6653_v42 = vld [vmem:[%s9354_s3 + $0x724] ss:$16 sps:$4 sm:$0xff]  }
 0x1e0   :  { %4911 = vmatprep.subr.bf16.mxu1 %v6581_v18  ;;  %v2903_v18 = vpop.f32.mrf.mxu1 }
 0x1e2   :  { %4869 = vmatpush1.bf16.msra.mxu0 %v6519_v2  ;;  %v6552_v2 = vld [vmem:[%s9354_s3 + $0x540] ss:$16 sps:$4 sm:$0xff]  }
 0x1e3   :  { %4870 = vmatprep.subr.bf16.mxu0 %v6524_v23  ;;  %4912 = vmatpush1.bf16.msra.mxu1 %v6579_v43  ;;  %v2858_v23 = vpop.f32.mrf.mxu0  ;;  %v6557_v43 = vld [vmem:[%s9354_s3 + $0x524] ss:$16 sps:$4 sm:$0xff]  }
 0x1e4   :  { %4913 = vmatprep.subr.bf16.mxu1 %v6587_v44  ;;  %v6645_v44 = vld [vmem:[%s9354_s3 + $0x740] ss:$16 sps:$4 sm:$0xff]  }
 0x1e6   :  { %4871 = vmatpush1.bf16.msra.mxu0 %v6522_v45  ;;  %v2855_v45 = vadd.f32 %v2854_v38, %v456_v39 }
 0x1e7   :  { %4872 = vmatprep.subr.bf16.mxu0 %v6527_v47  ;;  %4914 = vmatpush1.bf16.msra.mxu1 %v6585_v25  ;;  %v2857_v47 = vadd.f32 %v2856_v33, %v460_v59  ;;  %v2983_v25 = vpop.f32.mrf.mxu1 }
 0x1e8   :  { %4915 = vmatprep.subr.bf16.mxu1 %v6593_v49  ;;  %v6555_v49 = vld [vmem:[%s9354_s3 + $0x520] ss:$16 sps:$4 sm:$0xff]  }
 0x1ea   :  { %4873 = vmatpush1.bf16.msra.mxu0 %v6525_v56  ;;  %v2860_v56 = vpop.f32.mrf.mxu0 }
 0x1eb   :  { %4874 = vmatprep.subr.bf16.mxu0 %v6530_v52  ;;  %4916 = vmatpush1.bf16.msra.mxu1 %v6591_v53  ;;  %v6560_v52 = vld [vmem:[%s9354_s3 + $0x504] ss:$16 sps:$4 sm:$0xff]   ;;  %v6651_v53 = vld [vmem:[%s9354_s3 + $0x720] ss:$16 sps:$4 sm:$0xff]  }
 0x1ec   :  { %4917 = vmatprep.subr.bf16.mxu1 %v6599_v12  ;;  %v2859_v12 = vadd.f32 %v2858_v23, %v456_v39  ;;  %v6570_v39 = vld [vmem:[%s9354_s3 + $0xa8] ss:$16 sps:$4 sm:$0xff]   ;;  %v6590_v23 = vld [vmem:[%s9354_s3 + $0x4c] ss:$16 sps:$4 sm:$0xff]  }
 0x1ee   :  { %4875 = vmatpush1.bf16.msra.mxu0 %v6528_v58  ;;  %v6659_v58 = vld [vmem:[%s9354_s3 + $0x704] ss:$16 sps:$4 sm:$0xff]  }
 0x1ef   :  { %4876 = vmatprep.subr.bf16.mxu0 %v6533_v1  ;;  %4918 = vmatpush1.bf16.msra.mxu1 %v6597_v60  ;;  %v2898_v60 = vadd.f32 %v2897_v13, %v2855_v45  ;;  %v6602_v45 = vld [vmem:[%s9354_s3 + $0xc] ss:$16 sps:$4 sm:$0xff]  }
 0x1f0   :  { %4919 = vmatprep.subr.bf16.mxu1 %v6605_v61  ;;  %v2900_v61 = vadd.f32 %v2899_v46, %v2857_v47  ;;  %v6600_v47 = vld [vmem:[%s9354_s3 + $0x8] ss:$16 sps:$4 sm:$0xff]  }
 0x1f2   :  { %4877 = vmatpush1.bf16.msra.mxu0 %v6531_v62  ;;  %v2985_v62 = vpop.f32.mrf.mxu1 }
 0x1f3   :  { %4878 = vmatprep.subr.bf16.mxu0 %v6536_v51  ;;  %4920 = vmatpush1.bf16.msra.mxu1 %v6603_v63  ;;  %v6558_v51 = vld [vmem:[%s9354_s3 + $0x500] ss:$16 sps:$4 sm:$0xff]   ;;  %v2861_v63 = vadd.f32 %v2860_v56, %v460_v59  ;;  %v6578_v59 = vld [vmem:[%s9354_s3 + $0x8c] ss:$16 sps:$4 sm:$0xff]  }
 0x1f4   :  { %4921 = vmatprep.subr.bf16.mxu1 %v6611_v0  ;;  %v6614_v56 = vld [vmem:[%s9354_s3 + $0x1cc] ss:$16 sps:$4 sm:$0xff]  }
 0x1f6   :  { %4879 = vmatpush1.bf16.msra.mxu0 %v6534_v3  ;;  %v6563_v3 = vld [vmem:[%s9354_s3 + $0xec] ss:$16 sps:$4 sm:$0xff]  }
 0x1f7   :  { %4880 = vmatprep.subr.bf16.mxu0 %v6539_v4  ;;  %4922 = vmatpush1.bf16.msra.mxu1 %v6609_v7  ;;  %v6657_v4 = vld [vmem:[%s9354_s3 + $0x700] ss:$16 sps:$4 sm:$0xff]   ;;  %v2902_v7 = vadd.f32 %v2901_v28, %v2859_v12  ;;  %v6618_v12 = vld [vmem:[%s9354_s3 + $0x1a8] ss:$16 sps:$4 sm:$0xff]  }
 0x1f8   :  { %4923 = vmatprep.subr.bf16.mxu1 %v6617_v15 }
 0x1fa   :  { %4881 = vmatpush2.bf16.msra.mxu0 %v6537_v8 }
 0x1fb   :  { %4882 = vmatprep.subr.bf16.mxu0 %v6542_v50  ;;  %4924 = vmatpush2.bf16.msra.mxu1 %v6615_v17  ;;  %v6665_v50 = vld [vmem:[%s9354_s3 + $0x2ec] ss:$16 sps:$4 sm:$0xff]  }
 0x1fc   :  { %4925 = vmatprep.subr.bf16.mxu1 %v6623_v24  ;;  %v2987_v24 = vpop.f32.mrf.mxu1 }
 0x1fe   :  { %4883 = vmatpush2.bf16.msra.mxu0 %v6540_v9 }
 0x1ff   :  { %4884 = vmatprep.subr.bf16.mxu0 %v6545_v6  ;;  %4926 = vmatpush2.bf16.msra.mxu1 %v6621_v11  ;;  %v2904_v6 = vadd.f32 %v2903_v18, %v2861_v63  ;;  %v6584_v18 = vld [vmem:[%s9354_s3 + $0x6c] ss:$16 sps:$4 sm:$0xff]   ;;  %v463_v63 = vsub.s32 6, %v7778_v19 }
 0x200   :  { %4927 = vmatprep.subr.bf16.mxu1 %v6629_v48 }
 0x202   :  { %4885 = vmatpush2.bf16.msra.mxu0 %v6543_v10 }
 0x203   :  { %4886 = vmatprep.subr.bf16.mxu0 %v6548_v41  ;;  %4928 = vmatpush2.bf16.msra.mxu1 %v6627_v31  ;;  %v2989_v31 = vpop.f32.mrf.mxu1 }
 0x204   :  { %4929 = vmatprep.subr.bf16.mxu1 %v6635_v14 }
 0x206   :  { %4887 = vmatpush2.bf16.msra.mxu0 %v6546_v55 }
 0x207   :  { %4888 = vmatprep.subr.bf16.mxu0 %v6551_v26  ;;  %4930 = vmatpush2.bf16.msra.mxu1 %v6633_v16 }
 0x208   :  { %4931 = vmatprep.subr.bf16.mxu1 %v6641_v27 }
 0x20a   :  { %4889 = vmatpush2.bf16.msra.mxu0 %v6549_v29  ;;  %v6561_v29 = vld [vmem:[%s9354_s3 + $0xe8] ss:$16 sps:$4 sm:$0xff]  }
 0x20b   :  { %4890 = vmatprep.subr.bf16.mxu0 %v6554_v34  ;;  %4932 = vmatpush2.bf16.msra.mxu1 %v6639_v36  ;;  %v6566_v34 = vld [vmem:[%s9354_s3 + $0xcc] ss:$16 sps:$4 sm:$0xff]   ;;  %v6564_v36 = vld [vmem:[%s9354_s3 + $0xc8] ss:$16 sps:$4 sm:$0xff]  }
 0x20c   :  { %4933 = vmatprep.subr.bf16.mxu1 %v6647_v37  ;;  %v6572_v37 = vld [vmem:[%s9354_s3 + $0xac] ss:$16 sps:$4 sm:$0xff]  }
 0x20e   :  { %4891 = vmatpush2.bf16.msra.mxu0 %v6552_v2  ;;  %v6582_v2 = vld [vmem:[%s9354_s3 + $0x68] ss:$16 sps:$4 sm:$0xff]  }
 0x20f   :  { %4892 = vmatprep.subr.bf16.mxu0 %v6557_v43  ;;  %4934 = vmatpush2.bf16.msra.mxu1 %v6645_v44  ;;  %v6588_v43 = vld [vmem:[%s9354_s3 + $0x48] ss:$16 sps:$4 sm:$0xff]   ;;  %v6596_v44 = vld [vmem:[%s9354_s3 + $0x2c] ss:$16 sps:$4 sm:$0xff]  }
 0x210   :  { %4935 = vmatprep.subr.bf16.mxu1 %v6653_v42  ;;  %v6594_v42 = vld [vmem:[%s9354_s3 + $0x28] ss:$16 sps:$4 sm:$0xff]  }
 0x211   :  { %v2940_v1 = vpop.f32.mrf.mxu0 }
 0x212   :  { %4893 = vmatpush2.bf16.msra.mxu0 %v6555_v49  ;;  %v2941_v15 = vadd.f32 %v2940_v1, %v2898_v60  ;;  %v6606_v49 = vld [vmem:[%s9354_s3 + $0x1e8] ss:$16 sps:$4 sm:$0xff]  }
 0x213   :  { %v2942_v0 = vpop.f32.mrf.mxu0  ;;  %4894 = vmatprep.subr.bf16.mxu0 %v6560_v52  ;;  %4936 = vmatpush2.bf16.msra.mxu1 %v6651_v53  ;;  %v6612_v52 = vld [vmem:[%s9354_s3 + $0x1c8] ss:$16 sps:$4 sm:$0xff]   ;;  %v6620_v53 = vld [vmem:[%s9354_s3 + $0x1ac] ss:$16 sps:$4 sm:$0xff]  }
 0x214   :  { %v2943_v8 = vadd.f32 %v2942_v0, %v2900_v61  ;;  %4937 = vmatprep.subr.bf16.mxu1 %v6659_v58  ;;  %v2984_v13 = vadd.f32 %v2983_v25, %v2941_v15  ;;  %v6608_v25 = vld [vmem:[%s9354_s3 + $0x1ec] ss:$16 sps:$4 sm:$0xff]   ;;  %v6624_v60 = vld [vmem:[%s9354_s3 + $0x188] ss:$16 sps:$4 sm:$0xff]   ;;  %v467_v0 = vsub.s32 7, %v7778_v19 }
 0x215   :  { %v2944_v17 = vpop.f32.mrf.mxu0  ;;  %v6626_v58 = vld [vmem:[%s9354_s3 + $0x18c] ss:$16 sps:$4 sm:$0xff]  }
 0x216   :  { %v2945_v9 = vadd.f32 %v2944_v17, %v2902_v7  ;;  %4895 = vmatpush2.bf16.msra.mxu0 %v6558_v51  ;;  %v2986_v11 = vadd.f32 %v2985_v62, %v2943_v8  ;;  %v3184_v38 = vmul.f32 0.2, %v2984_v13  ;;  %vm3168_vm11 = vcmp.gt.f32.partialorder %v2984_v13, 0.0  ;;  %v6632_v61 = vld [vmem:[%s9354_s3 + $0x16c] ss:$16 sps:$4 sm:$0xff]  }
 0x217   :  { %v2946_v48 = vpop.f32.mrf.mxu0  ;;  %4950 = vmatprep.subr.bf16.mxu0 %v6563_v3  ;;  %4938 = vmatpush2.bf16.msra.mxu1 %v6657_v4  ;;  %v6630_v51 = vld [vmem:[%s9354_s3 + $0x168] ss:$16 sps:$4 sm:$0xff]   ;;  %v6638_v4 = vld [vmem:[%s9354_s3 + $0x14c] ss:$16 sps:$4 sm:$0xff]  }
 0x218   :  { %v2988_v10 = vadd.f32 %v2987_v24, %v2945_v9  ;;  %4993 = vmatprep.subr.bf16.mxu1 %v6665_v50  ;;  %v2947_v41 = vadd.f32 %v2946_v48, %v2904_v6  ;;  %v3185_v46 = vmul.f32 0.2, %v2986_v11  ;;  %vm3169_vm10 = vcmp.gt.f32.partialorder %v2986_v11, 0.0  ;;  %v6636_v8 = vld [vmem:[%s9354_s3 + $0x148] ss:$16 sps:$4 sm:$0xff]   ;;  %v6908_v50 = vld [vmem:[%s9353_s2] sm:$0xff] }
 0x219   :  { %v3200_v54 = vsel %vm3168_vm11, %v2984_v13, %v3184_v38  ;;  %v464_v17 = vrot.slane %v6908_v50, %v463_v63  ;;  %v468_v24 = vrot.slane %v6908_v50, %v467_v0  ;;  %v6644_v6 = vld [vmem:[%s9354_s3 + $0x12c] ss:$16 sps:$4 sm:$0xff]   ;;  %v6642_v13 = vld [vmem:[%s9354_s3 + $0x128] ss:$16 sps:$4 sm:$0xff]  }
 0x21a   :  { %v3192_v14 = vmul.f32 0.2, %v2988_v10  ;;  %vm3176_vm9 = vcmp.gt.f32.partialorder %v2988_v10, 0.0  ;;  %v2990_v55 = vadd.f32 %v2989_v31, %v2947_v41  ;;  %v3201_v27 = vsel %vm3169_vm10, %v2986_v11, %v3185_v46  ;;  %v3026_v1 = vpop.f32.mrf.mxu1  ;;  %v6663_v63 = vld [vmem:[%s9354_s3 + $0x2e8] ss:$16 sps:$4 sm:$0xff]  }
 0x21b   :  { %v6677_v50 = vld [vmem:[%s9354_s3 + $0x2ac] ss:$16 sps:$4 sm:$0xff]  }
 0x21c   :  { %vm3177_vm12 = vcmp.gt.f32.partialorder %v2990_v55, 0.0  ;;  %v3193_v26 = vmul.f32 0.2, %v2990_v55  ;;  %v3208_v16 = vsel %vm3176_vm9, %v2988_v10, %v3192_v14  ;;  %v3028_v62 = vpop.f32.mrf.mxu1  ;;  %v3027_v10 = vadd.f32 %v3026_v1, %v464_v17  ;;  %v6650_v14 = vld [vmem:[%s9354_s3 + $0x10c] ss:$16 sps:$4 sm:$0xff]  }
 0x21d   :  { %v8727_v33 = vpack.c.bf16 %v3208_v16, %v3200_v54  ;;  %v3029_v41 = vadd.f32 %v3028_v62, %v468_v24 }
 0x21e   :  { %v3209_v20 = vsel %vm3177_vm12, %v2990_v55, %v3193_v26  ;;  %v3030_v15 = vpop.f32.mrf.mxu1 }
 0x21f   :  { %v8722_v28 = vpack.c.bf16 %v3209_v20, %v3201_v27  ;;  %v3031_v55 = vadd.f32 %v3030_v15, %v464_v17  ;;  %v6648_v20 = vld [vmem:[%s9354_s3 + $0x108] ss:$16 sps:$4 sm:$0xff]  }
 0x220   :  { %v3032_v48 = vpop.f32.mrf.mxu1  ;;  %v6672_v15 = vld [vmem:[%s9354_s3 + $0x488] ss:$16 sps:$4 sm:$0xff]  }
 0x221   :  { %4896 = vmatprep.mubr.bf16.mxu0 %v8722_v28  ;;  %v6675_v17 = vld [vmem:[%s9354_s3 + $0x2a8] ss:$16 sps:$4 sm:$0xff]  }
 0x222   :  { %4897 = vmatmul.mubr.bf16.vlgmr.msra.gmra.mxu0 %v8727_v33 }
 0x223   :  { %4951 = vmatpush1.bf16.msra.mxu0 %v6561_v29  ;;  %4982 = vmatprep.mubr.bf16.mxu0 %v8327_v22  ;;  %v6576_v22 = vld [vmem:[%s9354_s3 + $0x88] ss:$16 sps:$4 sm:$0xff]  }
 0x224   :  { %4952 = vmatprep.subr.bf16.mxu0 %v6566_v34 }
 0x227   :  { %4953 = vmatpush1.bf16.msra.mxu0 %v6564_v36 }
 0x228   :  { %4954 = vmatprep.subr.bf16.mxu0 %v6572_v37  ;;  %v6656_v37 = vld [vmem:[%s9354_s3 + $0x4ec] ss:$16 sps:$4 sm:$0xff]  }
 0x22b   :  { %4955 = vmatpush1.bf16.msra.mxu0 %v6570_v39  ;;  %v3033_v39 = vadd.f32 %v3032_v48, %v468_v24  ;;  %v6678_v24 = vld [vmem:[%s9354_s3 + $0x468] ss:$16 sps:$4 sm:$0xff]   ;;  %v6692_v48 = vld [vmem:[%s9354_s3 + $0x42c] ss:$16 sps:$4 sm:$0xff]  }
 0x22c   :  { %4956 = vmatprep.subr.bf16.mxu0 %v6578_v59 }
 0x22f   :  { %4957 = vmatpush1.bf16.msra.mxu0 %v6576_v22 }
 0x230   :  { %4958 = vmatprep.subr.bf16.mxu0 %v6584_v18 }
 0x233   :  { %4959 = vmatpush1.bf16.msra.mxu0 %v6582_v2 }
 0x234   :  { %4960 = vmatprep.subr.bf16.mxu0 %v6590_v23 }
 0x237   :  { %4961 = vmatpush1.bf16.msra.mxu0 %v6588_v43  ;;  %v6654_v43 = vld [vmem:[%s9354_s3 + $0x4e8] ss:$16 sps:$4 sm:$0xff]  }
 0x238   :  { %4962 = vmatprep.subr.bf16.mxu0 %v6596_v44 }
 0x23b   :  { %4963 = vmatpush1.bf16.msra.mxu0 %v6594_v42 }
 0x23c   :  { %4964 = vmatprep.subr.bf16.mxu0 %v6602_v45 }
 0x23f   :  { %4965 = vmatpush1.bf16.msra.mxu0 %v6600_v47  ;;  %v6662_v47 = vld [vmem:[%s9354_s3 + $0x4cc] ss:$16 sps:$4 sm:$0xff]  }
 0x240   :  { %4966 = vmatprep.subr.bf16.mxu0 %v6608_v25 }
 0x243   :  { %4967 = vmatpush2.bf16.msra.mxu0 %v6606_v49 }
 0x244   :  { %4968 = vmatprep.subr.bf16.mxu0 %v6614_v56 }
 0x247   :  { %4969 = vmatpush2.bf16.msra.mxu0 %v6612_v52 }
 0x248   :  { %4970 = vmatprep.subr.bf16.mxu0 %v6620_v53  ;;  %v6660_v53 = vld [vmem:[%s9354_s3 + $0x4c8] ss:$16 sps:$4 sm:$0xff]  }
 0x24b   :  { %4971 = vmatpush2.bf16.msra.mxu0 %v6618_v12 }
 0x24c   :  { %4972 = vmatprep.subr.bf16.mxu0 %v6626_v58  ;;  %v6668_v58 = vld [vmem:[%s9354_s3 + $0x4ac] ss:$16 sps:$4 sm:$0xff]  }
 0x24f   :  { %4973 = vmatpush2.bf16.msra.mxu0 %v6624_v60 }
 0x250   :  { %4974 = vmatprep.subr.bf16.mxu0 %v6632_v61 }
 0x251   :  { %v3069_v3 = vpop.f32.mrf.mxu0 }
 0x252   :  { %v3070_v38 = vadd.f32 %v3069_v3, %v3027_v10  ;;  %v6671_v3 = vld [vmem:[%s9354_s3 + $0x2cc] ss:$16 sps:$4 sm:$0xff]   ;;  %v6687_v10 = vld [vmem:[%s9354_s3 + $0x268] ss:$16 sps:$4 sm:$0xff]  }
 0x253   :  { %v3071_v7 = vpop.f32.mrf.mxu0  ;;  %4975 = vmatpush2.bf16.msra.mxu0 %v6630_v51 }
 0x254   :  { %4976 = vmatprep.subr.bf16.mxu0 %v6638_v4  ;;  %v3072_v26 = vadd.f32 %v3071_v7, %v3029_v41  ;;  %v6674_v4 = vld [vmem:[%s9354_s3 + $0x48c] ss:$16 sps:$4 sm:$0xff]   ;;  %v6669_v7 = vld [vmem:[%s9354_s3 + $0x2c8] ss:$16 sps:$4 sm:$0xff]  }
 0x255   :  { %v3073_v9 = vpop.f32.mrf.mxu0  ;;  %v6690_v41 = vld [vmem:[%s9354_s3 + $0x428] ss:$16 sps:$4 sm:$0xff]  }
 0x256   :  { %v3074_v54 = vadd.f32 %v3073_v9, %v3031_v55  ;;  %v6683_v9 = vld [vmem:[%s9354_s3 + $0x28c] ss:$16 sps:$4 sm:$0xff]   ;;  %v6696_v55 = vld [vmem:[%s9354_s3 + $0x408] ss:$16 sps:$4 sm:$0xff]  }
 0x257   :  { %v3075_v11 = vpop.f32.mrf.mxu0  ;;  %4977 = vmatpush2.bf16.msra.mxu0 %v6636_v8  ;;  %v6680_v8 = vld [vmem:[%s9354_s3 + $0x46c] ss:$16 sps:$4 sm:$0xff]  }
 0x258   :  { %4978 = vmatprep.subr.bf16.mxu0 %v6644_v6  ;;  %v3076_v18 = vadd.f32 %v3075_v11, %v3033_v39  ;;  %v6681_v6 = vld [vmem:[%s9354_s3 + $0x288] ss:$16 sps:$4 sm:$0xff]  }
 0x259   :  { %v3155_v31 = vpop.f32.mrf.mxu0  ;;  %v6684_v11 = vld [vmem:[%s9354_s3 + $0x448] ss:$16 sps:$4 sm:$0xff]  }
 0x25a   :  { %v3112_v46 = vpop.f32.mrf.mxu1  ;;  %v6714_v39 = vld [vmem:[%s9354_s3 + $0x5a8] ss:$16 sps:$4 sm:$0xff]  }
 0x25b   :  { %v3157_v16 = vpop.f32.mrf.mxu0  ;;  %4979 = vmatpush2.bf16.msra.mxu0 %v6642_v13  ;;  %v3113_v29 = vadd.f32 %v3112_v46, %v3070_v38  ;;  %v6689_v13 = vld [vmem:[%s9354_s3 + $0x26c] ss:$16 sps:$4 sm:$0xff]   ;;  %v6693_v46 = vld [vmem:[%s9354_s3 + $0x248] ss:$16 sps:$4 sm:$0xff]  }
 0x25c   :  { %v3114_v27 = vpop.f32.mrf.mxu1  ;;  %4980 = vmatprep.subr.bf16.mxu0 %v6650_v14  ;;  %v6695_v14 = vld [vmem:[%s9354_s3 + $0x24c] ss:$16 sps:$4 sm:$0xff]  }
 0x25d   :  { %v3115_v34 = vadd.f32 %v3114_v27, %v3072_v26  ;;  %v3159_v36 = vpop.f32.mrf.mxu0  ;;  %v3156_v44 = vadd.f32 %v3155_v31, %v3113_v29  ;;  %v6698_v31 = vld [vmem:[%s9354_s3 + $0x40c] ss:$16 sps:$4 sm:$0xff]   ;;  %v6699_v27 = vld [vmem:[%s9354_s3 + $0x228] ss:$16 sps:$4 sm:$0xff]  }
 0x25e   :  { %v3116_v59 = vpop.f32.mrf.mxu1  ;;  %v6704_v38 = vld [vmem:[%s9354_s3 + $0x5ec] ss:$16 sps:$4 sm:$0xff]   ;;  %v6708_v29 = vld [vmem:[%s9354_s3 + $0x5c8] ss:$16 sps:$4 sm:$0xff]  }
 0x25f   :  { %v3117_v22 = vadd.f32 %v3116_v59, %v3074_v54  ;;  %v3158_v2 = vadd.f32 %v3157_v16, %v3115_v34  ;;  %4981 = vmatpush2.bf16.msra.mxu0 %v6648_v20  ;;  %v3161_v45 = vpop.f32.mrf.mxu0  ;;  %v3186_v12 = vmul.f32 0.2, %v3156_v44  ;;  %vm3170_vm15 = vcmp.gt.f32.partialorder %v3156_v44, 0.0  ;;  %v6701_v26 = vld [vmem:[%s9354_s3 + $0x22c] ss:$16 sps:$4 sm:$0xff]  }
 0x260   :  { %v3118_v23 = vpop.f32.mrf.mxu1  ;;  %5036 = vmatprep.subr.bf16.mxu0 %v6656_v37  ;;  %v6702_v16 = vld [vmem:[%s9354_s3 + $0x5e8] ss:$16 sps:$4 sm:$0xff]   ;;  %v6710_v20 = vld [vmem:[%s9354_s3 + $0x5cc] ss:$16 sps:$4 sm:$0xff]  }
 0x261   :  { %v3160_v42 = vadd.f32 %v3159_v36, %v3117_v22  ;;  %v3119_v25 = vadd.f32 %v3118_v23, %v3076_v18  ;;  %v3187_v56 = vmul.f32 0.2, %v3158_v2  ;;  %vm3171_vm14 = vcmp.gt.f32.partialorder %v3158_v2, 0.0  ;;  %v6707_v54 = vld [vmem:[%s9354_s3 + $0x20c] ss:$16 sps:$4 sm:$0xff]  }
 0x262   :  { %4983 = vmatmul.mubr.bf16.vlgmr.msra.gmra.mxu0 %v8093_v57  ;;  %v3202_v62 = vsel %vm3170_vm15, %v3156_v44, %v3186_v12  ;;  %v6705_v34 = vld [vmem:[%s9354_s3 + $0x208] ss:$16 sps:$4 sm:$0xff]   ;;  %v6716_v36 = vld [vmem:[%s9354_s3 + $0x5ac] ss:$16 sps:$4 sm:$0xff]  }
 0x263   :  { %v3194_v49 = vmul.f32 0.2, %v3160_v42  ;;  %vm3178_vm13 = vcmp.gt.f32.partialorder %v3160_v42, 0.0  ;;  %v3162_v52 = vadd.f32 %v3161_v45, %v3119_v25  ;;  %5037 = vmatpush1.bf16.msra.mxu0 %v6654_v43  ;;  %5068 = vmatprep.mubr.bf16.mxu0 %v8722_v28  ;;  %v3203_v60 = vsel %vm3171_vm14, %v3158_v2, %v3187_v56  ;;  %v6666_v28 = vld [vmem:[%s9354_s3 + $0x4a8] ss:$16 sps:$4 sm:$0xff]  }
 0x264   :  { %5038 = vmatprep.subr.bf16.mxu0 %v6662_v47  ;;  %v6713_v37 = vld [vmem:[%s9354_s3 + $0x3ec] ss:$16 sps:$4 sm:$0xff]   ;;  %v6711_v59 = vld [vmem:[%s9354_s3 + $0x3e8] ss:$16 sps:$4 sm:$0xff]  }
 0x265   :  { %vm3179_vm0 = vcmp.gt.f32.partialorder %v3162_v52, 0.0  ;;  %v3195_v57 = vmul.f32 0.2, %v3162_v52  ;;  %v3210_v1 = vsel %vm3178_vm13, %v3160_v42, %v3194_v49  ;;  %v6722_v22 = vld [vmem:[%s9354_s3 + $0x58c] ss:$16 sps:$4 sm:$0xff]   ;;  %vm5675_vm13 = vcmask 7168  }
 0x266   :  { %v8852_v0 = vpack.c.bf16 %v3210_v1, %v3202_v62  ;;  %v6719_v18 = vld [vmem:[%s9354_s3 + $0x3cc] ss:$16 sps:$4 sm:$0xff]   ;;  %v6720_v2 = vld [vmem:[%s9354_s3 + $0x588] ss:$16 sps:$4 sm:$0xff]  }
 0x267   :  { %5039 = vmatpush1.bf16.msra.mxu0 %v6660_v53  ;;  %v3211_v61 = vsel %vm3179_vm0, %v3162_v52, %v3195_v57  ;;  %v6717_v23 = vld [vmem:[%s9354_s3 + $0x3c8] ss:$16 sps:$4 sm:$0xff]   ;;  %v6728_v43 = vld [vmem:[%s9354_s3 + $0x56c] ss:$16 sps:$4 sm:$0xff]  }
 0x268   :  { %v8847_v51 = vpack.c.bf16 %v3211_v61, %v3203_v60  ;;  %5040 = vmatprep.subr.bf16.mxu0 %v6668_v58  ;;  %v6725_v44 = vld [vmem:[%s9354_s3 + $0x3ac] ss:$16 sps:$4 sm:$0xff]   ;;  %v6726_v42 = vld [vmem:[%s9354_s3 + $0x568] ss:$16 sps:$4 sm:$0xff]  }
 0x269   :  { %v6723_v45 = vld [vmem:[%s9354_s3 + $0x3a8] ss:$16 sps:$4 sm:$0xff]   ;;  %v6734_v47 = vld [vmem:[%s9354_s3 + $0x54c] ss:$16 sps:$4 sm:$0xff]  }
 0x26a   :  { %4939 = vmatprep.mubr.bf16.mxu1 %v8847_v51  ;;  %v6731_v25 = vld [vmem:[%s9354_s3 + $0x38c] ss:$16 sps:$4 sm:$0xff]   ;;  %v6732_v49 = vld [vmem:[%s9354_s3 + $0x548] ss:$16 sps:$4 sm:$0xff]  }
 0x26b   :  { %4940 = vmatmul.mubr.bf16.vlgmr.msra.gmra.mxu1 %v8852_v0  ;;  %5041 = vmatpush1.bf16.msra.mxu0 %v6666_v28  ;;  %v6729_v56 = vld [vmem:[%s9354_s3 + $0x388] ss:$16 sps:$4 sm:$0xff]   ;;  %v6740_v52 = vld [vmem:[%s9354_s3 + $0x52c] ss:$16 sps:$4 sm:$0xff]  }
 0x26c   :  { %4994 = vmatpush1.bf16.msra.mxu1 %v6663_v63  ;;  %5025 = vmatprep.mubr.bf16.mxu1 %v8355_v21  ;;  %v6686_v21 = vld [vmem:[%s9354_s3 + $0x44c] ss:$16 sps:$4 sm:$0xff]   ;;  %v6738_v12 = vld [vmem:[%s9354_s3 + $0x528] ss:$16 sps:$4 sm:$0xff]  }
 0x26d   :  { %4995 = vmatprep.subr.bf16.mxu1 %v6671_v3  ;;  %5042 = vmatprep.subr.bf16.mxu0 %v6674_v4  ;;  %v6737_v53 = vld [vmem:[%s9354_s3 + $0x36c] ss:$16 sps:$4 sm:$0xff]   ;;  %v6735_v58 = vld [vmem:[%s9354_s3 + $0x368] ss:$16 sps:$4 sm:$0xff]  }
 0x26e   :  { %v6746_v57 = vld [vmem:[%s9354_s3 + $0x50c] ss:$16 sps:$4 sm:$0xff]   ;;  %v6744_v60 = vld [vmem:[%s9354_s3 + $0x508] ss:$16 sps:$4 sm:$0xff]  }
 0x26f   :  { %5043 = vmatpush1.bf16.msra.mxu0 %v6672_v15  ;;  %v6743_v1 = vld [vmem:[%s9354_s3 + $0x34c] ss:$16 sps:$4 sm:$0xff]   ;;  %v6741_v61 = vld [vmem:[%s9354_s3 + $0x348] ss:$16 sps:$4 sm:$0xff]  }
 0x270   :  { %4996 = vmatpush1.bf16.msra.mxu1 %v6669_v7  ;;  %5044 = vmatprep.subr.bf16.mxu0 %v6680_v8  ;;  %v6803_v28 = vld [vmem:[%s9355_s5 + $0x74] ss:$8 sps:$4 sm:$0xff]   ;;  %v6801_v63 = vld [vmem:[%s9355_s5 + $0x70] ss:$8 sps:$4 sm:$0xff]   ;;  %v6806_v4 = vld [vmem:[%s9355_s5 + $0x64] ss:$8 sps:$4 sm:$0xff]  }
 0x271   :  { %4997 = vmatprep.subr.bf16.mxu1 %v6677_v50  ;;  %v6749_v62 = vld [vmem:[%s9354_s3 + $0x32c] ss:$16 sps:$4 sm:$0xff]   ;;  %v6747_v3 = vld [vmem:[%s9354_s3 + $0x328] ss:$16 sps:$4 sm:$0xff]  }
 0x272   :  { %v6752_v7 = vld [vmem:[%s9354_s3 + $0x30c] ss:$16 sps:$4 sm:$0xff]   ;;  %v6804_v15 = vld [vmem:[%s9355_s5 + $0x60] ss:$8 sps:$4 sm:$0xff]  }
 0x273   :  { %5045 = vmatpush1.bf16.msra.mxu0 %v6678_v24  ;;  %v6750_v8 = vld [vmem:[%s9354_s3 + $0x308] ss:$16 sps:$4 sm:$0xff]   ;;  %v6809_v50 = vld [vmem:[%s9355_s5 + $0x54] ss:$8 sps:$4 sm:$0xff]  }
 0x274   :  { %4998 = vmatpush1.bf16.msra.mxu1 %v6675_v17  ;;  %5046 = vmatprep.subr.bf16.mxu0 %v6686_v21  ;;  %v6807_v17 = vld [vmem:[%s9355_s5 + $0x50] ss:$8 sps:$4 sm:$0xff]   ;;  %v6758_v21 = vld [vmem:[%s9354_s3 + $0x6cc] ss:$16 sps:$4 sm:$0xff]  }
 0x275   :  { %4999 = vmatprep.subr.bf16.mxu1 %v6683_v9  ;;  %v6753_v24 = vld [vmem:[%s9354_s3 + $0x6e8] ss:$16 sps:$4 sm:$0xff]   ;;  %v6812_v9 = vld [vmem:[%s9355_s5 + $0x44] ss:$8 sps:$4 sm:$0xff]  }
 0x277   :  { %5047 = vmatpush1.bf16.msra.mxu0 %v6684_v11  ;;  %v6756_v11 = vld [vmem:[%s9354_s3 + $0x6c8] ss:$16 sps:$4 sm:$0xff]  }
 0x278   :  { %5000 = vmatpush1.bf16.msra.mxu1 %v6681_v6  ;;  %5048 = vmatprep.subr.bf16.mxu0 %v6692_v48  ;;  %v6810_v6 = vld [vmem:[%s9355_s5 + $0x40] ss:$8 sps:$4 sm:$0xff]   ;;  %v6815_v48 = vld [vmem:[%s9355_s5 + $0x34] ss:$8 sps:$4 sm:$0xff]  }
 0x279   :  { %5001 = vmatprep.subr.bf16.mxu1 %v6689_v13  ;;  %v6813_v13 = vld [vmem:[%s9355_s5 + $0x30] ss:$8 sps:$4 sm:$0xff]  }
 0x27b   :  { %5049 = vmatpush1.bf16.msra.mxu0 %v6690_v41  ;;  %v6764_v41 = vld [vmem:[%s9354_s3 + $0x68c] ss:$16 sps:$4 sm:$0xff]  }
 0x27c   :  { %5002 = vmatpush1.bf16.msra.mxu1 %v6687_v10  ;;  %5050 = vmatprep.subr.bf16.mxu0 %v6698_v31  ;;  %v6818_v10 = vld [vmem:[%s9355_s5 + $0x24] ss:$8 sps:$4 sm:$0xff]   ;;  %v6816_v31 = vld [vmem:[%s9355_s5 + $0x20] ss:$8 sps:$4 sm:$0xff]  }
 0x27d   :  { %5003 = vmatprep.subr.bf16.mxu1 %v6695_v14  ;;  %v6762_v14 = vld [vmem:[%s9354_s3 + $0x688] ss:$16 sps:$4 sm:$0xff]  }
 0x27f   :  { %5051 = vmatpush1.bf16.msra.mxu0 %v6696_v55  ;;  %v6767_v55 = vld [vmem:[%s9354_s3 + $0x66c] ss:$16 sps:$4 sm:$0xff]  }
 0x280   :  { %5004 = vmatpush1.bf16.msra.mxu1 %v6693_v46  ;;  %5052 = vmatprep.subr.bf16.mxu0 %v6704_v38  ;;  %v6821_v46 = vld [vmem:[%s9355_s5 + $0x14] ss:$8 sps:$4 sm:$0xff]   ;;  %v6819_v38 = vld [vmem:[%s9355_s5 + $0x10] ss:$8 sps:$4 sm:$0xff]  }
 0x281   :  { %5005 = vmatprep.subr.bf16.mxu1 %v6701_v26  ;;  %v6765_v26 = vld [vmem:[%s9354_s3 + $0x668] ss:$16 sps:$4 sm:$0xff]  }
 0x283   :  { %5053 = vmatpush2.bf16.msra.mxu0 %v6702_v16  ;;  %v6824_v16 = vld [vmem:[%s9355_s5 + $0x4] ss:$8 sps:$4 sm:$0xff]  }
 0x284   :  { %5006 = vmatpush1.bf16.msra.mxu1 %v6699_v27  ;;  %5054 = vmatprep.subr.bf16.mxu0 %v6710_v20  ;;  %v6770_v27 = vld [vmem:[%s9354_s3 + $0x64c] ss:$16 sps:$4 sm:$0xff]   ;;  %v6822_v20 = vld [vmem:[%s9355_s5] ss:$8 sps:$4 sm:$0xff]  }
 0x285   :  { %5007 = vmatprep.subr.bf16.mxu1 %v6707_v54  ;;  %v6768_v54 = vld [vmem:[%s9354_s3 + $0x648] ss:$16 sps:$4 sm:$0xff]  }
 0x287   :  { %5055 = vmatpush2.bf16.msra.mxu0 %v6708_v29  ;;  %v6827_v29 = vld [vmem:[%s9355_s5 + $0xf4] ss:$8 sps:$4 sm:$0xff]  }
 0x288   :  { %5008 = vmatpush1.bf16.msra.mxu1 %v6705_v34  ;;  %5056 = vmatprep.subr.bf16.mxu0 %v6716_v36  ;;  %v6773_v34 = vld [vmem:[%s9354_s3 + $0x62c] ss:$16 sps:$4 sm:$0xff]   ;;  %v6825_v36 = vld [vmem:[%s9355_s5 + $0xf0] ss:$8 sps:$4 sm:$0xff]  }
 0x289   :  { %5009 = vmatprep.subr.bf16.mxu1 %v6713_v37  ;;  %v6771_v37 = vld [vmem:[%s9354_s3 + $0x628] ss:$16 sps:$4 sm:$0xff]  }
 0x28b   :  { %5057 = vmatpush2.bf16.msra.mxu0 %v6714_v39  ;;  %v6830_v39 = vld [vmem:[%s9355_s5 + $0xe4] ss:$8 sps:$4 sm:$0xff]  }
 0x28c   :  { %5010 = vmatpush2.bf16.msra.mxu1 %v6711_v59  ;;  %5058 = vmatprep.subr.bf16.mxu0 %v6722_v22  ;;  %v6776_v59 = vld [vmem:[%s9354_s3 + $0x60c] ss:$16 sps:$4 sm:$0xff]   ;;  %v6828_v22 = vld [vmem:[%s9355_s5 + $0xe0] ss:$8 sps:$4 sm:$0xff]  }
 0x28d   :  { %5011 = vmatprep.subr.bf16.mxu1 %v6719_v18  ;;  %v6774_v18 = vld [vmem:[%s9354_s3 + $0x608] ss:$16 sps:$4 sm:$0xff]  }
 0x28f   :  { %5059 = vmatpush2.bf16.msra.mxu0 %v6720_v2  ;;  %v6833_v2 = vld [vmem:[%s9355_s5 + $0xd4] ss:$8 sps:$4 sm:$0xff]  }
 0x290   :  { %5012 = vmatpush2.bf16.msra.mxu1 %v6717_v23  ;;  %5060 = vmatprep.subr.bf16.mxu0 %v6728_v43  ;;  %v6779_v23 = vld [vmem:[%s9354_s3 + $0x7ec] ss:$16 sps:$4 sm:$0xff]   ;;  %v6831_v43 = vld [vmem:[%s9355_s5 + $0xd0] ss:$8 sps:$4 sm:$0xff]  }
 0x291   :  { %5013 = vmatprep.subr.bf16.mxu1 %v6725_v44  ;;  %v6777_v44 = vld [vmem:[%s9354_s3 + $0x7e8] ss:$16 sps:$4 sm:$0xff]  }
 0x293   :  { %5061 = vmatpush2.bf16.msra.mxu0 %v6726_v42  ;;  %v6836_v42 = vld [vmem:[%s9355_s5 + $0xc4] ss:$8 sps:$4 sm:$0xff]  }
 0x294   :  { %5014 = vmatpush2.bf16.msra.mxu1 %v6723_v45  ;;  %5062 = vmatprep.subr.bf16.mxu0 %v6734_v47  ;;  %v6782_v45 = vld [vmem:[%s9354_s3 + $0x7cc] ss:$16 sps:$4 sm:$0xff]   ;;  %v6834_v47 = vld [vmem:[%s9355_s5 + $0xc0] ss:$8 sps:$4 sm:$0xff]  }
 0x295   :  { %5015 = vmatprep.subr.bf16.mxu1 %v6731_v25  ;;  %v6780_v25 = vld [vmem:[%s9354_s3 + $0x7c8] ss:$16 sps:$4 sm:$0xff]  }
 0x297   :  { %5063 = vmatpush2.bf16.msra.mxu0 %v6732_v49  ;;  %v6839_v49 = vld [vmem:[%s9355_s5 + $0xb4] ss:$8 sps:$4 sm:$0xff]  }
 0x298   :  { %5016 = vmatpush2.bf16.msra.mxu1 %v6729_v56  ;;  %5064 = vmatprep.subr.bf16.mxu0 %v6740_v52  ;;  %v6785_v56 = vld [vmem:[%s9354_s3 + $0x7ac] ss:$16 sps:$4 sm:$0xff]   ;;  %v6837_v52 = vld [vmem:[%s9355_s5 + $0xb0] ss:$8 sps:$4 sm:$0xff]  }
 0x299   :  { %5017 = vmatprep.subr.bf16.mxu1 %v6737_v53  ;;  %v6783_v53 = vld [vmem:[%s9354_s3 + $0x7a8] ss:$16 sps:$4 sm:$0xff]  }
 0x29b   :  { %5065 = vmatpush2.bf16.msra.mxu0 %v6738_v12  ;;  %v6842_v12 = vld [vmem:[%s9355_s5 + $0xa4] ss:$8 sps:$4 sm:$0xff]  }
 0x29c   :  { %5018 = vmatpush2.bf16.msra.mxu1 %v6735_v58  ;;  %5066 = vmatprep.subr.bf16.mxu0 %v6746_v57  ;;  %v6788_v58 = vld [vmem:[%s9354_s3 + $0x78c] ss:$16 sps:$4 sm:$0xff]   ;;  %v6840_v57 = vld [vmem:[%s9355_s5 + $0xa0] ss:$8 sps:$4 sm:$0xff]  }
 0x29d   :  { %5019 = vmatprep.subr.bf16.mxu1 %v6743_v1  ;;  %v6786_v1 = vld [vmem:[%s9354_s3 + $0x788] ss:$16 sps:$4 sm:$0xff]  }
 0x29f   :  { %5067 = vmatpush2.bf16.msra.mxu0 %v6744_v60  ;;  %v6845_v60 = vld [vmem:[%s9355_s5 + $0x94] ss:$8 sps:$4 sm:$0xff]  }
 0x2a0   :  { %5020 = vmatpush2.bf16.msra.mxu1 %v6741_v61  ;;  %5546 = vmatprep.subr.bf16.mxu0 %v6803_v28  ;;  %v6791_v61 = vld [vmem:[%s9354_s3 + $0x76c] ss:$16 sps:$4 sm:$0xff]   ;;  %v6843_v28 = vld [vmem:[%s9355_s5 + $0x90] ss:$8 sps:$4 sm:$0xff]  }
 0x2a1   :  { %5021 = vmatprep.subr.bf16.mxu1 %v6749_v62  ;;  %v6789_v62 = vld [vmem:[%s9354_s3 + $0x768] ss:$16 sps:$4 sm:$0xff]  }
 0x2a2   :  { %5069 = vmatmul.mubr.bf16.vlgmr.msra.gmra.mxu0 %v8727_v33  ;;  %v6755_v33 = vld [vmem:[%s9354_s3 + $0x6ec] ss:$16 sps:$4 sm:$0xff]  }
 0x2a3   :  { %5547 = vmatpush1.bf16.msra.mxu0 %v6801_v63  ;;  %v6848_v63 = vld [vmem:[%s9355_s5 + $0x84] ss:$8 sps:$4 sm:$0xff]  }
 0x2a4   :  { %5022 = vmatpush2.bf16.msra.mxu1 %v6747_v3  ;;  %5548 = vmatprep.subr.bf16.mxu0 %v6806_v4  ;;  %v6794_v3 = vld [vmem:[%s9354_s3 + $0x74c] ss:$16 sps:$4 sm:$0xff]   ;;  %v6846_v4 = vld [vmem:[%s9355_s5 + $0x80] ss:$8 sps:$4 sm:$0xff]  }
 0x2a5   :  { %5023 = vmatprep.subr.bf16.mxu1 %v6752_v7  ;;  %v6792_v7 = vld [vmem:[%s9354_s3 + $0x748] ss:$16 sps:$4 sm:$0xff]  }
 0x2a7   :  { %5549 = vmatpush1.bf16.msra.mxu0 %v6804_v15  ;;  %v6797_v15 = vld [vmem:[%s9354_s3 + $0x72c] ss:$16 sps:$4 sm:$0xff]  }
 0x2a8   :  { %5024 = vmatpush2.bf16.msra.mxu1 %v6750_v8  ;;  %5550 = vmatprep.subr.bf16.mxu0 %v6809_v50  ;;  %v6795_v8 = vld [vmem:[%s9354_s3 + $0x728] ss:$16 sps:$4 sm:$0xff]   ;;  %v6800_v50 = vld [vmem:[%s9354_s3 + $0x70c] ss:$16 sps:$4 sm:$0xff]  }
 0x2a9   :  { %5079 = vmatprep.subr.bf16.mxu1 %v6755_v33  ;;  %v6798_v33 = vld [vmem:[%s9354_s3 + $0x708] ss:$16 sps:$4 sm:$0xff]  }
 0x2ab   :  { %5026 = vmatmul.mubr.bf16.vlgmr.msra.gmra.mxu1 %v8531_v35  ;;  %5551 = vmatpush1.bf16.msra.mxu0 %v6807_v17  ;;  %v6761_v35 = vld [vmem:[%s9354_s3 + $0x6ac] ss:$16 sps:$4 sm:$0xff]   ;;  %v6849_v17 = vld [vmem:[%s9355_s5 + $0x170] ss:$8 sps:$4 sm:$0xff]  }
 0x2ac   :  { %5080 = vmatpush1.bf16.msra.mxu1 %v6753_v24  ;;  %5111 = vmatprep.mubr.bf16.mxu1 %v8847_v51  ;;  %v6759_v51 = vld [vmem:[%s9354_s3 + $0x6a8] ss:$16 sps:$4 sm:$0xff]   ;;  %v6851_v24 = vld [vmem:[%s9355_s5 + $0x174] ss:$8 sps:$4 sm:$0xff]  }
 0x2ad   :  { %5081 = vmatprep.subr.bf16.mxu1 %v6758_v21  ;;  %5552 = vmatprep.subr.bf16.mxu0 %v6812_v9  ;;  %v6854_v21 = vld [vmem:[%s9355_s5 + $0x164] ss:$8 sps:$4 sm:$0xff]   ;;  %v6852_v9 = vld [vmem:[%s9355_s5 + $0x160] ss:$8 sps:$4 sm:$0xff]  }
 0x2af   :  { %5553 = vmatpush1.bf16.msra.mxu0 %v6810_v6  ;;  %v6855_v6 = vld [vmem:[%s9355_s5 + $0x150] ss:$8 sps:$4 sm:$0xff]  }
 0x2b0   :  { %5082 = vmatpush1.bf16.msra.mxu1 %v6756_v11  ;;  %5554 = vmatprep.subr.bf16.mxu0 %v6815_v48  ;;  %v6860_v11 = vld [vmem:[%s9355_s5 + $0x144] ss:$8 sps:$4 sm:$0xff]   ;;  %v6858_v48 = vld [vmem:[%s9355_s5 + $0x140] ss:$8 sps:$4 sm:$0xff]  }
 0x2b1   :  { %5083 = vmatprep.subr.bf16.mxu1 %v6761_v35  ;;  %v6863_v35 = vld [vmem:[%s9355_s5 + $0x134] ss:$8 sps:$4 sm:$0xff]  }
 0x2b3   :  { %5555 = vmatpush1.bf16.msra.mxu0 %v6813_v13  ;;  %v6861_v13 = vld [vmem:[%s9355_s5 + $0x130] ss:$8 sps:$4 sm:$0xff]  }
 0x2b4   :  { %5084 = vmatpush1.bf16.msra.mxu1 %v6759_v51  ;;  %5556 = vmatprep.subr.bf16.mxu0 %v6818_v10  ;;  %v6866_v51 = vld [vmem:[%s9355_s5 + $0x124] ss:$8 sps:$4 sm:$0xff]   ;;  %v6864_v10 = vld [vmem:[%s9355_s5 + $0x120] ss:$8 sps:$4 sm:$0xff]  }
 0x2b5   :  { %5085 = vmatprep.subr.bf16.mxu1 %v6764_v41  ;;  %v6869_v41 = vld [vmem:[%s9355_s5 + $0x114] ss:$8 sps:$4 sm:$0xff]  }
 0x2b7   :  { %5557 = vmatpush1.bf16.msra.mxu0 %v6816_v31  ;;  %v6867_v31 = vld [vmem:[%s9355_s5 + $0x110] ss:$8 sps:$4 sm:$0xff]  }
 0x2b8   :  { %5086 = vmatpush1.bf16.msra.mxu1 %v6762_v14  ;;  %5558 = vmatprep.subr.bf16.mxu0 %v6821_v46  ;;  %v6872_v14 = vld [vmem:[%s9355_s5 + $0x104] ss:$8 sps:$4 sm:$0xff]   ;;  %v6870_v46 = vld [vmem:[%s9355_s5 + $0x100] ss:$8 sps:$4 sm:$0xff]  }
 0x2b9   :  { %5087 = vmatprep.subr.bf16.mxu1 %v6767_v55  ;;  %v6875_v55 = vld [vmem:[%s9355_s5 + $0x1f4] ss:$8 sps:$4 sm:$0xff]  }
 0x2bb   :  { %5559 = vmatpush1.bf16.msra.mxu0 %v6819_v38  ;;  %v6873_v38 = vld [vmem:[%s9355_s5 + $0x1f0] ss:$8 sps:$4 sm:$0xff]  }
 0x2bc   :  { %5088 = vmatpush1.bf16.msra.mxu1 %v6765_v26  ;;  %5560 = vmatprep.subr.bf16.mxu0 %v6824_v16  ;;  %v6878_v26 = vld [vmem:[%s9355_s5 + $0x1e4] ss:$8 sps:$4 sm:$0xff]   ;;  %v4812_v16 = vpop.f32.mrf.mxu0 }
 0x2bd   :  { %5089 = vmatprep.subr.bf16.mxu1 %v6770_v27  ;;  %v6876_v27 = vld [vmem:[%s9355_s5 + $0x1e0] ss:$8 sps:$4 sm:$0xff]  }
 0x2bf   :  { %5561 = vmatpush1.bf16.msra.mxu0 %v6822_v20  ;;  %v6881_v20 = vld [vmem:[%s9355_s5 + $0x1d4] ss:$8 sps:$4 sm:$0xff]  }
 0x2c0   :  { %5090 = vmatpush1.bf16.msra.mxu1 %v6768_v54  ;;  %5562 = vmatprep.subr.bf16.mxu0 %v6827_v29  ;;  %v4814_v54 = vpop.f32.mrf.mxu0  ;;  %v6879_v29 = vld [vmem:[%s9355_s5 + $0x1d0] ss:$8 sps:$4 sm:$0xff]  }
 0x2c1   :  { %5091 = vmatprep.subr.bf16.mxu1 %v6773_v34  ;;  %v6884_v34 = vld [vmem:[%s9355_s5 + $0x1c4] ss:$8 sps:$4 sm:$0xff]  }
 0x2c3   :  { %5563 = vmatpush2.bf16.msra.mxu0 %v6825_v36  ;;  %v4816_v36 = vpop.f32.mrf.mxu0 }
 0x2c4   :  { %5092 = vmatpush1.bf16.msra.mxu1 %v6771_v37  ;;  %5564 = vmatprep.subr.bf16.mxu0 %v6830_v39  ;;  %v4855_v37 = vpop.f32.mrf.mxu1  ;;  %v6882_v39 = vld [vmem:[%s9355_s5 + $0x1c0] ss:$8 sps:$4 sm:$0xff]  }
 0x2c5   :  { %5093 = vmatprep.subr.bf16.mxu1 %v6776_v59  ;;  %v6887_v59 = vld [vmem:[%s9355_s5 + $0x1b4] ss:$8 sps:$4 sm:$0xff]  }
 0x2c7   :  { %5565 = vmatpush2.bf16.msra.mxu0 %v6828_v22  ;;  %v4818_v22 = vpop.f32.mrf.mxu0 }
 0x2c8   :  { %5094 = vmatpush1.bf16.msra.mxu1 %v6774_v18  ;;  %5566 = vmatprep.subr.bf16.mxu0 %v6833_v2  ;;  %v9299_v18 = vld [vmem:[%s9356_s4] sm:$0xf]  ;;  %v4857_v2 = vpop.f32.mrf.mxu1 }
 0x2c9   :  { %5095 = vmatprep.subr.bf16.mxu1 %v6779_v23 }
 0x2cb   :  { %5567 = vmatpush2.bf16.msra.mxu0 %v6831_v43  ;;  %v6885_v43 = vld [vmem:[%s9355_s5 + $0x1b0] ss:$8 sps:$4 sm:$0xff]  }
 0x2cc   :  { %5096 = vmatpush2.bf16.msra.mxu1 %v6777_v44  ;;  %5568 = vmatprep.subr.bf16.mxu0 %v6836_v42  ;;  %v3485_v44 = vrot.slane %v9299_v18, %v8218_v30  ;;  %v3481_v42 = vrot.slane %v9299_v18, %v7793_v32 }
 0x2cd   :  { %5097 = vmatprep.subr.bf16.mxu1 %v6782_v45  ;;  %v4859_v45 = vpop.f32.mrf.mxu1 }
 0x2cf   :  { %5569 = vmatpush2.bf16.msra.mxu0 %v6834_v47 }
 0x2d0   :  { %5098 = vmatpush2.bf16.msra.mxu1 %v6780_v25  ;;  %5570 = vmatprep.subr.bf16.mxu0 %v6839_v49  ;;  %v4815_v25 = vadd.f32 %v4814_v54, %v3485_v44  ;;  %v4813_v49 = vadd.f32 %v4812_v16, %v3481_v42 }
 0x2d1   :  { %5099 = vmatprep.subr.bf16.mxu1 %v6785_v56  ;;  %v4817_v56 = vadd.f32 %v4816_v36, %v3481_v42  ;;  %v3489_v36 = vrot.slane %v9299_v18, %v447_v40 }
 0x2d3   :  { %5571 = vmatpush2.bf16.msra.mxu0 %v6837_v52  ;;  %v4861_v52 = vpop.f32.mrf.mxu1 }
 0x2d4   :  { %5100 = vmatpush2.bf16.msra.mxu1 %v6783_v53  ;;  %5572 = vmatprep.subr.bf16.mxu0 %v6842_v12  ;;  %v4858_v12 = vadd.f32 %v4857_v2, %v4815_v25 }
 0x2d5   :  { %5101 = vmatprep.subr.bf16.mxu1 %v6788_v58  ;;  %v4819_v58 = vadd.f32 %v4818_v22, %v3485_v44 }
 0x2d7   :  { %5573 = vmatpush2.bf16.msra.mxu0 %v6840_v57  ;;  %v4856_v57 = vadd.f32 %v4855_v37, %v4813_v49 }
 0x2d8   :  { %5102 = vmatpush2.bf16.msra.mxu1 %v6786_v1  ;;  %5574 = vmatprep.subr.bf16.mxu0 %v6845_v60  ;;  %v4860_v60 = vadd.f32 %v4859_v45, %v4817_v56 }
 0x2d9   :  { %5103 = vmatprep.subr.bf16.mxu1 %v6791_v61 }
 0x2db   :  { %5575 = vmatpush2.bf16.msra.mxu0 %v6843_v28  ;;  %v6890_v28 = vld [vmem:[%s9355_s5 + $0x1a4] ss:$8 sps:$4 sm:$0xff]  }
 0x2dc   :  { %5104 = vmatpush2.bf16.msra.mxu1 %v6789_v62  ;;  %5576 = vmatprep.subr.bf16.mxu0 %v6848_v63 }
 0x2dd   :  { %5105 = vmatprep.subr.bf16.mxu1 %v6794_v3 }
 0x2df   :  { %5577 = vmatpush2.bf16.msra.mxu0 %v6846_v4  ;;  %v6888_v4 = vld [vmem:[%s9355_s5 + $0x1a0] ss:$8 sps:$4 sm:$0xff]  }
 0x2e0   :  { %5106 = vmatpush2.bf16.msra.mxu1 %v6792_v7  ;;  %v4862_v7 = vadd.f32 %v4861_v52, %v4819_v58 }
 0x2e1   :  { %5107 = vmatprep.subr.bf16.mxu1 %v6797_v15 }
 0x2e2   :  { %v4898_v23 = vpop.f32.mrf.mxu0 }
 0x2e3   :  { %v4899_v62 = vadd.f32 %v4898_v23, %v4856_v57 }
 0x2e4   :  { %5108 = vmatpush2.bf16.msra.mxu1 %v6795_v8  ;;  %v4900_v47 = vpop.f32.mrf.mxu0 }
 0x2e5   :  { %5109 = vmatprep.subr.bf16.mxu1 %v6800_v50  ;;  %v4901_v61 = vadd.f32 %v4900_v47, %v4858_v12 }
 0x2e6   :  { %v4902_v53 = vpop.f32.mrf.mxu0 }
 0x2e7   :  { %v4903_v15 = vadd.f32 %v4902_v53, %v4860_v60 }
 0x2e8   :  { %5110 = vmatpush2.bf16.msra.mxu1 %v6798_v33  ;;  %v4904_v63 = vpop.f32.mrf.mxu0 }
 0x2e9   :  { %5589 = vmatprep.subr.bf16.mxu1 %v6851_v24 }
 0x2eb   :  { %5112 = vmatmul.mubr.bf16.vlgmr.msra.gmra.mxu1 %v8852_v0  ;;  %v6857_v0 = vld [vmem:[%s9355_s5 + $0x154] ss:$8 sps:$4 sm:$0xff]  }
 0x2ec   :  { %5590 = vmatpush1.bf16.msra.mxu1 %v6849_v17  ;;  %v4905_v17 = vadd.f32 %v4904_v63, %v4862_v7 }
 0x2ed   :  { %5591 = vmatprep.subr.bf16.mxu1 %v6854_v21  ;;  %v6893_v21 = vld [vmem:[%s9355_s5 + $0x194] ss:$8 sps:$4 sm:$0xff]  }
 0x2f0   :  { %5592 = vmatpush1.bf16.msra.mxu1 %v6852_v9 }
 0x2f1   :  { %5593 = vmatprep.subr.bf16.mxu1 %v6857_v0  ;;  %v6891_v0 = vld [vmem:[%s9355_s5 + $0x190] ss:$8 sps:$4 sm:$0xff]  }
 0x2f4   :  { %5594 = vmatpush1.bf16.msra.mxu1 %v6855_v6 }
 0x2f5   :  { %5595 = vmatprep.subr.bf16.mxu1 %v6860_v11 }
 0x2f8   :  { %5596 = vmatpush1.bf16.msra.mxu1 %v6858_v48 }
 0x2f9   :  { %5597 = vmatprep.subr.bf16.mxu1 %v6863_v35 }
 0x2fc   :  { %5598 = vmatpush1.bf16.msra.mxu1 %v6861_v13 }
 0x2fd   :  { %5599 = vmatprep.subr.bf16.mxu1 %v6866_v51  ;;  %v6896_v51 = vld [vmem:[%s9355_s5 + $0x184] ss:$8 sps:$4 sm:$0xff]  }
 0x300   :  { %5600 = vmatpush1.bf16.msra.mxu1 %v6864_v10 }
 0x301   :  { %5601 = vmatprep.subr.bf16.mxu1 %v6869_v41  ;;  %v6894_v41 = vld [vmem:[%s9355_s5 + $0x180] ss:$8 sps:$4 sm:$0xff]  }
 0x304   :  { %5602 = vmatpush1.bf16.msra.mxu1 %v6867_v31 }
 0x305   :  { %5603 = vmatprep.subr.bf16.mxu1 %v6872_v14 }
 0x308   :  { %5604 = vmatpush1.bf16.msra.mxu1 %v6870_v46 }
 0x309   :  { %5605 = vmatprep.subr.bf16.mxu1 %v6875_v55 }
 0x30c   :  { %5606 = vmatpush2.bf16.msra.mxu1 %v6873_v38 }
 0x30d   :  { %5607 = vmatprep.subr.bf16.mxu1 %v6878_v26 }
 0x310   :  { %5608 = vmatpush2.bf16.msra.mxu1 %v6876_v27 }
 0x311   :  { %5609 = vmatprep.subr.bf16.mxu1 %v6881_v20 }
 0x314   :  { %5610 = vmatpush2.bf16.msra.mxu1 %v6879_v29 }
 0x315   :  { %5611 = vmatprep.subr.bf16.mxu1 %v6884_v34  ;;  %v3493_v34 = vrot.slane %v9299_v18, %v451_v5 }
 0x318   :  { %5612 = vmatpush2.bf16.msra.mxu1 %v6882_v39 }
 0x319   :  { %5613 = vmatprep.subr.bf16.mxu1 %v6887_v59 }
 0x31c   :  { %5614 = vmatpush2.bf16.msra.mxu1 %v6885_v43 }
 0x31d   :  { %5615 = vmatprep.subr.bf16.mxu1 %v6890_v28 }
 0x320   :  { %5616 = vmatpush2.bf16.msra.mxu1 %v6888_v4 }
 0x321   :  { %5617 = vmatprep.subr.bf16.mxu1 %v6893_v21  ;;  %v5214_v21 = vld [vmem:[%s9358_s6] sm:$0x3] }
 0x322   :  { %v4984_v26 = vpop.f32.mrf.mxu0 }
 0x323   :  { %v4985_v22 = vadd.f32 %v4984_v26, %v3489_v36 }
 0x324   :  { %5618 = vmatpush2.bf16.msra.mxu1 %v6891_v0  ;;  %v4986_v16 = vpop.f32.mrf.mxu0  ;;  %v5219_v0 = vrot.slane %v5214_v21, %v7793_v32 }
 0x325   :  { %5619 = vmatprep.subr.bf16.mxu1 %v6896_v51  ;;  %v4987_v59 = vadd.f32 %v4986_v16, %v3493_v34 }
 0x326   :  { %v4988_v27 = vpop.f32.mrf.mxu0 }
 0x327   :  { %v4989_v23 = vadd.f32 %v4988_v27, %v3489_v36 }
 0x328   :  { %5620 = vmatpush2.bf16.msra.mxu1 %v6894_v41  ;;  %v4990_v54 = vpop.f32.mrf.mxu0  ;;  %v5644_v41 = vld [vmem:[%s9359_s7] sm:$0x3] }
 0x329   :  { %v4991_v45 = vadd.f32 %v4990_v54, %v3493_v34  ;;  %v5649_v16 = vrot.slane %v5644_v41, %v7793_v32  ;;  %v5653_v27 = vrot.slane %v5644_v41, %v8218_v30 }
 0x32b   :  { %v4941_v1 = vpop.f32.mrf.mxu1 }
 0x32c   :  { %v4942_v50 = vadd.f32 %v4941_v1, %v4899_v62 }
 0x32d   :  { %v4943_v3 = vpop.f32.mrf.mxu1 }
 0x32e   :  { %v4944_v8 = vadd.f32 %v4943_v3, %v4901_v61  ;;  %v5130_v35 = vmul.f32 0.2, %v4942_v50  ;;  %vm5122_vm3 = vcmp.gt.f32.partialorder %v4942_v50, 0.0 }
 0x32f   :  { %v4945_v33 = vpop.f32.mrf.mxu1 }
 0x330   :  { %v4946_v24 = vadd.f32 %v4945_v33, %v4903_v15  ;;  %v5131_v6 = vmul.f32 0.2, %v4944_v8  ;;  %vm5123_vm2 = vcmp.gt.f32.partialorder %v4944_v8, 0.0  ;;  %v5138_v46 = vsel %vm5122_vm3, %v4942_v50, %v5130_v35 }
 0x331   :  { %v4947_v9 = vpop.f32.mrf.mxu1 }
 0x332   :  { %vm5126_vm1 = vcmp.gt.f32.partialorder %v4946_v24, 0.0  ;;  %v5134_v11 = vmul.f32 0.2, %v4946_v24  ;;  %v4948_v48 = vadd.f32 %v4947_v9, %v4905_v17  ;;  %v5139_v31 = vsel %vm5123_vm2, %v4944_v8, %v5131_v6 }
 0x333   :  { %v14_v17 = vstv %s9357_s8  ;;  %v5223_v6 = vrot.slane %v5214_v21, %v8218_v30 }
 0x334   :  { %vm5127_vm4 = vcmp.gt.f32.partialorder %v4948_v48, 0.0  ;;  %v5135_v13 = vmul.f32 0.2, %v4948_v48  ;;  %v5142_v10 = vsel %vm5126_vm1, %v4946_v24, %v5134_v11  ;;  %15 = vst [vmem:[#allocation2] sm:$0x1] %v14_v17 }
 0x335   :  { %v5146_v38 = vpack.c.bf16 %v5142_v10, %v5138_v46 }
 0x336   :  { %v5143_v14 = vsel %vm5127_vm4, %v4948_v48, %v5135_v13 }
 0x337   :  { %v5147_v55 = vpack.c.bf16 %v5143_v14, %v5139_v31 }
 0x339   :  { %5578 = vmatprep.mubr.bf16.mxu0 %v5147_v55 }
 0x33a   :  { %5579 = vmatmul.mubr.bf16.vlgmr.msra.gmra.mxu0 %v5146_v38 }
 0x362   :  { %v5070_v37 = vpop.f32.mrf.mxu0 }
 0x364   :  { %v5072_v2 = vpop.f32.mrf.mxu0 }
 0x366   :  { %v5074_v25 = vpop.f32.mrf.mxu0 }
 0x368   :  { %v5076_v40 = vpop.f32.mrf.mxu0 }
 0x36b   :  { %v5027_v20 = vpop.f32.mrf.mxu1 }
 0x36c   :  { %v5028_v44 = vadd.f32 %v5027_v20, %v4985_v22 }
 0x36d   :  { %v5029_v29 = vpop.f32.mrf.mxu1 }
 0x36e   :  { %v5030_v43 = vadd.f32 %v5029_v29, %v4987_v59  ;;  %v5071_v5 = vadd.f32 %v5070_v37, %v5028_v44 }
 0x36f   :  { %v5031_v39 = vpop.f32.mrf.mxu1 }
 0x370   :  { %v5032_v47 = vadd.f32 %v5031_v39, %v4989_v23  ;;  %v5073_v52 = vadd.f32 %v5072_v2, %v5030_v43 }
 0x371   :  { %v5033_v42 = vpop.f32.mrf.mxu1 }
 0x372   :  { %v5034_v56 = vadd.f32 %v5033_v42, %v4991_v45  ;;  %v5075_v12 = vadd.f32 %v5074_v25, %v5032_v47  ;;  %v6405_v45 = vld [vmem:[#allocation2] ss:$0 sm:$0xff] }
 0x374   :  { %v5077_v1 = vadd.f32 %v5076_v40, %v5034_v56 }
 0x3ab   :  { %v5113_v49 = vpop.f32.mrf.mxu1 }
 0x3ac   :  { %v5114_v18 = vadd.f32 %v5113_v49, %v5071_v5 }
 0x3ad   :  { %v5115_v53 = vpop.f32.mrf.mxu1 }
 0x3ae   :  { %v5116_v19 = vadd.f32 %v5115_v53, %v5073_v52  ;;  %v5132_v63 = vmul.f32 0.2, %v5114_v18  ;;  %vm5124_vm7 = vcmp.gt.f32.partialorder %v5114_v18, 0.0 }
 0x3af   :  { %v5117_v58 = vpop.f32.mrf.mxu1 }
 0x3b0   :  { %v5118_v57 = vadd.f32 %v5117_v58, %v5075_v12  ;;  %v5133_v61 = vmul.f32 0.2, %v5116_v19  ;;  %vm5125_vm6 = vcmp.gt.f32.partialorder %v5116_v19, 0.0  ;;  %v5140_v8 = vsel %vm5124_vm7, %v5114_v18, %v5132_v63 }
 0x3b1   :  { %v5119_v60 = vpop.f32.mrf.mxu1 }
 0x3b2   :  { %vm5128_vm5 = vcmp.gt.f32.partialorder %v5118_v57, 0.0  ;;  %v5136_v28 = vmul.f32 0.2, %v5118_v57  ;;  %v5120_v62 = vadd.f32 %v5119_v60, %v5077_v1  ;;  %v5141_v7 = vsel %vm5125_vm6, %v5116_v19, %v5133_v61 }
 0x3b4   :  { %vm5129_vm8 = vcmp.gt.f32.partialorder %v5120_v62, 0.0  ;;  %v5137_v3 = vmul.f32 0.2, %v5120_v62  ;;  %v5144_v4 = vsel %vm5128_vm5, %v5118_v57, %v5136_v28 }
 0x3b5   :  { %v5148_v33 = vpack.c.bf16 %v5144_v4, %v5140_v8 }
 0x3b6   :  { %v5145_v15 = vsel %vm5129_vm8, %v5120_v62, %v5137_v3 }
 0x3b7   :  { %v5149_v50 = vpack.c.bf16 %v5145_v15, %v5141_v7 }
 0x3b9   :  { %5621 = vmatprep.mubr.bf16.mxu1 %v5149_v50 }
 0x3ba   :  { %5622 = vmatmul.mubr.bf16.vlgmr.msra.gmra.mxu1 %v5148_v33 }
 0x3fa   :  { %v5580_v24 = vpop.f32.mrf.mxu0 }
 0x3fb   :  { %v5581_v48 = vadd.f32 %v5580_v24, %v5219_v0 }
 0x3fc   :  { %v5582_v9 = vpop.f32.mrf.mxu0 }
 0x3fd   :  { %v5583_v13 = vadd.f32 %v5582_v9, %v5223_v6 }
 0x3fe   :  { %v5584_v11 = vpop.f32.mrf.mxu0 }
 0x3ff   :  { %v5585_v14 = vadd.f32 %v5584_v11, %v5219_v0 }
 0x400   :  { %v5586_v51 = vpop.f32.mrf.mxu0 }
 0x401   :  { %v5587_v38 = vadd.f32 %v5586_v51, %v5223_v6 }
 0x47a   :  { %v5623_v35 = vpop.f32.mrf.mxu1 }
 0x47b   :  { %v5624_v10 = vadd.f32 %v5623_v35, %v5581_v48 }
 0x47c   :  { %v5625_v31 = vpop.f32.mrf.mxu1 }
 0x47d   :  { %vm5632_vm9 = vcmp.gt.f32.partialorder %v5624_v10, 0.0  ;;  %v5636_v46 = vmul.f32 0.2, %v5624_v10  ;;  %v5626_v55 = vadd.f32 %v5625_v31, %v5583_v13 }
 0x47e   :  { %v5627_v26 = vpop.f32.mrf.mxu1 }
 0x47f   :  { %vm5633_vm10 = vcmp.gt.f32.partialorder %v5626_v55, 0.0  ;;  %v5637_v20 = vmul.f32 0.2, %v5626_v55  ;;  %v5628_v54 = vadd.f32 %v5627_v26, %v5585_v14  ;;  %v5640_v29 = vsel %vm5632_vm9, %v5624_v10, %v5636_v46 }
 0x480   :  { %v5629_v34 = vpop.f32.mrf.mxu1  ;;  %v5656_v59 = vmul.f32 %v5649_v16, %v5640_v29 }
 0x481   :  { %vm5634_vm11 = vcmp.gt.f32.partialorder %v5628_v54, 0.0  ;;  %v5638_v36 = vmul.f32 0.2, %v5628_v54  ;;  %v5630_v37 = vadd.f32 %v5629_v34, %v5587_v38  ;;  %v5641_v39 = vsel %vm5633_vm10, %v5626_v55, %v5637_v20 }
 0x482   :  { %v5657_v22 = vmul.f32 %v5653_v27, %v5641_v39 }
 0x483   :  { %vm5635_vm12 = vcmp.gt.f32.partialorder %v5630_v37, 0.0  ;;  %v5639_v2 = vmul.f32 0.2, %v5630_v37  ;;  %v5642_v23 = vsel %vm5634_vm11, %v5628_v54, %v5638_v36 }
 0x484   :  { %v5660_v43 = vadd.f32 %v5657_v22, %v5656_v59  ;;  %v5658_v32 = vmul.f32 %v5649_v16, %v5642_v23 }
 0x485   :  { %v5643_v44 = vsel %vm5635_vm12, %v5630_v37, %v5639_v2 }
 0x486   :  { %5661 = vadd.xlane.f32.xlu0 %v5660_v43  ;;  %v5659_v42 = vmul.f32 %v5653_v27, %v5643_v44 }
 0x488   :  { %v5663_v30 = vadd.f32 %v5659_v42, %v5658_v32 }
 0x48a   :  { %5664 = vadd.xlane.f32.xlu0 %v5663_v30 }
 0x50f   :  { %v5662_v47 = vpop.xlane.xlu0 %5661 }
 0x510   :  { %v5673_v25 = vadd.f32 %v6405_v45, %v5662_v47 }
 0x512   :  { %5676 = vst.msk [vmem:[%s9360_s9] sm:$0xff] %vm5675_vm13, %v5673_v25 }
 0x513   :  { %v5665_v49 = vpop.xlane.xlu0 %5664 }
 0x514   :  { %v5674_v56 = vadd.f32 %v6405_v45, %v5665_v49 }
 0x516   :  { %5677 = vst.msk [vmem:[%s9360_s9 + $0x8] sm:$0xff] %vm5675_vm13, %v5674_v56 }

</bundles_post_ra>
